<compile_context>
chip_gen: v5e
topology: v5e:2x2
jax: 0.10.0
libtpu: 0.0.40
codegen_flags: <defaults>
</compile_context>

<pallas_src>
import math
import functools

import jax
import jax.numpy as jnp
from jax import lax
from jax.experimental import pallas as pl
from jax.experimental.pallas import tpu as pltpu

LN_EPS = 1e-7  # DeBERTa layernorm eps


# ----------------------------- in-kernel helpers (values, not refs) -----------------------------

def _layer_norm(x, g, b):
    mu = jnp.mean(x, axis=-1, keepdims=True)
    xc = x - mu
    var = jnp.mean(xc * xc, axis=-1, keepdims=True)
    return xc * lax.rsqrt(var + LN_EPS) * g + b


def _gelu_tanh(y):
    c = 0.7978845608028654  # sqrt(2/pi)
    return 0.5 * y * (1.0 + jnp.tanh(c * (y + 0.044715 * y * y * y)))


# ----------------------------- fused forward kernel -----------------------------

def fused_lm_kernel(n_heads,
                    emb_ref, mask_ref,
                    emb_ln_g_ref, emb_ln_b_ref,
                    wqkv_ref, bqkv_ref, wo_ref, bo_ref,
                    ln1_g_ref, ln1_b_ref,
                    w1_ref, b1_ref, w2_ref, b2_ref,
                    ln2_g_ref, ln2_b_ref,
                    fc_w_ref, fc_b_ref,
                    out_ref):
    B, S = mask_ref.shape
    BS, H = emb_ref.shape
    L = wqkv_ref.shape[0]
    Dh = H // n_heads
    scale = 1.0 / math.sqrt(Dh)
    FC_OUT = fc_w_ref.shape[1]

    # ---- embedding LayerNorm ----
    h = _layer_norm(emb_ref[...], emb_ln_g_ref[...], emb_ln_b_ref[...])  # (BS, H)

    # ---- encoder layers (static unrolled loop, weights resident in VMEM) ----
    for l in range(L):
        wqkv = wqkv_ref[l]          # (H, 3H)
        bqkv = bqkv_ref[l]          # (1, 3H)
        wo = wo_ref[l]              # (H, H)
        bo = bo_ref[l]              # (1, H)

        # fused Q/K/V projection: one MXU pass with N = 3H
        qkv = jnp.dot(h, wqkv, preferred_element_type=jnp.float32) + bqkv  # (BS, 3H)

        # attention + output projection folded per (batch, head)
        ao_parts = []
        for b in range(B):
            bias_b = mask_ref[b:b + 1, :]              # (1, S) additive bias
            r0 = b * S
            ao_b = jnp.zeros((S, H), jnp.float32)
            for hh in range(n_heads):
                c0 = hh * Dh
                q = qkv[r0:r0 + S, c0:c0 + Dh]                     # (S, Dh)
                k = qkv[r0:r0 + S, H + c0:H + c0 + Dh]             # (S, Dh)
                v = qkv[r0:r0 + S, 2 * H + c0:2 * H + c0 + Dh]     # (S, Dh)

                # contract last dims directly (no explicit transpose)
                s = lax.dot_general(q, k, (((1,), (1,)), ((), ())),
                                    preferred_element_type=jnp.float32) * scale
                s = s + bias_b                                     # (S, S)

                m = jnp.max(s, axis=-1, keepdims=True)
                e = jnp.exp(s - m)
                denom = jnp.sum(e, axis=-1, keepdims=True)         # >= 1
                p = e * pl.reciprocal(denom, approx=True)

                ctx = jnp.dot(p, v, preferred_element_type=jnp.float32)  # (S, Dh)
                # fold the per-head slice of the output projection into the loop
                ao_b = ao_b + jnp.dot(ctx, wo[c0:c0 + Dh, :],
                                      preferred_element_type=jnp.float32)  # (S, H)
            ao_parts.append(ao_b)

        ao = jnp.concatenate(ao_parts, axis=0) + bo                 # (BS, H)

        # residual + LayerNorm 1
        h = _layer_norm(ao + h, ln1_g_ref[l], ln1_b_ref[l])

        # fused FFN: matmul + GELU + matmul, intermediate stays in VMEM
        ff = _gelu_tanh(jnp.dot(h, w1_ref[l], preferred_element_type=jnp.float32)
                        + b1_ref[l])                                # (BS, FFN)
        ff2 = jnp.dot(ff, w2_ref[l], preferred_element_type=jnp.float32) + b2_ref[l]

        # residual + LayerNorm 2
        h = _layer_norm(ff2 + h, ln2_g_ref[l], ln2_b_ref[l])

    # ---- final fc on the flattened last_hidden_state ----
    # out[b, :] = concat_s(h[b*S + s, :]) @ fc_w + fc_b
    #           = sum_s h[b*S + s, :] @ fc_w[s*H:(s+1)*H, :] + fc_b
    fc_b = fc_b_ref[...]
    for b in range(B):
        acc = jnp.zeros((1, FC_OUT), jnp.float32)
        for s in range(S):
            row = h[b * S + s:b * S + s + 1, :]                     # (1, H)
            acc = acc + jnp.dot(row, fc_w_ref[s * H:(s + 1) * H, :],
                                preferred_element_type=jnp.float32)
        out_ref[b:b + 1, :] = acc + fc_b


# ----------------------------- wrapper -----------------------------

@functools.partial(jax.jit, static_argnames=("n_heads",))
def lm_forward(params, ids, attention_mask, n_heads):
    """LM.forward: last_hidden_state -> reshape(B, -1) -> fc (is_linear=True)."""
    B, S = ids.shape
    H = params["word_emb"].shape[1]
    FC_OUT = params["fc_w"].shape[1]

    # Embedding lookup + positional add (XLA glue), rest is one fused Pallas kernel.
    emb = jnp.take(params["word_emb"], ids, axis=0) + params["pos_emb"][None, :, :]
    emb = emb.reshape(B * S, H).astype(jnp.float32)

    # Additive mask bias (B, S): 0 for keep, -1e9 for masked.
    mask_bias = (1.0 - attention_mask.astype(jnp.float32)) * jnp.float32(-1e9)

    kern = functools.partial(fused_lm_kernel, n_heads)
    vmem = lambda: pl.BlockSpec(memory_space=pltpu.MemorySpace.VMEM)
    n_inputs = 18

    return pl.pallas_call(
        kern,
        out_shape=jax.ShapeDtypeStruct((B, FC_OUT), jnp.float32),
        in_specs=[vmem() for _ in range(n_inputs)],
        out_specs=vmem(),
    )(emb, mask_bias,
      params["emb_ln_g"], params["emb_ln_b"],
      params["wqkv"], params["bqkv"], params["wo"], params["bo"],
      params["ln1_g"], params["ln1_b"],
      params["w1"], params["b1"], params["w2"], params["b2"],
      params["ln2_g"], params["ln2_b"],
      params["fc_w"], params["fc_b"])


# ----------------------------- model params -----------------------------

def init_params(key, vocab, seq, H, n_heads, ffn, n_layers, fc_out):
    def dense(k, shape, scale=0.02):
        return (scale * jax.random.normal(k, shape)).astype(jnp.float32)

    ks = jax.random.split(key, 8)
    return {
        "word_emb": dense(ks[0], (vocab, H)),
        "pos_emb": dense(ks[1], (seq, H)),
        "emb_ln_g": jnp.ones((1, H), jnp.float32),
        "emb_ln_b": jnp.zeros((1, H), jnp.float32),
        # per-layer weights stacked along a leading L axis (statically indexed in-kernel)
        "wqkv": dense(ks[2], (n_layers, H, 3 * H)),
        "bqkv": jnp.zeros((n_layers, 1, 3 * H), jnp.float32),
        "wo": dense(ks[3], (n_layers, H, H)),
        "bo": jnp.zeros((n_layers, 1, H), jnp.float32),
        "ln1_g": jnp.ones((n_layers, 1, H), jnp.float32),
        "ln1_b": jnp.zeros((n_layers, 1, H), jnp.float32),
        "w1": dense(ks[4], (n_layers, H, ffn)),
        "b1": jnp.zeros((n_layers, 1, ffn), jnp.float32),
        "w2": dense(ks[5], (n_layers, ffn, H)),
        "b2": jnp.zeros((n_layers, 1, H), jnp.float32),
        "ln2_g": jnp.ones((n_layers, 1, H), jnp.float32),
        "ln2_b": jnp.zeros((n_layers, 1, H), jnp.float32),
        "fc_w": dense(ks[6], (seq * H, fc_out)),
        "fc_b": jnp.zeros((1, fc_out), jnp.float32),
    }


# ----------------------------- main -----------------------------

if __name__ == "__main__":
    # Small shapes consistent with the module's forward
    # (deberta-base would be H=768, 12 layers, 12 heads, state_dim=32).
    B, S, H, NH, FFN, L, VOCAB, FC_OUT = 2, 8, 128, 4, 512, 2, 64, 512

    root = jax.random.PRNGKey(0)
    k_param, k_ids = jax.random.split(root)

    params = init_params(k_param, VOCAB, S, H, NH, FFN, L, FC_OUT)
    ids = jax.random.randint(k_ids, (B, S), 0, VOCAB, dtype=jnp.int32)
    attention_mask = jnp.ones((B, S), jnp.int32).at[1, -2:].set(0)

    out = lm_forward(params, ids, attention_mask, n_heads=NH)
    out = jax.block_until_ready(out)

    assert out.shape == (B, FC_OUT), out.shape
    assert bool(jnp.all(jnp.isfinite(out)))
    print("KERNEL_OK")
</pallas_src>

<mosaic_0001>
module attributes {stable_mosaic.version = 11 : i64} {
  func.func @fused_lm_kernel(%arg0: memref<16x128xf32, #tpu.memory_space<vmem>>, %arg1: memref<2x8xf32, #tpu.memory_space<vmem>>, %arg2: memref<1x128xf32, #tpu.memory_space<vmem>>, %arg3: memref<1x128xf32, #tpu.memory_space<vmem>>, %arg4: memref<2x128x384xf32, #tpu.memory_space<vmem>>, %arg5: memref<2x1x384xf32, #tpu.memory_space<vmem>>, %arg6: memref<2x128x128xf32, #tpu.memory_space<vmem>>, %arg7: memref<2x1x128xf32, #tpu.memory_space<vmem>>, %arg8: memref<2x1x128xf32, #tpu.memory_space<vmem>>, %arg9: memref<2x1x128xf32, #tpu.memory_space<vmem>>, %arg10: memref<2x128x512xf32, #tpu.memory_space<vmem>>, %arg11: memref<2x1x512xf32, #tpu.memory_space<vmem>>, %arg12: memref<2x512x128xf32, #tpu.memory_space<vmem>>, %arg13: memref<2x1x128xf32, #tpu.memory_space<vmem>>, %arg14: memref<2x1x128xf32, #tpu.memory_space<vmem>>, %arg15: memref<2x1x128xf32, #tpu.memory_space<vmem>>, %arg16: memref<1024x512xf32, #tpu.memory_space<vmem>>, %arg17: memref<1x512xf32, #tpu.memory_space<vmem>>, %arg18: memref<2x512xf32, #tpu.memory_space<vmem>>) attributes {dimension_semantics = [], scalar_prefetch = 0 : i64, scratch_operands = 0 : i64, tpu.core_type = #tpu.core_type<tc>} {
    %c0 = arith.constant 0 : index
    %c0_0 = arith.constant 0 : index
    %0 = vector.load %arg0[%c0, %c0_0] : memref<16x128xf32, #tpu.memory_space<vmem>>, vector<16x128xf32>
    %c0_1 = arith.constant 0 : index
    %c0_2 = arith.constant 0 : index
    %1 = vector.load %arg2[%c0_1, %c0_2] : memref<1x128xf32, #tpu.memory_space<vmem>>, vector<1x128xf32>
    %c0_3 = arith.constant 0 : index
    %c0_4 = arith.constant 0 : index
    %2 = vector.load %arg3[%c0_3, %c0_4] : memref<1x128xf32, #tpu.memory_space<vmem>>, vector<1x128xf32>
    %cst = arith.constant dense<0.000000e+00> : vector<16xf32>
    %3 = vector.multi_reduction <add>, %0, %cst [1] : vector<16x128xf32> to vector<16xf32>
    %4 = vector.shape_cast %3 : vector<16xf32> to vector<16x1xf32>
    %cst_5 = arith.constant 1.280000e+02 : f32
    %5 = vector.broadcast %cst_5 : f32 to vector<16x1xf32>
    %6 = arith.divf %4, %5 : vector<16x1xf32>
    %7 = vector.broadcast %6 : vector<16x1xf32> to vector<16x128xf32>
    %8 = arith.subf %0, %7 : vector<16x128xf32>
    %9 = arith.mulf %8, %8 : vector<16x128xf32>
    %cst_6 = arith.constant dense<0.000000e+00> : vector<16xf32>
    %10 = vector.multi_reduction <add>, %9, %cst_6 [1] : vector<16x128xf32> to vector<16xf32>
    %11 = vector.shape_cast %10 : vector<16xf32> to vector<16x1xf32>
    %cst_7 = arith.constant 1.280000e+02 : f32
    %12 = vector.broadcast %cst_7 : f32 to vector<16x1xf32>
    %13 = arith.divf %11, %12 : vector<16x1xf32>
    %cst_8 = arith.constant 1.000000e-07 : f32
    %14 = vector.broadcast %cst_8 : f32 to vector<16x1xf32>
    %15 = arith.addf %13, %14 : vector<16x1xf32>
    %16 = math.rsqrt %15 : vector<16x1xf32>
    %17 = vector.broadcast %16 : vector<16x1xf32> to vector<16x128xf32>
    %18 = arith.mulf %8, %17 : vector<16x128xf32>
    %19 = vector.broadcast %1 : vector<1x128xf32> to vector<16x128xf32>
    %20 = arith.mulf %18, %19 : vector<16x128xf32>
    %21 = vector.broadcast %2 : vector<1x128xf32> to vector<16x128xf32>
    %22 = arith.addf %20, %21 : vector<16x128xf32>
    %c0_9 = arith.constant 0 : index
    %c0_10 = arith.constant 0 : index
    %c0_11 = arith.constant 0 : index
    %23 = vector.load %arg4[%c0_9, %c0_10, %c0_11] : memref<2x128x384xf32, #tpu.memory_space<vmem>>, vector<1x128x384xf32>
    %24 = vector.shape_cast %23 : vector<1x128x384xf32> to vector<128x384xf32>
    %c0_12 = arith.constant 0 : index
    %c0_13 = arith.constant 0 : index
    %c0_14 = arith.constant 0 : index
    %25 = vector.load %arg5[%c0_12, %c0_13, %c0_14] : memref<2x1x384xf32, #tpu.memory_space<vmem>>, vector<1x1x384xf32>
    %26 = vector.shape_cast %25 : vector<1x1x384xf32> to vector<1x384xf32>
    %c0_15 = arith.constant 0 : index
    %c0_16 = arith.constant 0 : index
    %c0_17 = arith.constant 0 : index
    %27 = vector.load %arg6[%c0_15, %c0_16, %c0_17] : memref<2x128x128xf32, #tpu.memory_space<vmem>>, vector<1x128x128xf32>
    %28 = vector.shape_cast %27 : vector<1x128x128xf32> to vector<128x128xf32>
    %c0_18 = arith.constant 0 : index
    %c0_19 = arith.constant 0 : index
    %c0_20 = arith.constant 0 : index
    %29 = vector.load %arg7[%c0_18, %c0_19, %c0_20] : memref<2x1x128xf32, #tpu.memory_space<vmem>>, vector<1x1x128xf32>
    %30 = vector.shape_cast %29 : vector<1x1x128xf32> to vector<1x128xf32>
    %cst_21 = arith.constant dense<0.000000e+00> : vector<16x384xf32>
    %31 = tpu.matmul %22, %24, %cst_21 {dimension_numbers = #tpu.dot_dimension_numbers<[1], [0], [0], [1], [0, 0, 1, 1], [], []>} : vector<16x128xf32>, vector<128x384xf32>, vector<16x384xf32> -> vector<16x384xf32>
    %32 = vector.broadcast %26 : vector<1x384xf32> to vector<16x384xf32>
    %33 = arith.addf %31, %32 : vector<16x384xf32>
    %c0_22 = arith.constant 0 : index
    %c0_23 = arith.constant 0 : index
    %34 = vector.load %arg1[%c0_22, %c0_23] : memref<2x8xf32, #tpu.memory_space<vmem>>, vector<1x8xf32>
    %cst_24 = arith.constant 0.000000e+00 : f32
    %35 = vector.broadcast %cst_24 : f32 to vector<8x128xf32>
    %36 = vector.extract_strided_slice %33 {offsets = [0, 0], sizes = [8, 32], strides = [1, 1]} : vector<16x384xf32> to vector<8x32xf32>
    %37 = vector.extract_strided_slice %33 {offsets = [0, 128], sizes = [8, 32], strides = [1, 1]} : vector<16x384xf32> to vector<8x32xf32>
    %38 = vector.extract_strided_slice %33 {offsets = [0, 256], sizes = [8, 32], strides = [1, 1]} : vector<16x384xf32> to vector<8x32xf32>
    %cst_25 = arith.constant dense<0.000000e+00> : vector<8x8xf32>
    %39 = tpu.matmul %36, %37, %cst_25 {dimension_numbers = #tpu.dot_dimension_numbers<[1], [1], [0], [0], [0, 0, 1, 0], [], []>} : vector<8x32xf32>, vector<8x32xf32>, vector<8x8xf32> -> vector<8x8xf32>
    %cst_26 = arith.constant 0.176776692 : f32
    %40 = vector.broadcast %cst_26 : f32 to vector<8x8xf32>
    %41 = arith.mulf %39, %40 : vector<8x8xf32>
    %42 = vector.broadcast %34 : vector<1x8xf32> to vector<8x8xf32>
    %43 = arith.addf %41, %42 : vector<8x8xf32>
    %cst_27 = arith.constant dense<0xFF800000> : vector<8xf32>
    %44 = vector.multi_reduction <maximumf>, %43, %cst_27 [1] : vector<8x8xf32> to vector<8xf32>
    %45 = vector.shape_cast %44 : vector<8xf32> to vector<8x1xf32>
    %46 = vector.broadcast %45 : vector<8x1xf32> to vector<8x8xf32>
    %47 = arith.subf %43, %46 : vector<8x8xf32>
    %48 = math.exp %47 : vector<8x8xf32>
    %cst_28 = arith.constant dense<0.000000e+00> : vector<8xf32>
    %49 = vector.multi_reduction <add>, %48, %cst_28 [1] : vector<8x8xf32> to vector<8xf32>
    %50 = vector.shape_cast %49 : vector<8xf32> to vector<8x1xf32>
    %51 = tpu.reciprocal %50 {approx = true} : vector<8x1xf32> -> vector<8x1xf32>
    %52 = vector.broadcast %51 : vector<8x1xf32> to vector<8x8xf32>
    %53 = arith.mulf %48, %52 : vector<8x8xf32>
    %cst_29 = arith.constant dense<0.000000e+00> : vector<8x32xf32>
    %54 = tpu.matmul %53, %38, %cst_29 {dimension_numbers = #tpu.dot_dimension_numbers<[1], [0], [0], [1], [0, 0, 1, 1], [], []>} : vector<8x8xf32>, vector<8x32xf32>, vector<8x32xf32> -> vector<8x32xf32>
    %55 = vector.extract_strided_slice %28 {offsets = [0, 0], sizes = [32, 128], strides = [1, 1]} : vector<128x128xf32> to vector<32x128xf32>
    %cst_30 = arith.constant dense<0.000000e+00> : vector<8x128xf32>
    %56 = tpu.matmul %54, %55, %cst_30 {dimension_numbers = #tpu.dot_dimension_numbers<[1], [0], [0], [1], [0, 0, 1, 1], [], []>} : vector<8x32xf32>, vector<32x128xf32>, vector<8x128xf32> -> vector<8x128xf32>
    %57 = arith.addf %35, %56 : vector<8x128xf32>
    %58 = vector.extract_strided_slice %33 {offsets = [0, 32], sizes = [8, 32], strides = [1, 1]} : vector<16x384xf32> to vector<8x32xf32>
    %59 = vector.extract_strided_slice %33 {offsets = [0, 160], sizes = [8, 32], strides = [1, 1]} : vector<16x384xf32> to vector<8x32xf32>
    %60 = vector.extract_strided_slice %33 {offsets = [0, 288], sizes = [8, 32], strides = [1, 1]} : vector<16x384xf32> to vector<8x32xf32>
    %cst_31 = arith.constant dense<0.000000e+00> : vector<8x8xf32>
    %61 = tpu.matmul %58, %59, %cst_31 {dimension_numbers = #tpu.dot_dimension_numbers<[1], [1], [0], [0], [0, 0, 1, 0], [], []>} : vector<8x32xf32>, vector<8x32xf32>, vector<8x8xf32> -> vector<8x8xf32>
    %cst_32 = arith.constant 0.176776692 : f32
    %62 = vector.broadcast %cst_32 : f32 to vector<8x8xf32>
    %63 = arith.mulf %61, %62 : vector<8x8xf32>
    %64 = vector.broadcast %34 : vector<1x8xf32> to vector<8x8xf32>
    %65 = arith.addf %63, %64 : vector<8x8xf32>
    %cst_33 = arith.constant dense<0xFF800000> : vector<8xf32>
    %66 = vector.multi_reduction <maximumf>, %65, %cst_33 [1] : vector<8x8xf32> to vector<8xf32>
    %67 = vector.shape_cast %66 : vector<8xf32> to vector<8x1xf32>
    %68 = vector.broadcast %67 : vector<8x1xf32> to vector<8x8xf32>
    %69 = arith.subf %65, %68 : vector<8x8xf32>
    %70 = math.exp %69 : vector<8x8xf32>
    %cst_34 = arith.constant dense<0.000000e+00> : vector<8xf32>
    %71 = vector.multi_reduction <add>, %70, %cst_34 [1] : vector<8x8xf32> to vector<8xf32>
    %72 = vector.shape_cast %71 : vector<8xf32> to vector<8x1xf32>
    %73 = tpu.reciprocal %72 {approx = true} : vector<8x1xf32> -> vector<8x1xf32>
    %74 = vector.broadcast %73 : vector<8x1xf32> to vector<8x8xf32>
    %75 = arith.mulf %70, %74 : vector<8x8xf32>
    %cst_35 = arith.constant dense<0.000000e+00> : vector<8x32xf32>
    %76 = tpu.matmul %75, %60, %cst_35 {dimension_numbers = #tpu.dot_dimension_numbers<[1], [0], [0], [1], [0, 0, 1, 1], [], []>} : vector<8x8xf32>, vector<8x32xf32>, vector<8x32xf32> -> vector<8x32xf32>
    %77 = vector.extract_strided_slice %28 {offsets = [32, 0], sizes = [32, 128], strides = [1, 1]} : vector<128x128xf32> to vector<32x128xf32>
    %cst_36 = arith.constant dense<0.000000e+00> : vector<8x128xf32>
    %78 = tpu.matmul %76, %77, %cst_36 {dimension_numbers = #tpu.dot_dimension_numbers<[1], [0], [0], [1], [0, 0, 1, 1], [], []>} : vector<8x32xf32>, vector<32x128xf32>, vector<8x128xf32> -> vector<8x128xf32>
    %79 = arith.addf %57, %78 : vector<8x128xf32>
    %80 = vector.extract_strided_slice %33 {offsets = [0, 64], sizes = [8, 32], strides = [1, 1]} : vector<16x384xf32> to vector<8x32xf32>
    %81 = vector.extract_strided_slice %33 {offsets = [0, 192], sizes = [8, 32], strides = [1, 1]} : vector<16x384xf32> to vector<8x32xf32>
    %82 = vector.extract_strided_slice %33 {offsets = [0, 320], sizes = [8, 32], strides = [1, 1]} : vector<16x384xf32> to vector<8x32xf32>
    %cst_37 = arith.constant dense<0.000000e+00> : vector<8x8xf32>
    %83 = tpu.matmul %80, %81, %cst_37 {dimension_numbers = #tpu.dot_dimension_numbers<[1], [1], [0], [0], [0, 0, 1, 0], [], []>} : vector<8x32xf32>, vector<8x32xf32>, vector<8x8xf32> -> vector<8x8xf32>
    %cst_38 = arith.constant 0.176776692 : f32
    %84 = vector.broadcast %cst_38 : f32 to vector<8x8xf32>
    %85 = arith.mulf %83, %84 : vector<8x8xf32>
    %86 = vector.broadcast %34 : vector<1x8xf32> to vector<8x8xf32>
    %87 = arith.addf %85, %86 : vector<8x8xf32>
    %cst_39 = arith.constant dense<0xFF800000> : vector<8xf32>
    %88 = vector.multi_reduction <maximumf>, %87, %cst_39 [1] : vector<8x8xf32> to vector<8xf32>
    %89 = vector.shape_cast %88 : vector<8xf32> to vector<8x1xf32>
    %90 = vector.broadcast %89 : vector<8x1xf32> to vector<8x8xf32>
    %91 = arith.subf %87, %90 : vector<8x8xf32>
    %92 = math.exp %91 : vector<8x8xf32>
    %cst_40 = arith.constant dense<0.000000e+00> : vector<8xf32>
    %93 = vector.multi_reduction <add>, %92, %cst_40 [1] : vector<8x8xf32> to vector<8xf32>
    %94 = vector.shape_cast %93 : vector<8xf32> to vector<8x1xf32>
    %95 = tpu.reciprocal %94 {approx = true} : vector<8x1xf32> -> vector<8x1xf32>
    %96 = vector.broadcast %95 : vector<8x1xf32> to vector<8x8xf32>
    %97 = arith.mulf %92, %96 : vector<8x8xf32>
    %cst_41 = arith.constant dense<0.000000e+00> : vector<8x32xf32>
    %98 = tpu.matmul %97, %82, %cst_41 {dimension_numbers = #tpu.dot_dimension_numbers<[1], [0], [0], [1], [0, 0, 1, 1], [], []>} : vector<8x8xf32>, vector<8x32xf32>, vector<8x32xf32> -> vector<8x32xf32>
    %99 = vector.extract_strided_slice %28 {offsets = [64, 0], sizes = [32, 128], strides = [1, 1]} : vector<128x128xf32> to vector<32x128xf32>
    %cst_42 = arith.constant dense<0.000000e+00> : vector<8x128xf32>
    %100 = tpu.matmul %98, %99, %cst_42 {dimension_numbers = #tpu.dot_dimension_numbers<[1], [0], [0], [1], [0, 0, 1, 1], [], []>} : vector<8x32xf32>, vector<32x128xf32>, vector<8x128xf32> -> vector<8x128xf32>
    %101 = arith.addf %79, %100 : vector<8x128xf32>
    %102 = vector.extract_strided_slice %33 {offsets = [0, 96], sizes = [8, 32], strides = [1, 1]} : vector<16x384xf32> to vector<8x32xf32>
    %103 = vector.extract_strided_slice %33 {offsets = [0, 224], sizes = [8, 32], strides = [1, 1]} : vector<16x384xf32> to vector<8x32xf32>
    %104 = vector.extract_strided_slice %33 {offsets = [0, 352], sizes = [8, 32], strides = [1, 1]} : vector<16x384xf32> to vector<8x32xf32>
    %cst_43 = arith.constant dense<0.000000e+00> : vector<8x8xf32>
    %105 = tpu.matmul %102, %103, %cst_43 {dimension_numbers = #tpu.dot_dimension_numbers<[1], [1], [0], [0], [0, 0, 1, 0], [], []>} : vector<8x32xf32>, vector<8x32xf32>, vector<8x8xf32> -> vector<8x8xf32>
    %cst_44 = arith.constant 0.176776692 : f32
    %106 = vector.broadcast %cst_44 : f32 to vector<8x8xf32>
    %107 = arith.mulf %105, %106 : vector<8x8xf32>
    %108 = vector.broadcast %34 : vector<1x8xf32> to vector<8x8xf32>
    %109 = arith.addf %107, %108 : vector<8x8xf32>
    %cst_45 = arith.constant dense<0xFF800000> : vector<8xf32>
    %110 = vector.multi_reduction <maximumf>, %109, %cst_45 [1] : vector<8x8xf32> to vector<8xf32>
    %111 = vector.shape_cast %110 : vector<8xf32> to vector<8x1xf32>
    %112 = vector.broadcast %111 : vector<8x1xf32> to vector<8x8xf32>
    %113 = arith.subf %109, %112 : vector<8x8xf32>
    %114 = math.exp %113 : vector<8x8xf32>
    %cst_46 = arith.constant dense<0.000000e+00> : vector<8xf32>
    %115 = vector.multi_reduction <add>, %114, %cst_46 [1] : vector<8x8xf32> to vector<8xf32>
    %116 = vector.shape_cast %115 : vector<8xf32> to vector<8x1xf32>
    %117 = tpu.reciprocal %116 {approx = true} : vector<8x1xf32> -> vector<8x1xf32>
    %118 = vector.broadcast %117 : vector<8x1xf32> to vector<8x8xf32>
    %119 = arith.mulf %114, %118 : vector<8x8xf32>
    %cst_47 = arith.constant dense<0.000000e+00> : vector<8x32xf32>
    %120 = tpu.matmul %119, %104, %cst_47 {dimension_numbers = #tpu.dot_dimension_numbers<[1], [0], [0], [1], [0, 0, 1, 1], [], []>} : vector<8x8xf32>, vector<8x32xf32>, vector<8x32xf32> -> vector<8x32xf32>
    %121 = vector.extract_strided_slice %28 {offsets = [96, 0], sizes = [32, 128], strides = [1, 1]} : vector<128x128xf32> to vector<32x128xf32>
    %cst_48 = arith.constant dense<0.000000e+00> : vector<8x128xf32>
    %122 = tpu.matmul %120, %121, %cst_48 {dimension_numbers = #tpu.dot_dimension_numbers<[1], [0], [0], [1], [0, 0, 1, 1], [], []>} : vector<8x32xf32>, vector<32x128xf32>, vector<8x128xf32> -> vector<8x128xf32>
    %123 = arith.addf %101, %122 : vector<8x128xf32>
    %c1 = arith.constant 1 : index
    %c0_49 = arith.constant 0 : index
    %124 = vector.load %arg1[%c1, %c0_49] : memref<2x8xf32, #tpu.memory_space<vmem>>, vector<1x8xf32>
    %cst_50 = arith.constant 0.000000e+00 : f32
    %125 = vector.broadcast %cst_50 : f32 to vector<8x128xf32>
    %126 = vector.extract_strided_slice %33 {offsets = [8, 0], sizes = [8, 32], strides = [1, 1]} : vector<16x384xf32> to vector<8x32xf32>
    %127 = vector.extract_strided_slice %33 {offsets = [8, 128], sizes = [8, 32], strides = [1, 1]} : vector<16x384xf32> to vector<8x32xf32>
    %128 = vector.extract_strided_slice %33 {offsets = [8, 256], sizes = [8, 32], strides = [1, 1]} : vector<16x384xf32> to vector<8x32xf32>
    %cst_51 = arith.constant dense<0.000000e+00> : vector<8x8xf32>
    %129 = tpu.matmul %126, %127, %cst_51 {dimension_numbers = #tpu.dot_dimension_numbers<[1], [1], [0], [0], [0, 0, 1, 0], [], []>} : vector<8x32xf32>, vector<8x32xf32>, vector<8x8xf32> -> vector<8x8xf32>
    %cst_52 = arith.constant 0.176776692 : f32
    %130 = vector.broadcast %cst_52 : f32 to vector<8x8xf32>
    %131 = arith.mulf %129, %130 : vector<8x8xf32>
    %132 = vector.broadcast %124 : vector<1x8xf32> to vector<8x8xf32>
    %133 = arith.addf %131, %132 : vector<8x8xf32>
    %cst_53 = arith.constant dense<0xFF800000> : vector<8xf32>
    %134 = vector.multi_reduction <maximumf>, %133, %cst_53 [1] : vector<8x8xf32> to vector<8xf32>
    %135 = vector.shape_cast %134 : vector<8xf32> to vector<8x1xf32>
    %136 = vector.broadcast %135 : vector<8x1xf32> to vector<8x8xf32>
    %137 = arith.subf %133, %136 : vector<8x8xf32>
    %138 = math.exp %137 : vector<8x8xf32>
    %cst_54 = arith.constant dense<0.000000e+00> : vector<8xf32>
    %139 = vector.multi_reduction <add>, %138, %cst_54 [1] : vector<8x8xf32> to vector<8xf32>
    %140 = vector.shape_cast %139 : vector<8xf32> to vector<8x1xf32>
    %141 = tpu.reciprocal %140 {approx = true} : vector<8x1xf32> -> vector<8x1xf32>
    %142 = vector.broadcast %141 : vector<8x1xf32> to vector<8x8xf32>
    %143 = arith.mulf %138, %142 : vector<8x8xf32>
    %cst_55 = arith.constant dense<0.000000e+00> : vector<8x32xf32>
    %144 = tpu.matmul %143, %128, %cst_55 {dimension_numbers = #tpu.dot_dimension_numbers<[1], [0], [0], [1], [0, 0, 1, 1], [], []>} : vector<8x8xf32>, vector<8x32xf32>, vector<8x32xf32> -> vector<8x32xf32>
    %145 = vector.extract_strided_slice %28 {offsets = [0, 0], sizes = [32, 128], strides = [1, 1]} : vector<128x128xf32> to vector<32x128xf32>
    %cst_56 = arith.constant dense<0.000000e+00> : vector<8x128xf32>
    %146 = tpu.matmul %144, %145, %cst_56 {dimension_numbers = #tpu.dot_dimension_numbers<[1], [0], [0], [1], [0, 0, 1, 1], [], []>} : vector<8x32xf32>, vector<32x128xf32>, vector<8x128xf32> -> vector<8x128xf32>
    %147 = arith.addf %125, %146 : vector<8x128xf32>
    %148 = vector.extract_strided_slice %33 {offsets = [8, 32], sizes = [8, 32], strides = [1, 1]} : vector<16x384xf32> to vector<8x32xf32>
    %149 = vector.extract_strided_slice %33 {offsets = [8, 160], sizes = [8, 32], strides = [1, 1]} : vector<16x384xf32> to vector<8x32xf32>
    %150 = vector.extract_strided_slice %33 {offsets = [8, 288], sizes = [8, 32], strides = [1, 1]} : vector<16x384xf32> to vector<8x32xf32>
    %cst_57 = arith.constant dense<0.000000e+00> : vector<8x8xf32>
    %151 = tpu.matmul %148, %149, %cst_57 {dimension_numbers = #tpu.dot_dimension_numbers<[1], [1], [0], [0], [0, 0, 1, 0], [], []>} : vector<8x32xf32>, vector<8x32xf32>, vector<8x8xf32> -> vector<8x8xf32>
    %cst_58 = arith.constant 0.176776692 : f32
    %152 = vector.broadcast %cst_58 : f32 to vector<8x8xf32>
    %153 = arith.mulf %151, %152 : vector<8x8xf32>
    %154 = vector.broadcast %124 : vector<1x8xf32> to vector<8x8xf32>
    %155 = arith.addf %153, %154 : vector<8x8xf32>
    %cst_59 = arith.constant dense<0xFF800000> : vector<8xf32>
    %156 = vector.multi_reduction <maximumf>, %155, %cst_59 [1] : vector<8x8xf32> to vector<8xf32>
    %157 = vector.shape_cast %156 : vector<8xf32> to vector<8x1xf32>
    %158 = vector.broadcast %157 : vector<8x1xf32> to vector<8x8xf32>
    %159 = arith.subf %155, %158 : vector<8x8xf32>
    %160 = math.exp %159 : vector<8x8xf32>
    %cst_60 = arith.constant dense<0.000000e+00> : vector<8xf32>
    %161 = vector.multi_reduction <add>, %160, %cst_60 [1] : vector<8x8xf32> to vector<8xf32>
    %162 = vector.shape_cast %161 : vector<8xf32> to vector<8x1xf32>
    %163 = tpu.reciprocal %162 {approx = true} : vector<8x1xf32> -> vector<8x1xf32>
    %164 = vector.broadcast %163 : vector<8x1xf32> to vector<8x8xf32>
    %165 = arith.mulf %160, %164 : vector<8x8xf32>
    %cst_61 = arith.constant dense<0.000000e+00> : vector<8x32xf32>
    %166 = tpu.matmul %165, %150, %cst_61 {dimension_numbers = #tpu.dot_dimension_numbers<[1], [0], [0], [1], [0, 0, 1, 1], [], []>} : vector<8x8xf32>, vector<8x32xf32>, vector<8x32xf32> -> vector<8x32xf32>
    %167 = vector.extract_strided_slice %28 {offsets = [32, 0], sizes = [32, 128], strides = [1, 1]} : vector<128x128xf32> to vector<32x128xf32>
    %cst_62 = arith.constant dense<0.000000e+00> : vector<8x128xf32>
    %168 = tpu.matmul %166, %167, %cst_62 {dimension_numbers = #tpu.dot_dimension_numbers<[1], [0], [0], [1], [0, 0, 1, 1], [], []>} : vector<8x32xf32>, vector<32x128xf32>, vector<8x128xf32> -> vector<8x128xf32>
    %169 = arith.addf %147, %168 : vector<8x128xf32>
    %170 = vector.extract_strided_slice %33 {offsets = [8, 64], sizes = [8, 32], strides = [1, 1]} : vector<16x384xf32> to vector<8x32xf32>
    %171 = vector.extract_strided_slice %33 {offsets = [8, 192], sizes = [8, 32], strides = [1, 1]} : vector<16x384xf32> to vector<8x32xf32>
    %172 = vector.extract_strided_slice %33 {offsets = [8, 320], sizes = [8, 32], strides = [1, 1]} : vector<16x384xf32> to vector<8x32xf32>
    %cst_63 = arith.constant dense<0.000000e+00> : vector<8x8xf32>
    %173 = tpu.matmul %170, %171, %cst_63 {dimension_numbers = #tpu.dot_dimension_numbers<[1], [1], [0], [0], [0, 0, 1, 0], [], []>} : vector<8x32xf32>, vector<8x32xf32>, vector<8x8xf32> -> vector<8x8xf32>
    %cst_64 = arith.constant 0.176776692 : f32
    %174 = vector.broadcast %cst_64 : f32 to vector<8x8xf32>
    %175 = arith.mulf %173, %174 : vector<8x8xf32>
    %176 = vector.broadcast %124 : vector<1x8xf32> to vector<8x8xf32>
    %177 = arith.addf %175, %176 : vector<8x8xf32>
    %cst_65 = arith.constant dense<0xFF800000> : vector<8xf32>
    %178 = vector.multi_reduction <maximumf>, %177, %cst_65 [1] : vector<8x8xf32> to vector<8xf32>
    %179 = vector.shape_cast %178 : vector<8xf32> to vector<8x1xf32>
    %180 = vector.broadcast %179 : vector<8x1xf32> to vector<8x8xf32>
    %181 = arith.subf %177, %180 : vector<8x8xf32>
    %182 = math.exp %181 : vector<8x8xf32>
    %cst_66 = arith.constant dense<0.000000e+00> : vector<8xf32>
    %183 = vector.multi_reduction <add>, %182, %cst_66 [1] : vector<8x8xf32> to vector<8xf32>
    %184 = vector.shape_cast %183 : vector<8xf32> to vector<8x1xf32>
    %185 = tpu.reciprocal %184 {approx = true} : vector<8x1xf32> -> vector<8x1xf32>
    %186 = vector.broadcast %185 : vector<8x1xf32> to vector<8x8xf32>
    %187 = arith.mulf %182, %186 : vector<8x8xf32>
    %cst_67 = arith.constant dense<0.000000e+00> : vector<8x32xf32>
    %188 = tpu.matmul %187, %172, %cst_67 {dimension_numbers = #tpu.dot_dimension_numbers<[1], [0], [0], [1], [0, 0, 1, 1], [], []>} : vector<8x8xf32>, vector<8x32xf32>, vector<8x32xf32> -> vector<8x32xf32>
    %189 = vector.extract_strided_slice %28 {offsets = [64, 0], sizes = [32, 128], strides = [1, 1]} : vector<128x128xf32> to vector<32x128xf32>
    %cst_68 = arith.constant dense<0.000000e+00> : vector<8x128xf32>
    %190 = tpu.matmul %188, %189, %cst_68 {dimension_numbers = #tpu.dot_dimension_numbers<[1], [0], [0], [1], [0, 0, 1, 1], [], []>} : vector<8x32xf32>, vector<32x128xf32>, vector<8x128xf32> -> vector<8x128xf32>
    %191 = arith.addf %169, %190 : vector<8x128xf32>
    %192 = vector.extract_strided_slice %33 {offsets = [8, 96], sizes = [8, 32], strides = [1, 1]} : vector<16x384xf32> to vector<8x32xf32>
    %193 = vector.extract_strided_slice %33 {offsets = [8, 224], sizes = [8, 32], strides = [1, 1]} : vector<16x384xf32> to vector<8x32xf32>
    %194 = vector.extract_strided_slice %33 {offsets = [8, 352], sizes = [8, 32], strides = [1, 1]} : vector<16x384xf32> to vector<8x32xf32>
    %cst_69 = arith.constant dense<0.000000e+00> : vector<8x8xf32>
    %195 = tpu.matmul %192, %193, %cst_69 {dimension_numbers = #tpu.dot_dimension_numbers<[1], [1], [0], [0], [0, 0, 1, 0], [], []>} : vector<8x32xf32>, vector<8x32xf32>, vector<8x8xf32> -> vector<8x8xf32>
    %cst_70 = arith.constant 0.176776692 : f32
    %196 = vector.broadcast %cst_70 : f32 to vector<8x8xf32>
    %197 = arith.mulf %195, %196 : vector<8x8xf32>
    %198 = vector.broadcast %124 : vector<1x8xf32> to vector<8x8xf32>
    %199 = arith.addf %197, %198 : vector<8x8xf32>
    %cst_71 = arith.constant dense<0xFF800000> : vector<8xf32>
    %200 = vector.multi_reduction <maximumf>, %199, %cst_71 [1] : vector<8x8xf32> to vector<8xf32>
    %201 = vector.shape_cast %200 : vector<8xf32> to vector<8x1xf32>
    %202 = vector.broadcast %201 : vector<8x1xf32> to vector<8x8xf32>
    %203 = arith.subf %199, %202 : vector<8x8xf32>
    %204 = math.exp %203 : vector<8x8xf32>
    %cst_72 = arith.constant dense<0.000000e+00> : vector<8xf32>
    %205 = vector.multi_reduction <add>, %204, %cst_72 [1] : vector<8x8xf32> to vector<8xf32>
    %206 = vector.shape_cast %205 : vector<8xf32> to vector<8x1xf32>
    %207 = tpu.reciprocal %206 {approx = true} : vector<8x1xf32> -> vector<8x1xf32>
    %208 = vector.broadcast %207 : vector<8x1xf32> to vector<8x8xf32>
    %209 = arith.mulf %204, %208 : vector<8x8xf32>
    %cst_73 = arith.constant dense<0.000000e+00> : vector<8x32xf32>
    %210 = tpu.matmul %209, %194, %cst_73 {dimension_numbers = #tpu.dot_dimension_numbers<[1], [0], [0], [1], [0, 0, 1, 1], [], []>} : vector<8x8xf32>, vector<8x32xf32>, vector<8x32xf32> -> vector<8x32xf32>
    %211 = vector.extract_strided_slice %28 {offsets = [96, 0], sizes = [32, 128], strides = [1, 1]} : vector<128x128xf32> to vector<32x128xf32>
    %cst_74 = arith.constant dense<0.000000e+00> : vector<8x128xf32>
    %212 = tpu.matmul %210, %211, %cst_74 {dimension_numbers = #tpu.dot_dimension_numbers<[1], [0], [0], [1], [0, 0, 1, 1], [], []>} : vector<8x32xf32>, vector<32x128xf32>, vector<8x128xf32> -> vector<8x128xf32>
    %213 = arith.addf %191, %212 : vector<8x128xf32>
    %214 = tpu.concatenate %123, %213 in 0 : vector<8x128xf32>, vector<8x128xf32> -> vector<16x128xf32>
    %215 = vector.broadcast %30 : vector<1x128xf32> to vector<16x128xf32>
    %216 = arith.addf %214, %215 : vector<16x128xf32>
    %217 = arith.addf %216, %22 : vector<16x128xf32>
    %c0_75 = arith.constant 0 : index
    %c0_76 = arith.constant 0 : index
    %c0_77 = arith.constant 0 : index
    %218 = vector.load %arg8[%c0_75, %c0_76, %c0_77] : memref<2x1x128xf32, #tpu.memory_space<vmem>>, vector<1x1x128xf32>
    %219 = vector.shape_cast %218 : vector<1x1x128xf32> to vector<1x128xf32>
    %c0_78 = arith.constant 0 : index
    %c0_79 = arith.constant 0 : index
    %c0_80 = arith.constant 0 : index
    %220 = vector.load %arg9[%c0_78, %c0_79, %c0_80] : memref<2x1x128xf32, #tpu.memory_space<vmem>>, vector<1x1x128xf32>
    %221 = vector.shape_cast %220 : vector<1x1x128xf32> to vector<1x128xf32>
    %cst_81 = arith.constant dense<0.000000e+00> : vector<16xf32>
    %222 = vector.multi_reduction <add>, %217, %cst_81 [1] : vector<16x128xf32> to vector<16xf32>
    %223 = vector.shape_cast %222 : vector<16xf32> to vector<16x1xf32>
    %cst_82 = arith.constant 1.280000e+02 : f32
    %224 = vector.broadcast %cst_82 : f32 to vector<16x1xf32>
    %225 = arith.divf %223, %224 : vector<16x1xf32>
    %226 = vector.broadcast %225 : vector<16x1xf32> to vector<16x128xf32>
    %227 = arith.subf %217, %226 : vector<16x128xf32>
    %228 = arith.mulf %227, %227 : vector<16x128xf32>
    %cst_83 = arith.constant dense<0.000000e+00> : vector<16xf32>
    %229 = vector.multi_reduction <add>, %228, %cst_83 [1] : vector<16x128xf32> to vector<16xf32>
    %230 = vector.shape_cast %229 : vector<16xf32> to vector<16x1xf32>
    %cst_84 = arith.constant 1.280000e+02 : f32
    %231 = vector.broadcast %cst_84 : f32 to vector<16x1xf32>
    %232 = arith.divf %230, %231 : vector<16x1xf32>
    %cst_85 = arith.constant 1.000000e-07 : f32
    %233 = vector.broadcast %cst_85 : f32 to vector<16x1xf32>
    %234 = arith.addf %232, %233 : vector<16x1xf32>
    %235 = math.rsqrt %234 : vector<16x1xf32>
    %236 = vector.broadcast %235 : vector<16x1xf32> to vector<16x128xf32>
    %237 = arith.mulf %227, %236 : vector<16x128xf32>
    %238 = vector.broadcast %219 : vector<1x128xf32> to vector<16x128xf32>
    %239 = arith.mulf %237, %238 : vector<16x128xf32>
    %240 = vector.broadcast %221 : vector<1x128xf32> to vector<16x128xf32>
    %241 = arith.addf %239, %240 : vector<16x128xf32>
    %c0_86 = arith.constant 0 : index
    %c0_87 = arith.constant 0 : index
    %c0_88 = arith.constant 0 : index
    %242 = vector.load %arg10[%c0_86, %c0_87, %c0_88] : memref<2x128x512xf32, #tpu.memory_space<vmem>>, vector<1x128x512xf32>
    %243 = vector.shape_cast %242 : vector<1x128x512xf32> to vector<128x512xf32>
    %cst_89 = arith.constant dense<0.000000e+00> : vector<16x512xf32>
    %244 = tpu.matmul %241, %243, %cst_89 {dimension_numbers = #tpu.dot_dimension_numbers<[1], [0], [0], [1], [0, 0, 1, 1], [], []>} : vector<16x128xf32>, vector<128x512xf32>, vector<16x512xf32> -> vector<16x512xf32>
    %c0_90 = arith.constant 0 : index
    %c0_91 = arith.constant 0 : index
    %c0_92 = arith.constant 0 : index
    %245 = vector.load %arg11[%c0_90, %c0_91, %c0_92] : memref<2x1x512xf32, #tpu.memory_space<vmem>>, vector<1x1x512xf32>
    %246 = vector.shape_cast %245 : vector<1x1x512xf32> to vector<1x512xf32>
    %247 = vector.broadcast %246 : vector<1x512xf32> to vector<16x512xf32>
    %248 = arith.addf %244, %247 : vector<16x512xf32>
    %cst_93 = arith.constant 5.000000e-01 : f32
    %249 = vector.broadcast %cst_93 : f32 to vector<16x512xf32>
    %250 = arith.mulf %249, %248 : vector<16x512xf32>
    %cst_94 = arith.constant 4.471500e-02 : f32
    %251 = vector.broadcast %cst_94 : f32 to vector<16x512xf32>
    %252 = arith.mulf %251, %248 : vector<16x512xf32>
    %253 = arith.mulf %252, %248 : vector<16x512xf32>
    %254 = arith.mulf %253, %248 : vector<16x512xf32>
    %255 = arith.addf %248, %254 : vector<16x512xf32>
    %cst_95 = arith.constant 0.797884583 : f32
    %256 = vector.broadcast %cst_95 : f32 to vector<16x512xf32>
    %257 = arith.mulf %256, %255 : vector<16x512xf32>
    %258 = math.tanh %257 : vector<16x512xf32>
    %cst_96 = arith.constant 1.000000e+00 : f32
    %259 = vector.broadcast %cst_96 : f32 to vector<16x512xf32>
    %260 = arith.addf %259, %258 : vector<16x512xf32>
    %261 = arith.mulf %250, %260 : vector<16x512xf32>
    %c0_97 = arith.constant 0 : index
    %c0_98 = arith.constant 0 : index
    %c0_99 = arith.constant 0 : index
    %262 = vector.load %arg12[%c0_97, %c0_98, %c0_99] : memref<2x512x128xf32, #tpu.memory_space<vmem>>, vector<1x512x128xf32>
    %263 = vector.shape_cast %262 : vector<1x512x128xf32> to vector<512x128xf32>
    %cst_100 = arith.constant dense<0.000000e+00> : vector<16x128xf32>
    %264 = tpu.matmul %261, %263, %cst_100 {dimension_numbers = #tpu.dot_dimension_numbers<[1], [0], [0], [1], [0, 0, 1, 1], [], []>} : vector<16x512xf32>, vector<512x128xf32>, vector<16x128xf32> -> vector<16x128xf32>
    %c0_101 = arith.constant 0 : index
    %c0_102 = arith.constant 0 : index
    %c0_103 = arith.constant 0 : index
    %265 = vector.load %arg13[%c0_101, %c0_102, %c0_103] : memref<2x1x128xf32, #tpu.memory_space<vmem>>, vector<1x1x128xf32>
    %266 = vector.shape_cast %265 : vector<1x1x128xf32> to vector<1x128xf32>
    %267 = vector.broadcast %266 : vector<1x128xf32> to vector<16x128xf32>
    %268 = arith.addf %264, %267 : vector<16x128xf32>
    %269 = arith.addf %268, %241 : vector<16x128xf32>
    %c0_104 = arith.constant 0 : index
    %c0_105 = arith.constant 0 : index
    %c0_106 = arith.constant 0 : index
    %270 = vector.load %arg14[%c0_104, %c0_105, %c0_106] : memref<2x1x128xf32, #tpu.memory_space<vmem>>, vector<1x1x128xf32>
    %271 = vector.shape_cast %270 : vector<1x1x128xf32> to vector<1x128xf32>
    %c0_107 = arith.constant 0 : index
    %c0_108 = arith.constant 0 : index
    %c0_109 = arith.constant 0 : index
    %272 = vector.load %arg15[%c0_107, %c0_108, %c0_109] : memref<2x1x128xf32, #tpu.memory_space<vmem>>, vector<1x1x128xf32>
    %273 = vector.shape_cast %272 : vector<1x1x128xf32> to vector<1x128xf32>
    %cst_110 = arith.constant dense<0.000000e+00> : vector<16xf32>
    %274 = vector.multi_reduction <add>, %269, %cst_110 [1] : vector<16x128xf32> to vector<16xf32>
    %275 = vector.shape_cast %274 : vector<16xf32> to vector<16x1xf32>
    %cst_111 = arith.constant 1.280000e+02 : f32
    %276 = vector.broadcast %cst_111 : f32 to vector<16x1xf32>
    %277 = arith.divf %275, %276 : vector<16x1xf32>
    %278 = vector.broadcast %277 : vector<16x1xf32> to vector<16x128xf32>
    %279 = arith.subf %269, %278 : vector<16x128xf32>
    %280 = arith.mulf %279, %279 : vector<16x128xf32>
    %cst_112 = arith.constant dense<0.000000e+00> : vector<16xf32>
    %281 = vector.multi_reduction <add>, %280, %cst_112 [1] : vector<16x128xf32> to vector<16xf32>
    %282 = vector.shape_cast %281 : vector<16xf32> to vector<16x1xf32>
    %cst_113 = arith.constant 1.280000e+02 : f32
    %283 = vector.broadcast %cst_113 : f32 to vector<16x1xf32>
    %284 = arith.divf %282, %283 : vector<16x1xf32>
    %cst_114 = arith.constant 1.000000e-07 : f32
    %285 = vector.broadcast %cst_114 : f32 to vector<16x1xf32>
    %286 = arith.addf %284, %285 : vector<16x1xf32>
    %287 = math.rsqrt %286 : vector<16x1xf32>
    %288 = vector.broadcast %287 : vector<16x1xf32> to vector<16x128xf32>
    %289 = arith.mulf %279, %288 : vector<16x128xf32>
    %290 = vector.broadcast %271 : vector<1x128xf32> to vector<16x128xf32>
    %291 = arith.mulf %289, %290 : vector<16x128xf32>
    %292 = vector.broadcast %273 : vector<1x128xf32> to vector<16x128xf32>
    %293 = arith.addf %291, %292 : vector<16x128xf32>
    %c1_115 = arith.constant 1 : index
    %c0_116 = arith.constant 0 : index
    %c0_117 = arith.constant 0 : index
    %294 = vector.load %arg4[%c1_115, %c0_116, %c0_117] : memref<2x128x384xf32, #tpu.memory_space<vmem>>, vector<1x128x384xf32>
    %295 = vector.shape_cast %294 : vector<1x128x384xf32> to vector<128x384xf32>
    %c1_118 = arith.constant 1 : index
    %c0_119 = arith.constant 0 : index
    %c0_120 = arith.constant 0 : index
    %296 = vector.load %arg5[%c1_118, %c0_119, %c0_120] : memref<2x1x384xf32, #tpu.memory_space<vmem>>, vector<1x1x384xf32>
    %297 = vector.shape_cast %296 : vector<1x1x384xf32> to vector<1x384xf32>
    %c1_121 = arith.constant 1 : index
    %c0_122 = arith.constant 0 : index
    %c0_123 = arith.constant 0 : index
    %298 = vector.load %arg6[%c1_121, %c0_122, %c0_123] : memref<2x128x128xf32, #tpu.memory_space<vmem>>, vector<1x128x128xf32>
    %299 = vector.shape_cast %298 : vector<1x128x128xf32> to vector<128x128xf32>
    %c1_124 = arith.constant 1 : index
    %c0_125 = arith.constant 0 : index
    %c0_126 = arith.constant 0 : index
    %300 = vector.load %arg7[%c1_124, %c0_125, %c0_126] : memref<2x1x128xf32, #tpu.memory_space<vmem>>, vector<1x1x128xf32>
    %301 = vector.shape_cast %300 : vector<1x1x128xf32> to vector<1x128xf32>
    %cst_127 = arith.constant dense<0.000000e+00> : vector<16x384xf32>
    %302 = tpu.matmul %293, %295, %cst_127 {dimension_numbers = #tpu.dot_dimension_numbers<[1], [0], [0], [1], [0, 0, 1, 1], [], []>} : vector<16x128xf32>, vector<128x384xf32>, vector<16x384xf32> -> vector<16x384xf32>
    %303 = vector.broadcast %297 : vector<1x384xf32> to vector<16x384xf32>
    %304 = arith.addf %302, %303 : vector<16x384xf32>
    %c0_128 = arith.constant 0 : index
    %c0_129 = arith.constant 0 : index
    %305 = vector.load %arg1[%c0_128, %c0_129] : memref<2x8xf32, #tpu.memory_space<vmem>>, vector<1x8xf32>
    %cst_130 = arith.constant 0.000000e+00 : f32
    %306 = vector.broadcast %cst_130 : f32 to vector<8x128xf32>
    %307 = vector.extract_strided_slice %304 {offsets = [0, 0], sizes = [8, 32], strides = [1, 1]} : vector<16x384xf32> to vector<8x32xf32>
    %308 = vector.extract_strided_slice %304 {offsets = [0, 128], sizes = [8, 32], strides = [1, 1]} : vector<16x384xf32> to vector<8x32xf32>
    %309 = vector.extract_strided_slice %304 {offsets = [0, 256], sizes = [8, 32], strides = [1, 1]} : vector<16x384xf32> to vector<8x32xf32>
    %cst_131 = arith.constant dense<0.000000e+00> : vector<8x8xf32>
    %310 = tpu.matmul %307, %308, %cst_131 {dimension_numbers = #tpu.dot_dimension_numbers<[1], [1], [0], [0], [0, 0, 1, 0], [], []>} : vector<8x32xf32>, vector<8x32xf32>, vector<8x8xf32> -> vector<8x8xf32>
    %cst_132 = arith.constant 0.176776692 : f32
    %311 = vector.broadcast %cst_132 : f32 to vector<8x8xf32>
    %312 = arith.mulf %310, %311 : vector<8x8xf32>
    %313 = vector.broadcast %305 : vector<1x8xf32> to vector<8x8xf32>
    %314 = arith.addf %312, %313 : vector<8x8xf32>
    %cst_133 = arith.constant dense<0xFF800000> : vector<8xf32>
    %315 = vector.multi_reduction <maximumf>, %314, %cst_133 [1] : vector<8x8xf32> to vector<8xf32>
    %316 = vector.shape_cast %315 : vector<8xf32> to vector<8x1xf32>
    %317 = vector.broadcast %316 : vector<8x1xf32> to vector<8x8xf32>
    %318 = arith.subf %314, %317 : vector<8x8xf32>
    %319 = math.exp %318 : vector<8x8xf32>
    %cst_134 = arith.constant dense<0.000000e+00> : vector<8xf32>
    %320 = vector.multi_reduction <add>, %319, %cst_134 [1] : vector<8x8xf32> to vector<8xf32>
    %321 = vector.shape_cast %320 : vector<8xf32> to vector<8x1xf32>
    %322 = tpu.reciprocal %321 {approx = true} : vector<8x1xf32> -> vector<8x1xf32>
    %323 = vector.broadcast %322 : vector<8x1xf32> to vector<8x8xf32>
    %324 = arith.mulf %319, %323 : vector<8x8xf32>
    %cst_135 = arith.constant dense<0.000000e+00> : vector<8x32xf32>
    %325 = tpu.matmul %324, %309, %cst_135 {dimension_numbers = #tpu.dot_dimension_numbers<[1], [0], [0], [1], [0, 0, 1, 1], [], []>} : vector<8x8xf32>, vector<8x32xf32>, vector<8x32xf32> -> vector<8x32xf32>
    %326 = vector.extract_strided_slice %299 {offsets = [0, 0], sizes = [32, 128], strides = [1, 1]} : vector<128x128xf32> to vector<32x128xf32>
    %cst_136 = arith.constant dense<0.000000e+00> : vector<8x128xf32>
    %327 = tpu.matmul %325, %326, %cst_136 {dimension_numbers = #tpu.dot_dimension_numbers<[1], [0], [0], [1], [0, 0, 1, 1], [], []>} : vector<8x32xf32>, vector<32x128xf32>, vector<8x128xf32> -> vector<8x128xf32>
    %328 = arith.addf %306, %327 : vector<8x128xf32>
    %329 = vector.extract_strided_slice %304 {offsets = [0, 32], sizes = [8, 32], strides = [1, 1]} : vector<16x384xf32> to vector<8x32xf32>
    %330 = vector.extract_strided_slice %304 {offsets = [0, 160], sizes = [8, 32], strides = [1, 1]} : vector<16x384xf32> to vector<8x32xf32>
    %331 = vector.extract_strided_slice %304 {offsets = [0, 288], sizes = [8, 32], strides = [1, 1]} : vector<16x384xf32> to vector<8x32xf32>
    %cst_137 = arith.constant dense<0.000000e+00> : vector<8x8xf32>
    %332 = tpu.matmul %329, %330, %cst_137 {dimension_numbers = #tpu.dot_dimension_numbers<[1], [1], [0], [0], [0, 0, 1, 0], [], []>} : vector<8x32xf32>, vector<8x32xf32>, vector<8x8xf32> -> vector<8x8xf32>
    %cst_138 = arith.constant 0.176776692 : f32
    %333 = vector.broadcast %cst_138 : f32 to vector<8x8xf32>
    %334 = arith.mulf %332, %333 : vector<8x8xf32>
    %335 = vector.broadcast %305 : vector<1x8xf32> to vector<8x8xf32>
    %336 = arith.addf %334, %335 : vector<8x8xf32>
    %cst_139 = arith.constant dense<0xFF800000> : vector<8xf32>
    %337 = vector.multi_reduction <maximumf>, %336, %cst_139 [1] : vector<8x8xf32> to vector<8xf32>
    %338 = vector.shape_cast %337 : vector<8xf32> to vector<8x1xf32>
    %339 = vector.broadcast %338 : vector<8x1xf32> to vector<8x8xf32>
    %340 = arith.subf %336, %339 : vector<8x8xf32>
    %341 = math.exp %340 : vector<8x8xf32>
    %cst_140 = arith.constant dense<0.000000e+00> : vector<8xf32>
    %342 = vector.multi_reduction <add>, %341, %cst_140 [1] : vector<8x8xf32> to vector<8xf32>
    %343 = vector.shape_cast %342 : vector<8xf32> to vector<8x1xf32>
    %344 = tpu.reciprocal %343 {approx = true} : vector<8x1xf32> -> vector<8x1xf32>
    %345 = vector.broadcast %344 : vector<8x1xf32> to vector<8x8xf32>
    %346 = arith.mulf %341, %345 : vector<8x8xf32>
    %cst_141 = arith.constant dense<0.000000e+00> : vector<8x32xf32>
    %347 = tpu.matmul %346, %331, %cst_141 {dimension_numbers = #tpu.dot_dimension_numbers<[1], [0], [0], [1], [0, 0, 1, 1], [], []>} : vector<8x8xf32>, vector<8x32xf32>, vector<8x32xf32> -> vector<8x32xf32>
    %348 = vector.extract_strided_slice %299 {offsets = [32, 0], sizes = [32, 128], strides = [1, 1]} : vector<128x128xf32> to vector<32x128xf32>
    %cst_142 = arith.constant dense<0.000000e+00> : vector<8x128xf32>
    %349 = tpu.matmul %347, %348, %cst_142 {dimension_numbers = #tpu.dot_dimension_numbers<[1], [0], [0], [1], [0, 0, 1, 1], [], []>} : vector<8x32xf32>, vector<32x128xf32>, vector<8x128xf32> -> vector<8x128xf32>
    %350 = arith.addf %328, %349 : vector<8x128xf32>
    %351 = vector.extract_strided_slice %304 {offsets = [0, 64], sizes = [8, 32], strides = [1, 1]} : vector<16x384xf32> to vector<8x32xf32>
    %352 = vector.extract_strided_slice %304 {offsets = [0, 192], sizes = [8, 32], strides = [1, 1]} : vector<16x384xf32> to vector<8x32xf32>
    %353 = vector.extract_strided_slice %304 {offsets = [0, 320], sizes = [8, 32], strides = [1, 1]} : vector<16x384xf32> to vector<8x32xf32>
    %cst_143 = arith.constant dense<0.000000e+00> : vector<8x8xf32>
    %354 = tpu.matmul %351, %352, %cst_143 {dimension_numbers = #tpu.dot_dimension_numbers<[1], [1], [0], [0], [0, 0, 1, 0], [], []>} : vector<8x32xf32>, vector<8x32xf32>, vector<8x8xf32> -> vector<8x8xf32>
    %cst_144 = arith.constant 0.176776692 : f32
    %355 = vector.broadcast %cst_144 : f32 to vector<8x8xf32>
    %356 = arith.mulf %354, %355 : vector<8x8xf32>
    %357 = vector.broadcast %305 : vector<1x8xf32> to vector<8x8xf32>
    %358 = arith.addf %356, %357 : vector<8x8xf32>
    %cst_145 = arith.constant dense<0xFF800000> : vector<8xf32>
    %359 = vector.multi_reduction <maximumf>, %358, %cst_145 [1] : vector<8x8xf32> to vector<8xf32>
    %360 = vector.shape_cast %359 : vector<8xf32> to vector<8x1xf32>
    %361 = vector.broadcast %360 : vector<8x1xf32> to vector<8x8xf32>
    %362 = arith.subf %358, %361 : vector<8x8xf32>
    %363 = math.exp %362 : vector<8x8xf32>
    %cst_146 = arith.constant dense<0.000000e+00> : vector<8xf32>
    %364 = vector.multi_reduction <add>, %363, %cst_146 [1] : vector<8x8xf32> to vector<8xf32>
    %365 = vector.shape_cast %364 : vector<8xf32> to vector<8x1xf32>
    %366 = tpu.reciprocal %365 {approx = true} : vector<8x1xf32> -> vector<8x1xf32>
    %367 = vector.broadcast %366 : vector<8x1xf32> to vector<8x8xf32>
    %368 = arith.mulf %363, %367 : vector<8x8xf32>
    %cst_147 = arith.constant dense<0.000000e+00> : vector<8x32xf32>
    %369 = tpu.matmul %368, %353, %cst_147 {dimension_numbers = #tpu.dot_dimension_numbers<[1], [0], [0], [1], [0, 0, 1, 1], [], []>} : vector<8x8xf32>, vector<8x32xf32>, vector<8x32xf32> -> vector<8x32xf32>
    %370 = vector.extract_strided_slice %299 {offsets = [64, 0], sizes = [32, 128], strides = [1, 1]} : vector<128x128xf32> to vector<32x128xf32>
    %cst_148 = arith.constant dense<0.000000e+00> : vector<8x128xf32>
    %371 = tpu.matmul %369, %370, %cst_148 {dimension_numbers = #tpu.dot_dimension_numbers<[1], [0], [0], [1], [0, 0, 1, 1], [], []>} : vector<8x32xf32>, vector<32x128xf32>, vector<8x128xf32> -> vector<8x128xf32>
    %372 = arith.addf %350, %371 : vector<8x128xf32>
    %373 = vector.extract_strided_slice %304 {offsets = [0, 96], sizes = [8, 32], strides = [1, 1]} : vector<16x384xf32> to vector<8x32xf32>
    %374 = vector.extract_strided_slice %304 {offsets = [0, 224], sizes = [8, 32], strides = [1, 1]} : vector<16x384xf32> to vector<8x32xf32>
    %375 = vector.extract_strided_slice %304 {offsets = [0, 352], sizes = [8, 32], strides = [1, 1]} : vector<16x384xf32> to vector<8x32xf32>
    %cst_149 = arith.constant dense<0.000000e+00> : vector<8x8xf32>
    %376 = tpu.matmul %373, %374, %cst_149 {dimension_numbers = #tpu.dot_dimension_numbers<[1], [1], [0], [0], [0, 0, 1, 0], [], []>} : vector<8x32xf32>, vector<8x32xf32>, vector<8x8xf32> -> vector<8x8xf32>
    %cst_150 = arith.constant 0.176776692 : f32
    %377 = vector.broadcast %cst_150 : f32 to vector<8x8xf32>
    %378 = arith.mulf %376, %377 : vector<8x8xf32>
    %379 = vector.broadcast %305 : vector<1x8xf32> to vector<8x8xf32>
    %380 = arith.addf %378, %379 : vector<8x8xf32>
    %cst_151 = arith.constant dense<0xFF800000> : vector<8xf32>
    %381 = vector.multi_reduction <maximumf>, %380, %cst_151 [1] : vector<8x8xf32> to vector<8xf32>
    %382 = vector.shape_cast %381 : vector<8xf32> to vector<8x1xf32>
    %383 = vector.broadcast %382 : vector<8x1xf32> to vector<8x8xf32>
    %384 = arith.subf %380, %383 : vector<8x8xf32>
    %385 = math.exp %384 : vector<8x8xf32>
    %cst_152 = arith.constant dense<0.000000e+00> : vector<8xf32>
    %386 = vector.multi_reduction <add>, %385, %cst_152 [1] : vector<8x8xf32> to vector<8xf32>
    %387 = vector.shape_cast %386 : vector<8xf32> to vector<8x1xf32>
    %388 = tpu.reciprocal %387 {approx = true} : vector<8x1xf32> -> vector<8x1xf32>
    %389 = vector.broadcast %388 : vector<8x1xf32> to vector<8x8xf32>
    %390 = arith.mulf %385, %389 : vector<8x8xf32>
    %cst_153 = arith.constant dense<0.000000e+00> : vector<8x32xf32>
    %391 = tpu.matmul %390, %375, %cst_153 {dimension_numbers = #tpu.dot_dimension_numbers<[1], [0], [0], [1], [0, 0, 1, 1], [], []>} : vector<8x8xf32>, vector<8x32xf32>, vector<8x32xf32> -> vector<8x32xf32>
    %392 = vector.extract_strided_slice %299 {offsets = [96, 0], sizes = [32, 128], strides = [1, 1]} : vector<128x128xf32> to vector<32x128xf32>
    %cst_154 = arith.constant dense<0.000000e+00> : vector<8x128xf32>
    %393 = tpu.matmul %391, %392, %cst_154 {dimension_numbers = #tpu.dot_dimension_numbers<[1], [0], [0], [1], [0, 0, 1, 1], [], []>} : vector<8x32xf32>, vector<32x128xf32>, vector<8x128xf32> -> vector<8x128xf32>
    %394 = arith.addf %372, %393 : vector<8x128xf32>
    %c1_155 = arith.constant 1 : index
    %c0_156 = arith.constant 0 : index
    %395 = vector.load %arg1[%c1_155, %c0_156] : memref<2x8xf32, #tpu.memory_space<vmem>>, vector<1x8xf32>
    %cst_157 = arith.constant 0.000000e+00 : f32
    %396 = vector.broadcast %cst_157 : f32 to vector<8x128xf32>
    %397 = vector.extract_strided_slice %304 {offsets = [8, 0], sizes = [8, 32], strides = [1, 1]} : vector<16x384xf32> to vector<8x32xf32>
    %398 = vector.extract_strided_slice %304 {offsets = [8, 128], sizes = [8, 32], strides = [1, 1]} : vector<16x384xf32> to vector<8x32xf32>
    %399 = vector.extract_strided_slice %304 {offsets = [8, 256], sizes = [8, 32], strides = [1, 1]} : vector<16x384xf32> to vector<8x32xf32>
    %cst_158 = arith.constant dense<0.000000e+00> : vector<8x8xf32>
    %400 = tpu.matmul %397, %398, %cst_158 {dimension_numbers = #tpu.dot_dimension_numbers<[1], [1], [0], [0], [0, 0, 1, 0], [], []>} : vector<8x32xf32>, vector<8x32xf32>, vector<8x8xf32> -> vector<8x8xf32>
    %cst_159 = arith.constant 0.176776692 : f32
    %401 = vector.broadcast %cst_159 : f32 to vector<8x8xf32>
    %402 = arith.mulf %400, %401 : vector<8x8xf32>
    %403 = vector.broadcast %395 : vector<1x8xf32> to vector<8x8xf32>
    %404 = arith.addf %402, %403 : vector<8x8xf32>
    %cst_160 = arith.constant dense<0xFF800000> : vector<8xf32>
    %405 = vector.multi_reduction <maximumf>, %404, %cst_160 [1] : vector<8x8xf32> to vector<8xf32>
    %406 = vector.shape_cast %405 : vector<8xf32> to vector<8x1xf32>
    %407 = vector.broadcast %406 : vector<8x1xf32> to vector<8x8xf32>
    %408 = arith.subf %404, %407 : vector<8x8xf32>
    %409 = math.exp %408 : vector<8x8xf32>
    %cst_161 = arith.constant dense<0.000000e+00> : vector<8xf32>
    %410 = vector.multi_reduction <add>, %409, %cst_161 [1] : vector<8x8xf32> to vector<8xf32>
    %411 = vector.shape_cast %410 : vector<8xf32> to vector<8x1xf32>
    %412 = tpu.reciprocal %411 {approx = true} : vector<8x1xf32> -> vector<8x1xf32>
    %413 = vector.broadcast %412 : vector<8x1xf32> to vector<8x8xf32>
    %414 = arith.mulf %409, %413 : vector<8x8xf32>
    %cst_162 = arith.constant dense<0.000000e+00> : vector<8x32xf32>
    %415 = tpu.matmul %414, %399, %cst_162 {dimension_numbers = #tpu.dot_dimension_numbers<[1], [0], [0], [1], [0, 0, 1, 1], [], []>} : vector<8x8xf32>, vector<8x32xf32>, vector<8x32xf32> -> vector<8x32xf32>
    %416 = vector.extract_strided_slice %299 {offsets = [0, 0], sizes = [32, 128], strides = [1, 1]} : vector<128x128xf32> to vector<32x128xf32>
    %cst_163 = arith.constant dense<0.000000e+00> : vector<8x128xf32>
    %417 = tpu.matmul %415, %416, %cst_163 {dimension_numbers = #tpu.dot_dimension_numbers<[1], [0], [0], [1], [0, 0, 1, 1], [], []>} : vector<8x32xf32>, vector<32x128xf32>, vector<8x128xf32> -> vector<8x128xf32>
    %418 = arith.addf %396, %417 : vector<8x128xf32>
    %419 = vector.extract_strided_slice %304 {offsets = [8, 32], sizes = [8, 32], strides = [1, 1]} : vector<16x384xf32> to vector<8x32xf32>
    %420 = vector.extract_strided_slice %304 {offsets = [8, 160], sizes = [8, 32], strides = [1, 1]} : vector<16x384xf32> to vector<8x32xf32>
    %421 = vector.extract_strided_slice %304 {offsets = [8, 288], sizes = [8, 32], strides = [1, 1]} : vector<16x384xf32> to vector<8x32xf32>
    %cst_164 = arith.constant dense<0.000000e+00> : vector<8x8xf32>
    %422 = tpu.matmul %419, %420, %cst_164 {dimension_numbers = #tpu.dot_dimension_numbers<[1], [1], [0], [0], [0, 0, 1, 0], [], []>} : vector<8x32xf32>, vector<8x32xf32>, vector<8x8xf32> -> vector<8x8xf32>
    %cst_165 = arith.constant 0.176776692 : f32
    %423 = vector.broadcast %cst_165 : f32 to vector<8x8xf32>
    %424 = arith.mulf %422, %423 : vector<8x8xf32>
    %425 = vector.broadcast %395 : vector<1x8xf32> to vector<8x8xf32>
    %426 = arith.addf %424, %425 : vector<8x8xf32>
    %cst_166 = arith.constant dense<0xFF800000> : vector<8xf32>
    %427 = vector.multi_reduction <maximumf>, %426, %cst_166 [1] : vector<8x8xf32> to vector<8xf32>
    %428 = vector.shape_cast %427 : vector<8xf32> to vector<8x1xf32>
    %429 = vector.broadcast %428 : vector<8x1xf32> to vector<8x8xf32>
    %430 = arith.subf %426, %429 : vector<8x8xf32>
    %431 = math.exp %430 : vector<8x8xf32>
    %cst_167 = arith.constant dense<0.000000e+00> : vector<8xf32>
    %432 = vector.multi_reduction <add>, %431, %cst_167 [1] : vector<8x8xf32> to vector<8xf32>
    %433 = vector.shape_cast %432 : vector<8xf32> to vector<8x1xf32>
    %434 = tpu.reciprocal %433 {approx = true} : vector<8x1xf32> -> vector<8x1xf32>
    %435 = vector.broadcast %434 : vector<8x1xf32> to vector<8x8xf32>
    %436 = arith.mulf %431, %435 : vector<8x8xf32>
    %cst_168 = arith.constant dense<0.000000e+00> : vector<8x32xf32>
    %437 = tpu.matmul %436, %421, %cst_168 {dimension_numbers = #tpu.dot_dimension_numbers<[1], [0], [0], [1], [0, 0, 1, 1], [], []>} : vector<8x8xf32>, vector<8x32xf32>, vector<8x32xf32> -> vector<8x32xf32>
    %438 = vector.extract_strided_slice %299 {offsets = [32, 0], sizes = [32, 128], strides = [1, 1]} : vector<128x128xf32> to vector<32x128xf32>
    %cst_169 = arith.constant dense<0.000000e+00> : vector<8x128xf32>
    %439 = tpu.matmul %437, %438, %cst_169 {dimension_numbers = #tpu.dot_dimension_numbers<[1], [0], [0], [1], [0, 0, 1, 1], [], []>} : vector<8x32xf32>, vector<32x128xf32>, vector<8x128xf32> -> vector<8x128xf32>
    %440 = arith.addf %418, %439 : vector<8x128xf32>
    %441 = vector.extract_strided_slice %304 {offsets = [8, 64], sizes = [8, 32], strides = [1, 1]} : vector<16x384xf32> to vector<8x32xf32>
    %442 = vector.extract_strided_slice %304 {offsets = [8, 192], sizes = [8, 32], strides = [1, 1]} : vector<16x384xf32> to vector<8x32xf32>
    %443 = vector.extract_strided_slice %304 {offsets = [8, 320], sizes = [8, 32], strides = [1, 1]} : vector<16x384xf32> to vector<8x32xf32>
    %cst_170 = arith.constant dense<0.000000e+00> : vector<8x8xf32>
    %444 = tpu.matmul %441, %442, %cst_170 {dimension_numbers = #tpu.dot_dimension_numbers<[1], [1], [0], [0], [0, 0, 1, 0], [], []>} : vector<8x32xf32>, vector<8x32xf32>, vector<8x8xf32> -> vector<8x8xf32>
    %cst_171 = arith.constant 0.176776692 : f32
    %445 = vector.broadcast %cst_171 : f32 to vector<8x8xf32>
    %446 = arith.mulf %444, %445 : vector<8x8xf32>
    %447 = vector.broadcast %395 : vector<1x8xf32> to vector<8x8xf32>
    %448 = arith.addf %446, %447 : vector<8x8xf32>
    %cst_172 = arith.constant dense<0xFF800000> : vector<8xf32>
    %449 = vector.multi_reduction <maximumf>, %448, %cst_172 [1] : vector<8x8xf32> to vector<8xf32>
    %450 = vector.shape_cast %449 : vector<8xf32> to vector<8x1xf32>
    %451 = vector.broadcast %450 : vector<8x1xf32> to vector<8x8xf32>
    %452 = arith.subf %448, %451 : vector<8x8xf32>
    %453 = math.exp %452 : vector<8x8xf32>
    %cst_173 = arith.constant dense<0.000000e+00> : vector<8xf32>
    %454 = vector.multi_reduction <add>, %453, %cst_173 [1] : vector<8x8xf32> to vector<8xf32>
    %455 = vector.shape_cast %454 : vector<8xf32> to vector<8x1xf32>
    %456 = tpu.reciprocal %455 {approx = true} : vector<8x1xf32> -> vector<8x1xf32>
    %457 = vector.broadcast %456 : vector<8x1xf32> to vector<8x8xf32>
    %458 = arith.mulf %453, %457 : vector<8x8xf32>
    %cst_174 = arith.constant dense<0.000000e+00> : vector<8x32xf32>
    %459 = tpu.matmul %458, %443, %cst_174 {dimension_numbers = #tpu.dot_dimension_numbers<[1], [0], [0], [1], [0, 0, 1, 1], [], []>} : vector<8x8xf32>, vector<8x32xf32>, vector<8x32xf32> -> vector<8x32xf32>
    %460 = vector.extract_strided_slice %299 {offsets = [64, 0], sizes = [32, 128], strides = [1, 1]} : vector<128x128xf32> to vector<32x128xf32>
    %cst_175 = arith.constant dense<0.000000e+00> : vector<8x128xf32>
    %461 = tpu.matmul %459, %460, %cst_175 {dimension_numbers = #tpu.dot_dimension_numbers<[1], [0], [0], [1], [0, 0, 1, 1], [], []>} : vector<8x32xf32>, vector<32x128xf32>, vector<8x128xf32> -> vector<8x128xf32>
    %462 = arith.addf %440, %461 : vector<8x128xf32>
    %463 = vector.extract_strided_slice %304 {offsets = [8, 96], sizes = [8, 32], strides = [1, 1]} : vector<16x384xf32> to vector<8x32xf32>
    %464 = vector.extract_strided_slice %304 {offsets = [8, 224], sizes = [8, 32], strides = [1, 1]} : vector<16x384xf32> to vector<8x32xf32>
    %465 = vector.extract_strided_slice %304 {offsets = [8, 352], sizes = [8, 32], strides = [1, 1]} : vector<16x384xf32> to vector<8x32xf32>
    %cst_176 = arith.constant dense<0.000000e+00> : vector<8x8xf32>
    %466 = tpu.matmul %463, %464, %cst_176 {dimension_numbers = #tpu.dot_dimension_numbers<[1], [1], [0], [0], [0, 0, 1, 0], [], []>} : vector<8x32xf32>, vector<8x32xf32>, vector<8x8xf32> -> vector<8x8xf32>
    %cst_177 = arith.constant 0.176776692 : f32
    %467 = vector.broadcast %cst_177 : f32 to vector<8x8xf32>
    %468 = arith.mulf %466, %467 : vector<8x8xf32>
    %469 = vector.broadcast %395 : vector<1x8xf32> to vector<8x8xf32>
    %470 = arith.addf %468, %469 : vector<8x8xf32>
    %cst_178 = arith.constant dense<0xFF800000> : vector<8xf32>
    %471 = vector.multi_reduction <maximumf>, %470, %cst_178 [1] : vector<8x8xf32> to vector<8xf32>
    %472 = vector.shape_cast %471 : vector<8xf32> to vector<8x1xf32>
    %473 = vector.broadcast %472 : vector<8x1xf32> to vector<8x8xf32>
    %474 = arith.subf %470, %473 : vector<8x8xf32>
    %475 = math.exp %474 : vector<8x8xf32>
    %cst_179 = arith.constant dense<0.000000e+00> : vector<8xf32>
    %476 = vector.multi_reduction <add>, %475, %cst_179 [1] : vector<8x8xf32> to vector<8xf32>
    %477 = vector.shape_cast %476 : vector<8xf32> to vector<8x1xf32>
    %478 = tpu.reciprocal %477 {approx = true} : vector<8x1xf32> -> vector<8x1xf32>
    %479 = vector.broadcast %478 : vector<8x1xf32> to vector<8x8xf32>
    %480 = arith.mulf %475, %479 : vector<8x8xf32>
    %cst_180 = arith.constant dense<0.000000e+00> : vector<8x32xf32>
    %481 = tpu.matmul %480, %465, %cst_180 {dimension_numbers = #tpu.dot_dimension_numbers<[1], [0], [0], [1], [0, 0, 1, 1], [], []>} : vector<8x8xf32>, vector<8x32xf32>, vector<8x32xf32> -> vector<8x32xf32>
    %482 = vector.extract_strided_slice %299 {offsets = [96, 0], sizes = [32, 128], strides = [1, 1]} : vector<128x128xf32> to vector<32x128xf32>
    %cst_181 = arith.constant dense<0.000000e+00> : vector<8x128xf32>
    %483 = tpu.matmul %481, %482, %cst_181 {dimension_numbers = #tpu.dot_dimension_numbers<[1], [0], [0], [1], [0, 0, 1, 1], [], []>} : vector<8x32xf32>, vector<32x128xf32>, vector<8x128xf32> -> vector<8x128xf32>
    %484 = arith.addf %462, %483 : vector<8x128xf32>
    %485 = tpu.concatenate %394, %484 in 0 : vector<8x128xf32>, vector<8x128xf32> -> vector<16x128xf32>
    %486 = vector.broadcast %301 : vector<1x128xf32> to vector<16x128xf32>
    %487 = arith.addf %485, %486 : vector<16x128xf32>
    %488 = arith.addf %487, %293 : vector<16x128xf32>
    %c1_182 = arith.constant 1 : index
    %c0_183 = arith.constant 0 : index
    %c0_184 = arith.constant 0 : index
    %489 = vector.load %arg8[%c1_182, %c0_183, %c0_184] : memref<2x1x128xf32, #tpu.memory_space<vmem>>, vector<1x1x128xf32>
    %490 = vector.shape_cast %489 : vector<1x1x128xf32> to vector<1x128xf32>
    %c1_185 = arith.constant 1 : index
    %c0_186 = arith.constant 0 : index
    %c0_187 = arith.constant 0 : index
    %491 = vector.load %arg9[%c1_185, %c0_186, %c0_187] : memref<2x1x128xf32, #tpu.memory_space<vmem>>, vector<1x1x128xf32>
    %492 = vector.shape_cast %491 : vector<1x1x128xf32> to vector<1x128xf32>
    %cst_188 = arith.constant dense<0.000000e+00> : vector<16xf32>
    %493 = vector.multi_reduction <add>, %488, %cst_188 [1] : vector<16x128xf32> to vector<16xf32>
    %494 = vector.shape_cast %493 : vector<16xf32> to vector<16x1xf32>
    %cst_189 = arith.constant 1.280000e+02 : f32
    %495 = vector.broadcast %cst_189 : f32 to vector<16x1xf32>
    %496 = arith.divf %494, %495 : vector<16x1xf32>
    %497 = vector.broadcast %496 : vector<16x1xf32> to vector<16x128xf32>
    %498 = arith.subf %488, %497 : vector<16x128xf32>
    %499 = arith.mulf %498, %498 : vector<16x128xf32>
    %cst_190 = arith.constant dense<0.000000e+00> : vector<16xf32>
    %500 = vector.multi_reduction <add>, %499, %cst_190 [1] : vector<16x128xf32> to vector<16xf32>
    %501 = vector.shape_cast %500 : vector<16xf32> to vector<16x1xf32>
    %cst_191 = arith.constant 1.280000e+02 : f32
    %502 = vector.broadcast %cst_191 : f32 to vector<16x1xf32>
    %503 = arith.divf %501, %502 : vector<16x1xf32>
    %cst_192 = arith.constant 1.000000e-07 : f32
    %504 = vector.broadcast %cst_192 : f32 to vector<16x1xf32>
    %505 = arith.addf %503, %504 : vector<16x1xf32>
    %506 = math.rsqrt %505 : vector<16x1xf32>
    %507 = vector.broadcast %506 : vector<16x1xf32> to vector<16x128xf32>
    %508 = arith.mulf %498, %507 : vector<16x128xf32>
    %509 = vector.broadcast %490 : vector<1x128xf32> to vector<16x128xf32>
    %510 = arith.mulf %508, %509 : vector<16x128xf32>
    %511 = vector.broadcast %492 : vector<1x128xf32> to vector<16x128xf32>
    %512 = arith.addf %510, %511 : vector<16x128xf32>
    %c1_193 = arith.constant 1 : index
    %c0_194 = arith.constant 0 : index
    %c0_195 = arith.constant 0 : index
    %513 = vector.load %arg10[%c1_193, %c0_194, %c0_195] : memref<2x128x512xf32, #tpu.memory_space<vmem>>, vector<1x128x512xf32>
    %514 = vector.shape_cast %513 : vector<1x128x512xf32> to vector<128x512xf32>
    %cst_196 = arith.constant dense<0.000000e+00> : vector<16x512xf32>
    %515 = tpu.matmul %512, %514, %cst_196 {dimension_numbers = #tpu.dot_dimension_numbers<[1], [0], [0], [1], [0, 0, 1, 1], [], []>} : vector<16x128xf32>, vector<128x512xf32>, vector<16x512xf32> -> vector<16x512xf32>
    %c1_197 = arith.constant 1 : index
    %c0_198 = arith.constant 0 : index
    %c0_199 = arith.constant 0 : index
    %516 = vector.load %arg11[%c1_197, %c0_198, %c0_199] : memref<2x1x512xf32, #tpu.memory_space<vmem>>, vector<1x1x512xf32>
    %517 = vector.shape_cast %516 : vector<1x1x512xf32> to vector<1x512xf32>
    %518 = vector.broadcast %517 : vector<1x512xf32> to vector<16x512xf32>
    %519 = arith.addf %515, %518 : vector<16x512xf32>
    %cst_200 = arith.constant 5.000000e-01 : f32
    %520 = vector.broadcast %cst_200 : f32 to vector<16x512xf32>
    %521 = arith.mulf %520, %519 : vector<16x512xf32>
    %cst_201 = arith.constant 4.471500e-02 : f32
    %522 = vector.broadcast %cst_201 : f32 to vector<16x512xf32>
    %523 = arith.mulf %522, %519 : vector<16x512xf32>
    %524 = arith.mulf %523, %519 : vector<16x512xf32>
    %525 = arith.mulf %524, %519 : vector<16x512xf32>
    %526 = arith.addf %519, %525 : vector<16x512xf32>
    %cst_202 = arith.constant 0.797884583 : f32
    %527 = vector.broadcast %cst_202 : f32 to vector<16x512xf32>
    %528 = arith.mulf %527, %526 : vector<16x512xf32>
    %529 = math.tanh %528 : vector<16x512xf32>
    %cst_203 = arith.constant 1.000000e+00 : f32
    %530 = vector.broadcast %cst_203 : f32 to vector<16x512xf32>
    %531 = arith.addf %530, %529 : vector<16x512xf32>
    %532 = arith.mulf %521, %531 : vector<16x512xf32>
    %c1_204 = arith.constant 1 : index
    %c0_205 = arith.constant 0 : index
    %c0_206 = arith.constant 0 : index
    %533 = vector.load %arg12[%c1_204, %c0_205, %c0_206] : memref<2x512x128xf32, #tpu.memory_space<vmem>>, vector<1x512x128xf32>
    %534 = vector.shape_cast %533 : vector<1x512x128xf32> to vector<512x128xf32>
    %cst_207 = arith.constant dense<0.000000e+00> : vector<16x128xf32>
    %535 = tpu.matmul %532, %534, %cst_207 {dimension_numbers = #tpu.dot_dimension_numbers<[1], [0], [0], [1], [0, 0, 1, 1], [], []>} : vector<16x512xf32>, vector<512x128xf32>, vector<16x128xf32> -> vector<16x128xf32>
    %c1_208 = arith.constant 1 : index
    %c0_209 = arith.constant 0 : index
    %c0_210 = arith.constant 0 : index
    %536 = vector.load %arg13[%c1_208, %c0_209, %c0_210] : memref<2x1x128xf32, #tpu.memory_space<vmem>>, vector<1x1x128xf32>
    %537 = vector.shape_cast %536 : vector<1x1x128xf32> to vector<1x128xf32>
    %538 = vector.broadcast %537 : vector<1x128xf32> to vector<16x128xf32>
    %539 = arith.addf %535, %538 : vector<16x128xf32>
    %540 = arith.addf %539, %512 : vector<16x128xf32>
    %c1_211 = arith.constant 1 : index
    %c0_212 = arith.constant 0 : index
    %c0_213 = arith.constant 0 : index
    %541 = vector.load %arg14[%c1_211, %c0_212, %c0_213] : memref<2x1x128xf32, #tpu.memory_space<vmem>>, vector<1x1x128xf32>
    %542 = vector.shape_cast %541 : vector<1x1x128xf32> to vector<1x128xf32>
    %c1_214 = arith.constant 1 : index
    %c0_215 = arith.constant 0 : index
    %c0_216 = arith.constant 0 : index
    %543 = vector.load %arg15[%c1_214, %c0_215, %c0_216] : memref<2x1x128xf32, #tpu.memory_space<vmem>>, vector<1x1x128xf32>
    %544 = vector.shape_cast %543 : vector<1x1x128xf32> to vector<1x128xf32>
    %cst_217 = arith.constant dense<0.000000e+00> : vector<16xf32>
    %545 = vector.multi_reduction <add>, %540, %cst_217 [1] : vector<16x128xf32> to vector<16xf32>
    %546 = vector.shape_cast %545 : vector<16xf32> to vector<16x1xf32>
    %cst_218 = arith.constant 1.280000e+02 : f32
    %547 = vector.broadcast %cst_218 : f32 to vector<16x1xf32>
    %548 = arith.divf %546, %547 : vector<16x1xf32>
    %549 = vector.broadcast %548 : vector<16x1xf32> to vector<16x128xf32>
    %550 = arith.subf %540, %549 : vector<16x128xf32>
    %551 = arith.mulf %550, %550 : vector<16x128xf32>
    %cst_219 = arith.constant dense<0.000000e+00> : vector<16xf32>
    %552 = vector.multi_reduction <add>, %551, %cst_219 [1] : vector<16x128xf32> to vector<16xf32>
    %553 = vector.shape_cast %552 : vector<16xf32> to vector<16x1xf32>
    %cst_220 = arith.constant 1.280000e+02 : f32
    %554 = vector.broadcast %cst_220 : f32 to vector<16x1xf32>
    %555 = arith.divf %553, %554 : vector<16x1xf32>
    %cst_221 = arith.constant 1.000000e-07 : f32
    %556 = vector.broadcast %cst_221 : f32 to vector<16x1xf32>
    %557 = arith.addf %555, %556 : vector<16x1xf32>
    %558 = math.rsqrt %557 : vector<16x1xf32>
    %559 = vector.broadcast %558 : vector<16x1xf32> to vector<16x128xf32>
    %560 = arith.mulf %550, %559 : vector<16x128xf32>
    %561 = vector.broadcast %542 : vector<1x128xf32> to vector<16x128xf32>
    %562 = arith.mulf %560, %561 : vector<16x128xf32>
    %563 = vector.broadcast %544 : vector<1x128xf32> to vector<16x128xf32>
    %564 = arith.addf %562, %563 : vector<16x128xf32>
    %c0_222 = arith.constant 0 : index
    %c0_223 = arith.constant 0 : index
    %565 = vector.load %arg17[%c0_222, %c0_223] : memref<1x512xf32, #tpu.memory_space<vmem>>, vector<1x512xf32>
    %cst_224 = arith.constant 0.000000e+00 : f32
    %566 = vector.broadcast %cst_224 : f32 to vector<1x512xf32>
    %567 = vector.extract_strided_slice %564 {offsets = [0, 0], sizes = [1, 128], strides = [1, 1]} : vector<16x128xf32> to vector<1x128xf32>
    %c0_225 = arith.constant 0 : index
    %c0_226 = arith.constant 0 : index
    %568 = vector.load %arg16[%c0_225, %c0_226] : memref<1024x512xf32, #tpu.memory_space<vmem>>, vector<128x512xf32>
    %cst_227 = arith.constant dense<0.000000e+00> : vector<1x512xf32>
    %569 = tpu.matmul %567, %568, %cst_227 {dimension_numbers = #tpu.dot_dimension_numbers<[1], [0], [0], [1], [0, 0, 1, 1], [], []>} : vector<1x128xf32>, vector<128x512xf32>, vector<1x512xf32> -> vector<1x512xf32>
    %570 = arith.addf %566, %569 : vector<1x512xf32>
    %571 = vector.extract_strided_slice %564 {offsets = [1, 0], sizes = [1, 128], strides = [1, 1]} : vector<16x128xf32> to vector<1x128xf32>
    %c128 = arith.constant 128 : index
    %c0_228 = arith.constant 0 : index
    %572 = vector.load %arg16[%c128, %c0_228] : memref<1024x512xf32, #tpu.memory_space<vmem>>, vector<128x512xf32>
    %cst_229 = arith.constant dense<0.000000e+00> : vector<1x512xf32>
    %573 = tpu.matmul %571, %572, %cst_229 {dimension_numbers = #tpu.dot_dimension_numbers<[1], [0], [0], [1], [0, 0, 1, 1], [], []>} : vector<1x128xf32>, vector<128x512xf32>, vector<1x512xf32> -> vector<1x512xf32>
    %574 = arith.addf %570, %573 : vector<1x512xf32>
    %575 = vector.extract_strided_slice %564 {offsets = [2, 0], sizes = [1, 128], strides = [1, 1]} : vector<16x128xf32> to vector<1x128xf32>
    %c256 = arith.constant 256 : index
    %c0_230 = arith.constant 0 : index
    %576 = vector.load %arg16[%c256, %c0_230] : memref<1024x512xf32, #tpu.memory_space<vmem>>, vector<128x512xf32>
    %cst_231 = arith.constant dense<0.000000e+00> : vector<1x512xf32>
    %577 = tpu.matmul %575, %576, %cst_231 {dimension_numbers = #tpu.dot_dimension_numbers<[1], [0], [0], [1], [0, 0, 1, 1], [], []>} : vector<1x128xf32>, vector<128x512xf32>, vector<1x512xf32> -> vector<1x512xf32>
    %578 = arith.addf %574, %577 : vector<1x512xf32>
    %579 = vector.extract_strided_slice %564 {offsets = [3, 0], sizes = [1, 128], strides = [1, 1]} : vector<16x128xf32> to vector<1x128xf32>
    %c384 = arith.constant 384 : index
    %c0_232 = arith.constant 0 : index
    %580 = vector.load %arg16[%c384, %c0_232] : memref<1024x512xf32, #tpu.memory_space<vmem>>, vector<128x512xf32>
    %cst_233 = arith.constant dense<0.000000e+00> : vector<1x512xf32>
    %581 = tpu.matmul %579, %580, %cst_233 {dimension_numbers = #tpu.dot_dimension_numbers<[1], [0], [0], [1], [0, 0, 1, 1], [], []>} : vector<1x128xf32>, vector<128x512xf32>, vector<1x512xf32> -> vector<1x512xf32>
    %582 = arith.addf %578, %581 : vector<1x512xf32>
    %583 = vector.extract_strided_slice %564 {offsets = [4, 0], sizes = [1, 128], strides = [1, 1]} : vector<16x128xf32> to vector<1x128xf32>
    %c512 = arith.constant 512 : index
    %c0_234 = arith.constant 0 : index
    %584 = vector.load %arg16[%c512, %c0_234] : memref<1024x512xf32, #tpu.memory_space<vmem>>, vector<128x512xf32>
    %cst_235 = arith.constant dense<0.000000e+00> : vector<1x512xf32>
    %585 = tpu.matmul %583, %584, %cst_235 {dimension_numbers = #tpu.dot_dimension_numbers<[1], [0], [0], [1], [0, 0, 1, 1], [], []>} : vector<1x128xf32>, vector<128x512xf32>, vector<1x512xf32> -> vector<1x512xf32>
    %586 = arith.addf %582, %585 : vector<1x512xf32>
    %587 = vector.extract_strided_slice %564 {offsets = [5, 0], sizes = [1, 128], strides = [1, 1]} : vector<16x128xf32> to vector<1x128xf32>
    %c640 = arith.constant 640 : index
    %c0_236 = arith.constant 0 : index
    %588 = vector.load %arg16[%c640, %c0_236] : memref<1024x512xf32, #tpu.memory_space<vmem>>, vector<128x512xf32>
    %cst_237 = arith.constant dense<0.000000e+00> : vector<1x512xf32>
    %589 = tpu.matmul %587, %588, %cst_237 {dimension_numbers = #tpu.dot_dimension_numbers<[1], [0], [0], [1], [0, 0, 1, 1], [], []>} : vector<1x128xf32>, vector<128x512xf32>, vector<1x512xf32> -> vector<1x512xf32>
    %590 = arith.addf %586, %589 : vector<1x512xf32>
    %591 = vector.extract_strided_slice %564 {offsets = [6, 0], sizes = [1, 128], strides = [1, 1]} : vector<16x128xf32> to vector<1x128xf32>
    %c768 = arith.constant 768 : index
    %c0_238 = arith.constant 0 : index
    %592 = vector.load %arg16[%c768, %c0_238] : memref<1024x512xf32, #tpu.memory_space<vmem>>, vector<128x512xf32>
    %cst_239 = arith.constant dense<0.000000e+00> : vector<1x512xf32>
    %593 = tpu.matmul %591, %592, %cst_239 {dimension_numbers = #tpu.dot_dimension_numbers<[1], [0], [0], [1], [0, 0, 1, 1], [], []>} : vector<1x128xf32>, vector<128x512xf32>, vector<1x512xf32> -> vector<1x512xf32>
    %594 = arith.addf %590, %593 : vector<1x512xf32>
    %595 = vector.extract_strided_slice %564 {offsets = [7, 0], sizes = [1, 128], strides = [1, 1]} : vector<16x128xf32> to vector<1x128xf32>
    %c896 = arith.constant 896 : index
    %c0_240 = arith.constant 0 : index
    %596 = vector.load %arg16[%c896, %c0_240] : memref<1024x512xf32, #tpu.memory_space<vmem>>, vector<128x512xf32>
    %cst_241 = arith.constant dense<0.000000e+00> : vector<1x512xf32>
    %597 = tpu.matmul %595, %596, %cst_241 {dimension_numbers = #tpu.dot_dimension_numbers<[1], [0], [0], [1], [0, 0, 1, 1], [], []>} : vector<1x128xf32>, vector<128x512xf32>, vector<1x512xf32> -> vector<1x512xf32>
    %598 = arith.addf %594, %597 : vector<1x512xf32>
    %599 = arith.addf %598, %565 : vector<1x512xf32>
    %c0_242 = arith.constant 0 : index
    %c0_243 = arith.constant 0 : index
    %600 = vector.load %arg18[%c0_242, %c0_243] : memref<2x512xf32, #tpu.memory_space<vmem>>, vector<1x512xf32>
    tpu.vector_store %arg18[%c0_242, %c0_243], %599 {strides = array<i32>} : memref<2x512xf32, #tpu.memory_space<vmem>>, vector<1x512xf32>,
    %cst_244 = arith.constant 0.000000e+00 : f32
    %601 = vector.broadcast %cst_244 : f32 to vector<1x512xf32>
    %602 = vector.extract_strided_slice %564 {offsets = [8, 0], sizes = [1, 128], strides = [1, 1]} : vector<16x128xf32> to vector<1x128xf32>
    %c0_245 = arith.constant 0 : index
    %c0_246 = arith.constant 0 : index
    %603 = vector.load %arg16[%c0_245, %c0_246] : memref<1024x512xf32, #tpu.memory_space<vmem>>, vector<128x512xf32>
    %cst_247 = arith.constant dense<0.000000e+00> : vector<1x512xf32>
    %604 = tpu.matmul %602, %603, %cst_247 {dimension_numbers = #tpu.dot_dimension_numbers<[1], [0], [0], [1], [0, 0, 1, 1], [], []>} : vector<1x128xf32>, vector<128x512xf32>, vector<1x512xf32> -> vector<1x512xf32>
    %605 = arith.addf %601, %604 : vector<1x512xf32>
    %606 = vector.extract_strided_slice %564 {offsets = [9, 0], sizes = [1, 128], strides = [1, 1]} : vector<16x128xf32> to vector<1x128xf32>
    %c128_248 = arith.constant 128 : index
    %c0_249 = arith.constant 0 : index
    %607 = vector.load %arg16[%c128_248, %c0_249] : memref<1024x512xf32, #tpu.memory_space<vmem>>, vector<128x512xf32>
    %cst_250 = arith.constant dense<0.000000e+00> : vector<1x512xf32>
    %608 = tpu.matmul %606, %607, %cst_250 {dimension_numbers = #tpu.dot_dimension_numbers<[1], [0], [0], [1], [0, 0, 1, 1], [], []>} : vector<1x128xf32>, vector<128x512xf32>, vector<1x512xf32> -> vector<1x512xf32>
    %609 = arith.addf %605, %608 : vector<1x512xf32>
    %610 = vector.extract_strided_slice %564 {offsets = [10, 0], sizes = [1, 128], strides = [1, 1]} : vector<16x128xf32> to vector<1x128xf32>
    %c256_251 = arith.constant 256 : index
    %c0_252 = arith.constant 0 : index
    %611 = vector.load %arg16[%c256_251, %c0_252] : memref<1024x512xf32, #tpu.memory_space<vmem>>, vector<128x512xf32>
    %cst_253 = arith.constant dense<0.000000e+00> : vector<1x512xf32>
    %612 = tpu.matmul %610, %611, %cst_253 {dimension_numbers = #tpu.dot_dimension_numbers<[1], [0], [0], [1], [0, 0, 1, 1], [], []>} : vector<1x128xf32>, vector<128x512xf32>, vector<1x512xf32> -> vector<1x512xf32>
    %613 = arith.addf %609, %612 : vector<1x512xf32>
    %614 = vector.extract_strided_slice %564 {offsets = [11, 0], sizes = [1, 128], strides = [1, 1]} : vector<16x128xf32> to vector<1x128xf32>
    %c384_254 = arith.constant 384 : index
    %c0_255 = arith.constant 0 : index
    %615 = vector.load %arg16[%c384_254, %c0_255] : memref<1024x512xf32, #tpu.memory_space<vmem>>, vector<128x512xf32>
    %cst_256 = arith.constant dense<0.000000e+00> : vector<1x512xf32>
    %616 = tpu.matmul %614, %615, %cst_256 {dimension_numbers = #tpu.dot_dimension_numbers<[1], [0], [0], [1], [0, 0, 1, 1], [], []>} : vector<1x128xf32>, vector<128x512xf32>, vector<1x512xf32> -> vector<1x512xf32>
    %617 = arith.addf %613, %616 : vector<1x512xf32>
    %618 = vector.extract_strided_slice %564 {offsets = [12, 0], sizes = [1, 128], strides = [1, 1]} : vector<16x128xf32> to vector<1x128xf32>
    %c512_257 = arith.constant 512 : index
    %c0_258 = arith.constant 0 : index
    %619 = vector.load %arg16[%c512_257, %c0_258] : memref<1024x512xf32, #tpu.memory_space<vmem>>, vector<128x512xf32>
    %cst_259 = arith.constant dense<0.000000e+00> : vector<1x512xf32>
    %620 = tpu.matmul %618, %619, %cst_259 {dimension_numbers = #tpu.dot_dimension_numbers<[1], [0], [0], [1], [0, 0, 1, 1], [], []>} : vector<1x128xf32>, vector<128x512xf32>, vector<1x512xf32> -> vector<1x512xf32>
    %621 = arith.addf %617, %620 : vector<1x512xf32>
    %622 = vector.extract_strided_slice %564 {offsets = [13, 0], sizes = [1, 128], strides = [1, 1]} : vector<16x128xf32> to vector<1x128xf32>
    %c640_260 = arith.constant 640 : index
    %c0_261 = arith.constant 0 : index
    %623 = vector.load %arg16[%c640_260, %c0_261] : memref<1024x512xf32, #tpu.memory_space<vmem>>, vector<128x512xf32>
    %cst_262 = arith.constant dense<0.000000e+00> : vector<1x512xf32>
    %624 = tpu.matmul %622, %623, %cst_262 {dimension_numbers = #tpu.dot_dimension_numbers<[1], [0], [0], [1], [0, 0, 1, 1], [], []>} : vector<1x128xf32>, vector<128x512xf32>, vector<1x512xf32> -> vector<1x512xf32>
    %625 = arith.addf %621, %624 : vector<1x512xf32>
    %626 = vector.extract_strided_slice %564 {offsets = [14, 0], sizes = [1, 128], strides = [1, 1]} : vector<16x128xf32> to vector<1x128xf32>
    %c768_263 = arith.constant 768 : index
    %c0_264 = arith.constant 0 : index
    %627 = vector.load %arg16[%c768_263, %c0_264] : memref<1024x512xf32, #tpu.memory_space<vmem>>, vector<128x512xf32>
    %cst_265 = arith.constant dense<0.000000e+00> : vector<1x512xf32>
    %628 = tpu.matmul %626, %627, %cst_265 {dimension_numbers = #tpu.dot_dimension_numbers<[1], [0], [0], [1], [0, 0, 1, 1], [], []>} : vector<1x128xf32>, vector<128x512xf32>, vector<1x512xf32> -> vector<1x512xf32>
    %629 = arith.addf %625, %628 : vector<1x512xf32>
    %630 = vector.extract_strided_slice %564 {offsets = [15, 0], sizes = [1, 128], strides = [1, 1]} : vector<16x128xf32> to vector<1x128xf32>
    %c896_266 = arith.constant 896 : index
    %c0_267 = arith.constant 0 : index
    %631 = vector.load %arg16[%c896_266, %c0_267] : memref<1024x512xf32, #tpu.memory_space<vmem>>, vector<128x512xf32>
    %cst_268 = arith.constant dense<0.000000e+00> : vector<1x512xf32>
    %632 = tpu.matmul %630, %631, %cst_268 {dimension_numbers = #tpu.dot_dimension_numbers<[1], [0], [0], [1], [0, 0, 1, 1], [], []>} : vector<1x128xf32>, vector<128x512xf32>, vector<1x512xf32> -> vector<1x512xf32>
    %633 = arith.addf %629, %632 : vector<1x512xf32>
    %634 = arith.addf %633, %565 : vector<1x512xf32>
    %c1_269 = arith.constant 1 : index
    %c0_270 = arith.constant 0 : index
    %635 = vector.load %arg18[%c1_269, %c0_270] : memref<2x512xf32, #tpu.memory_space<vmem>>, vector<1x512xf32>
    tpu.vector_store %arg18[%c1_269, %c0_270], %634 {strides = array<i32>} : memref<2x512xf32, #tpu.memory_space<vmem>>, vector<1x512xf32>,
    return
  }
}

</mosaic_0001>

<bundles_post_ra>
// kernel: lm_forward.1
= control target key start
LH: loop header
LB: loop body
LE: loop exit
PB: predicated region body
PF: predicated region fallthrough
CT: control target
= control target key end

     0   :  { %s7202_s0 = inlined_call_operand.vmem [shape: f32[16,128], index: 0, kind: input, shape index: {}]   ;;  %s7203_s1 = inlined_call_operand.vmem [shape: f32[2,8], index: 1, kind: input, shape index: {}]   ;;  %s7204_s2 = inlined_call_operand.hbm [shape: f32[1,128], index: 2, kind: input, shape index: {}]   ;;  %s7205_s3 = inlined_call_operand.hbm [shape: f32[1,128], index: 3, kind: input, shape index: {}]   ;;  %s7206_s4 = inlined_call_operand.hbm [shape: f32[2,128,384], index: 4, kind: input, shape index: {}]   ;;  %s7207_s5 = inlined_call_operand.hbm [shape: f32[2,1,384], index: 5, kind: input, shape index: {}]   ;;  %s7208_s6 = inlined_call_operand.hbm [shape: f32[2,128,128], index: 6, kind: input, shape index: {}]   ;;  %s7209_s7 = inlined_call_operand.hbm [shape: f32[2,1,128], index: 7, kind: input, shape index: {}]   ;;  %s7210_s8 = inlined_call_operand.hbm [shape: f32[2,1,128], index: 8, kind: input, shape index: {}]   ;;  %s7211_s9 = inlined_call_operand.hbm [shape: f32[2,1,128], index: 9, kind: input, shape index: {}]   ;;  %s7212_s10 = inlined_call_operand.hbm [shape: f32[2,128,512], index: 10, kind: input, shape index: {}]   ;;  %s7213_s11 = inlined_call_operand.hbm [shape: f32[2,1,512], index: 11, kind: input, shape index: {}]   ;;  %s7214_s12 = inlined_call_operand.hbm [shape: f32[2,512,128], index: 12, kind: input, shape index: {}]   ;;  %s7215_s13 = inlined_call_operand.hbm [shape: f32[2,1,128], index: 13, kind: input, shape index: {}]   ;;  %s7216_s14 = inlined_call_operand.hbm [shape: f32[2,1,128], index: 14, kind: input, shape index: {}]   ;;  %s7217_s15 = inlined_call_operand.hbm [shape: f32[2,1,128], index: 15, kind: input, shape index: {}]   ;;  %s7218_s16 = inlined_call_operand.hbm [shape: f32[1024,512], index: 16, kind: input, shape index: {}]   ;;  %s7219_s17 = inlined_call_operand.hbm [shape: f32[1,512], index: 17, kind: input, shape index: {}]   ;;  %s7220_s18 = inlined_call_operand.hbm [shape: f32[2,512], index: 18, kind: output, shape index: {}]  }
   0x1   :  { %7223 = sst [smem:[#allocation39_spill]] %s7202_s0 }
   0x2   :  { %7224 = sst [smem:[#allocation40_spill]] %s7203_s1 }
   0x3   :  { %7225 = sst [smem:[#allocation41_spill]] %s7204_s2 }
   0x4   :  { %23 = vsyncpa [#allocation3], 0 }
   0x5   :  { %24 = vsyncpa [#allocation6], 0 }
   0x6   :  { %25 = vsyncpa [#allocation9], 0 }
   0x7   :  { %26 = vsyncpa [#allocation12], 0 }
   0x8   :  { %27 = vsyncpa [#allocation15], 0 }
   0x9   :  { %28 = vsyncpa [#allocation18], 0 }
   0xa   :  { %29 = vsyncpa [#allocation21], 0 }
   0xb   :  { %30 = vsyncpa [#allocation24], 0 }
   0xc   :  { %31 = vsyncpa [#allocation27], 0  ;;  %s53_s29 = sshll.u32 %s7205_s3, 4  ;;  %s54_s29 = int_to_ptr.hbm [resolvable:$true] %s53_s29 }
   0xd   :  { %32 = vsyncpa [#allocation4], 0  ;;  %s6238_s30 = smov [#allocation5]   ;;  %s76_s20 = sshll.u32 %s7207_s5, 4  ;;  %s77_s20 = int_to_ptr.hbm [resolvable:$true] %s76_s20 }
   0xe   :  { %s55_s0 = sshll.u32 %s6238_s30, 4  ;;  %s6239_s21 = smov [#allocation8]   ;;  %s56_s0 = int_to_ptr.vmem [resolvable:$true] %s55_s0 }
   0xf   :  { %58 = dma.hbm_to_vmem [thread:$0]  %s54_s29, 16, %s56_s0, [#allocation6]  }
  0x10   :  { %s78_s22 = sshll.u32 %s6239_s21, 4  ;;  %s6240_s2 = smov 48   ;;  %s79_s22 = int_to_ptr.vmem [resolvable:$true] %s78_s22 }
  0x11   :  { %s6241_s23 = smov 3   ;;  %s102_s3 = sshll.u32 %s7209_s7, 4  ;;  %s103_s3 = int_to_ptr.hbm [resolvable:$true] %s102_s3 }
  0x12   :  { %84 = dma.hbm_to_vmem [thread:$0]  %s77_s20, 96, %s79_s22, [#allocation9], %s6240_s2, %s6240_s2, %s6241_s23  }
  0x13   :  { %s6242_s26 = smov [#allocation11]   ;;  %s128_s5 = sshll.u32 %s7211_s9, 4  ;;  %s129_s5 = int_to_ptr.hbm [resolvable:$true] %s128_s5 }
  0x14   :  { %s104_s27 = sshll.u32 %s6242_s26, 4  ;;  %s6243_s29 = smov 16   ;;  %s105_s27 = int_to_ptr.vmem [resolvable:$true] %s104_s27 }
  0x15   :  { %s6244_s0 = smov 1   ;;  %s6245_s19 = smov [#allocation14]  }
  0x16   :  { %110 = dma.hbm_to_vmem [thread:$0]  %s103_s3, 32, %s105_s27, [#allocation12], %s6243_s29, %s6243_s29, %s6244_s0  }
  0x17   :  { %s130_s1 = sshll.u32 %s6245_s19, 4  ;;  %s154_s7 = sshll.u32 %s7213_s11, 4  ;;  %s131_s1 = int_to_ptr.vmem [resolvable:$true] %s130_s1  ;;  %s155_s7 = int_to_ptr.hbm [resolvable:$true] %s154_s7 }
  0x18   :  { %136 = dma.hbm_to_vmem [thread:$0]  %s129_s5, 32, %s131_s1, [#allocation15], %s6243_s29, %s6243_s29, %s6244_s0  }
  0x19   :  { %s6246_s9 = smov [#allocation17]   ;;  %s180_s24 = sshll.u32 %s7215_s13, 4  ;;  %s181_s24 = int_to_ptr.hbm [resolvable:$true] %s180_s24 }
  0x1a   :  { %s156_s22 = sshll.u32 %s6246_s9, 4  ;;  %s6247_s25 = smov 64   ;;  %s157_s22 = int_to_ptr.vmem [resolvable:$true] %s156_s22 }
  0x1b   :  { %s6248_s3 = smov 4   ;;  %s6249_s11 = smov [#allocation20]  }
  0x1c   :  { %162 = dma.hbm_to_vmem [thread:$0]  %s155_s7, 128, %s157_s22, [#allocation18], %s6247_s25, %s6247_s25, %s6248_s3  }
  0x1d   :  { %s182_s26 = sshll.u32 %s6249_s11, 4  ;;  %s206_s30 = sshll.u32 %s7217_s15, 4  ;;  %s183_s26 = int_to_ptr.vmem [resolvable:$true] %s182_s26  ;;  %s207_s30 = int_to_ptr.hbm [resolvable:$true] %s206_s30 }
  0x1e   :  { %188 = dma.hbm_to_vmem [thread:$0]  %s181_s24, 32, %s183_s26, [#allocation21], %s6243_s29, %s6243_s29, %s6244_s0  }
  0x1f   :  { %s7226_s19 = sld [smem:[#allocation41_spill]]  ;;  %s6250_s20 = smov [#allocation23]  }
  0x20   :  { %s208_s21 = sshll.u32 %s6250_s20, 4  ;;  %s6251_s7 = smov [#allocation2]   ;;  %s209_s21 = int_to_ptr.vmem [resolvable:$true] %s208_s21 }
  0x21   :  { %214 = dma.hbm_to_vmem [thread:$0]  %s207_s30, 32, %s209_s21, [#allocation24], %s6243_s29, %s6243_s29, %s6244_s0  }
  0x22   :  { %s44_s15 = sshll.u32 %s6251_s7, 4  ;;  %s63_s2 = sshll.u32 %s7206_s4, 4  ;;  %s45_s15 = int_to_ptr.vmem [resolvable:$true] %s44_s15  ;;  %s64_s2 = int_to_ptr.hbm [resolvable:$true] %s63_s2 }
  0x23   :  { %s6252_s23 = smov [#allocation7]   ;;  %s89_s26 = sshll.u32 %s7208_s6, 4  ;;  %s90_s26 = int_to_ptr.hbm [resolvable:$true] %s89_s26 }
  0x24   :  { %s65_s24 = sshll.u32 %s6252_s23, 4  ;;  %s6253_s27 = smov 384   ;;  %s66_s24 = int_to_ptr.vmem [resolvable:$true] %s65_s24 }
  0x25   :  { %s42_s1 = sshll.u32 %s7226_s19, 4  ;;  %s6254_s28 = smov 24   ;;  %s43_s1 = int_to_ptr.hbm [resolvable:$true] %s42_s1 }
  0x26   :  { %47 = dma.hbm_to_vmem [thread:$0]  %s43_s1, 16, %s45_s15, [#allocation3]  }
  0x27   :  { %71 = dma.hbm_to_vmem [thread:$0]  %s64_s2, 12288, %s66_s24, [#allocation6], %s6253_s27, %s6253_s27, %s6254_s28  }
  0x28   :  { %s6255_s30 = smov [#allocation10]   ;;  %s6256_s13 = smov 128  }
  0x29   :  { %s91_s5 = sshll.u32 %s6255_s30, 4  ;;  %s6257_s19 = smov 8   ;;  %s92_s5 = int_to_ptr.vmem [resolvable:$true] %s91_s5 }
  0x2a   :  { %97 = dma.hbm_to_vmem [thread:$0]  %s90_s26, 4096, %s92_s5, [#allocation9], %s6256_s13, %s6256_s13, %s6257_s19  }
  0x2b   :  { %s115_s1 = sshll.u32 %s7210_s8, 4  ;;  %s6258_s21 = smov [#allocation13]   ;;  %s116_s1 = int_to_ptr.hbm [resolvable:$true] %s115_s1 }
  0x2c   :  { %s117_s7 = sshll.u32 %s6258_s21, 4  ;;  %s141_s9 = sshll.u32 %s7212_s10, 4  ;;  %s118_s7 = int_to_ptr.vmem [resolvable:$true] %s117_s7  ;;  %s142_s9 = int_to_ptr.hbm [resolvable:$true] %s141_s9 }
  0x2d   :  { %123 = dma.hbm_to_vmem [thread:$0]  %s116_s1, 32, %s118_s7, [#allocation12], %s6243_s29, %s6243_s29, %s6244_s0  }
  0x2e   :  { %s6259_s22 = smov [#allocation16]   ;;  %s6260_s23 = smov 512  }
  0x2f   :  { %s143_s2 = sshll.u32 %s6259_s22, 4  ;;  %s6261_s24 = smov 32   ;;  %s144_s2 = int_to_ptr.vmem [resolvable:$true] %s143_s2 }
  0x30   :  { %149 = dma.hbm_to_vmem [thread:$0]  %s142_s9, 16384, %s144_s2, [#allocation15], %s6260_s23, %s6260_s23, %s6261_s24  }
  0x31   :  { %s167_s11 = sshll.u32 %s7214_s12, 4  ;;  %s6262_s26 = smov [#allocation19]   ;;  %s168_s11 = int_to_ptr.hbm [resolvable:$true] %s167_s11 }
  0x32   :  { %s169_s27 = sshll.u32 %s6262_s26, 4  ;;  %s193_s30 = sshll.u32 %s7216_s14, 4  ;;  %s170_s27 = int_to_ptr.vmem [resolvable:$true] %s169_s27  ;;  %s194_s30 = int_to_ptr.hbm [resolvable:$true] %s193_s30 }
  0x33   :  { %175 = dma.hbm_to_vmem [thread:$0]  %s168_s11, 16384, %s170_s27, [#allocation18], %s6256_s13, %s6256_s13, %s6257_s19  }
  0x34   :  { %s6263_s5 = smov [#allocation22]   ;;  %s219_s21 = sshll.u32 %s7218_s16, 4  ;;  %s220_s21 = int_to_ptr.hbm [resolvable:$true] %s219_s21 }
  0x35   :  { %s195_s4 = sshll.u32 %s6263_s5, 4  ;;  %s233_s15 = sshll.u32 %s7219_s17, 4  ;;  %s196_s4 = int_to_ptr.vmem [resolvable:$true] %s195_s4  ;;  %s234_s15 = int_to_ptr.hbm [resolvable:$true] %s233_s15 }
  0x36   :  { %201 = dma.hbm_to_vmem [thread:$0]  %s194_s30, 32, %s196_s4, [#allocation21], %s6243_s29, %s6243_s29, %s6244_s0  }
  0x37   :  { %s6264_s6 = smov [#allocation25]   ;;  %s6265_s13 = smov [#allocation26]  }
  0x38   :  { %s221_s14 = sshll.u32 %s6264_s6, 4  ;;  %s235_s19 = sshll.u32 %s6265_s13, 4  ;;  %s222_s14 = int_to_ptr.vmem [resolvable:$true] %s221_s14  ;;  %s236_s19 = int_to_ptr.vmem [resolvable:$true] %s235_s19 }
  0x39   :  { %227 = dma.hbm_to_vmem [thread:$0]  %s220_s21, 65536, %s222_s14, [#allocation24], %s6260_s23, %s6260_s23, %s6261_s24  }
  0x3a   :  { %238 = dma.hbm_to_vmem [thread:$0]  %s234_s15, 64, %s236_s19, [#allocation27]  }
  0x3b   :  { %6218 = dma.done.wait [#allocation3], 16  }
  0x3c   :  { %6219 = vsyncadd [#allocation3], 4294967280 }
  0x3d   :  { %6220 = dma.done.wait [#allocation6], 12304  }
  0x3e   :  { %6221 = vsyncadd [#allocation6], 4294954992 }
  0x3f   :  { %6222 = dma.done.wait [#allocation9], 4192  }
  0x40   :  { %6223 = vsyncadd [#allocation9], 4294963104 }
  0x41   :  { %6224 = dma.done.wait [#allocation12], 64  }
  0x42   :  { %6225 = vsyncadd [#allocation12], 4294967232 }
  0x43   :  { %6226 = dma.done.wait [#allocation15], 16416  }
  0x44   :  { %6227 = vsyncadd [#allocation15], 4294950880 }
  0x45   :  { %6228 = dma.done.wait [#allocation18], 16512  }
  0x46   :  { %6229 = vsyncadd [#allocation18], 4294950784 }
  0x47   :  { %6230 = dma.done.wait [#allocation21], 64  }
  0x48   :  { %6231 = vsyncadd [#allocation21], 4294967232 }
  0x49   :  { %6232 = dma.done.wait [#allocation24], 65568  }
  0x4a   :  { %6233 = vsyncadd [#allocation24], 4294901728 }
  0x4b   :  { %6234 = dma.done.wait [#allocation27], 64  }
  0x4c   :  { %6235 = vsyncadd [#allocation27], 4294967232  ;;  %s7227_s29 = sld [smem:[#allocation39_spill]]  ;;  %v6266_v1 = vmov 128.0   ;;  %v409_v3 = vld [vmem:[#allocation7 + $0x168] sm:$0xff]  ;;  %v410_v4 = vld [vmem:[#allocation7 + $0x170] sm:$0xff] }
  0x4d   :  { %5688 = vrcp.f32 %v6266_v1  ;;  %437 = vmatpush.msra.mxu0 %v409_v3  ;;  %v411_v5 = vld [vmem:[#allocation7 + $0x178] sm:$0xff]  ;;  %v406_v6 = vld [vmem:[#allocation7 + $0x150] sm:$0xff]  ;;  %460 = vmatpush.msra.mxu1 %v410_v4  ;;  %v408_v8 = vld [vmem:[#allocation7 + $0x160] sm:$0xff]  ;;  %vm507_vm4 = vcmask 261120   ;;  %s6267_s22 = smov 96   ;;  %s7228_s8 = sld [smem:[#allocation40_spill]] }
  0x4e   :  { %v407_v7 = vld [vmem:[#allocation7 + $0x158] sm:$0xff]  ;;  %483 = vmatpush.msra.mxu2 %v411_v5  ;;  %v404_v20 = vld [vmem:[#allocation7 + $0x140] sm:$0xff]  ;;  %v405_v21 = vld [vmem:[#allocation7 + $0x148] sm:$0xff]  ;;  %vm537_vm8 = vcmask 64512   ;;  %s5559_s4 = sshll.u32 %s7220_s18, 4  ;;  %s5560_s4 = int_to_ptr.hbm [resolvable:$true] %s5559_s4 }
  0x4f   :  { %438 = vmatpush.msra.mxu0 %v406_v6  ;;  %461 = vmatpush.msra.mxu1 %v407_v7  ;;  %v403_v19 = vld [vmem:[#allocation7 + $0x138] sm:$0xff]  ;;  %v400_v22 = vld [vmem:[#allocation7 + $0x120] sm:$0xff]  ;;  %v401_v23 = vld [vmem:[#allocation7 + $0x128] sm:$0xff] }
  0x50   :  { %484 = vmatpush.msra.mxu2 %v408_v8  ;;  %v402_v24 = vld [vmem:[#allocation7 + $0x130] sm:$0xff]  ;;  %v397_v25 = vld [vmem:[#allocation7 + $0x108] sm:$0xff]  ;;  %v399_v27 = vld [vmem:[#allocation7 + $0x118] sm:$0xff] }
  0x51   :  { %439 = vmatpush.msra.mxu0 %v403_v19  ;;  %462 = vmatpush.msra.mxu1 %v404_v20  ;;  %v398_v26 = vld [vmem:[#allocation7 + $0x110] sm:$0xff]  ;;  %v395_v29 = vld [vmem:[#allocation7 + $0xf8] sm:$0xff]  ;;  %v396_v30 = vld [vmem:[#allocation7 + $0x100] sm:$0xff] }
  0x52   :  { %v303_v0 = vld [vmem:[%s7227_s29] sm:$0xff]  ;;  %v6440_v2 = vld [vmem:[%s7227_s29 + $0x8] sm:$0xff]  ;;  %485 = vmatpush.msra.mxu2 %v405_v21  ;;  %v394_v28 = vld [vmem:[#allocation7 + $0xf0] sm:$0xff] }
  0x53   :  { %307 = vadd.xlane.f32.xlu0 %v303_v0  ;;  %309 = vadd.xlane.f32.xlu1 %v6440_v2  ;;  %v5689_v9 = vpop.eup %5688  ;;  %v391_v31 = vld [vmem:[#allocation7 + $0xd8] sm:$0xff]  ;;  %v392_v32 = vld [vmem:[#allocation7 + $0xe0] sm:$0xff]  ;;  %v393_v33 = vld [vmem:[#allocation7 + $0xe8] sm:$0xff] }
  0x54   :  { %v312_v10 = vmul.f32 128.0, %v5689_v9  ;;  %vm316_vm0 = vweird.f32 %v5689_v9  ;;  %440 = vmatpush.msra.mxu0 %v400_v22  ;;  %463 = vmatpush.msra.mxu1 %v401_v23  ;;  %v388_v34 = vld [vmem:[#allocation7 + $0xc0] sm:$0xff]  ;;  %v389_v35 = vld [vmem:[#allocation7 + $0xc8] sm:$0xff]  ;;  %v390_v36 = vld [vmem:[#allocation7 + $0xd0] sm:$0xff] }
  0x55   :  { %486 = vmatpush.msra.mxu2 %v402_v24  ;;  %v385_v37 = vld [vmem:[#allocation7 + $0xa8] sm:$0xff]  ;;  %v386_v38 = vld [vmem:[#allocation7 + $0xb0] sm:$0xff]  ;;  %v387_v39 = vld [vmem:[#allocation7 + $0xb8] sm:$0xff] }
  0x56   :  { %v313_v11 = vsub.f32 1.0, %v312_v10  ;;  %441 = vmatpush.msra.mxu0 %v397_v25  ;;  %464 = vmatpush.msra.mxu1 %v398_v26  ;;  %v382_v40 = vld [vmem:[#allocation7 + $0x90] sm:$0xff]  ;;  %v383_v41 = vld [vmem:[#allocation7 + $0x98] sm:$0xff]  ;;  %v384_v42 = vld [vmem:[#allocation7 + $0xa0] sm:$0xff] }
  0x57   :  { %487 = vmatpush.msra.mxu2 %v399_v27  ;;  %v379_v43 = vld [vmem:[#allocation7 + $0x78] sm:$0xff]  ;;  %v380_v44 = vld [vmem:[#allocation7 + $0x80] sm:$0xff]  ;;  %v381_v45 = vld [vmem:[#allocation7 + $0x88] sm:$0xff] }
  0x58   :  { %v314_v12 = vmul.f32 %v5689_v9, %v313_v11  ;;  %442 = vmatpush.msra.mxu0 %v394_v28  ;;  %465 = vmatpush.msra.mxu1 %v395_v29  ;;  %v376_v46 = vld [vmem:[#allocation7 + $0x60] sm:$0xff]  ;;  %v377_v47 = vld [vmem:[#allocation7 + $0x68] sm:$0xff]  ;;  %v378_v48 = vld [vmem:[#allocation7 + $0x70] sm:$0xff] }
  0x59   :  { %488 = vmatpush.msra.mxu2 %v396_v30  ;;  %v373_v49 = vld [vmem:[#allocation7 + $0x48] sm:$0xff]  ;;  %v374_v50 = vld [vmem:[#allocation7 + $0x50] sm:$0xff]  ;;  %v375_v51 = vld [vmem:[#allocation7 + $0x58] sm:$0xff] }
  0x5a   :  { %v315_v13 = vadd.f32 %v5689_v9, %v314_v12  ;;  %443 = vmatpush.msra.mxu0 %v391_v31  ;;  %466 = vmatpush.msra.mxu1 %v392_v32  ;;  %v370_v52 = vld [vmem:[#allocation7 + $0x30] sm:$0xff]  ;;  %v371_v53 = vld [vmem:[#allocation7 + $0x38] sm:$0xff]  ;;  %v372_v54 = vld [vmem:[#allocation7 + $0x40] sm:$0xff] }
  0x5b   :  { %489 = vmatpush.msra.mxu2 %v393_v33  ;;  %v367_v55 = vld [vmem:[#allocation7 + $0x18] sm:$0xff]  ;;  %v368_v56 = vld [vmem:[#allocation7 + $0x20] sm:$0xff]  ;;  %v369_v57 = vld [vmem:[#allocation7 + $0x28] sm:$0xff] }
  0x5c   :  { %v6443_v14 = vsel %vm316_vm0, %v5689_v9, %v315_v13  ;;  %444 = vmatpush.msra.mxu0 %v388_v34  ;;  %467 = vmatpush.msra.mxu1 %v389_v35  ;;  %v364_v58 = vld [vmem:[#allocation7] sm:$0xff]  ;;  %v365_v59 = vld [vmem:[#allocation7 + $0x8] sm:$0xff]  ;;  %v366_v60 = vld [vmem:[#allocation7 + $0x10] sm:$0xff] }
  0x5d   :  { %490 = vmatpush.msra.mxu2 %v390_v36  ;;  %v5672_v11 = vld [vmem:[#allocation2] ss:$0 sm:$0xff] }
  0x5e   :  { %445 = vmatpush.msra.mxu0 %v385_v37  ;;  %468 = vmatpush.msra.mxu1 %v386_v38 }
  0x5f   :  { %491 = vmatpush.msra.mxu2 %v387_v39 }
  0x60   :  { %446 = vmatpush.msra.mxu0 %v382_v40  ;;  %469 = vmatpush.msra.mxu1 %v383_v41 }
  0x61   :  { %492 = vmatpush.msra.mxu2 %v384_v42 }
  0x62   :  { %447 = vmatpush.msra.mxu0 %v379_v43  ;;  %470 = vmatpush.msra.mxu1 %v380_v44  ;;  %v6497_v43 = vld [vmem:[%s7228_s8] ss:$0 sm:$0xff] }
  0x63   :  { %493 = vmatpush.msra.mxu2 %v381_v45 }
  0x64   :  { %448 = vmatpush.msra.mxu0 %v376_v46  ;;  %471 = vmatpush.msra.mxu1 %v377_v47 }
  0x65   :  { %494 = vmatpush.msra.mxu2 %v378_v48  ;;  %v6503_v48 = vld [vmem:[#allocation10 + $0x58] sm:$0xff] }
  0x66   :  { %449 = vmatpush.msra.mxu0 %v373_v49  ;;  %472 = vmatpush.msra.mxu1 %v374_v50  ;;  %v6506_v49 = vld [vmem:[#allocation10 + $0x50] sm:$0xff] }
  0x67   :  { %495 = vmatpush.msra.mxu2 %v375_v51  ;;  %v6508_v51 = vld [vmem:[#allocation10 + $0x48] sm:$0xff] }
  0x68   :  { %450 = vmatpush.msra.mxu0 %v370_v52  ;;  %473 = vmatpush.msra.mxu1 %v371_v53  ;;  %v6513_v53 = vld [vmem:[#allocation10 + $0x40] sm:$0xff] }
  0x69   :  { %496 = vmatpush.msra.mxu2 %v372_v54 }
  0x6a   :  { %451 = vmatpush.msra.mxu0 %v367_v55  ;;  %474 = vmatpush.msra.mxu1 %v368_v56 }
  0x6b   :  { %497 = vmatpush.msra.mxu2 %v369_v57 }
  0x6c   :  { %452 = vmatpush.msra.mxu0 %v364_v58  ;;  %475 = vmatpush.msra.mxu1 %v365_v59 }
  0x6d   :  { %498 = vmatpush.msra.mxu2 %v366_v60 }
  0x6f   :  { %768 = vmatpush.msrb.mxu2 %v6503_v48 }
  0x71   :  { %769 = vmatpush.msrb.mxu2 %v6506_v49 }
  0x73   :  { %770 = vmatpush.msrb.mxu2 %v6508_v51 }
  0x75   :  { %771 = vmatpush.msrb.mxu2 %v6513_v53 }
  0xc6   :  { %v308_v15 = vpop.xlane.xlu0 %307  ;;  %v310_v61 = vpop.xlane.xlu1 %309 }
  0xc7   :  { %v318_v16 = vmul.f32 %v6443_v14, %v308_v15  ;;  %v319_v62 = vmul.f32 %v6443_v14, %v310_v61  ;;  %v5673_v15 = vld [vmem:[#allocation5] ss:$0 sm:$0xff] }
  0xc9   :  { %v6446_v17 = vsub.f32 %v303_v0, %v318_v16  ;;  %v321_v1 = vsub.f32 %v6440_v2, %v319_v62 }
  0xcb   :  { %v322_v18 = vmul.f32 %v6446_v17, %v6446_v17  ;;  %v323_v4 = vmul.f32 %v321_v1, %v321_v1 }
  0xcd   :  { %324 = vadd.xlane.f32.xlu0 %v322_v18  ;;  %326 = vadd.xlane.f32.xlu1 %v323_v4  ;;  %v6459_v18 = vld [vmem:[#allocation8] sm:$0x7] }
  0xce   :  { %v432_v19 = vperm.slane %v6459_v18, 1  ;;  %v431_v20 = vperm.slane %v6459_v18, 0  ;;  %v433_v24 = vperm.slane %v6459_v18, 2 }
 0x140   :  { %v325_v63 = vpop.xlane.xlu0 %324  ;;  %v327_v27 = vpop.xlane.xlu1 %326 }
 0x141   :  { %v328_v0 = vmul.f32 %v325_v63, %v6443_v14  ;;  %v329_v28 = vmul.f32 %v327_v27, %v6443_v14 }
 0x143   :  { %v330_v3 = vadd.f32 1e-07, %v328_v0  ;;  %v331_v29 = vadd.f32 1e-07, %v329_v28 }
 0x145   :  { %5690 = vrsqrt.f32 %v330_v3  ;;  %vm338_vm2 = vweird.f32 %v330_v3  ;;  %vm348_vm5 = vweird.f32 %v331_v29 }
 0x146   :  { %5692 = vrsqrt.f32 %v331_v29 }
 0x14b   :  { %v5691_v5 = vpop.eup %5690 }
 0x14c   :  { %v333_v6 = vmul.f32 %v5691_v5, %v330_v3  ;;  %vm339_vm1 = vweird.f32 %v5691_v5  ;;  %v5693_v30 = vpop.eup %5692 }
 0x14d   :  { %vm340_vm3 = vmor %vm338_vm2, %vm339_vm1  ;;  %v343_v31 = vmul.f32 %v5693_v30, %v331_v29  ;;  %vm349_vm6 = vweird.f32 %v5693_v30 }
 0x14e   :  { %v334_v7 = vmul.f32 %v5691_v5, %v333_v6  ;;  %vm350_vm7 = vmor %vm348_vm5, %vm349_vm6 }
 0x14f   :  { %v344_v32 = vmul.f32 %v5693_v30, %v343_v31 }
 0x150   :  { %v335_v8 = vmul.f32 0.5, %v334_v7 }
 0x151   :  { %v345_v33 = vmul.f32 0.5, %v344_v32 }
 0x152   :  { %v336_v9 = vsub.f32 1.5, %v335_v8 }
 0x153   :  { %v346_v34 = vsub.f32 1.5, %v345_v33 }
 0x154   :  { %v337_v10 = vmul.f32 %v5691_v5, %v336_v9 }
 0x155   :  { %v347_v35 = vmul.f32 %v5693_v30, %v346_v34 }
 0x156   :  { %v341_v12 = vsel %vm340_vm3, %v5691_v5, %v337_v10 }
 0x157   :  { %v352_v13 = vmul.f32 %v341_v12, %v6446_v17  ;;  %v351_v36 = vsel %vm350_vm7, %v5693_v30, %v347_v35 }
 0x158   :  { %v353_v37 = vmul.f32 %v351_v36, %v321_v1 }
 0x159   :  { %v357_v16 = vmul.f32 %v5672_v11, %v352_v13 }
 0x15a   :  { %v358_v38 = vmul.f32 %v5672_v11, %v353_v37 }
 0x15b   :  { %v6454_v2 = vadd.f32 %v5673_v15, %v357_v16 }
 0x15c   :  { %v6486_v39 = vadd.f32 %v5673_v15, %v358_v38 }
 0x15d   :  { %453 = vmatmul.f32.vlgmr.msra.gmra.mxu0 %v6454_v2  ;;  %476 = vmatmul.f32.vlgmr.msra.gmra.mxu1 %v6454_v2 }
 0x15e   :  { %499 = vmatmul.f32.vlgmr.msra.gmra.mxu2 %v6454_v2 }
 0x165   :  { %456 = vmatmul.f32.gmra.mxu0 %v6486_v39  ;;  %479 = vmatmul.f32.gmra.mxu1 %v6486_v39 }
 0x166   :  { %502 = vmatmul.f32.gmra.mxu2 %v6486_v39 }
 0x1da   :  { %v477_v21 = vpop.f32.mrf.mxu1  ;;  %v454_v22 = vpop.f32.mrf.mxu0 }
 0x1db   :  { %v6463_v17 = vadd.f32 %v477_v21, %v432_v19  ;;  %v6471_v23 = vadd.f32 %v454_v22, %v431_v20 }
 0x1dd   :  { %688 = vrot.lane.b32.xlu2 %v6463_v17, %s6247_s25  ;;  %5577 = vmatpush.xpose.msk.msra.mxu3 %vm507_vm4, %v6463_v17 }
 0x1e0   :  { %5578 = vmatmul.msk.f32.vlgmr.msra.gmra.mxu3 %vm507_vm4, %v6471_v23 }
 0x1e1   :  { %v500_v25 = vpop.f32.mrf.mxu2 }
 0x1e2   :  { %v6478_v26 = vadd.f32 %v500_v25, %v433_v24  ;;  %v480_v50 = vpop.f32.mrf.mxu1  ;;  %v457_v54 = vpop.f32.mrf.mxu0 }
 0x1e3   :  { %v6511_v52 = vadd.f32 %v480_v50, %v432_v19  ;;  %v6541_v30 = vadd.f32 %v457_v54, %v431_v20  ;;  %v6552_v20 = vld [vmem:[%s7228_s8 + $0x1] ss:$0 sm:$0xff]  ;;  %v414_v54 = vld [vmem:[#allocation10 + $0x8] sm:$0xff] }
 0x1e4   :  { %567 = vmatpush.msrb.mxu3 %v6478_v26  ;;  %v415_v50 = vld [vmem:[#allocation10 + $0x10] sm:$0xff] }
 0x1e5   :  { %686 = vrot.lane.b32.xlu2 %v6471_v23, %s6247_s25  ;;  %5593 = vmatpush.xpose.msk.msra.mxu2 %vm507_vm4, %v6511_v52 }
 0x1e9   :  { %v503_v33 = vpop.f32.mrf.mxu2 }
 0x1ed   :  { %574 = vrot.lane.b32.xlu2 %v6463_v17, %s6267_s22 }
 0x237   :  { %v689_v40 = vpop.permute.xlu2 %688 }
 0x238   :  { %5585 = vmatpush.xpose.msk.msrb.mxu0 %vm507_vm4, %v689_v40 }
 0x23f   :  { %v687_v41 = vpop.permute.xlu2 %686 }
 0x240   :  { %5586 = vmatmul.msk.f32.vlgmr.msrb.gmra.mxu0 %vm507_vm4, %v687_v41 }
 0x247   :  { %v575_v42 = vpop.permute.xlu2 %574 }
 0x248   :  { %5580 = vmatpush.xpose.msk.msra.mxu3 %vm507_vm4, %v575_v42  ;;  %v420_v42 = vld [vmem:[#allocation10 + $0x38] sm:$0xff] }
 0x263   :  { %v531_v44 = vpop.f32.mrf.mxu3 }
 0x264   :  { %v534_v45 = vmul.f32 0.17677669, %v531_v44  ;;  %v419_v44 = vld [vmem:[#allocation10 + $0x30] sm:$0xff] }
 0x266   :  { %v536_v46 = vadd.f32 %v6497_v43, %v534_v45  ;;  %v418_v45 = vld [vmem:[#allocation10 + $0x28] sm:$0xff] }
 0x268   :  { %v538_v47 = vsel %vm537_vm8, %v536_v46, -inf }
 0x269   :  { %539 = vmax.xlane.f32.xlu0 %v538_v47  ;;  %v416_v47 = vld [vmem:[#allocation10 + $0x18] sm:$0xff] }
 0x27d   :  { %572 = vrot.lane.b32.xlu0 %v6471_v23, %s6267_s22 }
 0x2bd   :  { %v711_v58 = vpop.f32.mrf.mxu0 }
 0x2be   :  { %v714_v60 = vmul.f32 0.17677669, %v711_v58 }
 0x2c0   :  { %v715_v62 = vadd.f32 %v6497_v43, %v714_v60 }
 0x2c2   :  { %v716_v63 = vsel %vm537_vm8, %v715_v62, -inf }
 0x2dc   :  { %v540_v55 = vpop.xlane.xlu0 %539 }
 0x2dd   :  { %v541_v56 = vsub.f32 %v536_v46, %v540_v55  ;;  %v417_v46 = vld [vmem:[#allocation10 + $0x20] sm:$0xff] }
 0x2de   :  { %v413_v55 = vld [vmem:[#allocation10] sm:$0xff] }
 0x2df   :  { %v542_v57 = vmul.f32 1.442695, %v541_v56 }
 0x2e1   :  { %5694 = vpow2.f32 %v542_v57 }
 0x2e7   :  { %v5695_v59 = vpop.eup %5694 }
 0x2e8   :  { %v544_v61 = vsel %vm537_vm8, %v5695_v59, 0.0 }
 0x2e9   :  { %545 = vadd.xlane.f32.xlu1 %v544_v61 }
 0x2ef   :  { %v573_v7 = vpop.permute.xlu0 %572 }
 0x2f1   :  { %717 = vmax.xlane.f32.xlu1 %v716_v63 }
 0x30a   :  { %727 = vrot.lane.b32.xlu1 %v6478_v26, %s6247_s25 }
 0x35c   :  { %v546_v0 = vpop.xlane.xlu1 %545 }
 0x35d   :  { %5696 = vrcp.f32 %v546_v0 }
 0x363   :  { %v5697_v1 = vpop.eup %5696 }
 0x364   :  { %v718_v3 = vpop.xlane.xlu1 %717  ;;  %v548_v4 = vmul.f32 %v5697_v1, %v5695_v59 }
 0x365   :  { %v719_v5 = vsub.f32 %v715_v62, %v718_v3 }
 0x366   :  { %5579 = vmatmul.msk.f32.vlgmr.msrb.gmra.mxu3 %vm537_vm8, %v548_v4 }
 0x367   :  { %v720_v6 = vmul.f32 1.442695, %v719_v5 }
 0x369   :  { %5698 = vpow2.f32 %v720_v6 }
 0x36e   :  { %5581 = vmatmul.msk.f32.vlgmr.msra.gmra.mxu3 %vm507_vm4, %v573_v7 }
 0x36f   :  { %v5699_v8 = vpop.eup %5698 }
 0x370   :  { %v722_v9 = vsel %vm537_vm8, %v5699_v8, 0.0 }
 0x371   :  { %723 = vadd.xlane.f32.xlu2 %v722_v9 }
 0x37c   :  { %v728_v10 = vpop.permute.xlu1 %727 }
 0x37d   :  { %748 = vmatpush.msrb.mxu1 %v728_v10 }
 0x389   :  { %614 = vrot.lane.b32.xlu2 %v6478_v26, %s6267_s22 }
 0x391   :  { %777 = vrot.lane.b32.xlu2 %v6471_v23, %s6261_s24 }
 0x3e4   :  { %v724_v11 = vpop.xlane.xlu2 %723 }
 0x3e5   :  { %5700 = vrcp.f32 %v724_v11 }
 0x3e9   :  { %v6531_v12 = vpop.f32.mrf.mxu3 }
 0x3eb   :  { %v5701_v13 = vpop.eup %5700 }
 0x3ec   :  { %v615_v15 = vpop.permute.xlu2 %614  ;;  %v726_v16 = vmul.f32 %v5701_v13, %v5699_v8 }
 0x3ed   :  { %635 = vmatpush.msrb.mxu3 %v615_v15 }
 0x3ee   :  { %5587 = vmatmul.msk.f32.vlgmr.msrb.gmra.mxu1 %vm537_vm8, %v726_v16 }
 0x3ef   :  { %655 = vmatpush.msra.mxu3 %v420_v42 }
 0x3f1   :  { %v597_v19 = vpop.f32.mrf.mxu3  ;;  %656 = vmatpush.msra.mxu3 %v419_v44 }
 0x3f2   :  { %v600_v21 = vmul.f32 0.17677669, %v597_v19 }
 0x3f3   :  { %657 = vmatpush.msra.mxu3 %v418_v45 }
 0x3f4   :  { %v601_v22 = vadd.f32 %v6497_v43, %v600_v21  ;;  %v778_v56 = vpop.permute.xlu2 %777 }
 0x3f5   :  { %658 = vmatpush.msra.mxu3 %v417_v46 }
 0x3f6   :  { %v602_v25 = vsel %vm537_vm8, %v601_v22, -inf }
 0x3f7   :  { %603 = vmax.xlane.f32.xlu0 %v602_v25 }
 0x40b   :  { %779 = vrot.lane.b32.xlu0 %v6463_v17, %s6261_s24 }
 0x46a   :  { %v604_v23 = vpop.xlane.xlu0 %603 }
 0x46b   :  { %v605_v27 = vsub.f32 %v601_v22, %v604_v23  ;;  %v750_v28 = vpop.f32.mrf.mxu1 }
 0x46c   :  { %5588 = vmatmul.msk.f32.vlgmr.msrb.gmra.mxu2 %vm507_vm4, %v750_v28 }
 0x46d   :  { %v606_v29 = vmul.f32 1.442695, %v605_v27  ;;  %1015 = vmatpush.msrb.mxu2 %v420_v42 }
 0x46f   :  { %5702 = vpow2.f32 %v606_v29  ;;  %1016 = vmatpush.msrb.mxu2 %v419_v44  ;;  %v6607_v29 = vld [vmem:[#allocation10 + $0x78] sm:$0xff] }
 0x470   :  { %859 = vmatpush.msra.mxu1 %v6607_v29 }
 0x471   :  { %1017 = vmatpush.msrb.mxu2 %v418_v45 }
 0x473   :  { %1018 = vmatpush.msrb.mxu2 %v417_v46 }
 0x474   :  { %5594 = vmatmul.msk.f32.vlgmr.msra.gmra.mxu2 %vm507_vm4, %v6541_v30 }
 0x475   :  { %v5703_v31 = vpop.eup %5702  ;;  %1128 = vmatpush.msra.mxu2 %v6503_v48 }
 0x476   :  { %v608_v32 = vsel %vm537_vm8, %v5703_v31, 0.0 }
 0x477   :  { %609 = vadd.xlane.f32.xlu1 %v608_v32  ;;  %1129 = vmatpush.msra.mxu2 %v6506_v49  ;;  %v6615_v32 = vld [vmem:[#allocation10 + $0x60] sm:$0xff] }
 0x479   :  { %1130 = vmatpush.msra.mxu2 %v6508_v51  ;;  %v6569_v51 = vadd.f32 %v503_v33, %v433_v24 }
 0x47b   :  { %1131 = vmatpush.msra.mxu2 %v6513_v53 }
 0x47d   :  { %v780_v61 = vpop.permute.xlu0 %779 }
 0x4ea   :  { %v610_v17 = vpop.xlane.xlu1 %609 }
 0x4eb   :  { %5704 = vrcp.f32 %v610_v17 }
 0x4ef   :  { %v6546_v34 = vpop.f32.mrf.mxu2 }
 0x4f1   :  { %v5705_v35 = vpop.eup %5704 }
 0x4f2   :  { %v612_v36 = vmul.f32 %v5705_v35, %v5703_v31  ;;  %v6613_v31 = vld [vmem:[#allocation10 + $0x68] sm:$0xff] }
 0x4f4   :  { %5582 = vmatmul.msk.f32.vlgmr.msrb.gmra.mxu3 %vm537_vm8, %v612_v36 }
 0x4f5   :  { %678 = vmatpush.msrb.mxu3 %v416_v47 }
 0x4f7   :  { %v892_v37 = vpop.f32.mrf.mxu2  ;;  %679 = vmatpush.msrb.mxu3 %v415_v50 }
 0x4f8   :  { %v895_v38 = vmul.f32 0.17677669, %v892_v37 }
 0x4f9   :  { %680 = vmatpush.msrb.mxu3 %v414_v54 }
 0x4fa   :  { %v897_v40 = vadd.f32 %v6552_v20, %v895_v38 }
 0x4fb   :  { %681 = vmatpush.msrb.mxu3 %v413_v55 }
 0x4fc   :  { %v898_v41 = vsel %vm537_vm8, %v897_v40, -inf }
 0x4fd   :  { %899 = vmax.xlane.f32.xlu2 %v898_v41 }
 0x515   :  { %934 = vrot.lane.b32.xlu2 %v6511_v52, %s6267_s22 }
 0x51d   :  { %1137 = vrot.lane.b32.xlu2 %v6541_v30, %s6261_s24 }
 0x570   :  { %v900_v57 = vpop.xlane.xlu2 %899 }
 0x571   :  { %v901_v58 = vsub.f32 %v897_v40, %v900_v57  ;;  %v6628_v57 = vld [vmem:[#allocation11] ss:$0 sm:$0xff] }
 0x573   :  { %v902_v59 = vmul.f32 1.442695, %v901_v58 }
 0x575   :  { %5706 = vpow2.f32 %v902_v59 }
 0x577   :  { %v637_v60 = vpop.f32.mrf.mxu3 }
 0x578   :  { %5583 = vmatmul.msk.f32.vlgmr.msra.gmra.mxu3 %vm507_vm4, %v637_v60  ;;  %v935_v1 = vpop.permute.xlu2 %934 }
 0x579   :  { %5589 = vmatpush.xpose.msk.msra.mxu3 %vm507_vm4, %v780_v61 }
 0x57b   :  { %v5707_v48 = vpop.eup %5706 }
 0x57c   :  { %v904_v49 = vsel %vm537_vm8, %v5707_v48, 0.0 }
 0x57d   :  { %905 = vadd.xlane.f32.xlu1 %v904_v49 }
 0x580   :  { %5584 = vmatmul.msk.f32.vlgmr.msrb.gmra.mxu3 %vm507_vm4, %v6531_v12  ;;  %v1138_v10 = vpop.permute.xlu2 %1137 }
 0x581   :  { %927 = vmatpush.msrb.mxu3 %v6569_v51 }
 0x588   :  { %5590 = vmatmul.msk.f32.vlgmr.msra.gmra.mxu3 %vm507_vm4, %v778_v56 }
 0x589   :  { %1038 = vmatpush.msra.mxu3 %v416_v47 }
 0x58b   :  { %1039 = vmatpush.msra.mxu3 %v415_v50 }
 0x58d   :  { %1040 = vmatpush.msra.mxu3 %v414_v54 }
 0x58f   :  { %1041 = vmatpush.msra.mxu3 %v413_v55 }
 0x596   :  { %818 = vrot.lane.b32.xlu1 %v6478_v26, %s6261_s24 }
 0x59e   :  { %932 = vrot.lane.b32.xlu1 %v6541_v30, %s6267_s22 }
 0x5a6   :  { %1139 = vrot.lane.b32.xlu1 %v6511_v52, %s6261_s24 }
 0x5f0   :  { %v906_v18 = vpop.xlane.xlu1 %905 }
 0x5f1   :  { %5708 = vrcp.f32 %v906_v18 }
 0x5f7   :  { %v5709_v24 = vpop.eup %5708 }
 0x5f8   :  { %v908_v53 = vmul.f32 %v5709_v24, %v5707_v48 }
 0x5fa   :  { %5595 = vmatmul.msk.f32.vlgmr.msrb.gmra.mxu3 %vm537_vm8, %v908_v53 }
 0x5fb   :  { %v6582_v62 = vpop.f32.mrf.mxu3 }
 0x603   :  { %v6584_v63 = vpop.f32.mrf.mxu3 }
 0x604   :  { %v684_v55 = vadd.f32 %v6584_v63, %v6582_v62 }
 0x606   :  { %v776_v56 = vadd.f32 %v6546_v34, %v684_v55  ;;  %v1338_v55 = vld [vmem:[#allocation16 + $0x198] sm:$0xff] }
 0x608   :  { %v819_v0 = vpop.permute.xlu1 %818 }
 0x609   :  { %839 = vmatpush.msra.mxu0 %v819_v0 }
 0x60b   :  { %5596 = vmatpush.xpose.msk.msrb.mxu0 %vm507_vm4, %v935_v1  ;;  %v802_v26 = vpop.f32.mrf.mxu3 }
 0x60c   :  { %v805_v3 = vmul.f32 0.17677669, %v802_v26 }
 0x60e   :  { %v806_v4 = vadd.f32 %v6497_v43, %v805_v3 }
 0x610   :  { %v933_v5 = vpop.permute.xlu1 %932  ;;  %v807_v6 = vsel %vm537_vm8, %v806_v4, -inf }
 0x611   :  { %808 = vmax.xlane.f32.xlu0 %v807_v6  ;;  %v1344_v6 = vld [vmem:[#allocation16 + $0x1c8] sm:$0xff] }
 0x618   :  { %v1140_v7 = vpop.permute.xlu1 %1139 }
 0x619   :  { %5605 = vmatpush.xpose.msk.msrb.mxu3 %vm507_vm4, %v1140_v7 }
 0x625   :  { %1048 = vrot.lane.b32.xlu0 %v6511_v52, %s6247_s25 }
 0x67d   :  { %v929_v8 = vpop.f32.mrf.mxu3 }
 0x67e   :  { %5600 = vmatmul.msk.f32.vlgmr.msra.gmra.mxu3 %vm507_vm4, %v929_v8 }
 0x684   :  { %v809_v9 = vpop.xlane.xlu0 %808 }
 0x685   :  { %v810_v11 = vsub.f32 %v806_v4, %v809_v9 }
 0x686   :  { %5606 = vmatmul.msk.f32.vlgmr.msrb.gmra.mxu3 %vm507_vm4, %v1138_v10 }
 0x687   :  { %v811_v12 = vmul.f32 1.442695, %v810_v11 }
 0x689   :  { %5710 = vpow2.f32 %v811_v12 }
 0x68f   :  { %v5711_v43 = vpop.eup %5710 }
 0x690   :  { %v813_v13 = vsel %vm537_vm8, %v5711_v43, 0.0 }
 0x691   :  { %814 = vadd.xlane.f32.xlu1 %v813_v13  ;;  %v1349_v13 = vld [vmem:[#allocation16 + $0x1f0] sm:$0xff] }
 0x697   :  { %v1049_v23 = vpop.permute.xlu0 %1048 }
 0x6aa   :  { %1046 = vrot.lane.b32.xlu1 %v6541_v30, %s6247_s25  ;;  %v6610_v30 = vld [vmem:[#allocation10 + $0x70] sm:$0xff] }
 0x6ab   :  { %860 = vmatpush.msra.mxu1 %v6610_v30 }
 0x6ad   :  { %861 = vmatpush.msra.mxu1 %v6613_v31 }
 0x6af   :  { %862 = vmatpush.msra.mxu1 %v6615_v32 }
 0x701   :  { %v6597_v15 = vpop.f32.mrf.mxu3 }
 0x704   :  { %v815_v52 = vpop.xlane.xlu1 %814 }
 0x705   :  { %5712 = vrcp.f32 %v815_v52  ;;  %v1345_v52 = vld [vmem:[#allocation16 + $0x1d0] sm:$0xff] }
 0x709   :  { %v1162_v16 = vpop.f32.mrf.mxu3 }
 0x70a   :  { %v1165_v19 = vmul.f32 0.17677669, %v1162_v16 }
 0x70b   :  { %v5713_v21 = vpop.eup %5712 }
 0x70c   :  { %v817_v22 = vmul.f32 %v5713_v21, %v5711_v43  ;;  %v1166_v25 = vadd.f32 %v6552_v20, %v1165_v19  ;;  %v1340_v21 = vld [vmem:[#allocation16 + $0x1a8] sm:$0xff] }
 0x70e   :  { %5591 = vmatmul.msk.f32.vlgmr.msra.gmra.mxu0 %vm537_vm8, %v817_v22  ;;  %v1167_v27 = vsel %vm537_vm8, %v1166_v25, -inf  ;;  %v1341_v22 = vld [vmem:[#allocation16 + $0x1b0] sm:$0xff] }
 0x70f   :  { %5601 = vmatpush.xpose.msk.msra.mxu0 %vm507_vm4, %v1049_v23  ;;  %1168 = vmax.xlane.f32.xlu2 %v1167_v27  ;;  %v1337_v23 = vld [vmem:[#allocation16 + $0x190] sm:$0xff]  ;;  %v1332_v27 = vld [vmem:[#allocation16 + $0x168] sm:$0xff] }
 0x716   :  { %5597 = vmatmul.msk.f32.vlgmr.msrb.gmra.mxu0 %vm507_vm4, %v933_v5  ;;  %v1348_v5 = vld [vmem:[#allocation16 + $0x1e8] sm:$0xff] }
 0x717   :  { %1384 = vmatpush.msra.mxu3 %v1348_v5 }
 0x719   :  { %1385 = vmatpush.msra.mxu3 %v1344_v6 }
 0x71b   :  { %1386 = vmatpush.msra.mxu3 %v1340_v21  ;;  %v6655_v21 = vld [vmem:[#allocation14] ss:$0 sm:$0xff] }
 0x71c   :  { %v1047_v28 = vpop.permute.xlu1 %1046 }
 0x71e   :  { %5602 = vmatmul.msk.f32.vlgmr.msra.gmra.mxu0 %vm507_vm4, %v1047_v28  ;;  %v1333_v28 = vld [vmem:[#allocation16 + $0x170] sm:$0xff] }
 0x727   :  { %974 = vrot.lane.b32.xlu2 %v6569_v51, %s6267_s22 }
 0x782   :  { %v1169_v33 = vpop.xlane.xlu2 %1168 }
 0x783   :  { %v1170_v36 = vsub.f32 %v1166_v25, %v1169_v33  ;;  %v1336_v25 = vld [vmem:[#allocation16 + $0x188] sm:$0xff] }
 0x784   :  { %1387 = vmatpush.msra.mxu3 %v1336_v25  ;;  %v1328_v33 = vld [vmem:[#allocation16 + $0x148] sm:$0xff]  ;;  %v1339_v25 = vld [vmem:[#allocation16 + $0x1a0] sm:$0xff] }
 0x785   :  { %v1171_v37 = vmul.f32 1.442695, %v1170_v36  ;;  %v1317_v36 = vld [vmem:[#allocation16 + $0xf0] sm:$0xff] }
 0x786   :  { %1388 = vmatpush.msra.mxu3 %v1332_v27 }
 0x787   :  { %5714 = vpow2.f32 %v1171_v37  ;;  %v1312_v37 = vld [vmem:[#allocation16 + $0xc8] sm:$0xff] }
 0x788   :  { %1389 = vmatpush.msra.mxu3 %v1328_v33  ;;  %v1323_v33 = vld [vmem:[#allocation16 + $0x120] sm:$0xff] }
 0x78a   :  { %v975_v17 = vpop.permute.xlu2 %974 }
 0x78b   :  { %v841_v35 = vpop.f32.mrf.mxu0  ;;  %995 = vmatpush.msrb.mxu1 %v975_v17  ;;  %v1321_v17 = vld [vmem:[#allocation16 + $0x110] sm:$0xff] }
 0x78c   :  { %5592 = vmatmul.msk.f32.vlgmr.msra.gmra.mxu1 %vm507_vm4, %v841_v35  ;;  %v1316_v35 = vld [vmem:[#allocation16 + $0xe8] sm:$0xff] }
 0x78d   :  { %v5715_v46 = vpop.eup %5714 }
 0x78e   :  { %v1173_v50 = vsel %vm537_vm8, %v5715_v46, 0.0 }
 0x793   :  { %v957_v38 = vpop.f32.mrf.mxu0 }
 0x794   :  { %v960_v40 = vmul.f32 0.17677669, %v957_v38  ;;  %v1313_v38 = vld [vmem:[#allocation16 + $0xd0] sm:$0xff] }
 0x796   :  { %v961_v41 = vadd.f32 %v6552_v20, %v960_v40  ;;  %v1350_v40 = vld [vmem:[#allocation16 + $0x1f8] sm:$0xff] }
 0x798   :  { %v962_v42 = vsel %vm537_vm8, %v961_v41, -inf }
 0x799   :  { %963 = vmax.xlane.f32.xlu1 %v962_v42  ;;  %v1309_v42 = vld [vmem:[#allocation16 + $0xb0] sm:$0xff] }
 0x79b   :  { %v1071_v44 = vpop.f32.mrf.mxu0 }
 0x79c   :  { %v1074_v45 = vmul.f32 0.17677669, %v1071_v44  ;;  %v1346_v44 = vld [vmem:[#allocation16 + $0x1d8] sm:$0xff] }
 0x79e   :  { %v1075_v47 = vadd.f32 %v6552_v20, %v1074_v45  ;;  %v1304_v45 = vld [vmem:[#allocation16 + $0x88] sm:$0xff] }
 0x7a0   :  { %v1076_v54 = vsel %vm537_vm8, %v1075_v47, -inf }
 0x7a1   :  { %1174 = vadd.xlane.f32.xlu1 %v1173_v50  ;;  %1077 = vmax.xlane.f32.xlu0 %v1076_v54  ;;  %v1300_v50 = vld [vmem:[#allocation16 + $0x68] sm:$0xff]  ;;  %v1301_v54 = vld [vmem:[#allocation16 + $0x70] sm:$0xff] }
 0x809   :  { %v864_v58 = vpop.f32.mrf.mxu1 }
 0x80a   :  { %v867_v59 = vadd.f32 %v864_v58, %v776_v56  ;;  %v1296_v56 = vld [vmem:[#allocation16 + $0x48] sm:$0xff]  ;;  %v1297_v58 = vld [vmem:[#allocation16 + $0x50] sm:$0xff] }
 0x80c   :  { %v964_v60 = vpop.xlane.xlu1 %963  ;;  %v1231_v61 = vadd.f32 %v6628_v57, %v867_v59  ;;  %v1334_v59 = vld [vmem:[#allocation16 + $0x178] sm:$0xff] }
 0x80d   :  { %v965_v48 = vsub.f32 %v961_v41, %v964_v60  ;;  %v1308_v41 = vld [vmem:[#allocation16 + $0xa8] sm:$0xff] }
 0x80e   :  { %v1233_v20 = vadd.f32 %v1231_v61, %v6454_v2  ;;  %v1292_v60 = vld [vmem:[#allocation16 + $0x28] sm:$0xff]  ;;  %v1293_v61 = vld [vmem:[#allocation16 + $0x30] sm:$0xff] }
 0x80f   :  { %v966_v49 = vmul.f32 1.442695, %v965_v48  ;;  %v1330_v48 = vld [vmem:[#allocation16 + $0x158] sm:$0xff] }
 0x810   :  { %1237 = vadd.xlane.f32.xlu2 %v1233_v20 }
 0x811   :  { %5716 = vpow2.f32 %v966_v49  ;;  %v1289_v49 = vld [vmem:[#allocation16 + $0x10] sm:$0xff] }
 0x814   :  { %v1078_v18 = vpop.xlane.xlu0 %1077  ;;  %v1175_v1 = vpop.xlane.xlu1 %1174 }
 0x815   :  { %v1079_v24 = vsub.f32 %v1075_v47, %v1078_v18  ;;  %v1342_v47 = vld [vmem:[#allocation16 + $0x1b8] sm:$0xff] }
 0x816   :  { %v1326_v18 = vld [vmem:[#allocation16 + $0x138] sm:$0xff] }
 0x817   :  { %v5717_v53 = vpop.eup %5716  ;;  %v1080_v0 = vmul.f32 1.442695, %v1079_v24  ;;  %v1322_v24 = vld [vmem:[#allocation16 + $0x118] sm:$0xff] }
 0x818   :  { %v968_v62 = vsel %vm537_vm8, %v5717_v53, 0.0 }
 0x819   :  { %5718 = vpow2.f32 %v1080_v0  ;;  %969 = vadd.xlane.f32.xlu1 %v968_v62  ;;  %v1318_v0 = vld [vmem:[#allocation16 + $0xf8] sm:$0xff] }
 0x81f   :  { %v5719_v34 = vpop.eup %5718 }
 0x820   :  { %v1082_v63 = vsel %vm537_vm8, %v5719_v34, 0.0 }
 0x821   :  { %1083 = vadd.xlane.f32.xlu0 %v1082_v63 }
 0x832   :  { %1178 = vrot.lane.b32.xlu1 %v6569_v51, %s6261_s24 }
 0x835   :  { %1087 = vrot.lane.b32.xlu0 %v6569_v51, %s6247_s25 }
 0x883   :  { %v1238_v2 = vpop.xlane.xlu2 %1237 }
 0x884   :  { %v1241_v26 = vmul.f32 %v1238_v2, %v6443_v14  ;;  %v1310_v2 = vld [vmem:[#allocation16 + $0xb8] sm:$0xff] }
 0x886   :  { %v6639_v3 = vsub.f32 %v1233_v20, %v1241_v26  ;;  %v1288_v20 = vld [vmem:[#allocation16 + $0x8] sm:$0xff]  ;;  %v1302_v26 = vld [vmem:[#allocation16 + $0x78] sm:$0xff] }
 0x888   :  { %v1245_v4 = vmul.f32 %v6639_v3, %v6639_v3 }
 0x88a   :  { %1247 = vadd.xlane.f32.xlu0 %v1245_v4  ;;  %v1298_v4 = vld [vmem:[#allocation16 + $0x58] sm:$0xff] }
 0x88c   :  { %v970_v7 = vpop.xlane.xlu1 %969 }
 0x88d   :  { %5720 = vrcp.f32 %v970_v7  ;;  %v1294_v7 = vld [vmem:[#allocation16 + $0x38] sm:$0xff] }
 0x88e   :  { %5722 = vrcp.f32 %v1175_v1  ;;  %v1306_v1 = vld [vmem:[#allocation16 + $0x98] sm:$0xff] }
 0x893   :  { %v5721_v8 = vpop.eup %5720 }
 0x894   :  { %v972_v9 = vmul.f32 %v5721_v8, %v5717_v53  ;;  %v1084_v51 = vpop.xlane.xlu0 %1083  ;;  %v5723_v10 = vpop.eup %5722 }
 0x895   :  { %5724 = vrcp.f32 %v1084_v51  ;;  %v1177_v12 = vmul.f32 %v5723_v10, %v5715_v46  ;;  %v1305_v46 = vld [vmem:[#allocation16 + $0x90] sm:$0xff] }
 0x896   :  { %5598 = vmatmul.msk.f32.vlgmr.msrb.gmra.mxu1 %vm537_vm8, %v972_v9  ;;  %v1290_v9 = vld [vmem:[#allocation16 + $0x18] sm:$0xff] }
 0x89b   :  { %v5725_v11 = vpop.eup %5724 }
 0x89c   :  { %v1086_v16 = vmul.f32 %v5725_v11, %v5719_v34  ;;  %v1314_v34 = vld [vmem:[#allocation16 + $0xd8] sm:$0xff] }
 0x8a4   :  { %v1179_v43 = vpop.permute.xlu1 %1178 }
 0x8a5   :  { %1199 = vmatpush.msrb.mxu0 %v1179_v43  ;;  %v1347_v43 = vld [vmem:[#allocation16 + $0x1e0] sm:$0xff] }
 0x8a6   :  { %5607 = vmatmul.msk.f32.vlgmr.msrb.gmra.mxu0 %vm537_vm8, %v1177_v12  ;;  %v6651_v12 = vld [vmem:[#allocation13] ss:$0 sm:$0xff] }
 0x8a7   :  { %v1088_v19 = vpop.permute.xlu0 %1087  ;;  %1407 = vmatpush.msra.mxu0 %v1349_v13 }
 0x8a8   :  { %1108 = vmatpush.msra.mxu1 %v1088_v19  ;;  %v1343_v19 = vld [vmem:[#allocation16 + $0x1c0] sm:$0xff] }
 0x8a9   :  { %5603 = vmatmul.msk.f32.vlgmr.msra.gmra.mxu1 %vm537_vm8, %v1086_v16  ;;  %1408 = vmatpush.msra.mxu0 %v1345_v52 }
 0x8aa   :  { %1219 = vmatpush.msrb.mxu1 %v6607_v29  ;;  %v1329_v29 = vld [vmem:[#allocation16 + $0x150] sm:$0xff] }
 0x8ab   :  { %1409 = vmatpush.msra.mxu0 %v1341_v22 }
 0x8ac   :  { %1220 = vmatpush.msrb.mxu1 %v6610_v30  ;;  %v1324_v30 = vld [vmem:[#allocation16 + $0x128] sm:$0xff] }
 0x8ad   :  { %1410 = vmatpush.msra.mxu0 %v1337_v23  ;;  %1390 = vmatpush.msra.mxu3 %v1324_v30  ;;  %v1335_v23 = vld [vmem:[#allocation16 + $0x180] sm:$0xff] }
 0x8ae   :  { %1221 = vmatpush.msrb.mxu1 %v6613_v31  ;;  %v1325_v31 = vld [vmem:[#allocation16 + $0x130] sm:$0xff]  ;;  %v1315_v30 = vld [vmem:[#allocation16 + $0xe0] sm:$0xff] }
 0x8af   :  { %1411 = vmatpush.msra.mxu0 %v1333_v28  ;;  %v1327_v28 = vld [vmem:[#allocation16 + $0x140] sm:$0xff] }
 0x8b0   :  { %1222 = vmatpush.msrb.mxu1 %v6615_v32  ;;  %v1320_v32 = vld [vmem:[#allocation16 + $0x108] sm:$0xff] }
 0x8b1   :  { %1412 = vmatpush.msra.mxu0 %v1329_v29  ;;  %1391 = vmatpush.msra.mxu3 %v1320_v32  ;;  %v1319_v29 = vld [vmem:[#allocation16 + $0x100] sm:$0xff] }
 0x8b2   :  { %1430 = vmatpush.msra.mxu1 %v1350_v40  ;;  %v1311_v32 = vld [vmem:[#allocation16 + $0xc0] sm:$0xff] }
 0x8b3   :  { %1413 = vmatpush.msra.mxu0 %v1325_v31  ;;  %1392 = vmatpush.msra.mxu3 %v1316_v35  ;;  %v1307_v35 = vld [vmem:[#allocation16 + $0xa0] sm:$0xff] }
 0x8b4   :  { %1431 = vmatpush.msra.mxu1 %v1346_v44  ;;  %v1291_v40 = vld [vmem:[#allocation16 + $0x20] sm:$0xff] }
 0x8b5   :  { %1414 = vmatpush.msra.mxu0 %v1321_v17  ;;  %1393 = vmatpush.msra.mxu3 %v1312_v37  ;;  %v1299_v37 = vld [vmem:[#allocation16 + $0x60] sm:$0xff] }
 0x8b6   :  { %1432 = vmatpush.msra.mxu1 %v1342_v47 }
 0x8b7   :  { %1415 = vmatpush.msra.mxu0 %v1317_v36  ;;  %1394 = vmatpush.msra.mxu3 %v1308_v41  ;;  %v1303_v36 = vld [vmem:[#allocation16 + $0x80] sm:$0xff] }
 0x8b8   :  { %1433 = vmatpush.msra.mxu1 %v1338_v55  ;;  %v1287_v41 = vld [vmem:[#allocation16] sm:$0xff] }
 0x8b9   :  { %1416 = vmatpush.msra.mxu0 %v1313_v38  ;;  %1395 = vmatpush.msra.mxu3 %v1304_v45  ;;  %v1295_v38 = vld [vmem:[#allocation16 + $0x40] sm:$0xff] }
 0x8ba   :  { %1434 = vmatpush.msra.mxu1 %v1334_v59 }
 0x8bb   :  { %1417 = vmatpush.msra.mxu0 %v1309_v42  ;;  %1396 = vmatpush.msra.mxu3 %v1300_v50 }
 0x8bc   :  { %1435 = vmatpush.msra.mxu1 %v1330_v48  ;;  %v1572_v48 = vld [vmem:[#allocation19 + $0x178] sm:$0xff] }
 0x8bd   :  { %1418 = vmatpush.msra.mxu0 %v1305_v46  ;;  %1397 = vmatpush.msra.mxu3 %v1296_v56 }
 0x8be   :  { %1436 = vmatpush.msra.mxu1 %v1326_v18  ;;  %v1587_v18 = vld [vmem:[#allocation19 + $0x1f0] sm:$0xff] }
 0x8bf   :  { %1419 = vmatpush.msra.mxu0 %v1301_v54  ;;  %1398 = vmatpush.msra.mxu3 %v1292_v60 }
 0x8c0   :  { %1437 = vmatpush.msra.mxu1 %v1322_v24  ;;  %v1538_v24 = vld [vmem:[#allocation19 + $0x68] sm:$0xff] }
 0x8c1   :  { %1420 = vmatpush.msra.mxu0 %v1297_v58  ;;  %1399 = vmatpush.msra.mxu3 %v1288_v20  ;;  %v1588_v20 = vld [vmem:[#allocation19 + $0x1f8] sm:$0xff] }
 0x8c2   :  { %1438 = vmatpush.msra.mxu1 %v1318_v0  ;;  %v1570_v0 = vld [vmem:[#allocation19 + $0x168] sm:$0xff] }
 0x8c3   :  { %1421 = vmatpush.msra.mxu0 %v1293_v61  ;;  %v1540_v61 = vld [vmem:[#allocation19 + $0x78] sm:$0xff] }
 0x8c4   :  { %1439 = vmatpush.msra.mxu1 %v1314_v34  ;;  %v1537_v34 = vld [vmem:[#allocation19 + $0x60] sm:$0xff] }
 0x8c5   :  { %1422 = vmatpush.msra.mxu0 %v1289_v49  ;;  %v1571_v49 = vld [vmem:[#allocation19 + $0x170] sm:$0xff] }
 0x8c6   :  { %1440 = vmatpush.msra.mxu1 %v1310_v2  ;;  %v1569_v2 = vld [vmem:[#allocation19 + $0x160] sm:$0xff] }
 0x8c7   :  { %1639 = vmatpush.msrb.mxu0 %v1572_v48  ;;  %v1544_v48 = vld [vmem:[#allocation19 + $0x98] sm:$0xff] }
 0x8c8   :  { %1441 = vmatpush.msra.mxu1 %v1306_v1  ;;  %v1585_v1 = vld [vmem:[#allocation19 + $0x1e0] sm:$0xff] }
 0x8c9   :  { %1640 = vmatpush.msrb.mxu0 %v1571_v49  ;;  %v1527_v49 = vld [vmem:[#allocation19 + $0x10] sm:$0xff] }
 0x8ca   :  { %1442 = vmatpush.msra.mxu1 %v1302_v26  ;;  %v1536_v26 = vld [vmem:[#allocation19 + $0x58] sm:$0xff] }
 0x8cb   :  { %1641 = vmatpush.msrb.mxu0 %v1570_v0  ;;  %v1559_v0 = vld [vmem:[#allocation19 + $0x110] sm:$0xff] }
 0x8cc   :  { %1443 = vmatpush.msra.mxu1 %v1298_v4  ;;  %v1552_v4 = vld [vmem:[#allocation19 + $0xd8] sm:$0xff] }
 0x8cd   :  { %1642 = vmatpush.msrb.mxu0 %v1569_v2 }
 0x8ce   :  { %1444 = vmatpush.msra.mxu1 %v1294_v7  ;;  %v1535_v7 = vld [vmem:[#allocation19 + $0x50] sm:$0xff] }
 0x8d0   :  { %1445 = vmatpush.msra.mxu1 %v1290_v9  ;;  %v1567_v9 = vld [vmem:[#allocation19 + $0x150] sm:$0xff] }
 0x8fd   :  { %v1248_v53 = vpop.xlane.xlu0 %1247 }
 0x8fe   :  { %v1251_v62 = vmul.f32 %v1248_v53, %v6443_v14  ;;  %v1554_v53 = vld [vmem:[#allocation19 + $0xe8] sm:$0xff] }
 0x900   :  { %v1253_v63 = vadd.f32 1e-07, %v1251_v62  ;;  %v1586_v62 = vld [vmem:[#allocation19 + $0x1e8] sm:$0xff] }
 0x902   :  { %5726 = vrsqrt.f32 %v1253_v63  ;;  %vm1261_vm10 = vweird.f32 %v1253_v63 }
 0x908   :  { %v5727_v5 = vpop.eup %5726 }
 0x909   :  { %v1256_v6 = vmul.f32 %v5727_v5, %v1253_v63  ;;  %vm1262_vm9 = vweird.f32 %v5727_v5  ;;  %v1553_v63 = vld [vmem:[#allocation19 + $0xe0] sm:$0xff] }
 0x90a   :  { %vm1263_vm11 = vmor %vm1261_vm10, %vm1262_vm9 }
 0x90b   :  { %v1257_v8 = vmul.f32 %v5727_v5, %v1256_v6  ;;  %v1584_v6 = vld [vmem:[#allocation19 + $0x1d8] sm:$0xff] }
 0x90d   :  { %v1258_v51 = vmul.f32 0.5, %v1257_v8  ;;  %v1551_v8 = vld [vmem:[#allocation19 + $0xd0] sm:$0xff] }
 0x90f   :  { %v1259_v10 = vsub.f32 1.5, %v1258_v51  ;;  %v1583_v51 = vld [vmem:[#allocation19 + $0x1d0] sm:$0xff] }
 0x911   :  { %v1260_v11 = vmul.f32 %v5727_v5, %v1259_v10  ;;  %v1534_v10 = vld [vmem:[#allocation19 + $0x48] sm:$0xff] }
 0x913   :  { %v1264_v13 = vsel %vm1263_vm11, %v5727_v5, %v1260_v11  ;;  %v997_v52 = vpop.f32.mrf.mxu1  ;;  %v1568_v5 = vld [vmem:[#allocation19 + $0x158] sm:$0xff]  ;;  %v1550_v11 = vld [vmem:[#allocation19 + $0xc8] sm:$0xff] }
 0x914   :  { %v1275_v16 = vmul.f32 %v1264_v13, %v6639_v3  ;;  %5599 = vmatmul.msk.f32.vlgmr.msrb.gmra.mxu2 %vm507_vm4, %v997_v52  ;;  %v1331_v3 = vld [vmem:[#allocation16 + $0x160] sm:$0xff]  ;;  %1643 = vmatpush.msrb.mxu0 %v1568_v5  ;;  %v1582_v13 = vld [vmem:[#allocation19 + $0x1c8] sm:$0xff]  ;;  %v1533_v52 = vld [vmem:[#allocation19 + $0x40] sm:$0xff] }
 0x915   :  { %1361 = vmatpush.msrb.mxu2 %v1347_v43  ;;  %v1566_v43 = vld [vmem:[#allocation19 + $0x148] sm:$0xff] }
 0x916   :  { %v1280_v22 = vmul.f32 %v6651_v12, %v1275_v16  ;;  %1644 = vmatpush.msrb.mxu0 %v1567_v9  ;;  %v1549_v16 = vld [vmem:[#allocation19 + $0xc0] sm:$0xff] }
 0x917   :  { %1362 = vmatpush.msrb.mxu2 %v1343_v19  ;;  %v1565_v19 = vld [vmem:[#allocation19 + $0x140] sm:$0xff] }
 0x918   :  { %v6659_v27 = vadd.f32 %v6655_v21, %v1280_v22  ;;  %1645 = vmatpush.msrb.mxu0 %v1566_v43  ;;  %v6675_v22 = vld [vmem:[#allocation17] sm:$0xf] }
 0x919   :  { %1363 = vmatpush.msrb.mxu2 %v1339_v25  ;;  %v1581_v25 = vld [vmem:[#allocation19 + $0x1c0] sm:$0xff] }
 0x91a   :  { %1400 = vmatmul.f32.vlgmr.msra.gmra.mxu3 %v6659_v27  ;;  %1423 = vmatmul.f32.vlgmr.msra.gmra.mxu0 %v6659_v27 }
 0x91b   :  { %1364 = vmatpush.msrb.mxu2 %v1335_v23  ;;  %1646 = vmatpush.msrb.mxu0 %v1565_v19  ;;  %v1532_v23 = vld [vmem:[#allocation19 + $0x38] sm:$0xff] }
 0x91d   :  { %1365 = vmatpush.msrb.mxu2 %v1331_v3  ;;  %v1548_v3 = vld [vmem:[#allocation19 + $0xb8] sm:$0xff] }
 0x91f   :  { %1366 = vmatpush.msrb.mxu2 %v1327_v28  ;;  %v1564_v28 = vld [vmem:[#allocation19 + $0x138] sm:$0xff] }
 0x920   :  { %1647 = vmatpush.msrb.mxu0 %v1564_v28 }
 0x921   :  { %1367 = vmatpush.msrb.mxu2 %v1323_v33  ;;  %v1580_v33 = vld [vmem:[#allocation19 + $0x1b8] sm:$0xff] }
 0x923   :  { %1368 = vmatpush.msrb.mxu2 %v1319_v29  ;;  %v1201_v31 = vpop.f32.mrf.mxu0  ;;  %v1531_v29 = vld [vmem:[#allocation19 + $0x30] sm:$0xff] }
 0x924   :  { %5608 = vmatmul.msk.f32.vlgmr.msrb.gmra.mxu1 %vm507_vm4, %v1201_v31  ;;  %v1563_v31 = vld [vmem:[#allocation19 + $0x130] sm:$0xff] }
 0x925   :  { %1369 = vmatpush.msrb.mxu2 %v1315_v30  ;;  %1662 = vmatpush.msrb.mxu1 %v1588_v20  ;;  %v1547_v30 = vld [vmem:[#allocation19 + $0xb0] sm:$0xff]  ;;  %v1560_v20 = vld [vmem:[#allocation19 + $0x118] sm:$0xff] }
 0x926   :  { %v1110_v17 = vpop.f32.mrf.mxu1  ;;  %1648 = vmatpush.msrb.mxu0 %v1563_v31 }
 0x927   :  { %1370 = vmatpush.msrb.mxu2 %v1311_v32  ;;  %1663 = vmatpush.msrb.mxu1 %v1587_v18  ;;  %v1355_v32 = vperm.slane %v6675_v22, 2  ;;  %v1543_v18 = vld [vmem:[#allocation19 + $0x90] sm:$0xff] }
 0x928   :  { %5604 = vmatmul.msk.f32.vlgmr.msra.gmra.mxu2 %vm507_vm4, %v1110_v17  ;;  %v1579_v17 = vld [vmem:[#allocation19 + $0x1b0] sm:$0xff] }
 0x929   :  { %1371 = vmatpush.msrb.mxu2 %v1307_v35  ;;  %1664 = vmatpush.msrb.mxu1 %v1586_v62  ;;  %v1575_v62 = vld [vmem:[#allocation19 + $0x190] sm:$0xff] }
 0x92b   :  { %1372 = vmatpush.msrb.mxu2 %v1303_v36  ;;  %1665 = vmatpush.msrb.mxu1 %v1585_v1  ;;  %v1354_v36 = vperm.slane %v6675_v22, 1  ;;  %v1542_v1 = vld [vmem:[#allocation19 + $0x88] sm:$0xff] }
 0x92c   :  { %1446 = vmatmul.f32.vlgmr.msra.gmra.mxu1 %v6659_v27 }
 0x92d   :  { %1373 = vmatpush.msrb.mxu2 %v1299_v37  ;;  %1666 = vmatpush.msrb.mxu1 %v1584_v6  ;;  %v1530_v37 = vld [vmem:[#allocation19 + $0x28] sm:$0xff]  ;;  %v1525_v6 = vld [vmem:[#allocation19] sm:$0xff] }
 0x92f   :  { %1374 = vmatpush.msrb.mxu2 %v1295_v38  ;;  %1667 = vmatpush.msrb.mxu1 %v1583_v51  ;;  %v1546_v38 = vld [vmem:[#allocation19 + $0xa8] sm:$0xff]  ;;  %v1557_v51 = vld [vmem:[#allocation19 + $0x100] sm:$0xff] }
 0x931   :  { %1375 = vmatpush.msrb.mxu2 %v1291_v40  ;;  %1668 = vmatpush.msrb.mxu1 %v1582_v13  ;;  %v1562_v40 = vld [vmem:[#allocation19 + $0x128] sm:$0xff] }
 0x932   :  { %1649 = vmatpush.msrb.mxu0 %v1562_v40 }
 0x933   :  { %1376 = vmatpush.msrb.mxu2 %v1287_v41  ;;  %1669 = vmatpush.msrb.mxu1 %v1581_v25 }
 0x934   :  { %1377 = vmatmul.f32.vlgmr.msrb.gmra.mxu2 %v6659_v27 }
 0x935   :  { %1593 = vmatpush.msra.mxu2 %v1540_v61  ;;  %1670 = vmatpush.msrb.mxu1 %v1580_v33 }
 0x937   :  { %1671 = vmatpush.msrb.mxu1 %v1579_v17 }
 0x997   :  { %v1020_v42 = vpop.f32.mrf.mxu2  ;;  %v1424_v35 = vpop.f32.mrf.mxu0 }
 0x998   :  { %v1044_v44 = vadd.f32 %v6597_v15, %v1020_v42  ;;  %v1556_v15 = vld [vmem:[#allocation19 + $0xf8] sm:$0xff]  ;;  %v1353_v42 = vperm.slane %v6675_v22, 0 }
 0x999   :  { %1616 = vmatpush.msrb.mxu3 %v1556_v15  ;;  %v1528_v15 = vld [vmem:[#allocation19 + $0x18] sm:$0xff] }
 0x99d   :  { %v1401_v41 = vpop.f32.mrf.mxu3 }
 0x9a1   :  { %v1224_v47 = vpop.f32.mrf.mxu1 }
 0x9ab   :  { %v1133_v45 = vpop.f32.mrf.mxu2 }
 0x9ac   :  { %v1136_v46 = vadd.f32 %v1133_v45, %v1044_v44  ;;  %v1578_v44 = vld [vmem:[#allocation19 + $0x1a8] sm:$0xff]  ;;  %v1529_v45 = vld [vmem:[#allocation19 + $0x20] sm:$0xff] }
 0x9ad   :  { %1672 = vmatpush.msrb.mxu1 %v1578_v44 }
 0x9ae   :  { %v1227_v50 = vadd.f32 %v1224_v47, %v1136_v46  ;;  %v1545_v46 = vld [vmem:[#allocation19 + $0xa0] sm:$0xff]  ;;  %v1356_v47 = vperm.slane %v6675_v22, 3 }
 0x9b0   :  { %v1232_v54 = vadd.f32 %v6628_v57, %v1227_v50  ;;  %v1539_v57 = vld [vmem:[#allocation19 + $0x70] sm:$0xff] }
 0x9b1   :  { %1594 = vmatpush.msra.mxu2 %v1539_v57 }
 0x9b2   :  { %v1234_v55 = vadd.f32 %v1232_v54, %v6486_v39  ;;  %v1555_v39 = vld [vmem:[#allocation19 + $0xf0] sm:$0xff]  ;;  %v1561_v54 = vld [vmem:[#allocation19 + $0x120] sm:$0xff] }
 0x9b3   :  { %1617 = vmatpush.msrb.mxu3 %v1555_v39  ;;  %1595 = vmatpush.msra.mxu2 %v1538_v24  ;;  %v1576_v39 = vld [vmem:[#allocation19 + $0x198] sm:$0xff] }
 0x9b4   :  { %1239 = vadd.xlane.f32.xlu1 %v1234_v55  ;;  %1650 = vmatpush.msrb.mxu0 %v1561_v54 }
 0x9b5   :  { %1618 = vmatpush.msrb.mxu3 %v1554_v53  ;;  %1596 = vmatpush.msra.mxu2 %v1537_v34  ;;  %v1526_v34 = vld [vmem:[#allocation19 + $0x8] sm:$0xff] }
 0x9b6   :  { %1651 = vmatpush.msrb.mxu0 %v1560_v20 }
 0x9b7   :  { %1619 = vmatpush.msrb.mxu3 %v1553_v63  ;;  %1597 = vmatpush.msra.mxu2 %v1536_v26  ;;  %v1378_v50 = vpop.f32.mrf.mxu2  ;;  %v1558_v26 = vld [vmem:[#allocation19 + $0x108] sm:$0xff] }
 0x9b8   :  { %v6691_v61 = vadd.f32 %v1378_v50, %v1353_v42  ;;  %1652 = vmatpush.msrb.mxu0 %v1559_v0 }
 0x9b9   :  { %1620 = vmatpush.msrb.mxu3 %v1552_v4  ;;  %1598 = vmatpush.msra.mxu2 %v1535_v7  ;;  %v1574_v4 = vld [vmem:[#allocation19 + $0x188] sm:$0xff]  ;;  %v1541_v7 = vld [vmem:[#allocation19 + $0x80] sm:$0xff] }
 0x9ba   :  { %v1461_v5 = vmul.f32 0.044715, %v6691_v61  ;;  %1653 = vmatpush.msrb.mxu0 %v1558_v26 }
 0x9bb   :  { %1621 = vmatpush.msrb.mxu3 %v1551_v8  ;;  %1599 = vmatpush.msra.mxu2 %v1534_v10  ;;  %v1573_v10 = vld [vmem:[#allocation19 + $0x180] sm:$0xff] }
 0x9bc   :  { %v1469_v13 = vmul.f32 %v1461_v5, %v6691_v61  ;;  %1654 = vmatpush.msrb.mxu0 %v1557_v51 }
 0x9bd   :  { %1622 = vmatpush.msrb.mxu3 %v1550_v11  ;;  %1600 = vmatpush.msra.mxu2 %v1533_v52 }
 0x9be   :  { %v1477_v25 = vmul.f32 %v1469_v13, %v6691_v61  ;;  %v6735_v13 = vld [vmem:[#allocation20] ss:$0 sm:$0xff] }
 0x9bf   :  { %1623 = vmatpush.msrb.mxu3 %v1549_v16  ;;  %1601 = vmatpush.msra.mxu2 %v1532_v23 }
 0x9c0   :  { %v1485_v31 = vadd.f32 %v1477_v25, %v6691_v61 }
 0x9c1   :  { %1624 = vmatpush.msrb.mxu3 %v1548_v3  ;;  %1602 = vmatpush.msra.mxu2 %v1531_v29 }
 0x9c3   :  { %1625 = vmatpush.msrb.mxu3 %v1547_v30  ;;  %1603 = vmatpush.msra.mxu2 %v1530_v37 }
 0x9c5   :  { %1626 = vmatpush.msrb.mxu3 %v1546_v38  ;;  %1604 = vmatpush.msra.mxu2 %v1529_v45 }
 0x9c7   :  { %1627 = vmatpush.msrb.mxu3 %v1545_v46  ;;  %1605 = vmatpush.msra.mxu2 %v1528_v15 }
 0x9c9   :  { %1628 = vmatpush.msrb.mxu3 %v1544_v48  ;;  %1606 = vmatpush.msra.mxu2 %v1527_v49 }
 0x9cb   :  { %1629 = vmatpush.msrb.mxu3 %v1543_v18  ;;  %1607 = vmatpush.msra.mxu2 %v1526_v34 }
 0x9cd   :  { %1630 = vmatpush.msrb.mxu3 %v1542_v1  ;;  %1608 = vmatpush.msra.mxu2 %v1525_v6 }
 0x9cf   :  { %1631 = vmatpush.msrb.mxu3 %v1541_v7 }
 0xa27   :  { %v1240_v56 = vpop.xlane.xlu1 %1239 }
 0xa28   :  { %v1242_v58 = vmul.f32 %v1240_v56, %v6443_v14  ;;  %v6683_v56 = vadd.f32 %v1424_v35, %v1355_v32 }
 0xa2a   :  { %v6671_v59 = vsub.f32 %v1234_v55, %v1242_v58  ;;  %v1577_v55 = vld [vmem:[#allocation19 + $0x1a0] sm:$0xff]  ;;  %v1447_v58 = vpop.f32.mrf.mxu1  ;;  %v1463_v24 = vmul.f32 0.044715, %v6683_v56 }
 0xa2b   :  { %1673 = vmatpush.msrb.mxu1 %v1577_v55  ;;  %v6695_v57 = vadd.f32 %v1447_v58, %v1356_v47 }
 0xa2c   :  { %v1246_v60 = vmul.f32 %v6671_v59, %v6671_v59  ;;  %v1471_v11 = vmul.f32 %v1463_v24, %v6683_v56 }
 0xa2d   :  { %1674 = vmatpush.msrb.mxu1 %v1576_v39  ;;  %v1464_v8 = vmul.f32 0.044715, %v6695_v57 }
 0xa2e   :  { %1249 = vadd.xlane.f32.xlu2 %v1246_v60  ;;  %v6687_v60 = vadd.f32 %v1401_v41, %v1354_v36  ;;  %v1479_v16 = vmul.f32 %v1471_v11, %v6683_v56  ;;  %v1493_v41 = vmul.f32 0.7978846, %v1485_v31 }
 0xa2f   :  { %1675 = vmatpush.msrb.mxu1 %v1575_v62  ;;  %v1472_v52 = vmul.f32 %v1464_v8, %v6695_v57 }
 0xa30   :  { %v1462_v63 = vmul.f32 0.044715, %v6687_v60  ;;  %v1487_v33 = vadd.f32 %v1479_v16, %v6683_v56  ;;  %v1454_v24 = vmul.f32 0.5, %v6687_v60 }
 0xa31   :  { %1676 = vmatpush.msrb.mxu1 %v1574_v4  ;;  %v1480_v3 = vmul.f32 %v1472_v52, %v6695_v57 }
 0xa32   :  { %v1470_v43 = vmul.f32 %v1462_v63, %v6687_v60  ;;  %v1495_v37 = vmul.f32 0.7978846, %v1487_v33 }
 0xa33   :  { %1677 = vmatpush.msrb.mxu1 %v1573_v10  ;;  %v1488_v17 = vadd.f32 %v1480_v3, %v6695_v57 }
 0xa34   :  { %v1478_v19 = vmul.f32 %v1470_v43, %v6687_v60 }
 0xa35   :  { %v1496_v44 = vmul.f32 0.7978846, %v1488_v17 }
 0xa36   :  { %v1486_v29 = vadd.f32 %v1478_v19, %v6687_v60 }
 0xa38   :  { %v1494_v38 = vmul.f32 0.7978846, %v1486_v29 }
 0xaa1   :  { %v1250_v53 = vpop.xlane.xlu2 %1249 }
 0xaa2   :  { %v1252_v2 = vmul.f32 %v1250_v53, %v6443_v14  ;;  %v1456_v53 = vmul.f32 0.5, %v6695_v57 }
 0xaa4   :  { %v1254_v9 = vadd.f32 1e-07, %v1252_v2 }
 0xaa6   :  { %5728 = vrsqrt.f32 %v1254_v9  ;;  %vm1271_vm13 = vweird.f32 %v1254_v9 }
 0xaa7   :  { %5730 = vtanh.f32 %v1495_v37 }
 0xaa8   :  { %5732 = vtanh.f32 %v1494_v38 }
 0xaa9   :  { %5734 = vtanh.f32 %v1493_v41 }
 0xaaa   :  { %5736 = vtanh.f32 %v1496_v44 }
 0xaac   :  { %v5729_v23 = vpop.eup %5728 }
 0xaad   :  { %v1266_v28 = vmul.f32 %v5729_v23, %v1254_v9  ;;  %vm1272_vm12 = vweird.f32 %v5729_v23  ;;  %v5731_v55 = vpop.eup %5730 }
 0xaae   :  { %vm1273_vm14 = vmor %vm1271_vm13, %vm1272_vm12  ;;  %v5733_v58 = vpop.eup %5732  ;;  %v1511_v49 = vadd.f32 1.0, %v5731_v55 }
 0xaaf   :  { %v1267_v30 = vmul.f32 %v5729_v23, %v1266_v28  ;;  %v5735_v48 = vpop.eup %5734 }
 0xab0   :  { %v5737_v20 = vpop.eup %5736  ;;  %v1509_v39 = vadd.f32 1.0, %v5735_v48 }
 0xab1   :  { %v1268_v35 = vmul.f32 0.5, %v1267_v30  ;;  %v1512_v18 = vadd.f32 1.0, %v5737_v20 }
 0xab3   :  { %v1269_v40 = vsub.f32 1.5, %v1268_v35  ;;  %v1520_v63 = vmul.f32 %v1512_v18, %v1456_v53  ;;  %v1786_v53 = vld [vmem:[#allocation7 + $0x2f0] sm:$0xff] }
 0xab4   :  { %1839 = vmatpush.msra.mxu3 %v1786_v53 }
 0xab5   :  { %v1270_v45 = vmul.f32 %v5729_v23, %v1269_v40 }
 0xab7   :  { %v1274_v46 = vsel %vm1273_vm14, %v5729_v23, %v1270_v45 }
 0xab8   :  { %v1276_v50 = vmul.f32 %v1274_v46, %v6671_v59  ;;  %v1510_v59 = vadd.f32 1.0, %v5733_v58 }
 0xaba   :  { %v1281_v54 = vmul.f32 %v6651_v12, %v1276_v50  ;;  %v1453_v12 = vmul.f32 0.5, %v6691_v61  ;;  %v1518_v62 = vmul.f32 %v1510_v59, %v1454_v24 }
 0xabc   :  { %v6717_v15 = vadd.f32 %v6655_v21, %v1281_v54  ;;  %v1455_v21 = vmul.f32 0.5, %v6683_v56  ;;  %v1517_v0 = vmul.f32 %v1509_v39, %v1453_v12 }
 0xabe   :  { %1380 = vmatmul.f32.gmra.mxu2 %v6717_v15  ;;  %1403 = vmatmul.f32.gmra.mxu3 %v6717_v15  ;;  %v1519_v34 = vmul.f32 %v1511_v49, %v1455_v21  ;;  %v1785_v21 = vld [vmem:[#allocation7 + $0x2e8] sm:$0xff] }
 0xabf   :  { %1426 = vmatmul.f32.gmra.mxu0 %v6717_v15  ;;  %1449 = vmatmul.f32.gmra.mxu1 %v6717_v15 }
 0xac0   :  { %1816 = vmatpush.msrb.mxu2 %v1785_v21 }
 0xac6   :  { %1609 = vmatmul.f32.vlgmr.msra.gmra.mxu2 %v1517_v0  ;;  %1632 = vmatmul.f32.vlgmr.msrb.gmra.mxu3 %v1518_v62  ;;  %v1787_v0 = vld [vmem:[#allocation7 + $0x2f8] sm:$0xff]  ;;  %v1782_v62 = vld [vmem:[#allocation7 + $0x2d0] sm:$0xff] }
 0xac7   :  { %1655 = vmatmul.f32.vlgmr.msrb.gmra.mxu0 %v1519_v34  ;;  %1678 = vmatmul.f32.vlgmr.msrb.gmra.mxu1 %v1520_v63  ;;  %v1783_v34 = vld [vmem:[#allocation7 + $0x2d8] sm:$0xff]  ;;  %v1784_v63 = vld [vmem:[#allocation7 + $0x2e0] sm:$0xff] }
 0xac8   :  { %1862 = vmatpush.msra.mxu0 %v1787_v0  ;;  %1817 = vmatpush.msrb.mxu2 %v1782_v62 }
 0xac9   :  { %1840 = vmatpush.msra.mxu3 %v1783_v34 }
 0xaca   :  { %1863 = vmatpush.msra.mxu0 %v1784_v63  ;;  %v5680_v63 = vld [vmem:[#allocation22] ss:$0 sm:$0xff] }
 0xb3c   :  { %v1427_v2 = vpop.f32.mrf.mxu0  ;;  %v1450_v1 = vpop.f32.mrf.mxu1 }
 0xb3d   :  { %v1428_v26 = vadd.f32 %v1427_v2, %v1355_v32  ;;  %v1451_v60 = vadd.f32 %v1450_v1, %v1356_v47 }
 0xb3f   :  { %v1467_v61 = vmul.f32 0.044715, %v1428_v26  ;;  %v1468_v56 = vmul.f32 0.044715, %v1451_v60  ;;  %v1459_v40 = vmul.f32 0.5, %v1428_v26  ;;  %v1460_v45 = vmul.f32 0.5, %v1451_v60 }
 0xb41   :  { %v1381_v4 = vpop.f32.mrf.mxu2  ;;  %v1404_v57 = vpop.f32.mrf.mxu3  ;;  %v1475_v5 = vmul.f32 %v1467_v61, %v1428_v26  ;;  %v1476_v6 = vmul.f32 %v1468_v56, %v1451_v60 }
 0xb42   :  { %v1382_v7 = vadd.f32 %v1381_v4, %v1353_v42  ;;  %v1405_v8 = vadd.f32 %v1404_v57, %v1354_v36 }
 0xb43   :  { %v1483_v9 = vmul.f32 %v1475_v5, %v1428_v26  ;;  %v1484_v51 = vmul.f32 %v1476_v6, %v1451_v60 }
 0xb44   :  { %v1465_v10 = vmul.f32 0.044715, %v1382_v7  ;;  %v1466_v11 = vmul.f32 0.044715, %v1405_v8  ;;  %v1656_v31 = vpop.f32.mrf.mxu0  ;;  %v1679_v37 = vpop.f32.mrf.mxu1  ;;  %v1457_v20 = vmul.f32 0.5, %v1382_v7  ;;  %v1458_v59 = vmul.f32 0.5, %v1405_v8 }
 0xb45   :  { %v1491_v32 = vadd.f32 %v1483_v9, %v1428_v26  ;;  %v1492_v43 = vadd.f32 %v1484_v51, %v1451_v60  ;;  %v1780_v9 = vld [vmem:[#allocation7 + $0x2c0] sm:$0xff]  ;;  %v1781_v51 = vld [vmem:[#allocation7 + $0x2c8] sm:$0xff] }
 0xb46   :  { %v1473_v47 = vmul.f32 %v1465_v10, %v1382_v7  ;;  %v1474_v52 = vmul.f32 %v1466_v11, %v1405_v8  ;;  %1841 = vmatpush.msra.mxu3 %v1780_v9  ;;  %1864 = vmatpush.msra.mxu0 %v1781_v51  ;;  %v1776_v10 = vld [vmem:[#allocation7 + $0x2a0] sm:$0xff]  ;;  %v1777_v11 = vld [vmem:[#allocation7 + $0x2a8] sm:$0xff] }
 0xb47   :  { %v1499_v16 = vmul.f32 0.7978846, %v1491_v32  ;;  %v1500_v19 = vmul.f32 0.7978846, %v1492_v43  ;;  %v1778_v32 = vld [vmem:[#allocation7 + $0x2b0] sm:$0xff]  ;;  %v1773_v43 = vld [vmem:[#allocation7 + $0x288] sm:$0xff] }
 0xb48   :  { %v1481_v25 = vmul.f32 %v1473_v47, %v1382_v7  ;;  %v1482_v23 = vmul.f32 %v1474_v52, %v1405_v8  ;;  %1842 = vmatpush.msra.mxu3 %v1777_v11  ;;  %1865 = vmatpush.msra.mxu0 %v1778_v32  ;;  %v1775_v47 = vld [vmem:[#allocation7 + $0x298] sm:$0xff]  ;;  %v6759_v51 = vld [vmem:[#allocation8 + $0x3] sm:$0x7] }
 0xb49   :  { %v1610_v3 = vpop.f32.mrf.mxu2  ;;  %5738 = vtanh.f32 %v1499_v16  ;;  %v1633_v28 = vpop.f32.mrf.mxu3  ;;  %v1771_v52 = vld [vmem:[#allocation7 + $0x278] sm:$0xff]  ;;  %v1772_v16 = vld [vmem:[#allocation7 + $0x280] sm:$0xff]  ;;  %v1811_v11 = vperm.slane %v6759_v51, 1  ;;  %v1812_v32 = vperm.slane %v6759_v51, 2 }
 0xb4a   :  { %v1611_v42 = vadd.f32 %v6735_v13, %v1610_v3  ;;  %5740 = vtanh.f32 %v1500_v19  ;;  %v1489_v22 = vadd.f32 %v1481_v25, %v1382_v7  ;;  %v1490_v36 = vadd.f32 %v1482_v23, %v1405_v8  ;;  %v1779_v8 = vld [vmem:[#allocation7 + $0x2b8] sm:$0xff]  ;;  %1866 = vmatpush.msra.mxu0 %v1775_v47  ;;  %v1768_v25 = vld [vmem:[#allocation7 + $0x260] sm:$0xff]  ;;  %v1769_v23 = vld [vmem:[#allocation7 + $0x268] sm:$0xff] }
 0xb4b   :  { %1818 = vmatpush.msrb.mxu2 %v1779_v8  ;;  %v1767_v19 = vld [vmem:[#allocation7 + $0x258] sm:$0xff]  ;;  %v1764_v3 = vld [vmem:[#allocation7 + $0x240] sm:$0xff] }
 0xb4c   :  { %v1634_v33 = vadd.f32 %v1633_v28, %v1611_v42  ;;  %v1497_v29 = vmul.f32 0.7978846, %v1489_v22  ;;  %v1498_v30 = vmul.f32 0.7978846, %v1490_v36  ;;  %1867 = vmatpush.msra.mxu0 %v1772_v16  ;;  %v1765_v42 = vld [vmem:[#allocation7 + $0x248] sm:$0xff]  ;;  %v1766_v22 = vld [vmem:[#allocation7 + $0x250] sm:$0xff] }
 0xb4d   :  { %1819 = vmatpush.msrb.mxu2 %v1776_v10  ;;  %v1761_v36 = vld [vmem:[#allocation7 + $0x228] sm:$0xff]  ;;  %v1762_v28 = vld [vmem:[#allocation7 + $0x230] sm:$0xff]  ;;  %v1810_v10 = vperm.slane %v6759_v51, 0 }
 0xb4e   :  { %v1657_v17 = vadd.f32 %v1656_v31, %v1634_v33  ;;  %5742 = vtanh.f32 %v1497_v29  ;;  %1868 = vmatpush.msra.mxu0 %v1769_v23  ;;  %v1763_v33 = vld [vmem:[#allocation7 + $0x238] sm:$0xff]  ;;  %v1758_v29 = vld [vmem:[#allocation7 + $0x210] sm:$0xff]  ;;  %v1760_v31 = vld [vmem:[#allocation7 + $0x220] sm:$0xff] }
 0xb4f   :  { %v5739_v35 = vpop.eup %5738  ;;  %5744 = vtanh.f32 %v1498_v30  ;;  %1820 = vmatpush.msrb.mxu2 %v1773_v43  ;;  %v1759_v30 = vld [vmem:[#allocation7 + $0x218] sm:$0xff] }
 0xb50   :  { %v5741_v38 = vpop.eup %5740  ;;  %v1515_v41 = vadd.f32 1.0, %v5739_v35  ;;  %v1680_v44 = vadd.f32 %v1679_v37, %v1657_v17  ;;  %1869 = vmatpush.msra.mxu0 %v1766_v22  ;;  %v1755_v17 = vld [vmem:[#allocation7 + $0x1f8] sm:$0xff]  ;;  %v1756_v35 = vld [vmem:[#allocation7 + $0x200] sm:$0xff]  ;;  %v1757_v37 = vld [vmem:[#allocation7 + $0x208] sm:$0xff] }
 0xb51   :  { %v1516_v46 = vadd.f32 1.0, %v5741_v38  ;;  %v1752_v38 = vld [vmem:[#allocation7 + $0x1e0] sm:$0xff] }
 0xb52   :  { %v1523_v50 = vmul.f32 %v1515_v41, %v1459_v40  ;;  %v1685_v54 = vadd.f32 %v1680_v44, %v6659_v27  ;;  %1870 = vmatpush.msra.mxu0 %v1763_v33  ;;  %v1753_v40 = vld [vmem:[#allocation7 + $0x1e8] sm:$0xff]  ;;  %v1754_v41 = vld [vmem:[#allocation7 + $0x1f0] sm:$0xff] }
 0xb53   :  { %v1524_v55 = vmul.f32 %v1516_v46, %v1460_v45  ;;  %v1749_v44 = vld [vmem:[#allocation7 + $0x1c8] sm:$0xff]  ;;  %v1750_v45 = vld [vmem:[#allocation7 + $0x1d0] sm:$0xff]  ;;  %v1751_v46 = vld [vmem:[#allocation7 + $0x1d8] sm:$0xff] }
 0xb54   :  { %v5743_v58 = vpop.eup %5742  ;;  %1658 = vmatmul.f32.gmra.mxu0 %v1523_v50  ;;  %1689 = vadd.xlane.f32.xlu0 %v1685_v54  ;;  %v1746_v50 = vld [vmem:[#allocation7 + $0x1b0] sm:$0xff] }
 0xb55   :  { %v5745_v48 = vpop.eup %5744  ;;  %1681 = vmatmul.f32.gmra.mxu1 %v1524_v55  ;;  %v1513_v39 = vadd.f32 1.0, %v5743_v58  ;;  %1871 = vmatpush.msra.mxu0 %v1760_v31  ;;  %v1748_v55 = vld [vmem:[#allocation7 + $0x1c0] sm:$0xff]  ;;  %v1743_v58 = vld [vmem:[#allocation7 + $0x198] sm:$0xff] }
 0xb56   :  { %v1514_v49 = vadd.f32 1.0, %v5745_v48  ;;  %v1744_v48 = vld [vmem:[#allocation7 + $0x1a0] sm:$0xff]  ;;  %v6791_v31 = vld [vmem:[%s7228_s8] ss:$0 sm:$0xff] }
 0xb57   :  { %v1521_v18 = vmul.f32 %v1513_v39, %v1457_v20  ;;  %1872 = vmatpush.msra.mxu0 %v1757_v37  ;;  %v1745_v20 = vld [vmem:[#allocation7 + $0x1a8] sm:$0xff]  ;;  %v1740_v39 = vld [vmem:[#allocation7 + $0x180] sm:$0xff] }
 0xb58   :  { %v1522_v12 = vmul.f32 %v1514_v49, %v1458_v59  ;;  %v1741_v59 = vld [vmem:[#allocation7 + $0x188] sm:$0xff]  ;;  %v1742_v49 = vld [vmem:[#allocation7 + $0x190] sm:$0xff] }
 0xb59   :  { %1612 = vmatmul.f32.gmra.mxu2 %v1521_v18  ;;  %1873 = vmatpush.msra.mxu0 %v1754_v41 }
 0xb5a   :  { %1635 = vmatmul.f32.gmra.mxu3 %v1522_v12 }
 0xb5b   :  { %1874 = vmatpush.msra.mxu0 %v1751_v46  ;;  %v6803_v46 = vld [vmem:[#allocation10 + $0x98] sm:$0xff] }
 0xb5d   :  { %1875 = vmatpush.msra.mxu0 %v1748_v55 }
 0xb5f   :  { %1876 = vmatpush.msra.mxu0 %v1745_v20 }
 0xb61   :  { %1877 = vmatpush.msra.mxu0 %v1742_v49  ;;  %v6816_v49 = vld [vmem:[#allocation10 + $0x80] sm:$0xff] }
 0xbc7   :  { %v1690_v24 = vpop.xlane.xlu0 %1689 }
 0xbc8   :  { %v1693_v27 = vmul.f32 %v1690_v24, %v6443_v14 }
 0xbca   :  { %v6740_v2 = vsub.f32 %v1685_v54, %v1693_v27  ;;  %v1747_v54 = vld [vmem:[#allocation7 + $0x1b8] sm:$0xff] }
 0xbcc   :  { %v1697_v1 = vmul.f32 %v6740_v2, %v6740_v2 }
 0xbce   :  { %1699 = vadd.xlane.f32.xlu2 %v1697_v1 }
 0xbd1   :  { %v1659_v4 = vpop.f32.mrf.mxu0 }
 0xbd2   :  { %v1682_v5 = vpop.f32.mrf.mxu1 }
 0xbdc   :  { %v1613_v26 = vpop.f32.mrf.mxu2 }
 0xbdd   :  { %v1614_v60 = vadd.f32 %v6735_v13, %v1613_v26  ;;  %v1636_v61 = vpop.f32.mrf.mxu3  ;;  %v1774_v13 = vld [vmem:[#allocation7 + $0x290] sm:$0xff] }
 0xbde   :  { %1843 = vmatpush.msra.mxu3 %v1774_v13 }
 0xbdf   :  { %v1637_v56 = vadd.f32 %v1636_v61, %v1614_v60  ;;  %v5681_v60 = vld [vmem:[#allocation23] ss:$0 sm:$0xff] }
 0xbe0   :  { %1844 = vmatpush.msra.mxu3 %v1771_v52 }
 0xbe1   :  { %v1660_v57 = vadd.f32 %v1659_v4, %v1637_v56 }
 0xbe2   :  { %1845 = vmatpush.msra.mxu3 %v1768_v25 }
 0xbe3   :  { %v1683_v6 = vadd.f32 %v1682_v5, %v1660_v57 }
 0xbe4   :  { %1846 = vmatpush.msra.mxu3 %v1765_v42 }
 0xbe5   :  { %v6746_v7 = vadd.f32 %v1683_v6, %v6717_v15  ;;  %v1770_v15 = vld [vmem:[#allocation7 + $0x270] sm:$0xff] }
 0xbe6   :  { %1821 = vmatpush.msrb.mxu2 %v1770_v15  ;;  %1847 = vmatpush.msra.mxu3 %v1762_v28 }
 0xbe7   :  { %1691 = vadd.xlane.f32.xlu0 %v6746_v7 }
 0xbe8   :  { %1822 = vmatpush.msrb.mxu2 %v1767_v19  ;;  %1848 = vmatpush.msra.mxu3 %v1759_v30 }
 0xbea   :  { %1823 = vmatpush.msrb.mxu2 %v1764_v3  ;;  %1849 = vmatpush.msra.mxu3 %v1756_v35 }
 0xbec   :  { %1824 = vmatpush.msrb.mxu2 %v1761_v36  ;;  %1850 = vmatpush.msra.mxu3 %v1753_v40 }
 0xbee   :  { %1825 = vmatpush.msrb.mxu2 %v1758_v29  ;;  %1851 = vmatpush.msra.mxu3 %v1750_v45 }
 0xbf0   :  { %1826 = vmatpush.msrb.mxu2 %v1755_v17  ;;  %1852 = vmatpush.msra.mxu3 %v1747_v54  ;;  %v6808_v54 = vld [vmem:[#allocation10 + $0x88] sm:$0xff] }
 0xbf2   :  { %1827 = vmatpush.msrb.mxu2 %v1752_v38  ;;  %1853 = vmatpush.msra.mxu3 %v1744_v48 }
 0xbf4   :  { %1828 = vmatpush.msrb.mxu2 %v1749_v44  ;;  %1854 = vmatpush.msra.mxu3 %v1741_v59 }
 0xbf6   :  { %1829 = vmatpush.msrb.mxu2 %v1746_v50  ;;  %v6805_v50 = vld [vmem:[#allocation10 + $0x90] sm:$0xff]  ;;  %2053 = vmatpush.msrb.mxu3 %v6803_v46 }
 0xbf8   :  { %1830 = vmatpush.msrb.mxu2 %v1743_v58  ;;  %2054 = vmatpush.msrb.mxu3 %v6805_v50 }
 0xbfa   :  { %1831 = vmatpush.msrb.mxu2 %v1740_v39  ;;  %2055 = vmatpush.msrb.mxu3 %v6808_v54 }
 0xbfc   :  { %2056 = vmatpush.msrb.mxu3 %v6816_v49 }
 0xc41   :  { %v1700_v18 = vpop.xlane.xlu2 %1699 }
 0xc42   :  { %v1703_v12 = vmul.f32 %v1700_v18, %v6443_v14 }
 0xc44   :  { %v1705_v24 = vadd.f32 1e-07, %v1703_v12 }
 0xc46   :  { %5746 = vrsqrt.f32 %v1705_v24  ;;  %vm1713_vm0 = vweird.f32 %v1705_v24 }
 0xc4c   :  { %v5747_v21 = vpop.eup %5746 }
 0xc4d   :  { %v1708_v53 = vmul.f32 %v5747_v21, %v1705_v24  ;;  %vm1714_vm15 = vweird.f32 %v5747_v21 }
 0xc4e   :  { %vm1715_vm1 = vmor %vm1713_vm0, %vm1714_vm15 }
 0xc4f   :  { %v1709_v0 = vmul.f32 %v5747_v21, %v1708_v53 }
 0xc51   :  { %v1710_v27 = vmul.f32 0.5, %v1709_v0 }
 0xc53   :  { %v1711_v62 = vsub.f32 1.5, %v1710_v27 }
 0xc55   :  { %v1712_v34 = vmul.f32 %v5747_v21, %v1711_v62 }
 0xc57   :  { %v1716_v1 = vsel %vm1715_vm1, %v5747_v21, %v1712_v34  ;;  %vm4334_vm1 = vcmask 1042434  }
 0xc58   :  { %v1727_v26 = vmul.f32 %v1716_v1, %v6740_v2 }
 0xc5a   :  { %v1692_v61 = vpop.xlane.xlu0 %1691  ;;  %v1732_v56 = vmul.f32 %v5680_v63, %v1727_v26 }
 0xc5b   :  { %v1694_v4 = vmul.f32 %v1692_v61, %v6443_v14 }
 0xc5c   :  { %v6752_v57 = vadd.f32 %v5681_v60, %v1732_v56 }
 0xc5d   :  { %v1696_v5 = vsub.f32 %v6746_v7, %v1694_v4 }
 0xc5e   :  { %1832 = vmatmul.f32.vlgmr.msrb.gmra.mxu2 %v6752_v57  ;;  %1855 = vmatmul.f32.vlgmr.msra.gmra.mxu3 %v6752_v57 }
 0xc5f   :  { %1878 = vmatmul.f32.vlgmr.msra.gmra.mxu0 %v6752_v57  ;;  %v1698_v6 = vmul.f32 %v1696_v5, %v1696_v5 }
 0xc61   :  { %1701 = vadd.xlane.f32.xlu2 %v1698_v6 }
 0xcd4   :  { %v1702_v8 = vpop.xlane.xlu2 %1701 }
 0xcd5   :  { %v1704_v2 = vmul.f32 %v1702_v8, %v6443_v14 }
 0xcd7   :  { %v1706_v9 = vadd.f32 1e-07, %v1704_v2 }
 0xcd9   :  { %5748 = vrsqrt.f32 %v1706_v9  ;;  %vm1723_vm3 = vweird.f32 %v1706_v9 }
 0xcdc   :  { %v1879_v13 = vpop.f32.mrf.mxu0 }
 0xcdd   :  { %v6774_v25 = vadd.f32 %v1879_v13, %v1812_v32  ;;  %v1796_v13 = vld [vmem:[#allocation10 + $0xa8] sm:$0xff] }
 0xcdf   :  { %v5749_v7 = vpop.eup %5748 }
 0xce0   :  { %v1718_v43 = vmul.f32 %v5749_v7, %v1706_v9  ;;  %vm1724_vm2 = vweird.f32 %v5749_v7 }
 0xce1   :  { %v1833_v47 = vpop.f32.mrf.mxu2  ;;  %v1856_v15 = vpop.f32.mrf.mxu3  ;;  %vm1725_vm5 = vmor %vm1723_vm3, %vm1724_vm2  ;;  %vm4332_vm2 = vcmask 1040384   ;;  %vm4336_vm3 = vcmask 1041408  }
 0xce2   :  { %v1719_v52 = vmul.f32 %v5749_v7, %v1718_v43  ;;  %v6766_v16 = vadd.f32 %v1833_v47, %v1810_v10  ;;  %v6770_v19 = vadd.f32 %v1856_v15, %v1811_v11  ;;  %v1797_v43 = vld [vmem:[#allocation10 + $0xb0] sm:$0xff]  ;;  %v1795_v47 = vld [vmem:[#allocation10 + $0xa0] sm:$0xff]  ;;  %v1802_v15 = vld [vmem:[#allocation10 + $0xd8] sm:$0xff] }
 0xce4   :  { %v1720_v23 = vmul.f32 0.5, %v1719_v52  ;;  %5609 = vmatpush.xpose.msk.msra.mxu1 %vm507_vm4, %v6770_v19  ;;  %1947 = vrot.lane.b32.xlu2 %v6766_v16, %s6267_s22 }
 0xce6   :  { %v1721_v3 = vsub.f32 1.5, %v1720_v23  ;;  %v1800_v23 = vld [vmem:[#allocation10 + $0xc8] sm:$0xff] }
 0xce7   :  { %5610 = vmatmul.msk.f32.vlgmr.msra.gmra.mxu1 %vm507_vm4, %v6766_v16 }
 0xce8   :  { %1942 = vmatpush.msrb.mxu1 %v6774_v25  ;;  %v1722_v42 = vmul.f32 %v5749_v7, %v1721_v3 }
 0xcea   :  { %v1726_v22 = vsel %vm1725_vm5, %v5749_v7, %v1722_v42  ;;  %v1798_v7 = vld [vmem:[#allocation10 + $0xb8] sm:$0xff] }
 0xceb   :  { %v1728_v36 = vmul.f32 %v1726_v22, %v1696_v5  ;;  %2030 = vmatpush.msra.mxu2 %v1798_v7 }
 0xced   :  { %v1733_v28 = vmul.f32 %v5680_v63, %v1728_v36  ;;  %2031 = vmatpush.msra.mxu2 %v1797_v43 }
 0xcef   :  { %v6783_v33 = vadd.f32 %v5681_v60, %v1733_v28  ;;  %2032 = vmatpush.msra.mxu2 %v1796_v13 }
 0xcf1   :  { %1835 = vmatmul.f32.gmra.mxu2 %v6783_v33  ;;  %1858 = vmatmul.f32.gmra.mxu3 %v6783_v33 }
 0xcf2   :  { %1881 = vmatmul.f32.gmra.mxu0 %v6783_v33  ;;  %2033 = vmatpush.msra.mxu2 %v1795_v47 }
 0xcf4   :  { %2143 = vmatpush.msrb.mxu2 %v1802_v15 }
 0xd3e   :  { %v1948_v20 = vpop.permute.xlu2 %1947 }
 0xd64   :  { %v1908_v29 = vpop.f32.mrf.mxu1 }
 0xd65   :  { %v1911_v30 = vmul.f32 0.17677669, %v1908_v29 }
 0xd67   :  { %v1912_v17 = vadd.f32 %v6791_v31, %v1911_v30 }
 0xd69   :  { %v1913_v35 = vsel %vm537_vm8, %v1912_v17, -inf }
 0xd6a   :  { %1914 = vmax.xlane.f32.xlu1 %v1913_v35 }
 0xd6f   :  { %v1882_v12 = vpop.f32.mrf.mxu0 }
 0xd74   :  { %v1859_v35 = vpop.f32.mrf.mxu3 }
 0xd83   :  { %1949 = vrot.lane.b32.xlu1 %v6770_v19, %s6267_s22 }
 0xd8b   :  { %2061 = vrot.lane.b32.xlu1 %v6766_v16, %s6247_s25 }
 0xddd   :  { %v1915_v37 = vpop.xlane.xlu1 %1914 }
 0xdde   :  { %v1916_v38 = vsub.f32 %v1912_v17, %v1915_v37  ;;  %v1860_v37 = vadd.f32 %v1859_v35, %v1811_v11 }
 0xde0   :  { %v1917_v40 = vmul.f32 1.442695, %v1916_v38 }
 0xde2   :  { %5750 = vpow2.f32 %v1917_v40 }
 0xde8   :  { %v5751_v41 = vpop.eup %5750 }
 0xde9   :  { %v1919_v44 = vsel %vm537_vm8, %v5751_v41, 0.0 }
 0xdea   :  { %1920 = vadd.xlane.f32.xlu0 %v1919_v44 }
 0xdf5   :  { %v1950_v45 = vpop.permute.xlu1 %1949 }
 0xdf6   :  { %5612 = vmatpush.xpose.msk.msra.mxu1 %vm507_vm4, %v1950_v45 }
 0xdfd   :  { %v2062_v59 = vpop.permute.xlu1 %2061 }
 0xdfe   :  { %2063 = vrot.lane.b32.xlu0 %v6770_v19, %s6247_s25 }
 0xe5d   :  { %v1921_v55 = vpop.xlane.xlu0 %1920 }
 0xe5e   :  { %5752 = vrcp.f32 %v1921_v55 }
 0xe64   :  { %v5753_v58 = vpop.eup %5752 }
 0xe65   :  { %v1923_v48 = vmul.f32 %v5753_v58, %v5751_v41 }
 0xe67   :  { %5611 = vmatmul.msk.f32.vlgmr.msrb.gmra.mxu1 %vm537_vm8, %v1923_v48 }
 0xe6f   :  { %5613 = vmatmul.msk.f32.vlgmr.msra.gmra.mxu1 %vm507_vm4, %v1948_v20 }
 0xe70   :  { %v2064_v39 = vpop.permute.xlu0 %2063 }
 0xe71   :  { %5617 = vmatpush.xpose.msk.msrb.mxu0 %vm507_vm4, %v2064_v39 }
 0xe74   :  { %5618 = vmatmul.msk.f32.vlgmr.msrb.gmra.mxu0 %vm507_vm4, %v2062_v59  ;;  %v6870_v59 = vld [vmem:[%s7228_s8 + $0x1] ss:$0 sm:$0xff] }
 0xee4   :  { %v1944_v18 = vpop.f32.mrf.mxu1 }
 0xee5   :  { %5616 = vmatmul.msk.f32.vlgmr.msrb.gmra.mxu3 %vm507_vm4, %v1944_v18 }
 0xeec   :  { %v1972_v24 = vpop.f32.mrf.mxu1 }
 0xeed   :  { %v1975_v21 = vmul.f32 0.17677669, %v1972_v24 }
 0xeef   :  { %v1976_v53 = vadd.f32 %v6791_v31, %v1975_v21 }
 0xef1   :  { %v2086_v0 = vpop.f32.mrf.mxu0  ;;  %v1977_v27 = vsel %vm537_vm8, %v1976_v53, -inf }
 0xef2   :  { %v2089_v62 = vmul.f32 0.17677669, %v2086_v0  ;;  %1978 = vmax.xlane.f32.xlu0 %v1977_v27 }
 0xef4   :  { %v2090_v34 = vadd.f32 %v6791_v31, %v2089_v62 }
 0xef6   :  { %v2091_v63 = vsel %vm537_vm8, %v2090_v34, -inf }
 0xef7   :  { %2092 = vmax.xlane.f32.xlu2 %v2091_v63 }
 0xf06   :  { %1989 = vrot.lane.b32.xlu0 %v6774_v25, %s6267_s22 }
 0xf0e   :  { %2152 = vrot.lane.b32.xlu0 %v6766_v16, %s6261_s24  ;;  %v1801_v16 = vld [vmem:[#allocation10 + $0xd0] sm:$0xff] }
 0xf0f   :  { %2144 = vmatpush.msrb.mxu2 %v1801_v16 }
 0xf11   :  { %2145 = vmatpush.msrb.mxu2 %v1800_v23 }
 0xf65   :  { %v1979_v1 = vpop.xlane.xlu0 %1978 }
 0xf66   :  { %v1980_v26 = vsub.f32 %v1976_v53, %v1979_v1  ;;  %v6881_v1 = vld [vmem:[#allocation10 + $0xf8] sm:$0xff] }
 0xf68   :  { %v1981_v60 = vmul.f32 1.442695, %v1980_v26  ;;  %v6851_v40 = vpop.f32.mrf.mxu3  ;;  %v6884_v26 = vld [vmem:[#allocation10 + $0xf0] sm:$0xff] }
 0xf6a   :  { %5754 = vpow2.f32 %v1981_v60  ;;  %v2093_v61 = vpop.xlane.xlu2 %2092  ;;  %v6886_v60 = vld [vmem:[#allocation10 + $0xe8] sm:$0xff] }
 0xf6b   :  { %v2094_v56 = vsub.f32 %v2090_v34, %v2093_v61  ;;  %v6890_v61 = vld [vmem:[#allocation10 + $0xe0] sm:$0xff] }
 0xf6d   :  { %v2095_v4 = vmul.f32 1.442695, %v2094_v56 }
 0xf6f   :  { %5756 = vpow2.f32 %v2095_v4 }
 0xf70   :  { %v5755_v5 = vpop.eup %5754 }
 0xf71   :  { %v1983_v6 = vsel %vm537_vm8, %v5755_v5, 0.0 }
 0xf72   :  { %1984 = vadd.xlane.f32.xlu1 %v1983_v6 }
 0xf75   :  { %v5757_v8 = vpop.eup %5756 }
 0xf76   :  { %v2097_v2 = vsel %vm537_vm8, %v5757_v8, 0.0 }
 0xf77   :  { %2098 = vadd.xlane.f32.xlu2 %v2097_v2 }
 0xf78   :  { %v1990_v9 = vpop.permute.xlu0 %1989 }
 0xf79   :  { %2010 = vmatpush.msrb.mxu1 %v1990_v9 }
 0xf80   :  { %v2153_v28 = vpop.permute.xlu0 %2152 }
 0xf8b   :  { %2102 = vrot.lane.b32.xlu1 %v6774_v25, %s6247_s25 }
 0xf8f   :  { %2154 = vrot.lane.b32.xlu2 %v6770_v19, %s6261_s24  ;;  %v6837_v19 = vadd.f32 %v1882_v12, %v1812_v32  ;;  %v1799_v32 = vld [vmem:[#allocation10 + $0xc0] sm:$0xff] }
 0xf90   :  { %2146 = vmatpush.msrb.mxu2 %v1799_v32 }
 0xfe5   :  { %v1985_v52 = vpop.xlane.xlu1 %1984 }
 0xfe6   :  { %5758 = vrcp.f32 %v1985_v52 }
 0xfea   :  { %v2099_v3 = vpop.xlane.xlu2 %2098 }
 0xfeb   :  { %5760 = vrcp.f32 %v2099_v3 }
 0xfec   :  { %v5759_v42 = vpop.eup %5758 }
 0xfed   :  { %v1987_v22 = vmul.f32 %v5759_v42, %v5755_v5 }
 0xfef   :  { %5614 = vmatmul.msk.f32.vlgmr.msrb.gmra.mxu1 %vm537_vm8, %v1987_v22 }
 0xff1   :  { %v5761_v29 = vpop.eup %5760 }
 0xff2   :  { %v2155_v36 = vpop.permute.xlu2 %2154  ;;  %v2101_v30 = vmul.f32 %v5761_v29, %v5757_v8 }
 0xff3   :  { %5621 = vmatpush.xpose.msk.msra.mxu3 %vm507_vm4, %v2155_v36 }
 0xff6   :  { %5622 = vmatmul.msk.f32.vlgmr.msra.gmra.mxu3 %vm507_vm4, %v2153_v28 }
 0xff7   :  { %2300 = vmatpush.msrb.mxu3 %v6837_v19 }
 0xff9   :  { %2411 = vmatpush.msra.mxu3 %v6803_v46 }
 0xffb   :  { %2412 = vmatpush.msra.mxu3 %v6805_v50 }
 0xffd   :  { %2413 = vmatpush.msra.mxu3 %v6808_v54  ;;  %v2103_v17 = vpop.permute.xlu1 %2102  ;;  %v1836_v54 = vpop.f32.mrf.mxu2 }
 0xffe   :  { %2123 = vmatpush.msra.mxu1 %v2103_v17  ;;  %v1837_v11 = vadd.f32 %v1836_v54, %v1810_v10 }
 0xfff   :  { %2414 = vmatpush.msra.mxu3 %v6816_v49  ;;  %5619 = vmatmul.msk.f32.vlgmr.msra.gmra.mxu1 %vm537_vm8, %v2101_v30 }
0x1000   :  { %2234 = vmatpush.msrb.mxu1 %v6881_v1 }
0x1002   :  { %2235 = vmatpush.msrb.mxu1 %v6884_v26 }
0x1004   :  { %2236 = vmatpush.msrb.mxu1 %v6886_v60 }
0x1006   :  { %2237 = vmatpush.msrb.mxu1 %v6890_v61 }
0x106c   :  { %v2012_v38 = vpop.f32.mrf.mxu1 }
0x106d   :  { %5615 = vmatmul.msk.f32.vlgmr.msra.gmra.mxu2 %vm507_vm4, %v2012_v38 }
0x106e   :  { %5625 = vmatpush.xpose.msk.msra.mxu2 %vm507_vm4, %v1860_v37 }
0x1079   :  { %v2177_v41 = vpop.f32.mrf.mxu3 }
0x107a   :  { %v2180_v44 = vmul.f32 0.17677669, %v2177_v41 }
0x107c   :  { %v2125_v45 = vpop.f32.mrf.mxu1  ;;  %v2181_v46 = vadd.f32 %v6791_v31, %v2180_v44 }
0x107d   :  { %5620 = vmatmul.msk.f32.vlgmr.msrb.gmra.mxu2 %vm507_vm4, %v2125_v45 }
0x107e   :  { %v2182_v50 = vsel %vm537_vm8, %v2181_v46, -inf  ;;  %2388 = vmatpush.msrb.mxu2 %v1798_v7 }
0x107f   :  { %2183 = vmax.xlane.f32.xlu2 %v2182_v50 }
0x1080   :  { %2389 = vmatpush.msrb.mxu2 %v1797_v43 }
0x1082   :  { %2390 = vmatpush.msrb.mxu2 %v1796_v13 }
0x1084   :  { %2391 = vmatpush.msrb.mxu2 %v1795_v47 }
0x1085   :  { %5626 = vmatmul.msk.f32.vlgmr.msra.gmra.mxu2 %vm507_vm4, %v1837_v11 }
0x1086   :  { %2501 = vmatpush.msra.mxu2 %v1802_v15 }
0x1088   :  { %2502 = vmatpush.msra.mxu2 %v1801_v16 }
0x108a   :  { %2503 = vmatpush.msra.mxu2 %v1800_v23 }
0x108c   :  { %2504 = vmatpush.msra.mxu2 %v1799_v32 }
0x1097   :  { %2193 = vrot.lane.b32.xlu2 %v6774_v25, %s6261_s24 }
0x109f   :  { %2421 = vrot.lane.b32.xlu2 %v1860_v37, %s6247_s25 }
0x10a7   :  { %2510 = vrot.lane.b32.xlu2 %v1837_v11, %s6261_s24 }
0x10f0   :  { %v6863_v55 = vpop.f32.mrf.mxu2 }
0x10f2   :  { %v2184_v31 = vpop.xlane.xlu2 %2183 }
0x10f3   :  { %v2185_v10 = vsub.f32 %v2181_v46, %v2184_v31  ;;  %v2059_v31 = vadd.f32 %v6851_v40, %v6863_v55 }
0x10f5   :  { %v2186_v48 = vmul.f32 1.442695, %v2185_v10 }
0x10f7   :  { %5762 = vpow2.f32 %v2186_v48 }
0x10fa   :  { %v2194_v58 = vpop.permute.xlu2 %2193 }
0x10fb   :  { %2214 = vmatpush.msra.mxu0 %v2194_v58 }
0x10fd   :  { %v5763_v18 = vpop.eup %5762 }
0x10fe   :  { %v2188_v12 = vsel %vm537_vm8, %v5763_v18, 0.0 }
0x1100   :  { %v6865_v51 = vpop.f32.mrf.mxu2 }
0x1101   :  { %v2151_v10 = vadd.f32 %v6865_v51, %v2059_v31  ;;  %v2684_v31 = vld [vmem:[#allocation16 + $0x2a8] sm:$0xff] }
0x1102   :  { %v2422_v7 = vpop.permute.xlu2 %2421 }
0x1108   :  { %v2266_v20 = vpop.f32.mrf.mxu2 }
0x1109   :  { %v2269_v39 = vmul.f32 0.17677669, %v2266_v20  ;;  %v6919_v20 = vld [vmem:[#allocation11 + $0x1] ss:$0 sm:$0xff] }
0x110a   :  { %v2511_v47 = vpop.permute.xlu2 %2510 }
0x110b   :  { %v2270_v25 = vadd.f32 %v6870_v59, %v2269_v39 }
0x110d   :  { %v2271_v49 = vsel %vm537_vm8, %v2270_v25, -inf }
0x110e   :  { %2272 = vmax.xlane.f32.xlu0 %v2271_v49 }
0x1116   :  { %2189 = vadd.xlane.f32.xlu0 %v2188_v12 }
0x112a   :  { %2305 = vrot.lane.b32.xlu0 %v1837_v11, %s6267_s22 }
0x1132   :  { %2512 = vrot.lane.b32.xlu0 %v1860_v37, %s6261_s24 }
0x1181   :  { %v2273_v24 = vpop.xlane.xlu0 %2272 }
0x1182   :  { %v2274_v21 = vsub.f32 %v2270_v25, %v2273_v24 }
0x1184   :  { %v2275_v53 = vmul.f32 1.442695, %v2274_v21 }
0x1186   :  { %5764 = vpow2.f32 %v2275_v53 }
0x1189   :  { %v2190_v0 = vpop.xlane.xlu0 %2189 }
0x118a   :  { %5766 = vrcp.f32 %v2190_v0 }
0x118c   :  { %v5765_v27 = vpop.eup %5764 }
0x118d   :  { %v2277_v62 = vsel %vm537_vm8, %v5765_v27, 0.0 }
0x118e   :  { %2278 = vadd.xlane.f32.xlu1 %v2277_v62 }
0x1190   :  { %v5767_v34 = vpop.eup %5766 }
0x1191   :  { %v2192_v63 = vmul.f32 %v5767_v34, %v5763_v18 }
0x1193   :  { %5623 = vmatmul.msk.f32.vlgmr.msra.gmra.mxu0 %vm537_vm8, %v2192_v63 }
0x119c   :  { %v2306_v56 = vpop.permute.xlu0 %2305 }
0x11a4   :  { %v2513_v8 = vpop.permute.xlu0 %2512 }
0x11a7   :  { %2307 = vrot.lane.b32.xlu1 %v1860_v37, %s6267_s22 }
0x11af   :  { %2419 = vrot.lane.b32.xlu1 %v1837_v11, %s6247_s25 }
0x1201   :  { %v2279_v4 = vpop.xlane.xlu1 %2278 }
0x1202   :  { %5768 = vrcp.f32 %v2279_v4  ;;  %v2720_v4 = vld [vmem:[#allocation16 + $0x3c8] sm:$0xff] }
0x1208   :  { %v5769_v5 = vpop.eup %5768 }
0x1209   :  { %v2281_v6 = vmul.f32 %v5769_v5, %v5765_v27 }
0x120b   :  { %5627 = vmatmul.msk.f32.vlgmr.msrb.gmra.mxu3 %vm537_vm8, %v2281_v6 }
0x120c   :  { %5637 = vmatpush.xpose.msk.msrb.mxu3 %vm507_vm4, %v2513_v8  ;;  %v2725_v8 = vld [vmem:[#allocation16 + $0x3f0] sm:$0xff] }
0x1210   :  { %v2216_v2 = vpop.f32.mrf.mxu0 }
0x1211   :  { %5624 = vmatmul.msk.f32.vlgmr.msrb.gmra.mxu1 %vm507_vm4, %v2216_v2  ;;  %v2719_v2 = vld [vmem:[#allocation16 + $0x3c0] sm:$0xff] }
0x1219   :  { %v2308_v9 = vpop.permute.xlu1 %2307 }
0x121a   :  { %5628 = vmatpush.xpose.msk.msrb.mxu0 %vm507_vm4, %v2308_v9  ;;  %v2721_v9 = vld [vmem:[#allocation16 + $0x3d0] sm:$0xff] }
0x121d   :  { %5629 = vmatmul.msk.f32.vlgmr.msrb.gmra.mxu0 %vm507_vm4, %v2306_v56 }
0x121e   :  { %5633 = vmatpush.xpose.msk.msra.mxu0 %vm507_vm4, %v2422_v7  ;;  %v2715_v7 = vld [vmem:[#allocation16 + $0x3a0] sm:$0xff] }
0x1221   :  { %v2420_v43 = vpop.permute.xlu1 %2419 }
0x1225   :  { %5634 = vmatmul.msk.f32.vlgmr.msra.gmra.mxu0 %vm507_vm4, %v2420_v43  ;;  %v2716_v43 = vld [vmem:[#allocation16 + $0x3a8] sm:$0xff] }
0x128e   :  { %v2302_v13 = vpop.f32.mrf.mxu3  ;;  %v2239_v58 = vpop.f32.mrf.mxu1 }
0x128f   :  { %5632 = vmatmul.msk.f32.vlgmr.msra.gmra.mxu3 %vm507_vm4, %v2302_v13  ;;  %v2242_v48 = vadd.f32 %v2239_v58, %v2151_v10  ;;  %v2717_v13 = vld [vmem:[#allocation16 + $0x3b0] sm:$0xff]  ;;  %v2679_v10 = vld [vmem:[#allocation16 + $0x280] sm:$0xff] }
0x1290   :  { %v2685_v58 = vld [vmem:[#allocation16 + $0x2b0] sm:$0xff] }
0x1291   :  { %v2604_v39 = vadd.f32 %v6919_v20, %v2242_v48  ;;  %v2680_v48 = vld [vmem:[#allocation16 + $0x288] sm:$0xff] }
0x1297   :  { %5638 = vmatmul.msk.f32.vlgmr.msrb.gmra.mxu3 %vm507_vm4, %v2511_v47 }
0x129a   :  { %v2330_v15 = vpop.f32.mrf.mxu0 }
0x129b   :  { %v2333_v52 = vmul.f32 0.17677669, %v2330_v15  ;;  %v2711_v15 = vld [vmem:[#allocation16 + $0x380] sm:$0xff] }
0x129d   :  { %v2334_v16 = vadd.f32 %v6870_v59, %v2333_v52  ;;  %v2712_v52 = vld [vmem:[#allocation16 + $0x388] sm:$0xff] }
0x129f   :  { %v2335_v23 = vsel %vm537_vm8, %v2334_v16, -inf }
0x12a0   :  { %2336 = vmax.xlane.f32.xlu0 %v2335_v23  ;;  %v2707_v23 = vld [vmem:[#allocation16 + $0x360] sm:$0xff] }
0x12a2   :  { %v2444_v3 = vpop.f32.mrf.mxu0 }
0x12a3   :  { %v2447_v42 = vmul.f32 0.17677669, %v2444_v3  ;;  %v2708_v3 = vld [vmem:[#allocation16 + $0x368] sm:$0xff] }
0x12a5   :  { %v2448_v22 = vadd.f32 %v6870_v59, %v2447_v42  ;;  %v2709_v42 = vld [vmem:[#allocation16 + $0x370] sm:$0xff] }
0x12a7   :  { %v2449_v36 = vsel %vm537_vm8, %v2448_v22, -inf }
0x12a8   :  { %2450 = vmax.xlane.f32.xlu1 %v2449_v36  ;;  %v2704_v36 = vld [vmem:[#allocation16 + $0x348] sm:$0xff] }
0x1312   :  { %v6906_v28 = vpop.f32.mrf.mxu3 }
0x1313   :  { %v2337_v29 = vpop.xlane.xlu0 %2336 }
0x1314   :  { %v2338_v30 = vsub.f32 %v2334_v16, %v2337_v29  ;;  %v2713_v16 = vld [vmem:[#allocation16 + $0x390] sm:$0xff] }
0x1315   :  { %v2705_v29 = vld [vmem:[#allocation16 + $0x350] sm:$0xff] }
0x1316   :  { %v2339_v17 = vmul.f32 1.442695, %v2338_v30  ;;  %v2699_v30 = vld [vmem:[#allocation16 + $0x320] sm:$0xff] }
0x1318   :  { %5770 = vpow2.f32 %v2339_v17  ;;  %v2700_v17 = vld [vmem:[#allocation16 + $0x328] sm:$0xff] }
0x131a   :  { %v2535_v32 = vpop.f32.mrf.mxu3 }
0x131b   :  { %v2538_v35 = vmul.f32 0.17677669, %v2535_v32  ;;  %v2451_v37 = vpop.xlane.xlu1 %2450  ;;  %v2701_v32 = vld [vmem:[#allocation16 + $0x330] sm:$0xff] }
0x131c   :  { %v2452_v38 = vsub.f32 %v2448_v22, %v2451_v37  ;;  %v2703_v22 = vld [vmem:[#allocation16 + $0x340] sm:$0xff]  ;;  %v2696_v37 = vld [vmem:[#allocation16 + $0x308] sm:$0xff] }
0x131d   :  { %v2539_v41 = vadd.f32 %v6870_v59, %v2538_v35  ;;  %v2606_v59 = vadd.f32 %v2604_v39, %v6752_v57  ;;  %v2695_v35 = vld [vmem:[#allocation16 + $0x300] sm:$0xff]  ;;  %v2681_v39 = vld [vmem:[#allocation16 + $0x290] sm:$0xff] }
0x131e   :  { %v5771_v44 = vpop.eup %5770  ;;  %v2453_v45 = vmul.f32 1.442695, %v2452_v38  ;;  %v2697_v38 = vld [vmem:[#allocation16 + $0x310] sm:$0xff] }
0x131f   :  { %v2540_v46 = vsel %vm537_vm8, %v2539_v41, -inf  ;;  %v2341_v50 = vsel %vm537_vm8, %v5771_v44, 0.0 }
0x1320   :  { %5772 = vpow2.f32 %v2453_v45  ;;  %2541 = vmax.xlane.f32.xlu2 %v2540_v46  ;;  %2342 = vadd.xlane.f32.xlu0 %v2341_v50  ;;  %v2693_v45 = vld [vmem:[#allocation16 + $0x2f0] sm:$0xff]  ;;  %v2687_v46 = vld [vmem:[#allocation16 + $0x2c0] sm:$0xff]  ;;  %v2688_v50 = vld [vmem:[#allocation16 + $0x2c8] sm:$0xff] }
0x1326   :  { %v5773_v54 = vpop.eup %5772 }
0x1327   :  { %v2455_v11 = vsel %vm537_vm8, %v5773_v54, 0.0 }
0x1328   :  { %2456 = vadd.xlane.f32.xlu1 %v2455_v11  ;;  %v2683_v11 = vld [vmem:[#allocation16 + $0x2a0] sm:$0xff] }
0x1338   :  { %2347 = vrot.lane.b32.xlu2 %v6837_v19, %s6267_s22 }
0x1341   :  { %2460 = vrot.lane.b32.xlu1 %v6837_v19, %s6247_s25  ;;  %s6268_s25 = smov [#allocation28]  }
0x1361   :  { %2612 = vadd.xlane.f32.xlu2 %v2606_v59 }
0x1393   :  { %v2542_v25 = vpop.xlane.xlu2 %2541  ;;  %v2343_v49 = vpop.xlane.xlu0 %2342 }
0x1394   :  { %v2543_v18 = vsub.f32 %v2539_v41, %v2542_v25  ;;  %5774 = vrcp.f32 %v2343_v49  ;;  %v2691_v41 = vld [vmem:[#allocation16 + $0x2e0] sm:$0xff]  ;;  %v2676_v25 = vld [vmem:[#allocation16 + $0x268] sm:$0xff]  ;;  %v2677_v49 = vld [vmem:[#allocation16 + $0x270] sm:$0xff] }
0x1396   :  { %v2544_v12 = vmul.f32 1.442695, %v2543_v18  ;;  %v2671_v18 = vld [vmem:[#allocation16 + $0x240] sm:$0xff] }
0x1398   :  { %5776 = vpow2.f32 %v2544_v12  ;;  %v2672_v12 = vld [vmem:[#allocation16 + $0x248] sm:$0xff] }
0x139a   :  { %v5775_v24 = vpop.eup %5774 }
0x139b   :  { %v2345_v21 = vmul.f32 %v5775_v24, %v5771_v44  ;;  %v2348_v40 = vpop.permute.xlu2 %2347  ;;  %v2457_v53 = vpop.xlane.xlu1 %2456  ;;  %v2692_v44 = vld [vmem:[#allocation16 + $0x2e8] sm:$0xff]  ;;  %v2673_v24 = vld [vmem:[#allocation16 + $0x250] sm:$0xff] }
0x139c   :  { %2368 = vmatpush.msra.mxu1 %v2348_v40  ;;  %5778 = vrcp.f32 %v2457_v53  ;;  %v2668_v40 = vld [vmem:[#allocation16 + $0x228] sm:$0xff] }
0x139d   :  { %5630 = vmatmul.msk.f32.vlgmr.msra.gmra.mxu1 %vm537_vm8, %v2345_v21  ;;  %v2667_v21 = vld [vmem:[#allocation16 + $0x220] sm:$0xff]  ;;  %v2664_v53 = vld [vmem:[#allocation16 + $0x208] sm:$0xff] }
0x139e   :  { %v5777_v55 = vpop.eup %5776 }
0x139f   :  { %v2546_v51 = vsel %vm537_vm8, %v5777_v55, 0.0 }
0x13a0   :  { %2547 = vadd.xlane.f32.xlu0 %v2546_v51  ;;  %v2663_v51 = vld [vmem:[#allocation16 + $0x200] sm:$0xff] }
0x13a2   :  { %v5779_v57 = vpop.eup %5778 }
0x13a3   :  { %v2459_v0 = vmul.f32 %v5779_v57, %v5773_v54  ;;  %v2689_v54 = vld [vmem:[#allocation16 + $0x2d0] sm:$0xff] }
0x13a4   :  { %v2665_v57 = vld [vmem:[#allocation16 + $0x210] sm:$0xff] }
0x13b3   :  { %v2461_v27 = vpop.permute.xlu1 %2460 }
0x13b4   :  { %2481 = vmatpush.msrb.mxu1 %v2461_v27  ;;  %2551 = vrot.lane.b32.xlu0 %v6837_v19, %s6261_s24  ;;  %v2724_v19 = vld [vmem:[#allocation16 + $0x3e8] sm:$0xff]  ;;  %v2722_v27 = vld [vmem:[#allocation16 + $0x3d8] sm:$0xff]  ;;  %s5557_s24 = sshll.u32 %s6268_s25, 4  ;;  %s5558_s24 = int_to_ptr.vmem [resolvable:$true] %s5557_s24 }
0x13b5   :  { %5635 = vmatmul.msk.f32.vlgmr.msrb.gmra.mxu1 %vm537_vm8, %v2459_v0  ;;  %2761 = vmatpush.msra.mxu3 %v2724_v19  ;;  %v2726_v0 = vld [vmem:[#allocation16 + $0x3f8] sm:$0xff] }
0x13b6   :  { %2592 = vmatpush.msra.mxu1 %v6881_v1  ;;  %v2723_v1 = vld [vmem:[#allocation16 + $0x3e0] sm:$0xff]  ;;  %v2714_v19 = vld [vmem:[#allocation16 + $0x398] sm:$0xff] }
0x13b7   :  { %2762 = vmatpush.msra.mxu3 %v2720_v4 }
0x13b8   :  { %2593 = vmatpush.msra.mxu1 %v6884_v26 }
0x13b9   :  { %2763 = vmatpush.msra.mxu3 %v2716_v43  ;;  %v6941_v43 = vld [vmem:[#allocation13 + $0x1] ss:$0 sm:$0xff] }
0x13ba   :  { %2594 = vmatpush.msra.mxu1 %v6886_v60 }
0x13bb   :  { %2764 = vmatpush.msra.mxu3 %v2712_v52 }
0x13bc   :  { %2595 = vmatpush.msra.mxu1 %v6890_v61 }
0x13bd   :  { %2765 = vmatpush.msra.mxu3 %v2708_v3  ;;  %v2690_v3 = vld [vmem:[#allocation16 + $0x2d8] sm:$0xff] }
0x13be   :  { %2807 = vmatpush.msrb.mxu1 %v2726_v0  ;;  %v2962_v0 = vld [vmem:[#allocation19 + $0x3d8] sm:$0xff] }
0x13bf   :  { %2766 = vmatpush.msra.mxu3 %v2704_v36  ;;  %v2674_v36 = vld [vmem:[#allocation16 + $0x258] sm:$0xff] }
0x13c0   :  { %2808 = vmatpush.msrb.mxu1 %v2722_v27  ;;  %v2913_v27 = vld [vmem:[#allocation19 + $0x250] sm:$0xff] }
0x13c1   :  { %2767 = vmatpush.msra.mxu3 %v2700_v17 }
0x13c3   :  { %2768 = vmatpush.msra.mxu3 %v2696_v37 }
0x13c5   :  { %2769 = vmatpush.msra.mxu3 %v2692_v44 }
0x13c7   :  { %2770 = vmatpush.msra.mxu3 %v2688_v50 }
0x13c9   :  { %2771 = vmatpush.msra.mxu3 %v2684_v31 }
0x13cb   :  { %2772 = vmatpush.msra.mxu3 %v2680_v48  ;;  %v2966_v48 = vld [vmem:[#allocation19 + $0x3f8] sm:$0xff] }
0x13cd   :  { %2773 = vmatpush.msra.mxu3 %v2676_v25  ;;  %v2916_v25 = vld [vmem:[#allocation19 + $0x268] sm:$0xff] }
0x13cf   :  { %2774 = vmatpush.msra.mxu3 %v2672_v12  ;;  %v2964_v12 = vld [vmem:[#allocation19 + $0x3e8] sm:$0xff] }
0x13d1   :  { %2775 = vmatpush.msra.mxu3 %v2668_v40  ;;  %v2947_v40 = vld [vmem:[#allocation19 + $0x360] sm:$0xff] }
0x13d3   :  { %2776 = vmatpush.msra.mxu3 %v2664_v53  ;;  %v2930_v53 = vld [vmem:[#allocation19 + $0x2d8] sm:$0xff] }
0x13d4   :  { %v2613_v62 = vpop.xlane.xlu2 %2612 }
0x13d5   :  { %v2616_v34 = vmul.f32 %v2613_v62, %v6443_v14 }
0x13d7   :  { %v6933_v63 = vsub.f32 %v2606_v59, %v2616_v34  ;;  %v2675_v59 = vld [vmem:[#allocation16 + $0x260] sm:$0xff]  ;;  %v2718_v34 = vld [vmem:[#allocation16 + $0x3b8] sm:$0xff] }
0x13d8   :  { %2809 = vmatpush.msrb.mxu1 %v2718_v34  ;;  %v2945_v34 = vld [vmem:[#allocation19 + $0x350] sm:$0xff] }
0x13d9   :  { %v2620_v56 = vmul.f32 %v6933_v63, %v6933_v63 }
0x13da   :  { %2810 = vmatpush.msrb.mxu1 %v2714_v19  ;;  %v2912_v19 = vld [vmem:[#allocation19 + $0x248] sm:$0xff] }
0x13db   :  { %2622 = vadd.xlane.f32.xlu1 %v2620_v56 }
0x1413   :  { %v2548_v5 = vpop.xlane.xlu0 %2547 }
0x1414   :  { %5780 = vrcp.f32 %v2548_v5  ;;  %v2706_v5 = vld [vmem:[#allocation16 + $0x358] sm:$0xff] }
0x141a   :  { %v2370_v26 = vpop.f32.mrf.mxu1  ;;  %v5781_v60 = vpop.eup %5780 }
0x141b   :  { %5631 = vmatmul.msk.f32.vlgmr.msrb.gmra.mxu2 %vm507_vm4, %v2370_v26  ;;  %v2550_v61 = vmul.f32 %v5781_v60, %v5777_v55  ;;  %v2669_v55 = vld [vmem:[#allocation16 + $0x230] sm:$0xff]  ;;  %v2702_v26 = vld [vmem:[#allocation16 + $0x338] sm:$0xff] }
0x141c   :  { %2738 = vmatpush.msrb.mxu2 %v2723_v1  ;;  %v2710_v1 = vld [vmem:[#allocation16 + $0x378] sm:$0xff] }
0x141d   :  { %2811 = vmatpush.msrb.mxu1 %v2710_v1  ;;  %v2698_v60 = vld [vmem:[#allocation16 + $0x318] sm:$0xff]  ;;  %v2944_v1 = vld [vmem:[#allocation19 + $0x348] sm:$0xff] }
0x141e   :  { %2739 = vmatpush.msrb.mxu2 %v2719_v2 }
0x141f   :  { %2812 = vmatpush.msrb.mxu1 %v2706_v5  ;;  %v6963_v5 = vld [vmem:[#allocation17 + $0x4] sm:$0xf] }
0x1420   :  { %2740 = vmatpush.msrb.mxu2 %v2715_v7 }
0x1421   :  { %2813 = vmatpush.msrb.mxu1 %v2702_v26  ;;  %v2960_v26 = vld [vmem:[#allocation19 + $0x3c8] sm:$0xff] }
0x1422   :  { %2741 = vmatpush.msrb.mxu2 %v2711_v15  ;;  %v6944_v15 = vld [vmem:[#allocation14 + $0x1] ss:$0 sm:$0xff] }
0x1423   :  { %2814 = vmatpush.msrb.mxu1 %v2698_v60  ;;  %v2911_v60 = vld [vmem:[#allocation19 + $0x240] sm:$0xff] }
0x1424   :  { %2742 = vmatpush.msrb.mxu2 %v2707_v23  ;;  %v2694_v23 = vld [vmem:[#allocation16 + $0x2f8] sm:$0xff] }
0x1425   :  { %2815 = vmatpush.msrb.mxu1 %v2694_v23  ;;  %v2730_v23 = vperm.slane %v6963_v5, 0 }
0x1426   :  { %v2552_v6 = vpop.permute.xlu0 %2551  ;;  %2743 = vmatpush.msrb.mxu2 %v2703_v22  ;;  %v2678_v22 = vld [vmem:[#allocation16 + $0x278] sm:$0xff] }
0x1427   :  { %2572 = vmatpush.msrb.mxu0 %v2552_v6  ;;  %2816 = vmatpush.msrb.mxu1 %v2690_v3  ;;  %v2909_v3 = vld [vmem:[#allocation19 + $0x230] sm:$0xff] }
0x1428   :  { %5639 = vmatmul.msk.f32.vlgmr.msrb.gmra.mxu0 %vm537_vm8, %v2550_v61  ;;  %2744 = vmatpush.msrb.mxu2 %v2699_v30  ;;  %v2666_v30 = vld [vmem:[#allocation16 + $0x218] sm:$0xff] }
0x1429   :  { %2784 = vmatpush.msra.mxu0 %v2725_v8 }
0x142a   :  { %2745 = vmatpush.msrb.mxu2 %v2695_v35 }
0x142b   :  { %2785 = vmatpush.msra.mxu0 %v2721_v9 }
0x142c   :  { %2746 = vmatpush.msrb.mxu2 %v2691_v41 }
0x142d   :  { %2786 = vmatpush.msra.mxu0 %v2717_v13 }
0x142e   :  { %2747 = vmatpush.msrb.mxu2 %v2687_v46 }
0x142f   :  { %2787 = vmatpush.msra.mxu0 %v2713_v16 }
0x1430   :  { %2748 = vmatpush.msrb.mxu2 %v2683_v11 }
0x1431   :  { %2788 = vmatpush.msra.mxu0 %v2709_v42  ;;  %v2686_v42 = vld [vmem:[#allocation16 + $0x2b8] sm:$0xff] }
0x1432   :  { %v2483_v47 = vpop.f32.mrf.mxu1  ;;  %2749 = vmatpush.msrb.mxu2 %v2679_v10  ;;  %2817 = vmatpush.msrb.mxu1 %v2686_v42  ;;  %v2934_v10 = vld [vmem:[#allocation19 + $0x2f8] sm:$0xff]  ;;  %v2925_v42 = vld [vmem:[#allocation19 + $0x2b0] sm:$0xff] }
0x1433   :  { %5636 = vmatmul.msk.f32.vlgmr.msra.gmra.mxu2 %vm507_vm4, %v2483_v47  ;;  %2789 = vmatpush.msra.mxu0 %v2705_v29  ;;  %v2670_v29 = vld [vmem:[#allocation16 + $0x238] sm:$0xff] }
0x1434   :  { %2750 = vmatpush.msrb.mxu2 %v2675_v59  ;;  %2995 = vmatpush.msrb.mxu3 %v2934_v10  ;;  %v2965_v59 = vld [vmem:[#allocation19 + $0x3f0] sm:$0xff]  ;;  %v2906_v10 = vld [vmem:[#allocation19 + $0x218] sm:$0xff] }
0x1435   :  { %2790 = vmatpush.msra.mxu0 %v2701_v32 }
0x1436   :  { %2751 = vmatpush.msrb.mxu2 %v2671_v18  ;;  %v2948_v18 = vld [vmem:[#allocation19 + $0x368] sm:$0xff] }
0x1437   :  { %2791 = vmatpush.msra.mxu0 %v2697_v38 }
0x1438   :  { %2752 = vmatpush.msrb.mxu2 %v2667_v21  ;;  %v2931_v21 = vld [vmem:[#allocation19 + $0x2e0] sm:$0xff] }
0x1439   :  { %2792 = vmatpush.msra.mxu0 %v2693_v45 }
0x143a   :  { %2753 = vmatpush.msrb.mxu2 %v2663_v51  ;;  %v2914_v51 = vld [vmem:[#allocation19 + $0x258] sm:$0xff] }
0x143b   :  { %2793 = vmatpush.msra.mxu0 %v2689_v54 }
0x143d   :  { %2794 = vmatpush.msra.mxu0 %v2685_v58  ;;  %v2918_v58 = vld [vmem:[#allocation19 + $0x278] sm:$0xff] }
0x143e   :  { %2972 = vmatpush.msra.mxu2 %v2918_v58 }
0x143f   :  { %2795 = vmatpush.msra.mxu0 %v2681_v39  ;;  %v2949_v39 = vld [vmem:[#allocation19 + $0x370] sm:$0xff] }
0x1441   :  { %2796 = vmatpush.msra.mxu0 %v2677_v49  ;;  %v2932_v49 = vld [vmem:[#allocation19 + $0x2e8] sm:$0xff] }
0x1443   :  { %2797 = vmatpush.msra.mxu0 %v2673_v24  ;;  %v2915_v24 = vld [vmem:[#allocation19 + $0x260] sm:$0xff] }
0x1445   :  { %2798 = vmatpush.msra.mxu0 %v2669_v55  ;;  %v2963_v55 = vld [vmem:[#allocation19 + $0x3e0] sm:$0xff] }
0x1447   :  { %2799 = vmatpush.msra.mxu0 %v2665_v57  ;;  %v2946_v57 = vld [vmem:[#allocation19 + $0x358] sm:$0xff] }
0x144e   :  { %v2623_v62 = vpop.xlane.xlu1 %2622 }
0x144f   :  { %v2626_v56 = vmul.f32 %v2623_v62, %v6443_v14  ;;  %v2929_v62 = vld [vmem:[#allocation19 + $0x2d0] sm:$0xff] }
0x1451   :  { %v2628_v4 = vadd.f32 1e-07, %v2626_v56  ;;  %v2961_v56 = vld [vmem:[#allocation19 + $0x3d0] sm:$0xff] }
0x1453   :  { %5782 = vrsqrt.f32 %v2628_v4  ;;  %vm2636_vm7 = vweird.f32 %v2628_v4 }
0x1459   :  { %v5783_v61 = vpop.eup %5782 }
0x145a   :  { %v2631_v6 = vmul.f32 %v5783_v61, %v2628_v4  ;;  %vm2637_vm6 = vweird.f32 %v5783_v61  ;;  %v2928_v4 = vld [vmem:[#allocation19 + $0x2c8] sm:$0xff] }
0x145b   :  { %vm2638_vm8 = vmor %vm2636_vm7, %vm2637_vm6 }
0x145c   :  { %v2632_v8 = vmul.f32 %v5783_v61, %v2631_v6  ;;  %v2943_v6 = vld [vmem:[#allocation19 + $0x340] sm:$0xff] }
0x145e   :  { %v2633_v2 = vmul.f32 0.5, %v2632_v8  ;;  %v2959_v8 = vld [vmem:[#allocation19 + $0x3c0] sm:$0xff] }
0x1460   :  { %v2634_v9 = vsub.f32 1.5, %v2633_v2  ;;  %v2910_v2 = vld [vmem:[#allocation19 + $0x238] sm:$0xff] }
0x1462   :  { %v2635_v7 = vmul.f32 %v5783_v61, %v2634_v9  ;;  %v2926_v9 = vld [vmem:[#allocation19 + $0x2b8] sm:$0xff] }
0x1464   :  { %v2639_v13 = vsel %vm2638_vm8, %v5783_v61, %v2635_v7  ;;  %v2927_v61 = vld [vmem:[#allocation19 + $0x2c0] sm:$0xff]  ;;  %v2942_v7 = vld [vmem:[#allocation19 + $0x338] sm:$0xff] }
0x1465   :  { %v2650_v47 = vmul.f32 %v2639_v13, %v6933_v63  ;;  %v2682_v63 = vld [vmem:[#allocation16 + $0x298] sm:$0xff]  ;;  %v2732_v13 = vperm.slane %v6963_v5, 2 }
0x1466   :  { %2818 = vmatpush.msrb.mxu1 %v2682_v63  ;;  %v2941_v63 = vld [vmem:[#allocation19 + $0x330] sm:$0xff] }
0x1467   :  { %v2655_v52 = vmul.f32 %v6941_v43, %v2650_v47  ;;  %v2958_v47 = vld [vmem:[#allocation19 + $0x3b8] sm:$0xff] }
0x1468   :  { %2819 = vmatpush.msrb.mxu1 %v2678_v22 }
0x1469   :  { %v6948_v16 = vadd.f32 %v6944_v15, %v2655_v52 }
0x146a   :  { %2820 = vmatpush.msrb.mxu1 %v2674_v36  ;;  %v2731_v36 = vperm.slane %v6963_v5, 1 }
0x146b   :  { %2754 = vmatmul.f32.vlgmr.msrb.gmra.mxu2 %v6948_v16  ;;  %2777 = vmatmul.f32.vlgmr.msra.gmra.mxu3 %v6948_v16 }
0x146c   :  { %2800 = vmatmul.f32.vlgmr.msra.gmra.mxu0 %v6948_v16  ;;  %2821 = vmatpush.msrb.mxu1 %v2670_v29  ;;  %v2957_v29 = vld [vmem:[#allocation19 + $0x3b0] sm:$0xff] }
0x146e   :  { %2822 = vmatpush.msrb.mxu1 %v2666_v30  ;;  %v2908_v30 = vld [vmem:[#allocation19 + $0x228] sm:$0xff] }
0x149e   :  { %v2393_v32 = vpop.f32.mrf.mxu2 }
0x149f   :  { %v2417_v37 = vadd.f32 %v6906_v28, %v2393_v32  ;;  %v2950_v28 = vld [vmem:[#allocation19 + $0x378] sm:$0xff] }
0x14a0   :  { %3018 = vmatpush.msrb.mxu0 %v2950_v28  ;;  %v2922_v28 = vld [vmem:[#allocation19 + $0x298] sm:$0xff] }
0x14a2   :  { %3019 = vmatpush.msrb.mxu0 %v2949_v39  ;;  %v2905_v39 = vld [vmem:[#allocation19 + $0x210] sm:$0xff] }
0x14a4   :  { %3020 = vmatpush.msrb.mxu0 %v2948_v18  ;;  %v2937_v18 = vld [vmem:[#allocation19 + $0x310] sm:$0xff] }
0x14a5   :  { %v2574_v17 = vpop.f32.mrf.mxu0 }
0x14a6   :  { %5640 = vmatmul.msk.f32.vlgmr.msra.gmra.mxu1 %vm507_vm4, %v2574_v17  ;;  %3021 = vmatpush.msrb.mxu0 %v2947_v40  ;;  %v2924_v17 = vld [vmem:[#allocation19 + $0x2a8] sm:$0xff] }
0x14a7   :  { %3041 = vmatpush.msra.mxu1 %v2966_v48  ;;  %v2938_v48 = vld [vmem:[#allocation19 + $0x318] sm:$0xff]  ;;  %v2904_v40 = vld [vmem:[#allocation19 + $0x208] sm:$0xff] }
0x14a8   :  { %3022 = vmatpush.msrb.mxu0 %v2946_v57  ;;  %v2952_v57 = vld [vmem:[#allocation19 + $0x388] sm:$0xff] }
0x14a9   :  { %3042 = vmatpush.msra.mxu1 %v2965_v59  ;;  %v2921_v59 = vld [vmem:[#allocation19 + $0x290] sm:$0xff] }
0x14aa   :  { %3023 = vmatpush.msrb.mxu0 %v2945_v34  ;;  %v2919_v34 = vld [vmem:[#allocation19 + $0x280] sm:$0xff] }
0x14ab   :  { %3043 = vmatpush.msra.mxu1 %v2964_v12  ;;  %v2953_v12 = vld [vmem:[#allocation19 + $0x390] sm:$0xff] }
0x14ac   :  { %3024 = vmatpush.msrb.mxu0 %v2944_v1 }
0x14ad   :  { %3044 = vmatpush.msra.mxu1 %v2963_v55  ;;  %v2920_v55 = vld [vmem:[#allocation19 + $0x288] sm:$0xff] }
0x14ae   :  { %2823 = vmatmul.f32.vlgmr.msrb.gmra.mxu1 %v6948_v16  ;;  %3025 = vmatpush.msrb.mxu0 %v2943_v6 }
0x14af   :  { %3045 = vmatpush.msra.mxu1 %v2962_v0 }
0x14b0   :  { %3026 = vmatpush.msrb.mxu0 %v2942_v7 }
0x14b1   :  { %3046 = vmatpush.msra.mxu1 %v2961_v56 }
0x14b2   :  { %3027 = vmatpush.msrb.mxu0 %v2941_v63 }
0x14b3   :  { %3047 = vmatpush.msra.mxu1 %v2960_v26 }
0x14b5   :  { %3048 = vmatpush.msra.mxu1 %v2959_v8 }
0x14b6   :  { %v2506_v35 = vpop.f32.mrf.mxu2 }
0x14b7   :  { %v2509_v38 = vadd.f32 %v2506_v35, %v2417_v37  ;;  %3049 = vmatpush.msra.mxu1 %v2958_v47  ;;  %v2733_v35 = vperm.slane %v6963_v5, 3  ;;  %v2940_v37 = vld [vmem:[#allocation19 + $0x328] sm:$0xff] }
0x14b8   :  { %3028 = vmatpush.msrb.mxu0 %v2940_v37 }
0x14b9   :  { %3050 = vmatpush.msra.mxu1 %v2957_v29 }
0x14e9   :  { %v2801_v52 = vpop.f32.mrf.mxu0 }
0x14ee   :  { %v2755_v22 = vpop.f32.mrf.mxu2  ;;  %v2778_v32 = vpop.f32.mrf.mxu3 }
0x14ef   :  { %v6979_v58 = vadd.f32 %v2778_v32, %v2731_v36 }
0x1523   :  { %v2597_v41 = vpop.f32.mrf.mxu1 }
0x1524   :  { %v2600_v44 = vadd.f32 %v2597_v41, %v2509_v38  ;;  %v2956_v38 = vld [vmem:[#allocation19 + $0x3a8] sm:$0xff]  ;;  %v2907_v41 = vld [vmem:[#allocation19 + $0x220] sm:$0xff] }
0x1525   :  { %3051 = vmatpush.msra.mxu1 %v2956_v38 }
0x1526   :  { %v2605_v45 = vadd.f32 %v6919_v20, %v2600_v44  ;;  %v2917_v20 = vld [vmem:[#allocation19 + $0x270] sm:$0xff]  ;;  %v6971_v44 = vadd.f32 %v2801_v52, %v2732_v13 }
0x1527   :  { %2973 = vmatpush.msra.mxu2 %v2917_v20 }
0x1528   :  { %v2607_v46 = vadd.f32 %v2605_v45, %v6783_v33  ;;  %v2933_v33 = vld [vmem:[#allocation19 + $0x2f0] sm:$0xff] }
0x1529   :  { %2996 = vmatpush.msrb.mxu3 %v2933_v33  ;;  %2974 = vmatpush.msra.mxu2 %v2916_v25  ;;  %v2954_v33 = vld [vmem:[#allocation19 + $0x398] sm:$0xff]  ;;  %v2840_v25 = vmul.f32 0.044715, %v6971_v44 }
0x152a   :  { %2614 = vadd.xlane.f32.xlu0 %v2607_v46 }
0x152b   :  { %2997 = vmatpush.msrb.mxu3 %v2932_v49  ;;  %2975 = vmatpush.msra.mxu2 %v2915_v24  ;;  %v2824_v45 = vpop.f32.mrf.mxu1  ;;  %v2848_v56 = vmul.f32 %v2840_v25, %v6971_v44  ;;  %v2831_v25 = vmul.f32 0.5, %v6979_v58 }
0x152c   :  { %v6983_v20 = vadd.f32 %v2824_v45, %v2733_v35 }
0x152d   :  { %2998 = vmatpush.msrb.mxu3 %v2931_v21  ;;  %2976 = vmatpush.msra.mxu2 %v2914_v51  ;;  %v2839_v51 = vmul.f32 0.044715, %v6979_v58 }
0x152e   :  { %v2841_v0 = vmul.f32 0.044715, %v6983_v20 }
0x152f   :  { %2999 = vmatpush.msrb.mxu3 %v2930_v53  ;;  %2977 = vmatpush.msra.mxu2 %v2913_v27  ;;  %v2936_v53 = vld [vmem:[#allocation19 + $0x308] sm:$0xff]  ;;  %v2847_v26 = vmul.f32 %v2839_v51, %v6979_v58 }
0x1531   :  { %3000 = vmatpush.msrb.mxu3 %v2929_v62  ;;  %2978 = vmatpush.msra.mxu2 %v2912_v19  ;;  %v2903_v62 = vld [vmem:[#allocation19 + $0x200] sm:$0xff]  ;;  %v2855_v8 = vmul.f32 %v2847_v26, %v6979_v58 }
0x1532   :  { %v2935_v19 = vld [vmem:[#allocation19 + $0x300] sm:$0xff] }
0x1533   :  { %3001 = vmatpush.msrb.mxu3 %v2928_v4  ;;  %2979 = vmatpush.msra.mxu2 %v2911_v60  ;;  %v2951_v4 = vld [vmem:[#allocation19 + $0x380] sm:$0xff]  ;;  %v2849_v60 = vmul.f32 %v2841_v0, %v6983_v20 }
0x1534   :  { %v7023_v26 = vld [vmem:[#allocation20 + $0x1] ss:$0 sm:$0xff] }
0x1535   :  { %3002 = vmatpush.msrb.mxu3 %v2927_v61  ;;  %2980 = vmatpush.msra.mxu2 %v2910_v2  ;;  %v2856_v61 = vmul.f32 %v2848_v56, %v6971_v44 }
0x1537   :  { %3003 = vmatpush.msrb.mxu3 %v2926_v9  ;;  %2981 = vmatpush.msra.mxu2 %v2909_v3  ;;  %v2857_v9 = vmul.f32 %v2849_v60, %v6983_v20  ;;  %v2864_v47 = vadd.f32 %v2856_v61, %v6971_v44 }
0x1539   :  { %3004 = vmatpush.msrb.mxu3 %v2925_v42  ;;  %2982 = vmatpush.msra.mxu2 %v2908_v30  ;;  %v2863_v42 = vadd.f32 %v2855_v8, %v6979_v58  ;;  %v2865_v63 = vadd.f32 %v2857_v9, %v6983_v20  ;;  %v2872_v29 = vmul.f32 0.7978846, %v2864_v47 }
0x153b   :  { %3005 = vmatpush.msrb.mxu3 %v2924_v17  ;;  %2983 = vmatpush.msra.mxu2 %v2907_v41  ;;  %v2871_v32 = vmul.f32 0.7978846, %v2863_v42  ;;  %v2873_v37 = vmul.f32 0.7978846, %v2865_v63 }
0x153d   :  { %2984 = vmatpush.msra.mxu2 %v2906_v10 }
0x153f   :  { %2985 = vmatpush.msra.mxu2 %v2905_v39 }
0x1541   :  { %2986 = vmatpush.msra.mxu2 %v2904_v40 }
0x1543   :  { %2987 = vmatpush.msra.mxu2 %v2903_v62 }
0x159d   :  { %v2615_v50 = vpop.xlane.xlu0 %2614 }
0x159e   :  { %v2617_v54 = vmul.f32 %v2615_v50, %v6443_v14  ;;  %v2939_v50 = vld [vmem:[#allocation19 + $0x320] sm:$0xff] }
0x159f   :  { %3029 = vmatpush.msrb.mxu0 %v2939_v50 }
0x15a0   :  { %v6959_v11 = vsub.f32 %v2607_v46, %v2617_v54  ;;  %v2923_v46 = vld [vmem:[#allocation19 + $0x2a0] sm:$0xff] }
0x15a1   :  { %v2955_v54 = vld [vmem:[#allocation19 + $0x3a0] sm:$0xff]  ;;  %3006 = vmatpush.msrb.mxu3 %v2923_v46  ;;  %3030 = vmatpush.msrb.mxu0 %v2938_v48 }
0x15a2   :  { %v2621_v31 = vmul.f32 %v6959_v11, %v6959_v11  ;;  %3052 = vmatpush.msra.mxu1 %v2955_v54 }
0x15a3   :  { %3007 = vmatpush.msrb.mxu3 %v2922_v28  ;;  %3031 = vmatpush.msrb.mxu0 %v2937_v18 }
0x15a4   :  { %2624 = vadd.xlane.f32.xlu2 %v2621_v31  ;;  %v6975_v31 = vadd.f32 %v2755_v22, %v2730_v23  ;;  %3053 = vmatpush.msra.mxu1 %v2954_v33 }
0x15a5   :  { %3008 = vmatpush.msrb.mxu3 %v2921_v59  ;;  %3032 = vmatpush.msrb.mxu0 %v2936_v53 }
0x15a6   :  { %v2838_v24 = vmul.f32 0.044715, %v6975_v31  ;;  %3054 = vmatpush.msra.mxu1 %v2953_v12 }
0x15a7   :  { %3009 = vmatpush.msrb.mxu3 %v2920_v55  ;;  %3033 = vmatpush.msrb.mxu0 %v2935_v19 }
0x15a8   :  { %v2846_v1 = vmul.f32 %v2838_v24, %v6975_v31  ;;  %3055 = vmatpush.msra.mxu1 %v2952_v57 }
0x15a9   :  { %3010 = vmatpush.msrb.mxu3 %v2919_v34 }
0x15aa   :  { %3056 = vmatpush.msra.mxu1 %v2951_v4  ;;  %v2854_v6 = vmul.f32 %v2846_v1, %v6975_v31 }
0x15ac   :  { %v2862_v52 = vadd.f32 %v2854_v6, %v6975_v31 }
0x15ae   :  { %v2870_v30 = vmul.f32 0.7978846, %v2862_v52 }
0x1617   :  { %v2625_v49 = vpop.xlane.xlu2 %2624 }
0x1618   :  { %v2627_v21 = vmul.f32 %v2625_v49, %v6443_v14  ;;  %v2833_v49 = vmul.f32 0.5, %v6983_v20 }
0x161a   :  { %v2629_v27 = vadd.f32 1e-07, %v2627_v21 }
0x161c   :  { %5784 = vrsqrt.f32 %v2629_v27  ;;  %vm2646_vm9 = vweird.f32 %v2629_v27 }
0x161d   :  { %5786 = vtanh.f32 %v2872_v29 }
0x161e   :  { %5788 = vtanh.f32 %v2870_v30 }
0x161f   :  { %5790 = vtanh.f32 %v2871_v32 }
0x1620   :  { %5792 = vtanh.f32 %v2873_v37 }
0x1622   :  { %v5785_v2 = vpop.eup %5784 }
0x1623   :  { %v2641_v7 = vmul.f32 %v5785_v2, %v2629_v27  ;;  %vm2647_vm4 = vweird.f32 %v5785_v2  ;;  %v5787_v50 = vpop.eup %5786 }
0x1624   :  { %vm2648_vm10 = vmor %vm2646_vm9, %vm2647_vm4  ;;  %v5789_v54 = vpop.eup %5788  ;;  %v2888_v39 = vadd.f32 1.0, %v5787_v50 }
0x1625   :  { %v2642_v3 = vmul.f32 %v5785_v2, %v2641_v7  ;;  %v5791_v28 = vpop.eup %5790  ;;  %v2886_v33 = vadd.f32 1.0, %v5789_v54 }
0x1626   :  { %v5793_v48 = vpop.eup %5792 }
0x1627   :  { %v2643_v22 = vmul.f32 0.5, %v2642_v3  ;;  %v2889_v59 = vadd.f32 1.0, %v5793_v48 }
0x1629   :  { %v2644_v17 = vsub.f32 1.5, %v2643_v22  ;;  %v2897_v21 = vmul.f32 %v2889_v59, %v2833_v49  ;;  %v3246_v49 = vld [vmem:[#allocation25 + $0x3e8] sm:$0xff] }
0x162a   :  { %3272 = vmatpush.msra.mxu3 %v3246_v49  ;;  %v3195_v49 = vld [vmem:[#allocation25 + $0x250] sm:$0xff] }
0x162b   :  { %v2645_v38 = vmul.f32 %v5785_v2, %v2644_v17 }
0x162d   :  { %v2649_v41 = vsel %vm2648_vm10, %v5785_v2, %v2645_v38 }
0x162e   :  { %v2651_v45 = vmul.f32 %v2649_v41, %v6959_v11  ;;  %v2887_v11 = vadd.f32 1.0, %v5791_v28 }
0x1630   :  { %v2656_v46 = vmul.f32 %v6941_v43, %v2651_v45  ;;  %v2830_v43 = vmul.f32 0.5, %v6975_v31  ;;  %v2895_v12 = vmul.f32 %v2887_v11, %v2831_v25 }
0x1632   :  { %v7005_v10 = vadd.f32 %v6944_v15, %v2656_v46  ;;  %v2832_v15 = vmul.f32 0.5, %v6971_v44  ;;  %v2894_v18 = vmul.f32 %v2886_v33, %v2830_v43 }
0x1634   :  { %2757 = vmatmul.f32.gmra.mxu2 %v7005_v10  ;;  %2780 = vmatmul.f32.gmra.mxu3 %v7005_v10  ;;  %v2896_v24 = vmul.f32 %v2888_v39, %v2832_v15  ;;  %v3245_v15 = vld [vmem:[#allocation25 + $0x3e0] sm:$0xff] }
0x1635   :  { %2803 = vmatmul.f32.gmra.mxu0 %v7005_v10  ;;  %2826 = vmatmul.f32.gmra.mxu1 %v7005_v10 }
0x1636   :  { %3252 = vmatpush.msrb.mxu2 %v3245_v15  ;;  %v3194_v15 = vld [vmem:[#allocation25 + $0x248] sm:$0xff] }
0x163c   :  { %2988 = vmatmul.f32.vlgmr.msra.gmra.mxu2 %v2894_v18  ;;  %3011 = vmatmul.f32.vlgmr.msrb.gmra.mxu3 %v2895_v12  ;;  %v3247_v18 = vld [vmem:[#allocation25 + $0x3f0] sm:$0xff]  ;;  %v3248_v12 = vld [vmem:[#allocation25 + $0x3f8] sm:$0xff] }
0x163d   :  { %3034 = vmatmul.f32.vlgmr.msrb.gmra.mxu0 %v2896_v24  ;;  %3057 = vmatmul.f32.vlgmr.msra.gmra.mxu1 %v2897_v21  ;;  %v3241_v24 = vld [vmem:[#allocation25 + $0x3c0] sm:$0xff]  ;;  %v3242_v21 = vld [vmem:[#allocation25 + $0x3c8] sm:$0xff] }
0x163e   :  { %3292 = vmatpush.msra.mxu0 %v3247_v18  ;;  %3312 = vmatpush.msrb.mxu1 %v3248_v12  ;;  %v3196_v18 = vld [vmem:[#allocation25 + $0x258] sm:$0xff] }
0x163f   :  { %3253 = vmatpush.msrb.mxu2 %v3241_v24  ;;  %3273 = vmatpush.msra.mxu3 %v3242_v21  ;;  %v3190_v24 = vld [vmem:[#allocation25 + $0x228] sm:$0xff]  ;;  %v3191_v21 = vld [vmem:[#allocation25 + $0x230] sm:$0xff] }
0x16b2   :  { %v2804_v40 = vpop.f32.mrf.mxu0  ;;  %v2827_v55 = vpop.f32.mrf.mxu1 }
0x16b3   :  { %v2805_v51 = vadd.f32 %v2804_v40, %v2732_v13  ;;  %v2828_v31 = vadd.f32 %v2827_v55, %v2733_v35  ;;  %v3243_v40 = vld [vmem:[#allocation25 + $0x3d0] sm:$0xff]  ;;  %v3244_v55 = vld [vmem:[#allocation25 + $0x3d8] sm:$0xff] }
0x16b4   :  { %3293 = vmatpush.msra.mxu0 %v3243_v40  ;;  %3313 = vmatpush.msrb.mxu1 %v3244_v55  ;;  %v3192_v55 = vld [vmem:[#allocation25 + $0x238] sm:$0xff] }
0x16b5   :  { %v2844_v58 = vmul.f32 0.044715, %v2805_v51  ;;  %v2845_v44 = vmul.f32 0.044715, %v2828_v31  ;;  %v2836_v17 = vmul.f32 0.5, %v2805_v51  ;;  %v2837_v38 = vmul.f32 0.5, %v2828_v31 }
0x16b7   :  { %v2758_v53 = vpop.f32.mrf.mxu2  ;;  %v2781_v20 = vpop.f32.mrf.mxu3  ;;  %v2852_v57 = vmul.f32 %v2844_v58, %v2805_v51  ;;  %v2853_v0 = vmul.f32 %v2845_v44, %v2828_v31  ;;  %v3238_v58 = vld [vmem:[#allocation25 + $0x3a8] sm:$0xff]  ;;  %v3239_v44 = vld [vmem:[#allocation25 + $0x3b0] sm:$0xff] }
0x16b8   :  { %v2759_v27 = vadd.f32 %v2758_v53, %v2730_v23  ;;  %v2782_v62 = vadd.f32 %v2781_v20, %v2731_v36  ;;  %v3240_v53 = vld [vmem:[#allocation25 + $0x3b8] sm:$0xff]  ;;  %v3233_v20 = vld [vmem:[#allocation25 + $0x380] sm:$0xff]  ;;  %3274 = vmatpush.msra.mxu3 %v3238_v58  ;;  %3294 = vmatpush.msra.mxu0 %v3239_v44  ;;  %v3186_v58 = vld [vmem:[#allocation25 + $0x208] sm:$0xff] }
0x16b9   :  { %v2860_v34 = vmul.f32 %v2852_v57, %v2805_v51  ;;  %v2861_v56 = vmul.f32 %v2853_v0, %v2828_v31  ;;  %v3234_v0 = vld [vmem:[#allocation25 + $0x388] sm:$0xff]  ;;  %3314 = vmatpush.msrb.mxu1 %v3240_v53  ;;  %v3187_v53 = vld [vmem:[#allocation25 + $0x210] sm:$0xff] }
0x16ba   :  { %v2843_v19 = vmul.f32 0.044715, %v2782_v62  ;;  %v2842_v4 = vmul.f32 0.044715, %v2759_v27  ;;  %v3035_v42 = vpop.f32.mrf.mxu0  ;;  %v3058_v29 = vpop.f32.mrf.mxu1  ;;  %v2834_v48 = vmul.f32 0.5, %v2759_v27  ;;  %v2835_v11 = vmul.f32 0.5, %v2782_v62  ;;  %3275 = vmatpush.msra.mxu3 %v3234_v0 }
0x16bb   :  { %v2868_v13 = vadd.f32 %v2860_v34, %v2805_v51  ;;  %v2869_v1 = vadd.f32 %v2861_v56, %v2828_v31  ;;  %v3237_v51 = vld [vmem:[#allocation25 + $0x3a0] sm:$0xff]  ;;  %v3230_v56 = vld [vmem:[#allocation25 + $0x368] sm:$0xff] }
0x16bc   :  { %v2850_v35 = vmul.f32 %v2842_v4, %v2759_v27  ;;  %v2851_v60 = vmul.f32 %v2843_v19, %v2782_v62  ;;  %3254 = vmatpush.msrb.mxu2 %v3237_v51  ;;  %v3229_v34 = vld [vmem:[#allocation25 + $0x360] sm:$0xff]  ;;  %v3231_v19 = vld [vmem:[#allocation25 + $0x370] sm:$0xff]  ;;  %v3232_v4 = vld [vmem:[#allocation25 + $0x378] sm:$0xff]  ;;  %3276 = vmatpush.msra.mxu3 %v3230_v56 }
0x16bd   :  { %v2876_v61 = vmul.f32 0.7978846, %v2868_v13  ;;  %v2877_v6 = vmul.f32 0.7978846, %v2869_v1  ;;  %v3225_v13 = vld [vmem:[#allocation25 + $0x340] sm:$0xff]  ;;  %v3226_v1 = vld [vmem:[#allocation25 + $0x348] sm:$0xff] }
0x16be   :  { %v2858_v8 = vmul.f32 %v2850_v35, %v2759_v27  ;;  %v2859_v2 = vmul.f32 %v2851_v60, %v2782_v62  ;;  %3255 = vmatpush.msrb.mxu2 %v3233_v20  ;;  %v3227_v35 = vld [vmem:[#allocation25 + $0x350] sm:$0xff]  ;;  %v3228_v60 = vld [vmem:[#allocation25 + $0x358] sm:$0xff]  ;;  %3277 = vmatpush.msra.mxu3 %v3226_v1  ;;  %v3185_v51 = vld [vmem:[#allocation25 + $0x200] sm:$0xff] }
0x16bf   :  { %v2989_v9 = vpop.f32.mrf.mxu2  ;;  %5794 = vtanh.f32 %v2876_v61  ;;  %v3012_v7 = vpop.f32.mrf.mxu3  ;;  %v3221_v61 = vld [vmem:[#allocation25 + $0x320] sm:$0xff]  ;;  %v3188_v20 = vld [vmem:[#allocation25 + $0x218] sm:$0xff]  ;;  %v3182_v0 = vld [vmem:[#allocation25 + $0x1e8] sm:$0xff] }
0x16c0   :  { %v2990_v23 = vadd.f32 %v7023_v26, %v2989_v9  ;;  %5796 = vtanh.f32 %v2877_v6  ;;  %v2866_v5 = vadd.f32 %v2858_v8, %v2759_v27  ;;  %v2867_v36 = vadd.f32 %v2859_v2, %v2782_v62  ;;  %v3235_v27 = vld [vmem:[#allocation25 + $0x390] sm:$0xff]  ;;  %v3236_v62 = vld [vmem:[#allocation25 + $0x398] sm:$0xff]  ;;  %3256 = vmatpush.msrb.mxu2 %v3229_v34  ;;  %v3222_v6 = vld [vmem:[#allocation25 + $0x328] sm:$0xff] }
0x16c1   :  { %3295 = vmatpush.msra.mxu0 %v3235_v27  ;;  %3315 = vmatpush.msrb.mxu1 %v3236_v62  ;;  %v3223_v8 = vld [vmem:[#allocation25 + $0x330] sm:$0xff]  ;;  %v3224_v2 = vld [vmem:[#allocation25 + $0x338] sm:$0xff]  ;;  %v3217_v9 = vld [vmem:[#allocation25 + $0x300] sm:$0xff] }
0x16c2   :  { %v3013_v47 = vadd.f32 %v3012_v7, %v2990_v23  ;;  %v2874_v52 = vmul.f32 0.7978846, %v2866_v5  ;;  %v2875_v3 = vmul.f32 0.7978846, %v2867_v36  ;;  %3257 = vmatpush.msrb.mxu2 %v3225_v13  ;;  %v3218_v23 = vld [vmem:[#allocation25 + $0x308] sm:$0xff]  ;;  %v3219_v5 = vld [vmem:[#allocation25 + $0x310] sm:$0xff]  ;;  %3278 = vmatpush.msra.mxu3 %v3222_v6 }
0x16c3   :  { %3296 = vmatpush.msra.mxu0 %v3231_v19  ;;  %3316 = vmatpush.msrb.mxu1 %v3232_v4  ;;  %v3220_v36 = vld [vmem:[#allocation25 + $0x318] sm:$0xff]  ;;  %v3213_v7 = vld [vmem:[#allocation25 + $0x2e0] sm:$0xff]  ;;  %v3183_v27 = vld [vmem:[#allocation25 + $0x1f0] sm:$0xff] }
0x16c4   :  { %v3036_v63 = vadd.f32 %v3035_v42, %v3013_v47  ;;  %5798 = vtanh.f32 %v2874_v52  ;;  %3258 = vmatpush.msrb.mxu2 %v3221_v61  ;;  %v3214_v47 = vld [vmem:[#allocation25 + $0x2e8] sm:$0xff]  ;;  %v3215_v52 = vld [vmem:[#allocation25 + $0x2f0] sm:$0xff]  ;;  %3279 = vmatpush.msra.mxu3 %v3218_v23  ;;  %v3209_v42 = vld [vmem:[#allocation25 + $0x2c0] sm:$0xff] }
0x16c5   :  { %v5795_v22 = vpop.eup %5794  ;;  %5800 = vtanh.f32 %v2875_v3  ;;  %3297 = vmatpush.msra.mxu0 %v3227_v35  ;;  %3317 = vmatpush.msrb.mxu1 %v3228_v60  ;;  %v3216_v3 = vld [vmem:[#allocation25 + $0x2f8] sm:$0xff]  ;;  %v3178_v34 = vld [vmem:[#allocation25 + $0x1c8] sm:$0xff]  ;;  %v3179_v56 = vld [vmem:[#allocation25 + $0x1d0] sm:$0xff] }
0x16c6   :  { %v5797_v30 = vpop.eup %5796  ;;  %v2892_v32 = vadd.f32 1.0, %v5795_v22  ;;  %v3059_v37 = vadd.f32 %v3058_v29, %v3036_v63  ;;  %3259 = vmatpush.msrb.mxu2 %v3217_v9  ;;  %v3210_v63 = vld [vmem:[#allocation25 + $0x2c8] sm:$0xff]  ;;  %v3211_v22 = vld [vmem:[#allocation25 + $0x2d0] sm:$0xff]  ;;  %3280 = vmatpush.msra.mxu3 %v3214_v47  ;;  %v3212_v29 = vld [vmem:[#allocation25 + $0x2d8] sm:$0xff] }
0x16c7   :  { %v2893_v41 = vadd.f32 1.0, %v5797_v30  ;;  %3298 = vmatpush.msra.mxu0 %v3223_v8  ;;  %3318 = vmatpush.msrb.mxu1 %v3224_v2  ;;  %v3205_v30 = vld [vmem:[#allocation25 + $0x2a0] sm:$0xff]  ;;  %v3184_v62 = vld [vmem:[#allocation25 + $0x1f8] sm:$0xff]  ;;  %v3174_v13 = vld [vmem:[#allocation25 + $0x1a8] sm:$0xff] }
0x16c8   :  { %v2900_v45 = vmul.f32 %v2892_v32, %v2836_v17  ;;  %v3064_v46 = vadd.f32 %v3059_v37, %v6948_v16  ;;  %3260 = vmatpush.msrb.mxu2 %v3213_v7  ;;  %v3206_v17 = vld [vmem:[#allocation25 + $0x2a8] sm:$0xff]  ;;  %v3207_v32 = vld [vmem:[#allocation25 + $0x2b0] sm:$0xff]  ;;  %3281 = vmatpush.msra.mxu3 %v3210_v63  ;;  %v3208_v37 = vld [vmem:[#allocation25 + $0x2b8] sm:$0xff] }
0x16c9   :  { %v2901_v50 = vmul.f32 %v2893_v41, %v2837_v38  ;;  %3299 = vmatpush.msra.mxu0 %v3219_v5  ;;  %3319 = vmatpush.msrb.mxu1 %v3220_v36  ;;  %v3201_v38 = vld [vmem:[#allocation25 + $0x280] sm:$0xff]  ;;  %v3180_v19 = vld [vmem:[#allocation25 + $0x1d8] sm:$0xff]  ;;  %v3175_v1 = vld [vmem:[#allocation25 + $0x1b0] sm:$0xff] }
0x16ca   :  { %v5799_v54 = vpop.eup %5798  ;;  %3037 = vmatmul.f32.gmra.mxu0 %v2900_v45  ;;  %3070 = vadd.xlane.f32.xlu1 %v3064_v46  ;;  %v3202_v45 = vld [vmem:[#allocation25 + $0x288] sm:$0xff]  ;;  %v3173_v4 = vld [vmem:[#allocation25 + $0x1a0] sm:$0xff]  ;;  %v3176_v35 = vld [vmem:[#allocation25 + $0x1b8] sm:$0xff] }
0x16cb   :  { %v5801_v28 = vpop.eup %5800  ;;  %3060 = vmatmul.f32.gmra.mxu1 %v2901_v50  ;;  %v2890_v33 = vadd.f32 1.0, %v5799_v54  ;;  %3300 = vmatpush.msra.mxu0 %v3215_v52  ;;  %v3204_v54 = vld [vmem:[#allocation25 + $0x298] sm:$0xff]  ;;  %v3169_v60 = vld [vmem:[#allocation25 + $0x180] sm:$0xff]  ;;  %v3170_v61 = vld [vmem:[#allocation25 + $0x188] sm:$0xff] }
0x16cc   :  { %v2891_v39 = vadd.f32 1.0, %v5801_v28  ;;  %3320 = vmatpush.msrb.mxu1 %v3216_v3  ;;  %3261 = vmatpush.msrb.mxu2 %v3209_v42  ;;  %v3197_v28 = vld [vmem:[#allocation25 + $0x260] sm:$0xff]  ;;  %v3171_v6 = vld [vmem:[#allocation25 + $0x190] sm:$0xff]  ;;  %v3172_v8 = vld [vmem:[#allocation25 + $0x198] sm:$0xff] }
0x16cd   :  { %v2898_v59 = vmul.f32 %v2890_v33, %v2834_v48  ;;  %3301 = vmatpush.msra.mxu0 %v3211_v22  ;;  %3282 = vmatpush.msra.mxu3 %v3206_v17  ;;  %v3198_v33 = vld [vmem:[#allocation25 + $0x268] sm:$0xff]  ;;  %v3165_v2 = vld [vmem:[#allocation25 + $0x160] sm:$0xff]  ;;  %v3167_v23 = vld [vmem:[#allocation25 + $0x170] sm:$0xff] }
0x16ce   :  { %v2899_v43 = vmul.f32 %v2891_v39, %v2835_v11  ;;  %3321 = vmatpush.msrb.mxu1 %v3212_v29  ;;  %3262 = vmatpush.msrb.mxu2 %v3205_v30  ;;  %v3199_v11 = vld [vmem:[#allocation25 + $0x270] sm:$0xff]  ;;  %v3166_v9 = vld [vmem:[#allocation25 + $0x168] sm:$0xff]  ;;  %v3168_v5 = vld [vmem:[#allocation25 + $0x178] sm:$0xff] }
0x16cf   :  { %2991 = vmatmul.f32.gmra.mxu2 %v2898_v59  ;;  %3302 = vmatpush.msra.mxu0 %v3207_v32  ;;  %v3200_v59 = vld [vmem:[#allocation25 + $0x278] sm:$0xff]  ;;  %v3161_v36 = vld [vmem:[#allocation25 + $0x140] sm:$0xff]  ;;  %v3162_v7 = vld [vmem:[#allocation25 + $0x148] sm:$0xff] }
0x16d0   :  { %3014 = vmatmul.f32.gmra.mxu3 %v2899_v43  ;;  %3322 = vmatpush.msrb.mxu1 %v3208_v37  ;;  %v3193_v43 = vld [vmem:[#allocation25 + $0x240] sm:$0xff]  ;;  %v3163_v47 = vld [vmem:[#allocation25 + $0x150] sm:$0xff]  ;;  %v3164_v52 = vld [vmem:[#allocation25 + $0x158] sm:$0xff] }
0x16d1   :  { %3263 = vmatpush.msrb.mxu2 %v3201_v38  ;;  %3283 = vmatpush.msra.mxu3 %v3202_v45  ;;  %v3157_v3 = vld [vmem:[#allocation25 + $0x120] sm:$0xff]  ;;  %v3158_v42 = vld [vmem:[#allocation25 + $0x128] sm:$0xff]  ;;  %v3159_v63 = vld [vmem:[#allocation25 + $0x130] sm:$0xff] }
0x16d2   :  { %3323 = vmatpush.msrb.mxu1 %v3204_v54  ;;  %v3160_v22 = vld [vmem:[#allocation25 + $0x138] sm:$0xff]  ;;  %v3153_v29 = vld [vmem:[#allocation25 + $0x100] sm:$0xff]  ;;  %v3154_v30 = vld [vmem:[#allocation25 + $0x108] sm:$0xff] }
0x16d3   :  { %3264 = vmatpush.msrb.mxu2 %v3197_v28  ;;  %3284 = vmatpush.msra.mxu3 %v3198_v33  ;;  %v3155_v17 = vld [vmem:[#allocation25 + $0x110] sm:$0xff]  ;;  %v3156_v32 = vld [vmem:[#allocation25 + $0x118] sm:$0xff]  ;;  %v3149_v37 = vld [vmem:[#allocation25 + $0xe0] sm:$0xff] }
0x16d4   :  { %3324 = vmatpush.msrb.mxu1 %v3200_v59  ;;  %v3150_v38 = vld [vmem:[#allocation25 + $0xe8] sm:$0xff]  ;;  %v3152_v45 = vld [vmem:[#allocation25 + $0xf8] sm:$0xff]  ;;  %v3147_v54 = vld [vmem:[#allocation25 + $0xd0] sm:$0xff] }
0x16d5   :  { %3265 = vmatpush.msrb.mxu2 %v3193_v43  ;;  %3285 = vmatpush.msra.mxu3 %v3194_v15  ;;  %v3148_v28 = vld [vmem:[#allocation25 + $0xd8] sm:$0xff]  ;;  %v3142_v33 = vld [vmem:[#allocation25 + $0xa8] sm:$0xff]  ;;  %v3137_v59 = vld [vmem:[#allocation25 + $0x80] sm:$0xff] }
0x16d6   :  { %3325 = vmatpush.msrb.mxu1 %v3196_v18  ;;  %v3138_v43 = vld [vmem:[#allocation25 + $0x88] sm:$0xff]  ;;  %v3140_v15 = vld [vmem:[#allocation25 + $0x98] sm:$0xff]  ;;  %v3135_v18 = vld [vmem:[#allocation25 + $0x70] sm:$0xff] }
0x16d7   :  { %3286 = vmatpush.msra.mxu3 %v3190_v24  ;;  %v3130_v24 = vld [vmem:[#allocation25 + $0x48] sm:$0xff] }
0x16d8   :  { %3326 = vmatpush.msrb.mxu1 %v3192_v55  ;;  %v3125_v55 = vld [vmem:[#allocation25 + $0x20] sm:$0xff] }
0x16d9   :  { %3287 = vmatpush.msra.mxu3 %v3186_v58  ;;  %v3127_v58 = vld [vmem:[#allocation25 + $0x30] sm:$0xff] }
0x16da   :  { %3327 = vmatpush.msrb.mxu1 %v3188_v20  ;;  %v3121_v20 = vld [vmem:[#allocation25] sm:$0xff] }
0x16db   :  { %3352 = vmatpush.msrb.mxu3 %v3182_v0  ;;  %v3123_v0 = vld [vmem:[#allocation25 + $0x10] sm:$0xff] }
0x16dc   :  { %3392 = vmatpush.msra.mxu1 %v3184_v62 }
0x16dd   :  { %3353 = vmatpush.msrb.mxu3 %v3178_v34 }
0x16de   :  { %3393 = vmatpush.msra.mxu1 %v3180_v19 }
0x16df   :  { %3354 = vmatpush.msrb.mxu3 %v3174_v13 }
0x16e0   :  { %3394 = vmatpush.msra.mxu1 %v3176_v35 }
0x16e1   :  { %3355 = vmatpush.msrb.mxu3 %v3170_v61 }
0x16e2   :  { %3395 = vmatpush.msra.mxu1 %v3172_v8 }
0x16e3   :  { %3356 = vmatpush.msrb.mxu3 %v3166_v9 }
0x16e4   :  { %3396 = vmatpush.msra.mxu1 %v3168_v5 }
0x16e5   :  { %3357 = vmatpush.msrb.mxu3 %v3162_v7 }
0x16e6   :  { %3397 = vmatpush.msra.mxu1 %v3164_v52  ;;  %v3473_v52 = vld [vmem:[#allocation25 + $0x5e8] sm:$0xff] }
0x16e7   :  { %3358 = vmatpush.msrb.mxu3 %v3158_v42  ;;  %v3475_v42 = vld [vmem:[#allocation25 + $0x5f8] sm:$0xff] }
0x16e8   :  { %3398 = vmatpush.msra.mxu1 %v3160_v22  ;;  %v3469_v22 = vld [vmem:[#allocation25 + $0x5c8] sm:$0xff] }
0x16e9   :  { %3359 = vmatpush.msrb.mxu3 %v3154_v30  ;;  %v3464_v30 = vld [vmem:[#allocation25 + $0x5a0] sm:$0xff] }
0x16ea   :  { %3399 = vmatpush.msra.mxu1 %v3156_v32  ;;  %v3466_v32 = vld [vmem:[#allocation25 + $0x5b0] sm:$0xff] }
0x16eb   :  { %3360 = vmatpush.msrb.mxu3 %v3150_v38  ;;  %v3460_v38 = vld [vmem:[#allocation25 + $0x580] sm:$0xff] }
0x16ec   :  { %3400 = vmatpush.msra.mxu1 %v3152_v45  ;;  %v3462_v45 = vld [vmem:[#allocation25 + $0x590] sm:$0xff] }
0x16ee   :  { %3401 = vmatpush.msra.mxu1 %v3148_v28  ;;  %v3458_v28 = vld [vmem:[#allocation25 + $0x570] sm:$0xff] }
0x173d   :  { %v3071_v25 = vpop.xlane.xlu1 %3070 }
0x173e   :  { %v3074_v16 = vmul.f32 %v3071_v25, %v6443_v14 }
0x1740   :  { %v7028_v31 = vsub.f32 %v3064_v46, %v3074_v16  ;;  %v3203_v46 = vld [vmem:[#allocation25 + $0x290] sm:$0xff]  ;;  %v3189_v16 = vld [vmem:[#allocation25 + $0x220] sm:$0xff] }
0x1741   :  { %3303 = vmatpush.msra.mxu0 %v3203_v46  ;;  %3266 = vmatpush.msrb.mxu2 %v3189_v16  ;;  %v3145_v46 = vld [vmem:[#allocation25 + $0xc0] sm:$0xff]  ;;  %v3136_v16 = vld [vmem:[#allocation25 + $0x78] sm:$0xff] }
0x1742   :  { %v3078_v57 = vmul.f32 %v7028_v31, %v7028_v31 }
0x1743   :  { %3304 = vmatpush.msra.mxu0 %v3199_v11  ;;  %3267 = vmatpush.msrb.mxu2 %v3185_v51  ;;  %v3143_v11 = vld [vmem:[#allocation25 + $0xb0] sm:$0xff]  ;;  %v3126_v51 = vld [vmem:[#allocation25 + $0x28] sm:$0xff] }
0x1744   :  { %3080 = vadd.xlane.f32.xlu0 %v3078_v57  ;;  %v3181_v57 = vld [vmem:[#allocation25 + $0x1e0] sm:$0xff] }
0x1745   :  { %3305 = vmatpush.msra.mxu0 %v3195_v49  ;;  %3332 = vmatpush.msra.mxu2 %v3181_v57  ;;  %v3133_v49 = vld [vmem:[#allocation25 + $0x60] sm:$0xff]  ;;  %v3122_v57 = vld [vmem:[#allocation25 + $0x8] sm:$0xff] }
0x1747   :  { %v3038_v25 = vpop.f32.mrf.mxu0  ;;  %3306 = vmatpush.msra.mxu0 %v3191_v21  ;;  %v3131_v21 = vld [vmem:[#allocation25 + $0x50] sm:$0xff] }
0x1748   :  { %v3061_v12 = vpop.f32.mrf.mxu1 }
0x1749   :  { %3307 = vmatpush.msra.mxu0 %v3187_v53  ;;  %v3128_v53 = vld [vmem:[#allocation25 + $0x38] sm:$0xff] }
0x174b   :  { %3372 = vmatpush.msrb.mxu0 %v3183_v27  ;;  %v3124_v27 = vld [vmem:[#allocation25 + $0x18] sm:$0xff] }
0x174d   :  { %3373 = vmatpush.msrb.mxu0 %v3179_v56 }
0x174f   :  { %3374 = vmatpush.msrb.mxu0 %v3175_v1 }
0x1751   :  { %3375 = vmatpush.msrb.mxu0 %v3171_v6  ;;  %v5687_v6 = vld [vmem:[#allocation23 + $0x1] ss:$0 sm:$0xff] }
0x1752   :  { %v2992_v41 = vpop.f32.mrf.mxu2 }
0x1753   :  { %v2993_v50 = vadd.f32 %v7023_v26, %v2992_v41  ;;  %v3015_v48 = vpop.f32.mrf.mxu3  ;;  %3376 = vmatpush.msrb.mxu0 %v3167_v23  ;;  %v3151_v41 = vld [vmem:[#allocation25 + $0xf0] sm:$0xff] }
0x1755   :  { %v3016_v39 = vadd.f32 %v3015_v48, %v2993_v50  ;;  %3377 = vmatpush.msrb.mxu0 %v3163_v47  ;;  %v3146_v50 = vld [vmem:[#allocation25 + $0xc8] sm:$0xff]  ;;  %v3141_v48 = vld [vmem:[#allocation25 + $0xa0] sm:$0xff] }
0x1756   :  { %3361 = vmatpush.msrb.mxu3 %v3146_v50  ;;  %v3472_v47 = vld [vmem:[#allocation25 + $0x5e0] sm:$0xff] }
0x1757   :  { %v3039_v26 = vadd.f32 %v3038_v25, %v3016_v39  ;;  %3378 = vmatpush.msrb.mxu0 %v3159_v63  ;;  %v3144_v39 = vld [vmem:[#allocation25 + $0xb8] sm:$0xff]  ;;  %v3139_v25 = vld [vmem:[#allocation25 + $0x90] sm:$0xff]  ;;  %v3468_v63 = vld [vmem:[#allocation25 + $0x5c0] sm:$0xff] }
0x1758   :  { %3362 = vmatpush.msrb.mxu3 %v3142_v33  ;;  %3402 = vmatpush.msra.mxu1 %v3144_v39  ;;  %v3456_v50 = vld [vmem:[#allocation25 + $0x560] sm:$0xff]  ;;  %v3454_v39 = vld [vmem:[#allocation25 + $0x550] sm:$0xff] }
0x1759   :  { %v3062_v40 = vadd.f32 %v3061_v12, %v3039_v26  ;;  %3379 = vmatpush.msrb.mxu0 %v3155_v17  ;;  %v3134_v26 = vld [vmem:[#allocation25 + $0x68] sm:$0xff]  ;;  %v3129_v12 = vld [vmem:[#allocation25 + $0x40] sm:$0xff] }
0x175a   :  { %3363 = vmatpush.msrb.mxu3 %v3138_v43  ;;  %3403 = vmatpush.msra.mxu1 %v3140_v15  ;;  %v3465_v17 = vld [vmem:[#allocation25 + $0x5a8] sm:$0xff]  ;;  %v3452_v33 = vld [vmem:[#allocation25 + $0x540] sm:$0xff]  ;;  %v3450_v15 = vld [vmem:[#allocation25 + $0x530] sm:$0xff] }
0x175b   :  { %v7034_v44 = vadd.f32 %v3062_v40, %v7005_v10  ;;  %v3177_v10 = vld [vmem:[#allocation25 + $0x1c0] sm:$0xff]  ;;  %3380 = vmatpush.msrb.mxu0 %v3151_v41  ;;  %v3132_v40 = vld [vmem:[#allocation25 + $0x58] sm:$0xff]  ;;  %v3461_v41 = vld [vmem:[#allocation25 + $0x588] sm:$0xff] }
0x175c   :  { %3333 = vmatpush.msra.mxu2 %v3177_v10  ;;  %3364 = vmatpush.msrb.mxu3 %v3134_v26  ;;  %v3448_v43 = vld [vmem:[#allocation25 + $0x520] sm:$0xff] }
0x175d   :  { %3072 = vadd.xlane.f32.xlu2 %v7034_v44  ;;  %3381 = vmatpush.msrb.mxu0 %v3147_v54  ;;  %v3457_v54 = vld [vmem:[#allocation25 + $0x568] sm:$0xff]  ;;  %v3444_v26 = vld [vmem:[#allocation25 + $0x500] sm:$0xff] }
0x175e   :  { %3334 = vmatpush.msra.mxu2 %v3173_v4  ;;  %3404 = vmatpush.msra.mxu1 %v3136_v16  ;;  %v3446_v16 = vld [vmem:[#allocation25 + $0x510] sm:$0xff] }
0x175f   :  { %3382 = vmatpush.msrb.mxu0 %v3143_v11  ;;  %3365 = vmatpush.msrb.mxu3 %v3130_v24  ;;  %v3453_v11 = vld [vmem:[#allocation25 + $0x548] sm:$0xff]  ;;  %v3440_v24 = vld [vmem:[#allocation25 + $0x4e0] sm:$0xff] }
0x1760   :  { %3335 = vmatpush.msra.mxu2 %v3169_v60  ;;  %3405 = vmatpush.msra.mxu1 %v3132_v40  ;;  %v5686_v60 = vld [vmem:[#allocation22 + $0x1] ss:$0 sm:$0xff]  ;;  %v3442_v40 = vld [vmem:[#allocation25 + $0x4f0] sm:$0xff] }
0x1761   :  { %3383 = vmatpush.msrb.mxu0 %v3139_v25  ;;  %3366 = vmatpush.msrb.mxu3 %v3126_v51  ;;  %v3449_v25 = vld [vmem:[#allocation25 + $0x528] sm:$0xff]  ;;  %v3436_v51 = vld [vmem:[#allocation25 + $0x4c0] sm:$0xff] }
0x1762   :  { %3336 = vmatpush.msra.mxu2 %v3165_v2  ;;  %3406 = vmatpush.msra.mxu1 %v3128_v53  ;;  %v3438_v53 = vld [vmem:[#allocation25 + $0x4d0] sm:$0xff] }
0x1763   :  { %3384 = vmatpush.msrb.mxu0 %v3135_v18  ;;  %3367 = vmatpush.msrb.mxu3 %v3122_v57  ;;  %v3445_v18 = vld [vmem:[#allocation25 + $0x508] sm:$0xff]  ;;  %v3432_v57 = vld [vmem:[#allocation25 + $0x4a0] sm:$0xff] }
0x1764   :  { %3337 = vmatpush.msra.mxu2 %v3161_v36  ;;  %3407 = vmatpush.msra.mxu1 %v3124_v27  ;;  %v3434_v27 = vld [vmem:[#allocation25 + $0x4b0] sm:$0xff] }
0x1765   :  { %3385 = vmatpush.msrb.mxu0 %v3131_v21  ;;  %v3441_v21 = vld [vmem:[#allocation25 + $0x4e8] sm:$0xff] }
0x1766   :  { %3338 = vmatpush.msra.mxu2 %v3157_v3  ;;  %v3474_v3 = vld [vmem:[#allocation25 + $0x5f0] sm:$0xff] }
0x1767   :  { %3386 = vmatpush.msrb.mxu0 %v3127_v58  ;;  %v3437_v58 = vld [vmem:[#allocation25 + $0x4c8] sm:$0xff] }
0x1768   :  { %3339 = vmatpush.msra.mxu2 %v3153_v29  ;;  %v3470_v29 = vld [vmem:[#allocation25 + $0x5d0] sm:$0xff] }
0x1769   :  { %3387 = vmatpush.msrb.mxu0 %v3123_v0  ;;  %v3433_v0 = vld [vmem:[#allocation25 + $0x4a8] sm:$0xff] }
0x176a   :  { %3340 = vmatpush.msra.mxu2 %v3149_v37  ;;  %v3467_v37 = vld [vmem:[#allocation25 + $0x5b8] sm:$0xff] }
0x176c   :  { %3341 = vmatpush.msra.mxu2 %v3145_v46  ;;  %v3463_v46 = vld [vmem:[#allocation25 + $0x598] sm:$0xff] }
0x176e   :  { %3342 = vmatpush.msra.mxu2 %v3141_v48  ;;  %v3459_v48 = vld [vmem:[#allocation25 + $0x578] sm:$0xff] }
0x1770   :  { %3343 = vmatpush.msra.mxu2 %v3137_v59  ;;  %v3455_v59 = vld [vmem:[#allocation25 + $0x558] sm:$0xff] }
0x1772   :  { %3344 = vmatpush.msra.mxu2 %v3133_v49  ;;  %v3451_v49 = vld [vmem:[#allocation25 + $0x538] sm:$0xff] }
0x1774   :  { %3345 = vmatpush.msra.mxu2 %v3129_v12  ;;  %v3447_v12 = vld [vmem:[#allocation25 + $0x518] sm:$0xff] }
0x1776   :  { %3346 = vmatpush.msra.mxu2 %v3125_v55  ;;  %v3443_v55 = vld [vmem:[#allocation25 + $0x4f8] sm:$0xff] }
0x1778   :  { %3347 = vmatpush.msra.mxu2 %v3121_v20  ;;  %v3439_v20 = vld [vmem:[#allocation25 + $0x4d8] sm:$0xff] }
0x17b7   :  { %v3081_v62 = vpop.xlane.xlu0 %3080 }
0x17b8   :  { %v3084_v10 = vmul.f32 %v3081_v62, %v6443_v14  ;;  %v3435_v62 = vld [vmem:[#allocation25 + $0x4b8] sm:$0xff] }
0x17ba   :  { %v3086_v34 = vadd.f32 1e-07, %v3084_v10  ;;  %v3428_v10 = vld [vmem:[#allocation25 + $0x480] sm:$0xff] }
0x17bc   :  { %5802 = vrsqrt.f32 %v3086_v34  ;;  %vm3094_vm12 = vweird.f32 %v3086_v34 }
0x17c2   :  { %v5803_v56 = vpop.eup %5802 }
0x17c3   :  { %v3089_v19 = vmul.f32 %v5803_v56, %v3086_v34  ;;  %vm3095_vm11 = vweird.f32 %v5803_v56  ;;  %v3429_v34 = vld [vmem:[#allocation25 + $0x488] sm:$0xff] }
0x17c4   :  { %vm3096_vm13 = vmor %vm3094_vm12, %vm3095_vm11 }
0x17c5   :  { %v3090_v4 = vmul.f32 %v5803_v56, %v3089_v19  ;;  %v3431_v19 = vld [vmem:[#allocation25 + $0x498] sm:$0xff] }
0x17c7   :  { %v3091_v13 = vmul.f32 0.5, %v3090_v4  ;;  %v3424_v4 = vld [vmem:[#allocation25 + $0x460] sm:$0xff] }
0x17c9   :  { %v3092_v1 = vsub.f32 1.5, %v3091_v13  ;;  %v3425_v13 = vld [vmem:[#allocation25 + $0x468] sm:$0xff] }
0x17cb   :  { %v3093_v35 = vmul.f32 %v5803_v56, %v3092_v1  ;;  %v3426_v1 = vld [vmem:[#allocation25 + $0x470] sm:$0xff] }
0x17cd   :  { %v3097_v61 = vsel %vm3096_vm13, %v5803_v56, %v3093_v35  ;;  %v3430_v56 = vld [vmem:[#allocation25 + $0x490] sm:$0xff]  ;;  %v3427_v35 = vld [vmem:[#allocation25 + $0x478] sm:$0xff] }
0x17ce   :  { %v3108_v8 = vmul.f32 %v3097_v61, %v7028_v31  ;;  %v3421_v61 = vld [vmem:[#allocation25 + $0x448] sm:$0xff] }
0x17d0   :  { %v3113_v2 = vmul.f32 %v5686_v60, %v3108_v8  ;;  %v3073_v9 = vpop.xlane.xlu2 %3072  ;;  %v3420_v60 = vld [vmem:[#allocation25 + $0x440] sm:$0xff]  ;;  %v3423_v8 = vld [vmem:[#allocation25 + $0x458] sm:$0xff] }
0x17d1   :  { %v3075_v23 = vmul.f32 %v3073_v9, %v6443_v14  ;;  %v3417_v9 = vld [vmem:[#allocation25 + $0x428] sm:$0xff] }
0x17d2   :  { %v7040_v5 = vadd.f32 %v5687_v6, %v3113_v2  ;;  %v3422_v6 = vld [vmem:[#allocation25 + $0x450] sm:$0xff]  ;;  %v3416_v2 = vld [vmem:[#allocation25 + $0x420] sm:$0xff] }
0x17d3   :  { %v7043_v36 = vsub.f32 %v7034_v44, %v3075_v23  ;;  %v3471_v44 = vld [vmem:[#allocation25 + $0x5d8] sm:$0xff]  ;;  %v3418_v23 = vld [vmem:[#allocation25 + $0x430] sm:$0xff] }
0x17d4   :  { %v3250_v7 = vrot.slane %v7040_v5, 1 }
0x17d5   :  { %v3079_v31 = vmul.f32 %v7043_v36, %v7043_v36 }
0x17d6   :  { %3268 = vmatmul.f32.vlgmr.msrb.gmra.mxu2 %v3250_v7  ;;  %3288 = vmatmul.f32.vlgmr.msra.gmra.mxu3 %v3250_v7 }
0x17d7   :  { %3308 = vmatmul.f32.vlgmr.msra.gmra.mxu0 %v3250_v7  ;;  %3328 = vmatmul.f32.vlgmr.msrb.gmra.mxu1 %v3250_v7  ;;  %v3419_v7 = vld [vmem:[#allocation25 + $0x438] sm:$0xff] }
0x17d8   :  { %3478 = vmatpush.msrb.mxu2 %v3472_v47  ;;  %3498 = vmatpush.msra.mxu3 %v3473_v52  ;;  %v3412_v47 = vld [vmem:[#allocation25 + $0x400] sm:$0xff]  ;;  %v3413_v52 = vld [vmem:[#allocation25 + $0x408] sm:$0xff] }
0x17d9   :  { %3518 = vmatpush.msra.mxu0 %v3474_v3  ;;  %3538 = vmatpush.msrb.mxu1 %v3475_v42  ;;  %v3414_v3 = vld [vmem:[#allocation25 + $0x410] sm:$0xff]  ;;  %v3415_v42 = vld [vmem:[#allocation25 + $0x418] sm:$0xff] }
0x17da   :  { %3082 = vadd.xlane.f32.xlu1 %v3079_v31  ;;  %3479 = vmatpush.msrb.mxu2 %v3468_v63  ;;  %v3476_v31 = vrot.slane %v7040_v5, 2  ;;  %v3622_v63 = vld [vmem:[#allocation25 + $0x7e0] sm:$0xff] }
0x17db   :  { %3499 = vmatpush.msra.mxu3 %v3469_v22  ;;  %3519 = vmatpush.msra.mxu0 %v3470_v29  ;;  %v3623_v22 = vld [vmem:[#allocation25 + $0x7e8] sm:$0xff]  ;;  %v3624_v29 = vld [vmem:[#allocation25 + $0x7f0] sm:$0xff] }
0x17dc   :  { %3539 = vmatpush.msrb.mxu1 %v3471_v44  ;;  %3480 = vmatpush.msrb.mxu2 %v3464_v30  ;;  %v3625_v44 = vld [vmem:[#allocation25 + $0x7f8] sm:$0xff]  ;;  %v3618_v30 = vld [vmem:[#allocation25 + $0x7c0] sm:$0xff] }
0x17dd   :  { %3500 = vmatpush.msra.mxu3 %v3465_v17  ;;  %3520 = vmatpush.msra.mxu0 %v3466_v32  ;;  %v3619_v17 = vld [vmem:[#allocation25 + $0x7c8] sm:$0xff]  ;;  %v3620_v32 = vld [vmem:[#allocation25 + $0x7d0] sm:$0xff] }
0x17de   :  { %3540 = vmatpush.msrb.mxu1 %v3467_v37  ;;  %3481 = vmatpush.msrb.mxu2 %v3460_v38  ;;  %v3621_v37 = vld [vmem:[#allocation25 + $0x7d8] sm:$0xff]  ;;  %v3614_v38 = vld [vmem:[#allocation25 + $0x7a0] sm:$0xff] }
0x17df   :  { %3501 = vmatpush.msra.mxu3 %v3461_v41  ;;  %3521 = vmatpush.msra.mxu0 %v3462_v45  ;;  %v3615_v41 = vld [vmem:[#allocation25 + $0x7a8] sm:$0xff]  ;;  %v3616_v45 = vld [vmem:[#allocation25 + $0x7b0] sm:$0xff] }
0x17e0   :  { %3541 = vmatpush.msrb.mxu1 %v3463_v46  ;;  %3348 = vmatmul.f32.vlgmr.msra.gmra.mxu2 %v7040_v5  ;;  %v3617_v46 = vld [vmem:[#allocation25 + $0x7b8] sm:$0xff] }
0x17e1   :  { %3368 = vmatmul.f32.vlgmr.msrb.gmra.mxu3 %v7040_v5  ;;  %3388 = vmatmul.f32.vlgmr.msrb.gmra.mxu0 %v7040_v5 }
0x17e2   :  { %3408 = vmatmul.f32.vlgmr.msra.gmra.mxu1 %v7040_v5  ;;  %3482 = vmatpush.msrb.mxu2 %v3456_v50  ;;  %v3610_v50 = vld [vmem:[#allocation25 + $0x780] sm:$0xff] }
0x17e3   :  { %3502 = vmatpush.msra.mxu3 %v3457_v54  ;;  %3522 = vmatpush.msra.mxu0 %v3458_v28  ;;  %v3611_v54 = vld [vmem:[#allocation25 + $0x788] sm:$0xff]  ;;  %v3612_v28 = vld [vmem:[#allocation25 + $0x790] sm:$0xff] }
0x17e4   :  { %3542 = vmatpush.msrb.mxu1 %v3459_v48  ;;  %3483 = vmatpush.msrb.mxu2 %v3452_v33  ;;  %v3613_v48 = vld [vmem:[#allocation25 + $0x798] sm:$0xff]  ;;  %v3606_v33 = vld [vmem:[#allocation25 + $0x760] sm:$0xff] }
0x17e5   :  { %3503 = vmatpush.msra.mxu3 %v3453_v11  ;;  %3523 = vmatpush.msra.mxu0 %v3454_v39  ;;  %v3607_v11 = vld [vmem:[#allocation25 + $0x768] sm:$0xff]  ;;  %v3608_v39 = vld [vmem:[#allocation25 + $0x770] sm:$0xff] }
0x17e6   :  { %3543 = vmatpush.msrb.mxu1 %v3455_v59  ;;  %3484 = vmatpush.msrb.mxu2 %v3448_v43  ;;  %v3609_v59 = vld [vmem:[#allocation25 + $0x778] sm:$0xff]  ;;  %v3602_v43 = vld [vmem:[#allocation25 + $0x740] sm:$0xff] }
0x17e7   :  { %3504 = vmatpush.msra.mxu3 %v3449_v25  ;;  %3524 = vmatpush.msra.mxu0 %v3450_v15  ;;  %v3603_v25 = vld [vmem:[#allocation25 + $0x748] sm:$0xff]  ;;  %v3604_v15 = vld [vmem:[#allocation25 + $0x750] sm:$0xff] }
0x17e8   :  { %3544 = vmatpush.msrb.mxu1 %v3451_v49  ;;  %3485 = vmatpush.msrb.mxu2 %v3444_v26  ;;  %v3605_v49 = vld [vmem:[#allocation25 + $0x758] sm:$0xff]  ;;  %v3598_v26 = vld [vmem:[#allocation25 + $0x720] sm:$0xff] }
0x17e9   :  { %3505 = vmatpush.msra.mxu3 %v3445_v18  ;;  %3525 = vmatpush.msra.mxu0 %v3446_v16  ;;  %v3599_v18 = vld [vmem:[#allocation25 + $0x728] sm:$0xff]  ;;  %v3600_v16 = vld [vmem:[#allocation25 + $0x730] sm:$0xff] }
0x17ea   :  { %3545 = vmatpush.msrb.mxu1 %v3447_v12  ;;  %3486 = vmatpush.msrb.mxu2 %v3440_v24  ;;  %v3601_v12 = vld [vmem:[#allocation25 + $0x738] sm:$0xff]  ;;  %v3594_v24 = vld [vmem:[#allocation25 + $0x700] sm:$0xff] }
0x17eb   :  { %3506 = vmatpush.msra.mxu3 %v3441_v21  ;;  %3526 = vmatpush.msra.mxu0 %v3442_v40  ;;  %v3595_v21 = vld [vmem:[#allocation25 + $0x708] sm:$0xff]  ;;  %v3596_v40 = vld [vmem:[#allocation25 + $0x710] sm:$0xff] }
0x17ec   :  { %3546 = vmatpush.msrb.mxu1 %v3443_v55  ;;  %3487 = vmatpush.msrb.mxu2 %v3436_v51  ;;  %v3597_v55 = vld [vmem:[#allocation25 + $0x718] sm:$0xff]  ;;  %v3590_v51 = vld [vmem:[#allocation25 + $0x6e0] sm:$0xff] }
0x17ed   :  { %3507 = vmatpush.msra.mxu3 %v3437_v58  ;;  %3527 = vmatpush.msra.mxu0 %v3438_v53  ;;  %v3591_v58 = vld [vmem:[#allocation25 + $0x6e8] sm:$0xff]  ;;  %v3592_v53 = vld [vmem:[#allocation25 + $0x6f0] sm:$0xff] }
0x17ee   :  { %3547 = vmatpush.msrb.mxu1 %v3439_v20  ;;  %3488 = vmatpush.msrb.mxu2 %v3432_v57  ;;  %v3593_v20 = vld [vmem:[#allocation25 + $0x6f8] sm:$0xff]  ;;  %v3586_v57 = vld [vmem:[#allocation25 + $0x6c0] sm:$0xff] }
0x17ef   :  { %3508 = vmatpush.msra.mxu3 %v3433_v0  ;;  %3528 = vmatpush.msra.mxu0 %v3434_v27  ;;  %v3587_v0 = vld [vmem:[#allocation25 + $0x6c8] sm:$0xff]  ;;  %v3588_v27 = vld [vmem:[#allocation25 + $0x6d0] sm:$0xff] }
0x17f0   :  { %3548 = vmatpush.msrb.mxu1 %v3435_v62  ;;  %3489 = vmatpush.msrb.mxu2 %v3428_v10  ;;  %v3589_v62 = vld [vmem:[#allocation25 + $0x6d8] sm:$0xff]  ;;  %v3582_v10 = vld [vmem:[#allocation25 + $0x6a0] sm:$0xff] }
0x17f1   :  { %3509 = vmatpush.msra.mxu3 %v3429_v34  ;;  %3529 = vmatpush.msra.mxu0 %v3430_v56  ;;  %v3583_v34 = vld [vmem:[#allocation25 + $0x6a8] sm:$0xff]  ;;  %v3584_v56 = vld [vmem:[#allocation25 + $0x6b0] sm:$0xff] }
0x17f2   :  { %3549 = vmatpush.msrb.mxu1 %v3431_v19  ;;  %3490 = vmatpush.msrb.mxu2 %v3424_v4  ;;  %v3585_v19 = vld [vmem:[#allocation25 + $0x6b8] sm:$0xff]  ;;  %v3578_v4 = vld [vmem:[#allocation25 + $0x680] sm:$0xff] }
0x17f3   :  { %3510 = vmatpush.msra.mxu3 %v3425_v13  ;;  %3530 = vmatpush.msra.mxu0 %v3426_v1  ;;  %v3579_v13 = vld [vmem:[#allocation25 + $0x688] sm:$0xff]  ;;  %v3580_v1 = vld [vmem:[#allocation25 + $0x690] sm:$0xff] }
0x17f4   :  { %3550 = vmatpush.msrb.mxu1 %v3427_v35  ;;  %3491 = vmatpush.msrb.mxu2 %v3420_v60  ;;  %v3581_v35 = vld [vmem:[#allocation25 + $0x698] sm:$0xff]  ;;  %v3574_v60 = vld [vmem:[#allocation25 + $0x660] sm:$0xff] }
0x17f5   :  { %3511 = vmatpush.msra.mxu3 %v3421_v61  ;;  %3531 = vmatpush.msra.mxu0 %v3422_v6  ;;  %v3575_v61 = vld [vmem:[#allocation25 + $0x668] sm:$0xff]  ;;  %v3576_v6 = vld [vmem:[#allocation25 + $0x670] sm:$0xff] }
0x17f6   :  { %3551 = vmatpush.msrb.mxu1 %v3423_v8  ;;  %3492 = vmatpush.msrb.mxu2 %v3416_v2  ;;  %v3577_v8 = vld [vmem:[#allocation25 + $0x678] sm:$0xff]  ;;  %v3570_v2 = vld [vmem:[#allocation25 + $0x640] sm:$0xff] }
0x17f7   :  { %3512 = vmatpush.msra.mxu3 %v3417_v9  ;;  %3532 = vmatpush.msra.mxu0 %v3418_v23  ;;  %v3571_v9 = vld [vmem:[#allocation25 + $0x648] sm:$0xff]  ;;  %v3572_v23 = vld [vmem:[#allocation25 + $0x650] sm:$0xff] }
0x17f8   :  { %3552 = vmatpush.msrb.mxu1 %v3419_v7  ;;  %3493 = vmatpush.msrb.mxu2 %v3412_v47  ;;  %v3573_v7 = vld [vmem:[#allocation25 + $0x658] sm:$0xff]  ;;  %v3566_v47 = vld [vmem:[#allocation25 + $0x620] sm:$0xff] }
0x17f9   :  { %3513 = vmatpush.msra.mxu3 %v3413_v52  ;;  %3533 = vmatpush.msra.mxu0 %v3414_v3  ;;  %v3567_v52 = vld [vmem:[#allocation25 + $0x628] sm:$0xff]  ;;  %v3568_v3 = vld [vmem:[#allocation25 + $0x630] sm:$0xff] }
0x17fa   :  { %3553 = vmatpush.msrb.mxu1 %v3415_v42  ;;  %3494 = vmatmul.f32.vlgmr.msrb.gmra.mxu2 %v3476_v31  ;;  %v3569_v42 = vld [vmem:[#allocation25 + $0x638] sm:$0xff] }
0x17fb   :  { %3514 = vmatmul.f32.vlgmr.msra.gmra.mxu3 %v3476_v31  ;;  %3534 = vmatmul.f32.vlgmr.msra.gmra.mxu0 %v3476_v31 }
0x17fc   :  { %3554 = vmatmul.f32.vlgmr.msrb.gmra.mxu1 %v3476_v31  ;;  %3628 = vmatpush.msra.mxu2 %v3622_v63  ;;  %v3562_v31 = vld [vmem:[#allocation25 + $0x600] sm:$0xff]  ;;  %v3563_v63 = vld [vmem:[#allocation25 + $0x608] sm:$0xff] }
0x17fd   :  { %3648 = vmatpush.msrb.mxu3 %v3623_v22  ;;  %3668 = vmatpush.msrb.mxu0 %v3624_v29  ;;  %v3564_v22 = vld [vmem:[#allocation25 + $0x610] sm:$0xff]  ;;  %v3565_v29 = vld [vmem:[#allocation25 + $0x618] sm:$0xff] }
0x17fe   :  { %3688 = vmatpush.msra.mxu1 %v3625_v44  ;;  %3629 = vmatpush.msra.mxu2 %v3618_v30  ;;  %v3626_v44 = vrot.slane %v7040_v5, 3  ;;  %v3772_v30 = vld [vmem:[#allocation25 + $0x9e0] sm:$0xff] }
0x17ff   :  { %3649 = vmatpush.msrb.mxu3 %v3619_v17  ;;  %3669 = vmatpush.msrb.mxu0 %v3620_v32  ;;  %v3773_v17 = vld [vmem:[#allocation25 + $0x9e8] sm:$0xff]  ;;  %v3774_v32 = vld [vmem:[#allocation25 + $0x9f0] sm:$0xff] }
0x1800   :  { %3689 = vmatpush.msra.mxu1 %v3621_v37  ;;  %3630 = vmatpush.msra.mxu2 %v3614_v38  ;;  %v3775_v37 = vld [vmem:[#allocation25 + $0x9f8] sm:$0xff]  ;;  %v3768_v38 = vld [vmem:[#allocation25 + $0x9c0] sm:$0xff] }
0x1801   :  { %3650 = vmatpush.msrb.mxu3 %v3615_v41  ;;  %3670 = vmatpush.msrb.mxu0 %v3616_v45  ;;  %v3769_v41 = vld [vmem:[#allocation25 + $0x9c8] sm:$0xff]  ;;  %v3770_v45 = vld [vmem:[#allocation25 + $0x9d0] sm:$0xff] }
0x1802   :  { %3690 = vmatpush.msra.mxu1 %v3617_v46  ;;  %3631 = vmatpush.msra.mxu2 %v3610_v50  ;;  %v3771_v46 = vld [vmem:[#allocation25 + $0x9d8] sm:$0xff]  ;;  %v3764_v50 = vld [vmem:[#allocation25 + $0x9a0] sm:$0xff] }
0x1803   :  { %3651 = vmatpush.msrb.mxu3 %v3611_v54  ;;  %3671 = vmatpush.msrb.mxu0 %v3612_v28  ;;  %v3765_v54 = vld [vmem:[#allocation25 + $0x9a8] sm:$0xff]  ;;  %v3766_v28 = vld [vmem:[#allocation25 + $0x9b0] sm:$0xff] }
0x1804   :  { %3691 = vmatpush.msra.mxu1 %v3613_v48  ;;  %3632 = vmatpush.msra.mxu2 %v3606_v33  ;;  %v3767_v48 = vld [vmem:[#allocation25 + $0x9b8] sm:$0xff]  ;;  %v3760_v33 = vld [vmem:[#allocation25 + $0x980] sm:$0xff] }
0x1805   :  { %3652 = vmatpush.msrb.mxu3 %v3607_v11  ;;  %3672 = vmatpush.msrb.mxu0 %v3608_v39  ;;  %v3761_v11 = vld [vmem:[#allocation25 + $0x988] sm:$0xff]  ;;  %v3762_v39 = vld [vmem:[#allocation25 + $0x990] sm:$0xff] }
0x1806   :  { %3692 = vmatpush.msra.mxu1 %v3609_v59  ;;  %3633 = vmatpush.msra.mxu2 %v3602_v43  ;;  %v3763_v59 = vld [vmem:[#allocation25 + $0x998] sm:$0xff]  ;;  %v3756_v43 = vld [vmem:[#allocation25 + $0x960] sm:$0xff] }
0x1807   :  { %3653 = vmatpush.msrb.mxu3 %v3603_v25  ;;  %3673 = vmatpush.msrb.mxu0 %v3604_v15  ;;  %v3757_v25 = vld [vmem:[#allocation25 + $0x968] sm:$0xff]  ;;  %v3758_v15 = vld [vmem:[#allocation25 + $0x970] sm:$0xff] }
0x1808   :  { %3693 = vmatpush.msra.mxu1 %v3605_v49  ;;  %3634 = vmatpush.msra.mxu2 %v3598_v26  ;;  %v3759_v49 = vld [vmem:[#allocation25 + $0x978] sm:$0xff]  ;;  %v3752_v26 = vld [vmem:[#allocation25 + $0x940] sm:$0xff] }
0x1809   :  { %3654 = vmatpush.msrb.mxu3 %v3599_v18  ;;  %3674 = vmatpush.msrb.mxu0 %v3600_v16  ;;  %v3753_v18 = vld [vmem:[#allocation25 + $0x948] sm:$0xff]  ;;  %v3754_v16 = vld [vmem:[#allocation25 + $0x950] sm:$0xff] }
0x180a   :  { %3694 = vmatpush.msra.mxu1 %v3601_v12  ;;  %3635 = vmatpush.msra.mxu2 %v3594_v24  ;;  %v3755_v12 = vld [vmem:[#allocation25 + $0x958] sm:$0xff]  ;;  %v3748_v24 = vld [vmem:[#allocation25 + $0x920] sm:$0xff] }
0x180b   :  { %3655 = vmatpush.msrb.mxu3 %v3595_v21  ;;  %3675 = vmatpush.msrb.mxu0 %v3596_v40  ;;  %v3749_v21 = vld [vmem:[#allocation25 + $0x928] sm:$0xff]  ;;  %v3750_v40 = vld [vmem:[#allocation25 + $0x930] sm:$0xff] }
0x180c   :  { %3695 = vmatpush.msra.mxu1 %v3597_v55  ;;  %3636 = vmatpush.msra.mxu2 %v3590_v51  ;;  %v3751_v55 = vld [vmem:[#allocation25 + $0x938] sm:$0xff]  ;;  %v3744_v51 = vld [vmem:[#allocation25 + $0x900] sm:$0xff] }
0x180d   :  { %3656 = vmatpush.msrb.mxu3 %v3591_v58  ;;  %3676 = vmatpush.msrb.mxu0 %v3592_v53  ;;  %v3745_v58 = vld [vmem:[#allocation25 + $0x908] sm:$0xff]  ;;  %v3746_v53 = vld [vmem:[#allocation25 + $0x910] sm:$0xff] }
0x180e   :  { %3696 = vmatpush.msra.mxu1 %v3593_v20  ;;  %3637 = vmatpush.msra.mxu2 %v3586_v57  ;;  %v3747_v20 = vld [vmem:[#allocation25 + $0x918] sm:$0xff]  ;;  %v3740_v57 = vld [vmem:[#allocation25 + $0x8e0] sm:$0xff] }
0x180f   :  { %3657 = vmatpush.msrb.mxu3 %v3587_v0  ;;  %3677 = vmatpush.msrb.mxu0 %v3588_v27  ;;  %v3741_v0 = vld [vmem:[#allocation25 + $0x8e8] sm:$0xff]  ;;  %v3742_v27 = vld [vmem:[#allocation25 + $0x8f0] sm:$0xff] }
0x1810   :  { %3697 = vmatpush.msra.mxu1 %v3589_v62  ;;  %3638 = vmatpush.msra.mxu2 %v3582_v10  ;;  %v3743_v62 = vld [vmem:[#allocation25 + $0x8f8] sm:$0xff]  ;;  %v3736_v10 = vld [vmem:[#allocation25 + $0x8c0] sm:$0xff] }
0x1811   :  { %3658 = vmatpush.msrb.mxu3 %v3583_v34  ;;  %3678 = vmatpush.msrb.mxu0 %v3584_v56  ;;  %v3737_v34 = vld [vmem:[#allocation25 + $0x8c8] sm:$0xff]  ;;  %v3738_v56 = vld [vmem:[#allocation25 + $0x8d0] sm:$0xff] }
0x1812   :  { %3698 = vmatpush.msra.mxu1 %v3585_v19  ;;  %3639 = vmatpush.msra.mxu2 %v3578_v4  ;;  %v3739_v19 = vld [vmem:[#allocation25 + $0x8d8] sm:$0xff]  ;;  %v3732_v4 = vld [vmem:[#allocation25 + $0x8a0] sm:$0xff] }
0x1813   :  { %3659 = vmatpush.msrb.mxu3 %v3579_v13  ;;  %3679 = vmatpush.msrb.mxu0 %v3580_v1  ;;  %v3733_v13 = vld [vmem:[#allocation25 + $0x8a8] sm:$0xff]  ;;  %v3734_v1 = vld [vmem:[#allocation25 + $0x8b0] sm:$0xff] }
0x1814   :  { %3699 = vmatpush.msra.mxu1 %v3581_v35  ;;  %3640 = vmatpush.msra.mxu2 %v3574_v60  ;;  %v3735_v35 = vld [vmem:[#allocation25 + $0x8b8] sm:$0xff]  ;;  %v3728_v60 = vld [vmem:[#allocation25 + $0x880] sm:$0xff] }
0x1815   :  { %3660 = vmatpush.msrb.mxu3 %v3575_v61  ;;  %3680 = vmatpush.msrb.mxu0 %v3576_v6  ;;  %v3729_v61 = vld [vmem:[#allocation25 + $0x888] sm:$0xff]  ;;  %v3730_v6 = vld [vmem:[#allocation25 + $0x890] sm:$0xff] }
0x1816   :  { %3700 = vmatpush.msra.mxu1 %v3577_v8  ;;  %3641 = vmatpush.msra.mxu2 %v3570_v2  ;;  %v3731_v8 = vld [vmem:[#allocation25 + $0x898] sm:$0xff]  ;;  %v3724_v2 = vld [vmem:[#allocation25 + $0x860] sm:$0xff] }
0x1817   :  { %3661 = vmatpush.msrb.mxu3 %v3571_v9  ;;  %3681 = vmatpush.msrb.mxu0 %v3572_v23  ;;  %v3725_v9 = vld [vmem:[#allocation25 + $0x868] sm:$0xff]  ;;  %v3726_v23 = vld [vmem:[#allocation25 + $0x870] sm:$0xff] }
0x1818   :  { %3701 = vmatpush.msra.mxu1 %v3573_v7  ;;  %3642 = vmatpush.msra.mxu2 %v3566_v47  ;;  %v3727_v7 = vld [vmem:[#allocation25 + $0x878] sm:$0xff]  ;;  %v3720_v47 = vld [vmem:[#allocation25 + $0x840] sm:$0xff] }
0x1819   :  { %3662 = vmatpush.msrb.mxu3 %v3567_v52  ;;  %3682 = vmatpush.msrb.mxu0 %v3568_v3  ;;  %v3721_v52 = vld [vmem:[#allocation25 + $0x848] sm:$0xff]  ;;  %v3722_v3 = vld [vmem:[#allocation25 + $0x850] sm:$0xff] }
0x181a   :  { %3702 = vmatpush.msra.mxu1 %v3569_v42  ;;  %3643 = vmatpush.msra.mxu2 %v3562_v31  ;;  %v3723_v42 = vld [vmem:[#allocation25 + $0x858] sm:$0xff]  ;;  %v3716_v31 = vld [vmem:[#allocation25 + $0x820] sm:$0xff] }
0x181b   :  { %3663 = vmatpush.msrb.mxu3 %v3563_v63  ;;  %3683 = vmatpush.msrb.mxu0 %v3564_v22  ;;  %v3717_v63 = vld [vmem:[#allocation25 + $0x828] sm:$0xff]  ;;  %v3718_v22 = vld [vmem:[#allocation25 + $0x830] sm:$0xff] }
0x181c   :  { %3703 = vmatpush.msra.mxu1 %v3565_v29  ;;  %3644 = vmatmul.f32.vlgmr.msra.gmra.mxu2 %v3626_v44  ;;  %v3719_v29 = vld [vmem:[#allocation25 + $0x838] sm:$0xff] }
0x181d   :  { %3664 = vmatmul.f32.vlgmr.msrb.gmra.mxu3 %v3626_v44  ;;  %3684 = vmatmul.f32.vlgmr.msrb.gmra.mxu0 %v3626_v44 }
0x181e   :  { %3704 = vmatmul.f32.vlgmr.msra.gmra.mxu1 %v3626_v44  ;;  %3778 = vmatpush.msrb.mxu2 %v3772_v30  ;;  %v3712_v44 = vld [vmem:[#allocation25 + $0x800] sm:$0xff]  ;;  %v3713_v30 = vld [vmem:[#allocation25 + $0x808] sm:$0xff] }
0x181f   :  { %3798 = vmatpush.msra.mxu3 %v3773_v17  ;;  %3818 = vmatpush.msra.mxu0 %v3774_v32  ;;  %v3714_v17 = vld [vmem:[#allocation25 + $0x810] sm:$0xff]  ;;  %v3715_v32 = vld [vmem:[#allocation25 + $0x818] sm:$0xff] }
0x1820   :  { %3838 = vmatpush.msrb.mxu1 %v3775_v37  ;;  %3779 = vmatpush.msrb.mxu2 %v3768_v38  ;;  %v3776_v37 = vrot.slane %v7040_v5, 4  ;;  %v3922_v38 = vld [vmem:[#allocation25 + $0xbe0] sm:$0xff] }
0x1821   :  { %3799 = vmatpush.msra.mxu3 %v3769_v41  ;;  %3819 = vmatpush.msra.mxu0 %v3770_v45  ;;  %v3923_v41 = vld [vmem:[#allocation25 + $0xbe8] sm:$0xff]  ;;  %v3924_v45 = vld [vmem:[#allocation25 + $0xbf0] sm:$0xff] }
0x1822   :  { %3839 = vmatpush.msrb.mxu1 %v3771_v46  ;;  %3780 = vmatpush.msrb.mxu2 %v3764_v50  ;;  %v3925_v46 = vld [vmem:[#allocation25 + $0xbf8] sm:$0xff]  ;;  %v3918_v50 = vld [vmem:[#allocation25 + $0xbc0] sm:$0xff] }
0x1823   :  { %3800 = vmatpush.msra.mxu3 %v3765_v54  ;;  %3820 = vmatpush.msra.mxu0 %v3766_v28  ;;  %v3919_v54 = vld [vmem:[#allocation25 + $0xbc8] sm:$0xff]  ;;  %v3920_v28 = vld [vmem:[#allocation25 + $0xbd0] sm:$0xff] }
0x1824   :  { %3840 = vmatpush.msrb.mxu1 %v3767_v48  ;;  %3781 = vmatpush.msrb.mxu2 %v3760_v33  ;;  %v3921_v48 = vld [vmem:[#allocation25 + $0xbd8] sm:$0xff]  ;;  %v3914_v33 = vld [vmem:[#allocation25 + $0xba0] sm:$0xff] }
0x1825   :  { %3801 = vmatpush.msra.mxu3 %v3761_v11  ;;  %3821 = vmatpush.msra.mxu0 %v3762_v39  ;;  %v3915_v11 = vld [vmem:[#allocation25 + $0xba8] sm:$0xff]  ;;  %v3916_v39 = vld [vmem:[#allocation25 + $0xbb0] sm:$0xff] }
0x1826   :  { %3841 = vmatpush.msrb.mxu1 %v3763_v59  ;;  %3782 = vmatpush.msrb.mxu2 %v3756_v43  ;;  %v3917_v59 = vld [vmem:[#allocation25 + $0xbb8] sm:$0xff]  ;;  %v3910_v43 = vld [vmem:[#allocation25 + $0xb80] sm:$0xff] }
0x1827   :  { %3802 = vmatpush.msra.mxu3 %v3757_v25  ;;  %3822 = vmatpush.msra.mxu0 %v3758_v15  ;;  %v3911_v25 = vld [vmem:[#allocation25 + $0xb88] sm:$0xff]  ;;  %v3912_v15 = vld [vmem:[#allocation25 + $0xb90] sm:$0xff] }
0x1828   :  { %3842 = vmatpush.msrb.mxu1 %v3759_v49  ;;  %3783 = vmatpush.msrb.mxu2 %v3752_v26  ;;  %v3913_v49 = vld [vmem:[#allocation25 + $0xb98] sm:$0xff]  ;;  %v3906_v26 = vld [vmem:[#allocation25 + $0xb60] sm:$0xff] }
0x1829   :  { %3803 = vmatpush.msra.mxu3 %v3753_v18  ;;  %3823 = vmatpush.msra.mxu0 %v3754_v16  ;;  %v3907_v18 = vld [vmem:[#allocation25 + $0xb68] sm:$0xff]  ;;  %v3908_v16 = vld [vmem:[#allocation25 + $0xb70] sm:$0xff] }
0x182a   :  { %3843 = vmatpush.msrb.mxu1 %v3755_v12  ;;  %3784 = vmatpush.msrb.mxu2 %v3748_v24  ;;  %v3909_v12 = vld [vmem:[#allocation25 + $0xb78] sm:$0xff]  ;;  %v3902_v24 = vld [vmem:[#allocation25 + $0xb40] sm:$0xff] }
0x182b   :  { %3804 = vmatpush.msra.mxu3 %v3749_v21  ;;  %3824 = vmatpush.msra.mxu0 %v3750_v40  ;;  %v3903_v21 = vld [vmem:[#allocation25 + $0xb48] sm:$0xff]  ;;  %v3904_v40 = vld [vmem:[#allocation25 + $0xb50] sm:$0xff] }
0x182c   :  { %3844 = vmatpush.msrb.mxu1 %v3751_v55  ;;  %3785 = vmatpush.msrb.mxu2 %v3744_v51  ;;  %v3905_v55 = vld [vmem:[#allocation25 + $0xb58] sm:$0xff]  ;;  %v3898_v51 = vld [vmem:[#allocation25 + $0xb20] sm:$0xff] }
0x182d   :  { %3805 = vmatpush.msra.mxu3 %v3745_v58  ;;  %3825 = vmatpush.msra.mxu0 %v3746_v53  ;;  %v3899_v58 = vld [vmem:[#allocation25 + $0xb28] sm:$0xff]  ;;  %v3900_v53 = vld [vmem:[#allocation25 + $0xb30] sm:$0xff] }
0x182e   :  { %3845 = vmatpush.msrb.mxu1 %v3747_v20  ;;  %3786 = vmatpush.msrb.mxu2 %v3740_v57  ;;  %v3901_v20 = vld [vmem:[#allocation25 + $0xb38] sm:$0xff]  ;;  %v3894_v57 = vld [vmem:[#allocation25 + $0xb00] sm:$0xff] }
0x182f   :  { %3806 = vmatpush.msra.mxu3 %v3741_v0  ;;  %3826 = vmatpush.msra.mxu0 %v3742_v27  ;;  %v3895_v0 = vld [vmem:[#allocation25 + $0xb08] sm:$0xff]  ;;  %v3896_v27 = vld [vmem:[#allocation25 + $0xb10] sm:$0xff] }
0x1830   :  { %3846 = vmatpush.msrb.mxu1 %v3743_v62  ;;  %3787 = vmatpush.msrb.mxu2 %v3736_v10  ;;  %v3897_v62 = vld [vmem:[#allocation25 + $0xb18] sm:$0xff]  ;;  %v3890_v10 = vld [vmem:[#allocation25 + $0xae0] sm:$0xff] }
0x1831   :  { %3807 = vmatpush.msra.mxu3 %v3737_v34  ;;  %3827 = vmatpush.msra.mxu0 %v3738_v56  ;;  %v3891_v34 = vld [vmem:[#allocation25 + $0xae8] sm:$0xff]  ;;  %v3892_v56 = vld [vmem:[#allocation25 + $0xaf0] sm:$0xff] }
0x1832   :  { %3847 = vmatpush.msrb.mxu1 %v3739_v19  ;;  %3788 = vmatpush.msrb.mxu2 %v3732_v4  ;;  %v3893_v19 = vld [vmem:[#allocation25 + $0xaf8] sm:$0xff]  ;;  %v3886_v4 = vld [vmem:[#allocation25 + $0xac0] sm:$0xff] }
0x1833   :  { %3808 = vmatpush.msra.mxu3 %v3733_v13  ;;  %3828 = vmatpush.msra.mxu0 %v3734_v1  ;;  %v3887_v13 = vld [vmem:[#allocation25 + $0xac8] sm:$0xff]  ;;  %v3888_v1 = vld [vmem:[#allocation25 + $0xad0] sm:$0xff] }
0x1834   :  { %3848 = vmatpush.msrb.mxu1 %v3735_v35  ;;  %3789 = vmatpush.msrb.mxu2 %v3728_v60  ;;  %v3889_v35 = vld [vmem:[#allocation25 + $0xad8] sm:$0xff]  ;;  %v3882_v60 = vld [vmem:[#allocation25 + $0xaa0] sm:$0xff] }
0x1835   :  { %3809 = vmatpush.msra.mxu3 %v3729_v61  ;;  %3829 = vmatpush.msra.mxu0 %v3730_v6  ;;  %v3883_v61 = vld [vmem:[#allocation25 + $0xaa8] sm:$0xff]  ;;  %v3884_v6 = vld [vmem:[#allocation25 + $0xab0] sm:$0xff] }
0x1836   :  { %3849 = vmatpush.msrb.mxu1 %v3731_v8  ;;  %3790 = vmatpush.msrb.mxu2 %v3724_v2  ;;  %v3885_v8 = vld [vmem:[#allocation25 + $0xab8] sm:$0xff]  ;;  %v3878_v2 = vld [vmem:[#allocation25 + $0xa80] sm:$0xff] }
0x1837   :  { %3810 = vmatpush.msra.mxu3 %v3725_v9  ;;  %3830 = vmatpush.msra.mxu0 %v3726_v23  ;;  %v3879_v9 = vld [vmem:[#allocation25 + $0xa88] sm:$0xff]  ;;  %v3880_v23 = vld [vmem:[#allocation25 + $0xa90] sm:$0xff] }
0x1838   :  { %3850 = vmatpush.msrb.mxu1 %v3727_v7  ;;  %3791 = vmatpush.msrb.mxu2 %v3720_v47  ;;  %v3881_v7 = vld [vmem:[#allocation25 + $0xa98] sm:$0xff]  ;;  %v3874_v47 = vld [vmem:[#allocation25 + $0xa60] sm:$0xff] }
0x1839   :  { %3811 = vmatpush.msra.mxu3 %v3721_v52  ;;  %3831 = vmatpush.msra.mxu0 %v3722_v3  ;;  %v3875_v52 = vld [vmem:[#allocation25 + $0xa68] sm:$0xff]  ;;  %v3876_v3 = vld [vmem:[#allocation25 + $0xa70] sm:$0xff] }
0x183a   :  { %3851 = vmatpush.msrb.mxu1 %v3723_v42  ;;  %3792 = vmatpush.msrb.mxu2 %v3716_v31  ;;  %v3877_v42 = vld [vmem:[#allocation25 + $0xa78] sm:$0xff]  ;;  %v3870_v31 = vld [vmem:[#allocation25 + $0xa40] sm:$0xff] }
0x183b   :  { %3812 = vmatpush.msra.mxu3 %v3717_v63  ;;  %3832 = vmatpush.msra.mxu0 %v3718_v22  ;;  %v3871_v63 = vld [vmem:[#allocation25 + $0xa48] sm:$0xff]  ;;  %v3872_v22 = vld [vmem:[#allocation25 + $0xa50] sm:$0xff] }
0x183c   :  { %3852 = vmatpush.msrb.mxu1 %v3719_v29  ;;  %3793 = vmatpush.msrb.mxu2 %v3712_v44  ;;  %v3873_v29 = vld [vmem:[#allocation25 + $0xa58] sm:$0xff]  ;;  %v3866_v44 = vld [vmem:[#allocation25 + $0xa20] sm:$0xff] }
0x183d   :  { %3813 = vmatpush.msra.mxu3 %v3713_v30  ;;  %3833 = vmatpush.msra.mxu0 %v3714_v17  ;;  %v3867_v30 = vld [vmem:[#allocation25 + $0xa28] sm:$0xff]  ;;  %v3868_v17 = vld [vmem:[#allocation25 + $0xa30] sm:$0xff] }
0x183e   :  { %3853 = vmatpush.msrb.mxu1 %v3715_v32  ;;  %3794 = vmatmul.f32.vlgmr.msrb.gmra.mxu2 %v3776_v37  ;;  %v3869_v32 = vld [vmem:[#allocation25 + $0xa38] sm:$0xff] }
0x183f   :  { %3814 = vmatmul.f32.vlgmr.msra.gmra.mxu3 %v3776_v37  ;;  %3834 = vmatmul.f32.vlgmr.msra.gmra.mxu0 %v3776_v37 }
0x1840   :  { %3854 = vmatmul.f32.vlgmr.msrb.gmra.mxu1 %v3776_v37  ;;  %3928 = vmatpush.msra.mxu2 %v3922_v38  ;;  %v3862_v37 = vld [vmem:[#allocation25 + $0xa00] sm:$0xff]  ;;  %v3863_v38 = vld [vmem:[#allocation25 + $0xa08] sm:$0xff] }
0x1841   :  { %3948 = vmatpush.msrb.mxu3 %v3923_v41  ;;  %3968 = vmatpush.msrb.mxu0 %v3924_v45  ;;  %v3864_v41 = vld [vmem:[#allocation25 + $0xa10] sm:$0xff]  ;;  %v3865_v45 = vld [vmem:[#allocation25 + $0xa18] sm:$0xff] }
0x1842   :  { %3988 = vmatpush.msra.mxu1 %v3925_v46  ;;  %3929 = vmatpush.msra.mxu2 %v3918_v50  ;;  %v3926_v46 = vrot.slane %v7040_v5, 5  ;;  %v4072_v50 = vld [vmem:[#allocation25 + $0xde0] sm:$0xff] }
0x1843   :  { %3949 = vmatpush.msrb.mxu3 %v3919_v54  ;;  %3969 = vmatpush.msrb.mxu0 %v3920_v28  ;;  %v4073_v54 = vld [vmem:[#allocation25 + $0xde8] sm:$0xff]  ;;  %v4074_v28 = vld [vmem:[#allocation25 + $0xdf0] sm:$0xff] }
0x1844   :  { %3989 = vmatpush.msra.mxu1 %v3921_v48  ;;  %3930 = vmatpush.msra.mxu2 %v3914_v33  ;;  %v4075_v48 = vld [vmem:[#allocation25 + $0xdf8] sm:$0xff]  ;;  %v4068_v33 = vld [vmem:[#allocation25 + $0xdc0] sm:$0xff] }
0x1845   :  { %3950 = vmatpush.msrb.mxu3 %v3915_v11  ;;  %3970 = vmatpush.msrb.mxu0 %v3916_v39  ;;  %v4069_v11 = vld [vmem:[#allocation25 + $0xdc8] sm:$0xff]  ;;  %v4070_v39 = vld [vmem:[#allocation25 + $0xdd0] sm:$0xff] }
0x1846   :  { %3990 = vmatpush.msra.mxu1 %v3917_v59  ;;  %3931 = vmatpush.msra.mxu2 %v3910_v43  ;;  %v4071_v59 = vld [vmem:[#allocation25 + $0xdd8] sm:$0xff]  ;;  %v4064_v43 = vld [vmem:[#allocation25 + $0xda0] sm:$0xff] }
0x1847   :  { %3951 = vmatpush.msrb.mxu3 %v3911_v25  ;;  %3971 = vmatpush.msrb.mxu0 %v3912_v15  ;;  %v4065_v25 = vld [vmem:[#allocation25 + $0xda8] sm:$0xff]  ;;  %v4066_v15 = vld [vmem:[#allocation25 + $0xdb0] sm:$0xff] }
0x1848   :  { %3991 = vmatpush.msra.mxu1 %v3913_v49  ;;  %3932 = vmatpush.msra.mxu2 %v3906_v26  ;;  %v4067_v49 = vld [vmem:[#allocation25 + $0xdb8] sm:$0xff]  ;;  %v4060_v26 = vld [vmem:[#allocation25 + $0xd80] sm:$0xff] }
0x1849   :  { %3952 = vmatpush.msrb.mxu3 %v3907_v18  ;;  %3972 = vmatpush.msrb.mxu0 %v3908_v16  ;;  %v4061_v18 = vld [vmem:[#allocation25 + $0xd88] sm:$0xff]  ;;  %v4062_v16 = vld [vmem:[#allocation25 + $0xd90] sm:$0xff] }
0x184a   :  { %3992 = vmatpush.msra.mxu1 %v3909_v12  ;;  %3933 = vmatpush.msra.mxu2 %v3902_v24  ;;  %v4063_v12 = vld [vmem:[#allocation25 + $0xd98] sm:$0xff]  ;;  %v4056_v24 = vld [vmem:[#allocation25 + $0xd60] sm:$0xff] }
0x184b   :  { %3953 = vmatpush.msrb.mxu3 %v3903_v21  ;;  %3973 = vmatpush.msrb.mxu0 %v3904_v40  ;;  %v4057_v21 = vld [vmem:[#allocation25 + $0xd68] sm:$0xff]  ;;  %v4058_v40 = vld [vmem:[#allocation25 + $0xd70] sm:$0xff] }
0x184c   :  { %3993 = vmatpush.msra.mxu1 %v3905_v55  ;;  %3934 = vmatpush.msra.mxu2 %v3898_v51  ;;  %v4059_v55 = vld [vmem:[#allocation25 + $0xd78] sm:$0xff]  ;;  %v4052_v51 = vld [vmem:[#allocation25 + $0xd40] sm:$0xff] }
0x184d   :  { %3954 = vmatpush.msrb.mxu3 %v3899_v58  ;;  %3974 = vmatpush.msrb.mxu0 %v3900_v53  ;;  %v4053_v58 = vld [vmem:[#allocation25 + $0xd48] sm:$0xff]  ;;  %v4054_v53 = vld [vmem:[#allocation25 + $0xd50] sm:$0xff] }
0x184e   :  { %3994 = vmatpush.msra.mxu1 %v3901_v20  ;;  %3935 = vmatpush.msra.mxu2 %v3894_v57  ;;  %v4055_v20 = vld [vmem:[#allocation25 + $0xd58] sm:$0xff]  ;;  %v4048_v57 = vld [vmem:[#allocation25 + $0xd20] sm:$0xff] }
0x184f   :  { %3955 = vmatpush.msrb.mxu3 %v3895_v0  ;;  %3975 = vmatpush.msrb.mxu0 %v3896_v27  ;;  %v4049_v0 = vld [vmem:[#allocation25 + $0xd28] sm:$0xff]  ;;  %v4050_v27 = vld [vmem:[#allocation25 + $0xd30] sm:$0xff] }
0x1850   :  { %3995 = vmatpush.msra.mxu1 %v3897_v62  ;;  %3936 = vmatpush.msra.mxu2 %v3890_v10  ;;  %v4051_v62 = vld [vmem:[#allocation25 + $0xd38] sm:$0xff]  ;;  %v4044_v10 = vld [vmem:[#allocation25 + $0xd00] sm:$0xff] }
0x1851   :  { %3956 = vmatpush.msrb.mxu3 %v3891_v34  ;;  %3976 = vmatpush.msrb.mxu0 %v3892_v56  ;;  %v4045_v34 = vld [vmem:[#allocation25 + $0xd08] sm:$0xff]  ;;  %v4046_v56 = vld [vmem:[#allocation25 + $0xd10] sm:$0xff] }
0x1852   :  { %3996 = vmatpush.msra.mxu1 %v3893_v19  ;;  %3937 = vmatpush.msra.mxu2 %v3886_v4  ;;  %v4047_v19 = vld [vmem:[#allocation25 + $0xd18] sm:$0xff]  ;;  %v4040_v4 = vld [vmem:[#allocation25 + $0xce0] sm:$0xff] }
0x1853   :  { %3957 = vmatpush.msrb.mxu3 %v3887_v13  ;;  %3977 = vmatpush.msrb.mxu0 %v3888_v1  ;;  %v4041_v13 = vld [vmem:[#allocation25 + $0xce8] sm:$0xff]  ;;  %v4042_v1 = vld [vmem:[#allocation25 + $0xcf0] sm:$0xff] }
0x1854   :  { %3997 = vmatpush.msra.mxu1 %v3889_v35  ;;  %3938 = vmatpush.msra.mxu2 %v3882_v60  ;;  %v4043_v35 = vld [vmem:[#allocation25 + $0xcf8] sm:$0xff]  ;;  %v4036_v60 = vld [vmem:[#allocation25 + $0xcc0] sm:$0xff] }
0x1855   :  { %3958 = vmatpush.msrb.mxu3 %v3883_v61  ;;  %3978 = vmatpush.msrb.mxu0 %v3884_v6  ;;  %v4037_v61 = vld [vmem:[#allocation25 + $0xcc8] sm:$0xff]  ;;  %v4038_v6 = vld [vmem:[#allocation25 + $0xcd0] sm:$0xff] }
0x1856   :  { %3998 = vmatpush.msra.mxu1 %v3885_v8  ;;  %3939 = vmatpush.msra.mxu2 %v3878_v2  ;;  %v4039_v8 = vld [vmem:[#allocation25 + $0xcd8] sm:$0xff]  ;;  %v4032_v2 = vld [vmem:[#allocation25 + $0xca0] sm:$0xff] }
0x1857   :  { %3959 = vmatpush.msrb.mxu3 %v3879_v9  ;;  %3979 = vmatpush.msrb.mxu0 %v3880_v23  ;;  %v4033_v9 = vld [vmem:[#allocation25 + $0xca8] sm:$0xff]  ;;  %v4034_v23 = vld [vmem:[#allocation25 + $0xcb0] sm:$0xff] }
0x1858   :  { %3999 = vmatpush.msra.mxu1 %v3881_v7  ;;  %3940 = vmatpush.msra.mxu2 %v3874_v47  ;;  %v4035_v7 = vld [vmem:[#allocation25 + $0xcb8] sm:$0xff]  ;;  %v4028_v47 = vld [vmem:[#allocation25 + $0xc80] sm:$0xff] }
0x1859   :  { %3960 = vmatpush.msrb.mxu3 %v3875_v52  ;;  %3980 = vmatpush.msrb.mxu0 %v3876_v3  ;;  %v4029_v52 = vld [vmem:[#allocation25 + $0xc88] sm:$0xff]  ;;  %v4030_v3 = vld [vmem:[#allocation25 + $0xc90] sm:$0xff] }
0x185a   :  { %4000 = vmatpush.msra.mxu1 %v3877_v42  ;;  %3941 = vmatpush.msra.mxu2 %v3870_v31  ;;  %v4031_v42 = vld [vmem:[#allocation25 + $0xc98] sm:$0xff]  ;;  %v4024_v31 = vld [vmem:[#allocation25 + $0xc60] sm:$0xff] }
0x185b   :  { %3961 = vmatpush.msrb.mxu3 %v3871_v63  ;;  %3981 = vmatpush.msrb.mxu0 %v3872_v22  ;;  %v4025_v63 = vld [vmem:[#allocation25 + $0xc68] sm:$0xff]  ;;  %v4026_v22 = vld [vmem:[#allocation25 + $0xc70] sm:$0xff] }
0x185c   :  { %4001 = vmatpush.msra.mxu1 %v3873_v29  ;;  %3942 = vmatpush.msra.mxu2 %v3866_v44  ;;  %v4027_v29 = vld [vmem:[#allocation25 + $0xc78] sm:$0xff]  ;;  %v4020_v44 = vld [vmem:[#allocation25 + $0xc40] sm:$0xff] }
0x185d   :  { %3962 = vmatpush.msrb.mxu3 %v3867_v30  ;;  %3982 = vmatpush.msrb.mxu0 %v3868_v17  ;;  %v4021_v30 = vld [vmem:[#allocation25 + $0xc48] sm:$0xff]  ;;  %v4022_v17 = vld [vmem:[#allocation25 + $0xc50] sm:$0xff] }
0x185e   :  { %4002 = vmatpush.msra.mxu1 %v3869_v32  ;;  %3943 = vmatpush.msra.mxu2 %v3862_v37  ;;  %v4023_v32 = vld [vmem:[#allocation25 + $0xc58] sm:$0xff]  ;;  %v4016_v37 = vld [vmem:[#allocation25 + $0xc20] sm:$0xff] }
0x185f   :  { %3963 = vmatpush.msrb.mxu3 %v3863_v38  ;;  %3983 = vmatpush.msrb.mxu0 %v3864_v41  ;;  %v4017_v38 = vld [vmem:[#allocation25 + $0xc28] sm:$0xff]  ;;  %v4018_v41 = vld [vmem:[#allocation25 + $0xc30] sm:$0xff] }
0x1860   :  { %4003 = vmatpush.msra.mxu1 %v3865_v45  ;;  %3944 = vmatmul.f32.vlgmr.msra.gmra.mxu2 %v3926_v46  ;;  %v4019_v45 = vld [vmem:[#allocation25 + $0xc38] sm:$0xff] }
0x1861   :  { %3964 = vmatmul.f32.vlgmr.msrb.gmra.mxu3 %v3926_v46  ;;  %3984 = vmatmul.f32.vlgmr.msrb.gmra.mxu0 %v3926_v46 }
0x1862   :  { %4004 = vmatmul.f32.vlgmr.msra.gmra.mxu1 %v3926_v46  ;;  %4078 = vmatpush.msrb.mxu2 %v4072_v50  ;;  %v4012_v46 = vld [vmem:[#allocation25 + $0xc00] sm:$0xff]  ;;  %v4013_v50 = vld [vmem:[#allocation25 + $0xc08] sm:$0xff] }
0x1863   :  { %4098 = vmatpush.msra.mxu3 %v4073_v54  ;;  %4118 = vmatpush.msra.mxu0 %v4074_v28  ;;  %v4014_v54 = vld [vmem:[#allocation25 + $0xc10] sm:$0xff]  ;;  %v4015_v28 = vld [vmem:[#allocation25 + $0xc18] sm:$0xff] }
0x1864   :  { %4138 = vmatpush.msrb.mxu1 %v4075_v48  ;;  %4079 = vmatpush.msrb.mxu2 %v4068_v33  ;;  %v4076_v48 = vrot.slane %v7040_v5, 6  ;;  %v4222_v33 = vld [vmem:[#allocation25 + $0xfe0] sm:$0xff] }
0x1865   :  { %4099 = vmatpush.msra.mxu3 %v4069_v11  ;;  %4119 = vmatpush.msra.mxu0 %v4070_v39  ;;  %v4223_v11 = vld [vmem:[#allocation25 + $0xfe8] sm:$0xff]  ;;  %v4224_v39 = vld [vmem:[#allocation25 + $0xff0] sm:$0xff] }
0x1866   :  { %4139 = vmatpush.msrb.mxu1 %v4071_v59  ;;  %4080 = vmatpush.msrb.mxu2 %v4064_v43  ;;  %v4225_v59 = vld [vmem:[#allocation25 + $0xff8] sm:$0xff]  ;;  %v4218_v43 = vld [vmem:[#allocation25 + $0xfc0] sm:$0xff] }
0x1867   :  { %4100 = vmatpush.msra.mxu3 %v4065_v25  ;;  %4120 = vmatpush.msra.mxu0 %v4066_v15  ;;  %v4219_v25 = vld [vmem:[#allocation25 + $0xfc8] sm:$0xff]  ;;  %v4220_v15 = vld [vmem:[#allocation25 + $0xfd0] sm:$0xff] }
0x1868   :  { %4140 = vmatpush.msrb.mxu1 %v4067_v49  ;;  %4081 = vmatpush.msrb.mxu2 %v4060_v26  ;;  %v4221_v49 = vld [vmem:[#allocation25 + $0xfd8] sm:$0xff]  ;;  %v4214_v26 = vld [vmem:[#allocation25 + $0xfa0] sm:$0xff] }
0x1869   :  { %4101 = vmatpush.msra.mxu3 %v4061_v18  ;;  %4121 = vmatpush.msra.mxu0 %v4062_v16  ;;  %v4215_v18 = vld [vmem:[#allocation25 + $0xfa8] sm:$0xff]  ;;  %v4216_v16 = vld [vmem:[#allocation25 + $0xfb0] sm:$0xff] }
0x186a   :  { %4141 = vmatpush.msrb.mxu1 %v4063_v12  ;;  %4082 = vmatpush.msrb.mxu2 %v4056_v24  ;;  %v4217_v12 = vld [vmem:[#allocation25 + $0xfb8] sm:$0xff]  ;;  %v4210_v24 = vld [vmem:[#allocation25 + $0xf80] sm:$0xff] }
0x186b   :  { %4102 = vmatpush.msra.mxu3 %v4057_v21  ;;  %4122 = vmatpush.msra.mxu0 %v4058_v40  ;;  %v4211_v21 = vld [vmem:[#allocation25 + $0xf88] sm:$0xff]  ;;  %v4212_v40 = vld [vmem:[#allocation25 + $0xf90] sm:$0xff] }
0x186c   :  { %4142 = vmatpush.msrb.mxu1 %v4059_v55  ;;  %4083 = vmatpush.msrb.mxu2 %v4052_v51  ;;  %v4213_v55 = vld [vmem:[#allocation25 + $0xf98] sm:$0xff]  ;;  %v4206_v51 = vld [vmem:[#allocation25 + $0xf60] sm:$0xff] }
0x186d   :  { %4103 = vmatpush.msra.mxu3 %v4053_v58  ;;  %4123 = vmatpush.msra.mxu0 %v4054_v53  ;;  %v4207_v58 = vld [vmem:[#allocation25 + $0xf68] sm:$0xff]  ;;  %v4208_v53 = vld [vmem:[#allocation25 + $0xf70] sm:$0xff] }
0x186e   :  { %4143 = vmatpush.msrb.mxu1 %v4055_v20  ;;  %4084 = vmatpush.msrb.mxu2 %v4048_v57  ;;  %v4209_v20 = vld [vmem:[#allocation25 + $0xf78] sm:$0xff]  ;;  %v4202_v57 = vld [vmem:[#allocation25 + $0xf40] sm:$0xff] }
0x186f   :  { %4104 = vmatpush.msra.mxu3 %v4049_v0  ;;  %4124 = vmatpush.msra.mxu0 %v4050_v27  ;;  %v4203_v0 = vld [vmem:[#allocation25 + $0xf48] sm:$0xff]  ;;  %v4204_v27 = vld [vmem:[#allocation25 + $0xf50] sm:$0xff] }
0x1870   :  { %4144 = vmatpush.msrb.mxu1 %v4051_v62  ;;  %4085 = vmatpush.msrb.mxu2 %v4044_v10  ;;  %v3083_v62 = vpop.xlane.xlu1 %3082  ;;  %v4205_v10 = vld [vmem:[#allocation25 + $0xf58] sm:$0xff] }
0x1871   :  { %4105 = vmatpush.msra.mxu3 %v4045_v34  ;;  %4125 = vmatpush.msra.mxu0 %v4046_v56  ;;  %v4198_v34 = vld [vmem:[#allocation25 + $0xf20] sm:$0xff]  ;;  %v4199_v56 = vld [vmem:[#allocation25 + $0xf28] sm:$0xff] }
0x1872   :  { %4145 = vmatpush.msrb.mxu1 %v4047_v19  ;;  %4086 = vmatpush.msrb.mxu2 %v4040_v4  ;;  %v4200_v19 = vld [vmem:[#allocation25 + $0xf30] sm:$0xff]  ;;  %v4201_v4 = vld [vmem:[#allocation25 + $0xf38] sm:$0xff] }
0x1873   :  { %4106 = vmatpush.msra.mxu3 %v4041_v13  ;;  %4126 = vmatpush.msra.mxu0 %v4042_v1  ;;  %v4194_v13 = vld [vmem:[#allocation25 + $0xf00] sm:$0xff]  ;;  %v3085_v1 = vmul.f32 %v3083_v62, %v6443_v14  ;;  %v4187_v14 = vld [vmem:[#allocation25 + $0xec8] sm:$0xff]  ;;  %v4458_v62 = vld [vmem:[#allocation25 + $0x390] sm:$0xff] }
0x1874   :  { %4146 = vmatpush.msrb.mxu1 %v4043_v35  ;;  %4087 = vmatpush.msrb.mxu2 %v4036_v60  ;;  %v4195_v35 = vld [vmem:[#allocation25 + $0xf08] sm:$0xff]  ;;  %v4196_v60 = vld [vmem:[#allocation25 + $0xf10] sm:$0xff] }
0x1875   :  { %4107 = vmatpush.msra.mxu3 %v4037_v61  ;;  %4127 = vmatpush.msra.mxu0 %v4038_v6  ;;  %v4197_v61 = vld [vmem:[#allocation25 + $0xf18] sm:$0xff]  ;;  %v4190_v6 = vld [vmem:[#allocation25 + $0xee0] sm:$0xff] }
0x1876   :  { %4147 = vmatpush.msrb.mxu1 %v4039_v8  ;;  %4088 = vmatpush.msrb.mxu2 %v4032_v2  ;;  %v4191_v8 = vld [vmem:[#allocation25 + $0xee8] sm:$0xff]  ;;  %v4192_v2 = vld [vmem:[#allocation25 + $0xef0] sm:$0xff] }
0x1877   :  { %4108 = vmatpush.msra.mxu3 %v4033_v9  ;;  %4128 = vmatpush.msra.mxu0 %v4034_v23  ;;  %v4193_v9 = vld [vmem:[#allocation25 + $0xef8] sm:$0xff]  ;;  %v4186_v23 = vld [vmem:[#allocation25 + $0xec0] sm:$0xff] }
0x1878   :  { %4148 = vmatpush.msrb.mxu1 %v4035_v7  ;;  %4089 = vmatpush.msrb.mxu2 %v4028_v47  ;;  %v7058_v7 = vadd.f32 1e-07, %v3085_v1  ;;  %v4188_v47 = vld [vmem:[#allocation25 + $0xed0] sm:$0xff]  ;;  %v4448_v1 = vld [vmem:[#allocation25 + $0x340] sm:$0xff] }
0x1879   :  { %4109 = vmatpush.msra.mxu3 %v4029_v52  ;;  %4129 = vmatpush.msra.mxu0 %v4030_v3  ;;  %v4189_v52 = vld [vmem:[#allocation25 + $0xed8] sm:$0xff]  ;;  %v4182_v3 = vld [vmem:[#allocation25 + $0xea0] sm:$0xff] }
0x187a   :  { %4149 = vmatpush.msrb.mxu1 %v4031_v42  ;;  %4090 = vmatpush.msrb.mxu2 %v4024_v31  ;;  %v4183_v42 = vld [vmem:[#allocation25 + $0xea8] sm:$0xff]  ;;  %v4184_v31 = vld [vmem:[#allocation25 + $0xeb0] sm:$0xff]  ;;  %5804 = vrsqrt.f32 %v7058_v7  ;;  %vm3104_vm15 = vweird.f32 %v7058_v7 }
0x187b   :  { %4110 = vmatpush.msra.mxu3 %v4025_v63  ;;  %4130 = vmatpush.msra.mxu0 %v4026_v22  ;;  %v4185_v63 = vld [vmem:[#allocation25 + $0xeb8] sm:$0xff]  ;;  %v4178_v22 = vld [vmem:[#allocation25 + $0xe80] sm:$0xff] }
0x187c   :  { %4150 = vmatpush.msrb.mxu1 %v4027_v29  ;;  %4091 = vmatpush.msrb.mxu2 %v4020_v44  ;;  %v4179_v29 = vld [vmem:[#allocation25 + $0xe88] sm:$0xff]  ;;  %v4180_v44 = vld [vmem:[#allocation25 + $0xe90] sm:$0xff] }
0x187d   :  { %4111 = vmatpush.msra.mxu3 %v4021_v30  ;;  %4131 = vmatpush.msra.mxu0 %v4022_v17  ;;  %v4181_v30 = vld [vmem:[#allocation25 + $0xe98] sm:$0xff]  ;;  %v4174_v17 = vld [vmem:[#allocation25 + $0xe60] sm:$0xff] }
0x187e   :  { %4151 = vmatpush.msrb.mxu1 %v4023_v32  ;;  %4092 = vmatpush.msrb.mxu2 %v4016_v37  ;;  %v4175_v32 = vld [vmem:[#allocation25 + $0xe68] sm:$0xff]  ;;  %v4176_v37 = vld [vmem:[#allocation25 + $0xe70] sm:$0xff] }
0x187f   :  { %4112 = vmatpush.msra.mxu3 %v4017_v38  ;;  %4132 = vmatpush.msra.mxu0 %v4018_v41  ;;  %v4177_v38 = vld [vmem:[#allocation25 + $0xe78] sm:$0xff]  ;;  %v4170_v41 = vld [vmem:[#allocation25 + $0xe40] sm:$0xff] }
0x1880   :  { %4152 = vmatpush.msrb.mxu1 %v4019_v45  ;;  %4093 = vmatpush.msrb.mxu2 %v4012_v46  ;;  %v4171_v45 = vld [vmem:[#allocation25 + $0xe48] sm:$0xff]  ;;  %v4172_v46 = vld [vmem:[#allocation25 + $0xe50] sm:$0xff] }
0x1881   :  { %4113 = vmatpush.msra.mxu3 %v4013_v50  ;;  %4133 = vmatpush.msra.mxu0 %v4014_v54  ;;  %v4173_v50 = vld [vmem:[#allocation25 + $0xe58] sm:$0xff]  ;;  %v4166_v54 = vld [vmem:[#allocation25 + $0xe20] sm:$0xff] }
0x1882   :  { %4153 = vmatpush.msrb.mxu1 %v4015_v28  ;;  %4094 = vmatmul.f32.vlgmr.msrb.gmra.mxu2 %v4076_v48  ;;  %v7061_v28 = vpop.eup %5804 }
0x1883   :  { %4114 = vmatmul.f32.vlgmr.msra.gmra.mxu3 %v4076_v48  ;;  %4134 = vmatmul.f32.vlgmr.msra.gmra.mxu0 %v4076_v48  ;;  %vm3105_vm14 = vweird.f32 %v7061_v28 }
0x1884   :  { %4154 = vmatmul.f32.vlgmr.msrb.gmra.mxu1 %v4076_v48  ;;  %4228 = vmatpush.msra.mxu2 %v4222_v33  ;;  %v4167_v48 = vld [vmem:[#allocation25 + $0xe28] sm:$0xff]  ;;  %v4168_v33 = vld [vmem:[#allocation25 + $0xe30] sm:$0xff]  ;;  %vm7070_vm0 = vmor %vm3104_vm15, %vm3105_vm14 }
0x1885   :  { %4248 = vmatpush.msrb.mxu3 %v4223_v11  ;;  %4268 = vmatpush.msrb.mxu0 %v4224_v39  ;;  %v4169_v11 = vld [vmem:[#allocation25 + $0xe38] sm:$0xff]  ;;  %v4162_v39 = vld [vmem:[#allocation25 + $0xe00] sm:$0xff] }
0x1886   :  { %4288 = vmatpush.msra.mxu1 %v4225_v59  ;;  %4229 = vmatpush.msra.mxu2 %v4218_v43  ;;  %v4163_v59 = vld [vmem:[#allocation25 + $0xe08] sm:$0xff]  ;;  %v4164_v43 = vld [vmem:[#allocation25 + $0xe10] sm:$0xff] }
0x1887   :  { %4249 = vmatpush.msrb.mxu3 %v4219_v25  ;;  %4269 = vmatpush.msrb.mxu0 %v4220_v15  ;;  %v3099_v25 = vmul.f32 %v7061_v28, %v7058_v7  ;;  %v4165_v15 = vld [vmem:[#allocation25 + $0xe18] sm:$0xff]  ;;  %v4432_v7 = vld [vmem:[#allocation25 + $0x2c0] sm:$0xff] }
0x1888   :  { %4289 = vmatpush.msra.mxu1 %v4221_v49  ;;  %4230 = vmatpush.msra.mxu2 %v4214_v26  ;;  %v4226_v49 = vrot.slane %v7040_v5, 7  ;;  %v4468_v26 = vld [vmem:[#allocation25 + $0x3e0] sm:$0xff]  ;;  %v4467_v5 = vld [vmem:[#allocation25 + $0x3d8] sm:$0xff] }
0x1889   :  { %4250 = vmatpush.msrb.mxu3 %v4215_v18  ;;  %4270 = vmatpush.msrb.mxu0 %v4216_v16  ;;  %v4469_v18 = vld [vmem:[#allocation25 + $0x3e8] sm:$0xff]  ;;  %v4470_v16 = vld [vmem:[#allocation25 + $0x3f0] sm:$0xff] }
0x188a   :  { %4290 = vmatpush.msra.mxu1 %v4217_v12  ;;  %4231 = vmatpush.msra.mxu2 %v4210_v24  ;;  %v3100_v12 = vmul.f32 %v7061_v28, %v3099_v25  ;;  %v4471_v24 = vld [vmem:[#allocation25 + $0x3f8] sm:$0xff]  ;;  %v4416_v25 = vld [vmem:[#allocation25 + $0x240] sm:$0xff] }
0x188b   :  { %4251 = vmatpush.msrb.mxu3 %v4211_v21  ;;  %4271 = vmatpush.msrb.mxu0 %v4212_v40  ;;  %v4464_v21 = vld [vmem:[#allocation25 + $0x3c0] sm:$0xff]  ;;  %v4465_v40 = vld [vmem:[#allocation25 + $0x3c8] sm:$0xff] }
0x188c   :  { %4291 = vmatpush.msra.mxu1 %v4213_v55  ;;  %4232 = vmatpush.msra.mxu2 %v4206_v51  ;;  %v4466_v55 = vld [vmem:[#allocation25 + $0x3d0] sm:$0xff]  ;;  %v4460_v51 = vld [vmem:[#allocation25 + $0x3a0] sm:$0xff] }
0x188d   :  { %4252 = vmatpush.msrb.mxu3 %v4207_v58  ;;  %4272 = vmatpush.msrb.mxu0 %v4208_v53  ;;  %v4461_v58 = vld [vmem:[#allocation25 + $0x3a8] sm:$0xff]  ;;  %v4462_v53 = vld [vmem:[#allocation25 + $0x3b0] sm:$0xff] }
0x188e   :  { %4292 = vmatpush.msra.mxu1 %v4209_v20  ;;  %4233 = vmatpush.msra.mxu2 %v4202_v57  ;;  %v3101_v20 = vmul.f32 0.5, %v3100_v12  ;;  %v4463_v57 = vld [vmem:[#allocation25 + $0x3b8] sm:$0xff] }
0x188f   :  { %4253 = vmatpush.msrb.mxu3 %v4203_v0  ;;  %4273 = vmatpush.msrb.mxu0 %v4204_v27  ;;  %v4456_v0 = vld [vmem:[#allocation25 + $0x380] sm:$0xff]  ;;  %v4457_v27 = vld [vmem:[#allocation25 + $0x388] sm:$0xff] }
0x1890   :  { %4293 = vmatpush.msra.mxu1 %v4205_v10  ;;  %4234 = vmatpush.msra.mxu2 %v4198_v34  ;;  %v4459_v10 = vld [vmem:[#allocation25 + $0x398] sm:$0xff]  ;;  %v4452_v34 = vld [vmem:[#allocation25 + $0x360] sm:$0xff] }
0x1891   :  { %4254 = vmatpush.msrb.mxu3 %v4199_v56  ;;  %4274 = vmatpush.msrb.mxu0 %v4200_v19  ;;  %v4453_v56 = vld [vmem:[#allocation25 + $0x368] sm:$0xff]  ;;  %v4454_v19 = vld [vmem:[#allocation25 + $0x370] sm:$0xff] }
0x1892   :  { %4294 = vmatpush.msra.mxu1 %v4201_v4  ;;  %4235 = vmatpush.msra.mxu2 %v4194_v13  ;;  %v3102_v4 = vsub.f32 1.5, %v3101_v20  ;;  %v4455_v13 = vld [vmem:[#allocation25 + $0x378] sm:$0xff]  ;;  %v4404_v20 = vld [vmem:[#allocation25 + $0x1e0] sm:$0xff] }
0x1893   :  { %4255 = vmatpush.msrb.mxu3 %v4195_v35  ;;  %4275 = vmatpush.msrb.mxu0 %v4196_v60  ;;  %v4449_v35 = vld [vmem:[#allocation25 + $0x348] sm:$0xff]  ;;  %v4450_v60 = vld [vmem:[#allocation25 + $0x350] sm:$0xff] }
0x1894   :  { %4295 = vmatpush.msra.mxu1 %v4197_v61  ;;  %4236 = vmatpush.msra.mxu2 %v4190_v6  ;;  %v4451_v61 = vld [vmem:[#allocation25 + $0x358] sm:$0xff]  ;;  %v4444_v6 = vld [vmem:[#allocation25 + $0x320] sm:$0xff] }
0x1895   :  { %4256 = vmatpush.msrb.mxu3 %v4191_v8  ;;  %4276 = vmatpush.msrb.mxu0 %v4192_v2  ;;  %v4445_v8 = vld [vmem:[#allocation25 + $0x328] sm:$0xff]  ;;  %v4446_v2 = vld [vmem:[#allocation25 + $0x330] sm:$0xff] }
0x1896   :  { %4296 = vmatpush.msra.mxu1 %v4193_v9  ;;  %4237 = vmatpush.msra.mxu2 %v4186_v23  ;;  %v3103_v9 = vmul.f32 %v7061_v28, %v3102_v4  ;;  %v4447_v23 = vld [vmem:[#allocation25 + $0x338] sm:$0xff]  ;;  %v4397_v4 = vld [vmem:[#allocation25 + $0x1a8] sm:$0xff] }
0x1897   :  { %4257 = vmatpush.msrb.mxu3 %v4187_v14  ;;  %4277 = vmatpush.msrb.mxu0 %v4188_v47  ;;  %v4440_v14 = vld [vmem:[#allocation25 + $0x300] sm:$0xff]  ;;  %v4441_v47 = vld [vmem:[#allocation25 + $0x308] sm:$0xff] }
0x1898   :  { %4297 = vmatpush.msra.mxu1 %v4189_v52  ;;  %4238 = vmatpush.msra.mxu2 %v4182_v3  ;;  %v4442_v52 = vld [vmem:[#allocation25 + $0x310] sm:$0xff]  ;;  %v4443_v3 = vld [vmem:[#allocation25 + $0x318] sm:$0xff] }
0x1899   :  { %4258 = vmatpush.msrb.mxu3 %v4183_v42  ;;  %4278 = vmatpush.msrb.mxu0 %v4184_v31  ;;  %v4436_v42 = vld [vmem:[#allocation25 + $0x2e0] sm:$0xff]  ;;  %v4381_v31 = vld [vmem:[#allocation25 + $0x128] sm:$0xff] }
0x189a   :  { %4298 = vmatpush.msra.mxu1 %v4185_v63  ;;  %4239 = vmatpush.msra.mxu2 %v4178_v22  ;;  %v4437_v63 = vld [vmem:[#allocation25 + $0x2e8] sm:$0xff]  ;;  %v4438_v22 = vld [vmem:[#allocation25 + $0x2f0] sm:$0xff] }
0x189b   :  { %4259 = vmatpush.msrb.mxu3 %v4179_v29  ;;  %4279 = vmatpush.msrb.mxu0 %v4180_v44  ;;  %v3107_v29 = vsel %vm7070_vm0, %v7061_v28, %v3103_v9  ;;  %v4439_v44 = vld [vmem:[#allocation25 + $0x2f8] sm:$0xff]  ;;  %v4426_v28 = vld [vmem:[#allocation25 + $0x290] sm:$0xff] }
0x189c   :  { %4299 = vmatpush.msra.mxu1 %v4181_v30  ;;  %4240 = vmatpush.msra.mxu2 %v4174_v17  ;;  %v4433_v30 = vld [vmem:[#allocation25 + $0x2c8] sm:$0xff]  ;;  %v4434_v17 = vld [vmem:[#allocation25 + $0x2d0] sm:$0xff] }
0x189d   :  { %4260 = vmatpush.msrb.mxu3 %v4175_v32  ;;  %4280 = vmatpush.msrb.mxu0 %v4176_v37  ;;  %v4435_v32 = vld [vmem:[#allocation25 + $0x2d8] sm:$0xff]  ;;  %v4428_v37 = vld [vmem:[#allocation25 + $0x2a0] sm:$0xff]  ;;  %v4390_v9 = vld [vmem:[#allocation25 + $0x170] sm:$0xff] }
0x189e   :  { %4300 = vmatpush.msra.mxu1 %v4177_v38  ;;  %4241 = vmatpush.msra.mxu2 %v4170_v41  ;;  %v3109_v38 = vmul.f32 %v3107_v29, %v7043_v36  ;;  %v4429_v41 = vld [vmem:[#allocation25 + $0x2a8] sm:$0xff]  ;;  %v4376_v29 = vld [vmem:[#allocation25 + $0x100] sm:$0xff] }
0x189f   :  { %4261 = vmatpush.msrb.mxu3 %v4171_v45  ;;  %4281 = vmatpush.msrb.mxu0 %v4172_v46  ;;  %v4430_v45 = vld [vmem:[#allocation25 + $0x2b0] sm:$0xff]  ;;  %v4431_v46 = vld [vmem:[#allocation25 + $0x2b8] sm:$0xff]  ;;  %v4421_v36 = vld [vmem:[#allocation25 + $0x268] sm:$0xff] }
0x18a0   :  { %4301 = vmatpush.msra.mxu1 %v4173_v50  ;;  %4242 = vmatpush.msra.mxu2 %v4166_v54  ;;  %v4424_v50 = vld [vmem:[#allocation25 + $0x280] sm:$0xff]  ;;  %v4425_v54 = vld [vmem:[#allocation25 + $0x288] sm:$0xff] }
0x18a1   :  { %4262 = vmatpush.msrb.mxu3 %v4167_v48  ;;  %4282 = vmatpush.msrb.mxu0 %v4168_v33  ;;  %v4427_v48 = vld [vmem:[#allocation25 + $0x298] sm:$0xff]  ;;  %v4420_v33 = vld [vmem:[#allocation25 + $0x260] sm:$0xff] }
0x18a2   :  { %4302 = vmatpush.msra.mxu1 %v4169_v11  ;;  %4243 = vmatpush.msra.mxu2 %v4162_v39  ;;  %v5808_v11 = vld [vmem:[#allocation22 + $0x1] ss:$0 sm:$0xff] }
0x18a3   :  { %4263 = vmatpush.msrb.mxu3 %v4163_v59  ;;  %4283 = vmatpush.msrb.mxu0 %v4164_v43  ;;  %v3114_v39 = vmul.f32 %v5808_v11, %v3109_v38  ;;  %v4422_v59 = vld [vmem:[#allocation25 + $0x270] sm:$0xff]  ;;  %v4423_v43 = vld [vmem:[#allocation25 + $0x278] sm:$0xff]  ;;  %v4360_v11 = vld [vmem:[#allocation25 + $0x80] sm:$0xff] }
0x18a4   :  { %4303 = vmatpush.msra.mxu1 %v4165_v15  ;;  %4244 = vmatmul.f32.vlgmr.msra.gmra.mxu2 %v4226_v49  ;;  %v4417_v15 = vld [vmem:[#allocation25 + $0x248] sm:$0xff]  ;;  %v4375_v38 = vld [vmem:[#allocation25 + $0xf8] sm:$0xff] }
0x18a5   :  { %4264 = vmatmul.f32.vlgmr.msrb.gmra.mxu3 %v4226_v49  ;;  %4284 = vmatmul.f32.vlgmr.msrb.gmra.mxu0 %v4226_v49 }
0x18a6   :  { %4304 = vmatmul.f32.vlgmr.msra.gmra.mxu1 %v4226_v49  ;;  %4475 = vmatpush.msrb.mxu2 %v4468_v26  ;;  %v4418_v49 = vld [vmem:[#allocation25 + $0x250] sm:$0xff]  ;;  %v4419_v26 = vld [vmem:[#allocation25 + $0x258] sm:$0xff] }
0x18a7   :  { %4495 = vmatpush.msra.mxu3 %v4469_v18  ;;  %4515 = vmatpush.msra.mxu0 %v4470_v16  ;;  %v4412_v18 = vld [vmem:[#allocation25 + $0x220] sm:$0xff]  ;;  %v5809_v16 = vld [vmem:[#allocation23 + $0x1] ss:$0 sm:$0xff] }
0x18a8   :  { %4535 = vmatpush.msrb.mxu1 %v4471_v24  ;;  %4476 = vmatpush.msrb.mxu2 %v4464_v21  ;;  %v7078_v12 = vadd.f32 %v5809_v16, %v3114_v39  ;;  %v4413_v24 = vld [vmem:[#allocation25 + $0x228] sm:$0xff]  ;;  %v4414_v21 = vld [vmem:[#allocation25 + $0x230] sm:$0xff] }
0x18a9   :  { %4496 = vmatpush.msra.mxu3 %v4465_v40  ;;  %4516 = vmatpush.msra.mxu0 %v4466_v55  ;;  %v4415_v40 = vld [vmem:[#allocation25 + $0x238] sm:$0xff]  ;;  %v4408_v55 = vld [vmem:[#allocation25 + $0x200] sm:$0xff]  ;;  %v4361_v39 = vld [vmem:[#allocation25 + $0x88] sm:$0xff] }
0x18aa   :  { %4536 = vmatpush.msrb.mxu1 %v4467_v5  ;;  %4477 = vmatpush.msrb.mxu2 %v4460_v51  ;;  %v4409_v5 = vld [vmem:[#allocation25 + $0x208] sm:$0xff]  ;;  %v4410_v51 = vld [vmem:[#allocation25 + $0x210] sm:$0xff] }
0x18ab   :  { %4497 = vmatpush.msra.mxu3 %v4461_v58  ;;  %4517 = vmatpush.msra.mxu0 %v4462_v53  ;;  %v4411_v58 = vld [vmem:[#allocation25 + $0x218] sm:$0xff]  ;;  %v4473_v53 = vrot.slane %v7078_v12, 1  ;;  %v4354_v16 = vld [vmem:[#allocation25 + $0x50] sm:$0xff] }
0x18ac   :  { %4537 = vmatpush.msrb.mxu1 %v4463_v57  ;;  %4478 = vmatpush.msrb.mxu2 %v4456_v0  ;;  %v4405_v57 = vld [vmem:[#allocation25 + $0x1e8] sm:$0xff]  ;;  %v4406_v0 = vld [vmem:[#allocation25 + $0x1f0] sm:$0xff] }
0x18ad   :  { %4498 = vmatpush.msra.mxu3 %v4457_v27  ;;  %4518 = vmatpush.msra.mxu0 %v4458_v62  ;;  %v4407_v27 = vld [vmem:[#allocation25 + $0x1f8] sm:$0xff]  ;;  %v4400_v62 = vld [vmem:[#allocation25 + $0x1c0] sm:$0xff] }
0x18ae   :  { %4538 = vmatpush.msrb.mxu1 %v4459_v10  ;;  %4479 = vmatpush.msrb.mxu2 %v4452_v34  ;;  %v4401_v10 = vld [vmem:[#allocation25 + $0x1c8] sm:$0xff]  ;;  %v4402_v34 = vld [vmem:[#allocation25 + $0x1d0] sm:$0xff] }
0x18af   :  { %4499 = vmatpush.msra.mxu3 %v4453_v56  ;;  %4519 = vmatpush.msra.mxu0 %v4454_v19  ;;  %v4403_v56 = vld [vmem:[#allocation25 + $0x1d8] sm:$0xff]  ;;  %v4396_v19 = vld [vmem:[#allocation25 + $0x1a0] sm:$0xff] }
0x18b0   :  { %4539 = vmatpush.msrb.mxu1 %v4455_v13  ;;  %4480 = vmatpush.msrb.mxu2 %v4448_v1  ;;  %v4398_v13 = vld [vmem:[#allocation25 + $0x1b0] sm:$0xff]  ;;  %v4399_v1 = vld [vmem:[#allocation25 + $0x1b8] sm:$0xff] }
0x18b1   :  { %4500 = vmatpush.msra.mxu3 %v4449_v35  ;;  %4520 = vmatpush.msra.mxu0 %v4450_v60  ;;  %v4392_v35 = vld [vmem:[#allocation25 + $0x180] sm:$0xff]  ;;  %v4393_v60 = vld [vmem:[#allocation25 + $0x188] sm:$0xff] }
0x18b2   :  { %4540 = vmatpush.msrb.mxu1 %v4451_v61  ;;  %4481 = vmatpush.msrb.mxu2 %v4444_v6  ;;  %v4394_v61 = vld [vmem:[#allocation25 + $0x190] sm:$0xff]  ;;  %v4395_v6 = vld [vmem:[#allocation25 + $0x198] sm:$0xff] }
0x18b3   :  { %4501 = vmatpush.msra.mxu3 %v4445_v8  ;;  %4521 = vmatpush.msra.mxu0 %v4446_v2  ;;  %v4388_v8 = vld [vmem:[#allocation25 + $0x160] sm:$0xff]  ;;  %v4389_v2 = vld [vmem:[#allocation25 + $0x168] sm:$0xff] }
0x18b4   :  { %4541 = vmatpush.msrb.mxu1 %v4447_v23  ;;  %4482 = vmatpush.msrb.mxu2 %v4440_v14  ;;  %v4391_v23 = vld [vmem:[#allocation25 + $0x178] sm:$0xff]  ;;  %v4384_v14 = vld [vmem:[#allocation25 + $0x140] sm:$0xff] }
0x18b5   :  { %4502 = vmatpush.msra.mxu3 %v4441_v47  ;;  %4522 = vmatpush.msra.mxu0 %v4442_v52  ;;  %v4385_v47 = vld [vmem:[#allocation25 + $0x148] sm:$0xff]  ;;  %v4386_v52 = vld [vmem:[#allocation25 + $0x150] sm:$0xff] }
0x18b6   :  { %4542 = vmatpush.msrb.mxu1 %v4443_v3  ;;  %4483 = vmatpush.msrb.mxu2 %v4436_v42  ;;  %v4387_v3 = vld [vmem:[#allocation25 + $0x158] sm:$0xff]  ;;  %v4380_v42 = vld [vmem:[#allocation25 + $0x120] sm:$0xff] }
0x18b7   :  { %4503 = vmatpush.msra.mxu3 %v4437_v63  ;;  %4523 = vmatpush.msra.mxu0 %v4438_v22  ;;  %v4382_v63 = vld [vmem:[#allocation25 + $0x130] sm:$0xff]  ;;  %v4383_v22 = vld [vmem:[#allocation25 + $0x138] sm:$0xff] }
0x18b8   :  { %4543 = vmatpush.msrb.mxu1 %v4439_v44  ;;  %4484 = vmatpush.msrb.mxu2 %v4432_v7  ;;  %v4377_v44 = vld [vmem:[#allocation25 + $0x108] sm:$0xff]  ;;  %v4378_v7 = vld [vmem:[#allocation25 + $0x110] sm:$0xff] }
0x18b9   :  { %4504 = vmatpush.msra.mxu3 %v4433_v30  ;;  %4524 = vmatpush.msra.mxu0 %v4434_v17  ;;  %v4379_v30 = vld [vmem:[#allocation25 + $0x118] sm:$0xff]  ;;  %v4372_v17 = vld [vmem:[#allocation25 + $0xe0] sm:$0xff] }
0x18ba   :  { %4544 = vmatpush.msrb.mxu1 %v4435_v32  ;;  %4485 = vmatpush.msrb.mxu2 %v4428_v37  ;;  %v4373_v32 = vld [vmem:[#allocation25 + $0xe8] sm:$0xff]  ;;  %v4374_v37 = vld [vmem:[#allocation25 + $0xf0] sm:$0xff] }
0x18bb   :  { %4505 = vmatpush.msra.mxu3 %v4429_v41  ;;  %4525 = vmatpush.msra.mxu0 %v4430_v45  ;;  %v4368_v41 = vld [vmem:[#allocation25 + $0xc0] sm:$0xff]  ;;  %v4369_v45 = vld [vmem:[#allocation25 + $0xc8] sm:$0xff] }
0x18bc   :  { %4545 = vmatpush.msrb.mxu1 %v4431_v46  ;;  %4486 = vmatpush.msrb.mxu2 %v4424_v50  ;;  %v4370_v46 = vld [vmem:[#allocation25 + $0xd0] sm:$0xff]  ;;  %v4371_v50 = vld [vmem:[#allocation25 + $0xd8] sm:$0xff] }
0x18bd   :  { %4506 = vmatpush.msra.mxu3 %v4425_v54  ;;  %4526 = vmatpush.msra.mxu0 %v4426_v28  ;;  %v4364_v54 = vld [vmem:[#allocation25 + $0xa0] sm:$0xff]  ;;  %v4365_v28 = vld [vmem:[#allocation25 + $0xa8] sm:$0xff] }
0x18be   :  { %4546 = vmatpush.msrb.mxu1 %v4427_v48  ;;  %4487 = vmatpush.msrb.mxu2 %v4420_v33  ;;  %v4366_v48 = vld [vmem:[#allocation25 + $0xb0] sm:$0xff]  ;;  %v4367_v33 = vld [vmem:[#allocation25 + $0xb8] sm:$0xff] }
0x18bf   :  { %4507 = vmatpush.msra.mxu3 %v4421_v36  ;;  %4527 = vmatpush.msra.mxu0 %v4422_v59  ;;  %v4362_v36 = vld [vmem:[#allocation25 + $0x90] sm:$0xff]  ;;  %v4363_v59 = vld [vmem:[#allocation25 + $0x98] sm:$0xff] }
0x18c0   :  { %4547 = vmatpush.msrb.mxu1 %v4423_v43  ;;  %4488 = vmatpush.msrb.mxu2 %v4416_v25  ;;  %v4356_v43 = vld [vmem:[#allocation25 + $0x60] sm:$0xff]  ;;  %v4357_v25 = vld [vmem:[#allocation25 + $0x68] sm:$0xff] }
0x18c1   :  { %4508 = vmatpush.msra.mxu3 %v4417_v15  ;;  %4528 = vmatpush.msra.mxu0 %v4418_v49  ;;  %v4358_v15 = vld [vmem:[#allocation25 + $0x70] sm:$0xff]  ;;  %v4359_v49 = vld [vmem:[#allocation25 + $0x78] sm:$0xff] }
0x18c2   :  { %4548 = vmatpush.msrb.mxu1 %v4419_v26  ;;  %4489 = vmatpush.msrb.mxu2 %v4412_v18  ;;  %v4352_v26 = vld [vmem:[#allocation25 + $0x40] sm:$0xff]  ;;  %v4353_v18 = vld [vmem:[#allocation25 + $0x48] sm:$0xff] }
0x18c3   :  { %4509 = vmatpush.msra.mxu3 %v4413_v24  ;;  %4529 = vmatpush.msra.mxu0 %v4414_v21  ;;  %v4355_v24 = vld [vmem:[#allocation25 + $0x58] sm:$0xff]  ;;  %v4348_v21 = vld [vmem:[#allocation25 + $0x20] sm:$0xff] }
0x18c4   :  { %4549 = vmatpush.msrb.mxu1 %v4415_v40  ;;  %4490 = vmatpush.msrb.mxu2 %v4408_v55  ;;  %v4349_v40 = vld [vmem:[#allocation25 + $0x28] sm:$0xff]  ;;  %v4350_v55 = vld [vmem:[#allocation25 + $0x30] sm:$0xff] }
0x18c5   :  { %4510 = vmatpush.msra.mxu3 %v4409_v5  ;;  %4530 = vmatpush.msra.mxu0 %v4410_v51  ;;  %v4351_v5 = vld [vmem:[#allocation25 + $0x38] sm:$0xff]  ;;  %v4344_v51 = vld [vmem:[#allocation25] sm:$0xff] }
0x18c6   :  { %4550 = vmatpush.msrb.mxu1 %v4411_v58  ;;  %4491 = vmatmul.f32.vlgmr.msrb.gmra.mxu2 %v4473_v53  ;;  %v4345_v58 = vld [vmem:[#allocation25 + $0x8] sm:$0xff] }
0x18c7   :  { %4511 = vmatmul.f32.vlgmr.msra.gmra.mxu3 %v4473_v53  ;;  %4531 = vmatmul.f32.vlgmr.msra.gmra.mxu0 %v4473_v53 }
0x18c8   :  { %4551 = vmatmul.f32.vlgmr.msrb.gmra.mxu1 %v4473_v53  ;;  %4555 = vmatpush.msra.mxu2 %v4404_v20  ;;  %v4346_v53 = vld [vmem:[#allocation25 + $0x10] sm:$0xff]  ;;  %v4347_v20 = vld [vmem:[#allocation25 + $0x18] sm:$0xff] }
0x18c9   :  { %4575 = vmatpush.msrb.mxu3 %v4405_v57  ;;  %4595 = vmatpush.msrb.mxu0 %v4406_v0  ;;  %v4695_v57 = vld [vmem:[#allocation25 + $0x5e0] sm:$0xff]  ;;  %v7081_v0 = vpop.f32.mrf.mxu0 }
0x18ca   :  { %4615 = vmatpush.msra.mxu1 %v4407_v27  ;;  %4556 = vmatpush.msra.mxu2 %v4400_v62  ;;  %v4696_v27 = vld [vmem:[#allocation25 + $0x5e8] sm:$0xff]  ;;  %v4697_v62 = vld [vmem:[#allocation25 + $0x5f0] sm:$0xff] }
0x18cb   :  { %4576 = vmatpush.msrb.mxu3 %v4401_v10  ;;  %4596 = vmatpush.msrb.mxu0 %v4402_v34  ;;  %v7084_v10 = vpop.f32.mrf.mxu1  ;;  %v4698_v34 = vld [vmem:[#allocation25 + $0x5f8] sm:$0xff] }
0x18cc   :  { %4616 = vmatpush.msra.mxu1 %v4403_v56  ;;  %4557 = vmatpush.msra.mxu2 %v4396_v19  ;;  %v4691_v56 = vld [vmem:[#allocation25 + $0x5c0] sm:$0xff]  ;;  %v4692_v19 = vld [vmem:[#allocation25 + $0x5c8] sm:$0xff] }
0x18cd   :  { %4577 = vmatpush.msrb.mxu3 %v4397_v4  ;;  %4597 = vmatpush.msrb.mxu0 %v4398_v13  ;;  %v4693_v4 = vld [vmem:[#allocation25 + $0x5d0] sm:$0xff]  ;;  %v4694_v13 = vld [vmem:[#allocation25 + $0x5d8] sm:$0xff] }
0x18ce   :  { %4617 = vmatpush.msra.mxu1 %v4399_v1  ;;  %4558 = vmatpush.msra.mxu2 %v4392_v35  ;;  %v4687_v1 = vld [vmem:[#allocation25 + $0x5a0] sm:$0xff]  ;;  %v4688_v35 = vld [vmem:[#allocation25 + $0x5a8] sm:$0xff] }
0x18cf   :  { %4578 = vmatpush.msrb.mxu3 %v4393_v60  ;;  %4598 = vmatpush.msrb.mxu0 %v4394_v61  ;;  %v4689_v60 = vld [vmem:[#allocation25 + $0x5b0] sm:$0xff]  ;;  %v7089_v61 = vpop.f32.mrf.mxu2 }
0x18d0   :  { %4618 = vmatpush.msra.mxu1 %v4395_v6  ;;  %4559 = vmatpush.msra.mxu2 %v4388_v8  ;;  %v4690_v6 = vld [vmem:[#allocation25 + $0x5b8] sm:$0xff]  ;;  %v4683_v8 = vld [vmem:[#allocation25 + $0x580] sm:$0xff] }
0x18d1   :  { %4579 = vmatpush.msrb.mxu3 %v4389_v2  ;;  %4599 = vmatpush.msrb.mxu0 %v4390_v9  ;;  %v7091_v2 = vpop.f32.mrf.mxu3  ;;  %v4684_v9 = vld [vmem:[#allocation25 + $0x588] sm:$0xff] }
0x18d2   :  { %4619 = vmatpush.msra.mxu1 %v4391_v23  ;;  %4560 = vmatpush.msra.mxu2 %v4384_v14  ;;  %v4685_v23 = vld [vmem:[#allocation25 + $0x590] sm:$0xff]  ;;  %v4686_v14 = vld [vmem:[#allocation25 + $0x598] sm:$0xff] }
0x18d3   :  { %4580 = vmatpush.msrb.mxu3 %v4385_v47  ;;  %4600 = vmatpush.msrb.mxu0 %v4386_v52  ;;  %v4679_v47 = vld [vmem:[#allocation25 + $0x560] sm:$0xff]  ;;  %v4680_v52 = vld [vmem:[#allocation25 + $0x568] sm:$0xff] }
0x18d4   :  { %4620 = vmatpush.msra.mxu1 %v4387_v3  ;;  %4561 = vmatpush.msra.mxu2 %v4380_v42  ;;  %v4681_v3 = vld [vmem:[#allocation25 + $0x570] sm:$0xff]  ;;  %v4682_v42 = vld [vmem:[#allocation25 + $0x578] sm:$0xff] }
0x18d5   :  { %4581 = vmatpush.msrb.mxu3 %v4381_v31  ;;  %4601 = vmatpush.msrb.mxu0 %v4382_v63  ;;  %v4675_v31 = vld [vmem:[#allocation25 + $0x540] sm:$0xff]  ;;  %v7093_v63 = vpop.f32.mrf.mxu0 }
0x18d6   :  { %4621 = vmatpush.msra.mxu1 %v4383_v22  ;;  %4562 = vmatpush.msra.mxu2 %v4376_v29  ;;  %v4676_v22 = vld [vmem:[#allocation25 + $0x548] sm:$0xff]  ;;  %v4677_v29 = vld [vmem:[#allocation25 + $0x550] sm:$0xff] }
0x18d7   :  { %4582 = vmatpush.msrb.mxu3 %v4377_v44  ;;  %4602 = vmatpush.msrb.mxu0 %v4378_v7  ;;  %v7095_v44 = vpop.f32.mrf.mxu1  ;;  %v4678_v7 = vld [vmem:[#allocation25 + $0x558] sm:$0xff] }
0x18d8   :  { %4622 = vmatpush.msra.mxu1 %v4379_v30  ;;  %4563 = vmatpush.msra.mxu2 %v4372_v17  ;;  %v4671_v30 = vld [vmem:[#allocation25 + $0x520] sm:$0xff]  ;;  %v4672_v17 = vld [vmem:[#allocation25 + $0x528] sm:$0xff] }
0x18d9   :  { %4583 = vmatpush.msrb.mxu3 %v4373_v32  ;;  %4603 = vmatpush.msrb.mxu0 %v4374_v37  ;;  %v4673_v32 = vld [vmem:[#allocation25 + $0x530] sm:$0xff]  ;;  %v4674_v37 = vld [vmem:[#allocation25 + $0x538] sm:$0xff] }
0x18da   :  { %4623 = vmatpush.msra.mxu1 %v4375_v38  ;;  %4564 = vmatpush.msra.mxu2 %v4368_v41  ;;  %v4667_v38 = vld [vmem:[#allocation25 + $0x500] sm:$0xff]  ;;  %v4668_v41 = vld [vmem:[#allocation25 + $0x508] sm:$0xff] }
0x18db   :  { %4584 = vmatpush.msrb.mxu3 %v4369_v45  ;;  %4604 = vmatpush.msrb.mxu0 %v4370_v46  ;;  %v4669_v45 = vld [vmem:[#allocation25 + $0x510] sm:$0xff]  ;;  %v7097_v46 = vpop.f32.mrf.mxu2 }
0x18dc   :  { %4624 = vmatpush.msra.mxu1 %v4371_v50  ;;  %4565 = vmatpush.msra.mxu2 %v4364_v54  ;;  %v4670_v50 = vld [vmem:[#allocation25 + $0x518] sm:$0xff]  ;;  %v4663_v54 = vld [vmem:[#allocation25 + $0x4e0] sm:$0xff] }
0x18dd   :  { %4585 = vmatpush.msrb.mxu3 %v4365_v28  ;;  %4605 = vmatpush.msrb.mxu0 %v4366_v48  ;;  %v7099_v28 = vpop.f32.mrf.mxu3  ;;  %v4664_v48 = vld [vmem:[#allocation25 + $0x4e8] sm:$0xff] }
0x18de   :  { %4625 = vmatpush.msra.mxu1 %v4367_v33  ;;  %4566 = vmatpush.msra.mxu2 %v4360_v11  ;;  %v4665_v33 = vld [vmem:[#allocation25 + $0x4f0] sm:$0xff]  ;;  %v4666_v11 = vld [vmem:[#allocation25 + $0x4f8] sm:$0xff] }
0x18df   :  { %4586 = vmatpush.msrb.mxu3 %v4361_v39  ;;  %4606 = vmatpush.msrb.mxu0 %v4362_v36  ;;  %v4659_v39 = vld [vmem:[#allocation25 + $0x4c0] sm:$0xff]  ;;  %v7101_v36 = vpop.f32.mrf.mxu0 }
0x18e0   :  { %4626 = vmatpush.msra.mxu1 %v4363_v59  ;;  %4567 = vmatpush.msra.mxu2 %v4356_v43  ;;  %v4660_v59 = vld [vmem:[#allocation25 + $0x4c8] sm:$0xff]  ;;  %v4661_v43 = vld [vmem:[#allocation25 + $0x4d0] sm:$0xff] }
0x18e1   :  { %4587 = vmatpush.msrb.mxu3 %v4357_v25  ;;  %4607 = vmatpush.msrb.mxu0 %v4358_v15  ;;  %v7103_v25 = vpop.f32.mrf.mxu1  ;;  %v4662_v15 = vld [vmem:[#allocation25 + $0x4d8] sm:$0xff] }
0x18e2   :  { %4627 = vmatpush.msra.mxu1 %v4359_v49  ;;  %4568 = vmatpush.msra.mxu2 %v4352_v26  ;;  %v4655_v49 = vld [vmem:[#allocation25 + $0x4a0] sm:$0xff]  ;;  %v4656_v26 = vld [vmem:[#allocation25 + $0x4a8] sm:$0xff] }
0x18e3   :  { %4588 = vmatpush.msrb.mxu3 %v4353_v18  ;;  %4608 = vmatpush.msrb.mxu0 %v4354_v16  ;;  %v4657_v18 = vld [vmem:[#allocation25 + $0x4b0] sm:$0xff]  ;;  %v4658_v16 = vld [vmem:[#allocation25 + $0x4b8] sm:$0xff] }
0x18e4   :  { %4628 = vmatpush.msra.mxu1 %v4355_v24  ;;  %4569 = vmatpush.msra.mxu2 %v4348_v21  ;;  %v4651_v24 = vld [vmem:[#allocation25 + $0x480] sm:$0xff]  ;;  %v4652_v21 = vld [vmem:[#allocation25 + $0x488] sm:$0xff] }
0x18e5   :  { %4589 = vmatpush.msrb.mxu3 %v4349_v40  ;;  %4609 = vmatpush.msrb.mxu0 %v4350_v55  ;;  %v4653_v40 = vld [vmem:[#allocation25 + $0x490] sm:$0xff]  ;;  %v7105_v55 = vpop.f32.mrf.mxu2 }
0x18e6   :  { %4629 = vmatpush.msra.mxu1 %v4351_v5  ;;  %4570 = vmatpush.msra.mxu2 %v4344_v51  ;;  %v4654_v5 = vld [vmem:[#allocation25 + $0x498] sm:$0xff]  ;;  %v4647_v51 = vld [vmem:[#allocation25 + $0x460] sm:$0xff] }
0x18e7   :  { %4590 = vmatpush.msrb.mxu3 %v4345_v58  ;;  %4610 = vmatpush.msrb.mxu0 %v4346_v53  ;;  %v7107_v58 = vpop.f32.mrf.mxu3  ;;  %v4648_v53 = vld [vmem:[#allocation25 + $0x468] sm:$0xff] }
0x18e8   :  { %4630 = vmatpush.msra.mxu1 %v4347_v20  ;;  %4571 = vmatmul.f32.vlgmr.msra.gmra.mxu2 %v7078_v12  ;;  %v4649_v20 = vld [vmem:[#allocation25 + $0x470] sm:$0xff] }
0x18e9   :  { %4591 = vmatmul.f32.vlgmr.msrb.gmra.mxu3 %v7078_v12  ;;  %4611 = vmatmul.f32.vlgmr.msrb.gmra.mxu0 %v7078_v12 }
0x18ea   :  { %4631 = vmatmul.f32.vlgmr.msra.gmra.mxu1 %v7078_v12  ;;  %4701 = vmatpush.msrb.mxu2 %v4695_v57  ;;  %v4650_v57 = vld [vmem:[#allocation25 + $0x478] sm:$0xff] }
0x18eb   :  { %4721 = vmatpush.msra.mxu3 %v4696_v27  ;;  %4741 = vmatpush.msra.mxu0 %v4697_v62  ;;  %v4643_v27 = vld [vmem:[#allocation25 + $0x440] sm:$0xff]  ;;  %v7109_v62 = vpop.f32.mrf.mxu0 }
0x18ec   :  { %4761 = vmatpush.msrb.mxu1 %v4698_v34  ;;  %4702 = vmatpush.msrb.mxu2 %v4691_v56  ;;  %v4644_v34 = vld [vmem:[#allocation25 + $0x448] sm:$0xff]  ;;  %v4645_v56 = vld [vmem:[#allocation25 + $0x450] sm:$0xff] }
0x18ed   :  { %4722 = vmatpush.msra.mxu3 %v4692_v19  ;;  %4742 = vmatpush.msra.mxu0 %v4693_v4  ;;  %v7111_v19 = vpop.f32.mrf.mxu1  ;;  %v4646_v4 = vld [vmem:[#allocation25 + $0x458] sm:$0xff] }
0x18ee   :  { %4762 = vmatpush.msrb.mxu1 %v4694_v13  ;;  %4703 = vmatpush.msrb.mxu2 %v4687_v1  ;;  %v4639_v13 = vld [vmem:[#allocation25 + $0x420] sm:$0xff]  ;;  %v4640_v1 = vld [vmem:[#allocation25 + $0x428] sm:$0xff] }
0x18ef   :  { %4723 = vmatpush.msra.mxu3 %v4688_v35  ;;  %4743 = vmatpush.msra.mxu0 %v4689_v60  ;;  %v4641_v35 = vld [vmem:[#allocation25 + $0x430] sm:$0xff]  ;;  %v4642_v60 = vld [vmem:[#allocation25 + $0x438] sm:$0xff] }
0x18f0   :  { %4763 = vmatpush.msrb.mxu1 %v4690_v6  ;;  %4704 = vmatpush.msrb.mxu2 %v4683_v8  ;;  %v4635_v6 = vld [vmem:[#allocation25 + $0x400] sm:$0xff]  ;;  %v4636_v8 = vld [vmem:[#allocation25 + $0x408] sm:$0xff] }
0x18f1   :  { %4724 = vmatpush.msra.mxu3 %v4684_v9  ;;  %4744 = vmatpush.msra.mxu0 %v4685_v23  ;;  %v4637_v9 = vld [vmem:[#allocation25 + $0x410] sm:$0xff]  ;;  %v7113_v23 = vpop.f32.mrf.mxu2 }
0x18f2   :  { %4764 = vmatpush.msrb.mxu1 %v4686_v14  ;;  %4705 = vmatpush.msrb.mxu2 %v4679_v47  ;;  %v4638_v14 = vld [vmem:[#allocation25 + $0x418] sm:$0xff]  ;;  %v7115_v47 = vpop.f32.mrf.mxu3 }
0x18f3   :  { %4725 = vmatpush.msra.mxu3 %v4680_v52  ;;  %4745 = vmatpush.msra.mxu0 %v4681_v3  ;;  %v4699_v52 = vrot.slane %v7078_v12, 2  ;;  %v4845_v3 = vld [vmem:[#allocation25 + $0x7e0] sm:$0xff] }
0x18f4   :  { %4765 = vmatpush.msrb.mxu1 %v4682_v42  ;;  %4706 = vmatpush.msrb.mxu2 %v4675_v31  ;;  %v7118_v42 = vpop.f32.mrf.mxu0  ;;  %v4846_v31 = vld [vmem:[#allocation25 + $0x7e8] sm:$0xff] }
0x18f5   :  { %4726 = vmatpush.msra.mxu3 %v4676_v22  ;;  %4746 = vmatpush.msra.mxu0 %v4677_v29  ;;  %v4847_v22 = vld [vmem:[#allocation25 + $0x7f0] sm:$0xff]  ;;  %v7120_v29 = vpop.f32.mrf.mxu1 }
0x18f6   :  { %4766 = vmatpush.msrb.mxu1 %v4678_v7  ;;  %4707 = vmatpush.msrb.mxu2 %v4671_v30  ;;  %v4848_v7 = vld [vmem:[#allocation25 + $0x7f8] sm:$0xff]  ;;  %v4841_v30 = vld [vmem:[#allocation25 + $0x7c0] sm:$0xff] }
0x18f7   :  { %4727 = vmatpush.msra.mxu3 %v4672_v17  ;;  %4747 = vmatpush.msra.mxu0 %v4673_v32  ;;  %v4842_v17 = vld [vmem:[#allocation25 + $0x7c8] sm:$0xff]  ;;  %v4843_v32 = vld [vmem:[#allocation25 + $0x7d0] sm:$0xff] }
0x18f8   :  { %4767 = vmatpush.msrb.mxu1 %v4674_v37  ;;  %4708 = vmatpush.msrb.mxu2 %v4667_v38  ;;  %v4844_v37 = vld [vmem:[#allocation25 + $0x7d8] sm:$0xff]  ;;  %v4837_v38 = vld [vmem:[#allocation25 + $0x7a0] sm:$0xff] }
0x18f9   :  { %4728 = vmatpush.msra.mxu3 %v4668_v41  ;;  %4748 = vmatpush.msra.mxu0 %v4669_v45  ;;  %v4838_v41 = vld [vmem:[#allocation25 + $0x7a8] sm:$0xff]  ;;  %v4839_v45 = vld [vmem:[#allocation25 + $0x7b0] sm:$0xff] }
0x18fa   :  { %4768 = vmatpush.msrb.mxu1 %v4670_v50  ;;  %4709 = vmatpush.msrb.mxu2 %v4663_v54  ;;  %v7122_v50 = vpop.f32.mrf.mxu2  ;;  %v4840_v54 = vld [vmem:[#allocation25 + $0x7b8] sm:$0xff] }
0x18fb   :  { %4729 = vmatpush.msra.mxu3 %v4664_v48  ;;  %4749 = vmatpush.msra.mxu0 %v4665_v33  ;;  %v4833_v48 = vld [vmem:[#allocation25 + $0x780] sm:$0xff]  ;;  %v7124_v33 = vpop.f32.mrf.mxu3 }
0x18fc   :  { %4769 = vmatpush.msrb.mxu1 %v4666_v11  ;;  %4710 = vmatpush.msrb.mxu2 %v4659_v39  ;;  %v4834_v11 = vld [vmem:[#allocation25 + $0x788] sm:$0xff]  ;;  %v4835_v39 = vld [vmem:[#allocation25 + $0x790] sm:$0xff] }
0x18fd   :  { %4730 = vmatpush.msra.mxu3 %v4660_v59  ;;  %4750 = vmatpush.msra.mxu0 %v4661_v43  ;;  %v4836_v59 = vld [vmem:[#allocation25 + $0x798] sm:$0xff]  ;;  %v4829_v43 = vld [vmem:[#allocation25 + $0x760] sm:$0xff] }
0x18fe   :  { %4770 = vmatpush.msrb.mxu1 %v4662_v15  ;;  %4711 = vmatpush.msrb.mxu2 %v4655_v49  ;;  %v7126_v15 = vpop.f32.mrf.mxu0  ;;  %v4830_v49 = vld [vmem:[#allocation25 + $0x768] sm:$0xff] }
0x18ff   :  { %4731 = vmatpush.msra.mxu3 %v4656_v26  ;;  %4751 = vmatpush.msra.mxu0 %v4657_v18  ;;  %v4831_v26 = vld [vmem:[#allocation25 + $0x770] sm:$0xff]  ;;  %v7128_v18 = vpop.f32.mrf.mxu1 }
0x1900   :  { %4771 = vmatpush.msrb.mxu1 %v4658_v16  ;;  %4712 = vmatpush.msrb.mxu2 %v4651_v24  ;;  %v4832_v16 = vld [vmem:[#allocation25 + $0x778] sm:$0xff]  ;;  %v4825_v24 = vld [vmem:[#allocation25 + $0x740] sm:$0xff] }
0x1901   :  { %4732 = vmatpush.msra.mxu3 %v4652_v21  ;;  %4752 = vmatpush.msra.mxu0 %v4653_v40  ;;  %v4826_v21 = vld [vmem:[#allocation25 + $0x748] sm:$0xff]  ;;  %v4827_v40 = vld [vmem:[#allocation25 + $0x750] sm:$0xff] }
0x1902   :  { %4772 = vmatpush.msrb.mxu1 %v4654_v5  ;;  %4713 = vmatpush.msrb.mxu2 %v4647_v51  ;;  %v4828_v5 = vld [vmem:[#allocation25 + $0x758] sm:$0xff]  ;;  %v4821_v51 = vld [vmem:[#allocation25 + $0x720] sm:$0xff] }
0x1903   :  { %4733 = vmatpush.msra.mxu3 %v4648_v53  ;;  %4753 = vmatpush.msra.mxu0 %v4649_v20  ;;  %v4822_v53 = vld [vmem:[#allocation25 + $0x728] sm:$0xff]  ;;  %v4823_v20 = vld [vmem:[#allocation25 + $0x730] sm:$0xff] }
0x1904   :  { %4773 = vmatpush.msrb.mxu1 %v4650_v57  ;;  %4714 = vmatpush.msrb.mxu2 %v4643_v27  ;;  %v3390_v57 = vadd.f32 %v7093_v63, %v7081_v0  ;;  %v7132_v27 = vpop.f32.mrf.mxu2  ;;  %v4820_v0 = vld [vmem:[#allocation25 + $0x718] sm:$0xff]  ;;  %v4813_v63 = vld [vmem:[#allocation25 + $0x6e0] sm:$0xff] }
0x1905   :  { %4734 = vmatpush.msra.mxu3 %v4644_v34  ;;  %4754 = vmatpush.msra.mxu0 %v4645_v56  ;;  %v4824_v34 = vld [vmem:[#allocation25 + $0x738] sm:$0xff]  ;;  %v4817_v56 = vld [vmem:[#allocation25 + $0x700] sm:$0xff] }
0x1906   :  { %4774 = vmatpush.msrb.mxu1 %v4646_v4  ;;  %4715 = vmatpush.msrb.mxu2 %v4639_v13  ;;  %v3410_v4 = vadd.f32 %v7095_v44, %v7084_v10  ;;  %v7136_v13 = vpop.f32.mrf.mxu3 }
0x1907   :  { %4735 = vmatpush.msra.mxu3 %v4640_v1  ;;  %4755 = vmatpush.msra.mxu0 %v4641_v35  ;;  %v4818_v1 = vld [vmem:[#allocation25 + $0x708] sm:$0xff]  ;;  %v4819_v35 = vld [vmem:[#allocation25 + $0x710] sm:$0xff]  ;;  %v4155_v44 = vpop.f32.mrf.mxu1 }
0x1908   :  { %4775 = vmatpush.msrb.mxu1 %v4642_v60  ;;  %4716 = vmatpush.msrb.mxu2 %v4635_v6  ;;  %v3560_v60 = vadd.f32 %v7101_v36, %v3390_v57  ;;  %v3561_v6 = vadd.f32 %v7103_v25, %v3410_v4  ;;  %v3350_v36 = vadd.f32 %v7097_v46, %v7089_v61  ;;  %v4810_v25 = vld [vmem:[#allocation25 + $0x6c8] sm:$0xff]  ;;  %v4807_v46 = vld [vmem:[#allocation25 + $0x6b0] sm:$0xff] }
0x1909   :  { %4736 = vmatpush.msra.mxu3 %v4636_v8  ;;  %4756 = vmatpush.msra.mxu0 %v4637_v9  ;;  %v4135_v8 = vpop.f32.mrf.mxu0  ;;  %v4814_v9 = vld [vmem:[#allocation25 + $0x6e8] sm:$0xff] }
0x190a   :  { %4776 = vmatpush.msrb.mxu1 %v4638_v14  ;;  %4717 = vmatmul.f32.vlgmr.msrb.gmra.mxu2 %v4699_v52  ;;  %v4815_v14 = vld [vmem:[#allocation25 + $0x6f0] sm:$0xff]  ;;  %v3710_v10 = vadd.f32 %v7109_v62, %v3560_v60  ;;  %v4812_v62 = vld [vmem:[#allocation25 + $0x6d8] sm:$0xff]  ;;  %v4806_v61 = vld [vmem:[#allocation25 + $0x6a8] sm:$0xff] }
0x190b   :  { %4737 = vmatmul.f32.vlgmr.msra.gmra.mxu3 %v4699_v52  ;;  %4757 = vmatmul.f32.vlgmr.msra.gmra.mxu0 %v4699_v52  ;;  %v4790_v4 = vld [vmem:[#allocation25 + $0x628] sm:$0xff]  ;;  %v4785_v60 = vld [vmem:[#allocation25 + $0x600] sm:$0xff] }
0x190c   :  { %4777 = vmatmul.f32.vlgmr.msrb.gmra.mxu1 %v4699_v52  ;;  %4851 = vmatpush.msra.mxu2 %v4845_v3  ;;  %v4816_v52 = vld [vmem:[#allocation25 + $0x6f8] sm:$0xff]  ;;  %v4809_v3 = vld [vmem:[#allocation25 + $0x6c0] sm:$0xff] }
0x190d   :  { %4871 = vmatpush.msrb.mxu3 %v4846_v31  ;;  %4891 = vmatpush.msrb.mxu0 %v4847_v22  ;;  %v3711_v31 = vadd.f32 %v7111_v19, %v3561_v6  ;;  %v4811_v22 = vld [vmem:[#allocation25 + $0x6d0] sm:$0xff] }
0x190e   :  { %4911 = vmatpush.msra.mxu1 %v4848_v7  ;;  %4852 = vmatpush.msra.mxu2 %v4841_v30  ;;  %v3370_v7 = vadd.f32 %v7099_v28, %v7091_v2  ;;  %v3860_v30 = vadd.f32 %v7118_v42, %v3710_v10  ;;  %v4808_v2 = vld [vmem:[#allocation25 + $0x6b8] sm:$0xff]  ;;  %v4801_v28 = vld [vmem:[#allocation25 + $0x680] sm:$0xff] }
0x190f   :  { %4872 = vmatpush.msrb.mxu3 %v4842_v17  ;;  %4892 = vmatpush.msrb.mxu0 %v4843_v32  ;;  %v4805_v17 = vld [vmem:[#allocation25 + $0x6a0] sm:$0xff]  ;;  %v3558_v32 = vadd.f32 %v7105_v55, %v3350_v36  ;;  %v4115_v55 = vpop.f32.mrf.mxu3  ;;  %v4788_v10 = vld [vmem:[#allocation25 + $0x618] sm:$0xff]  ;;  %v4849_v36 = vrot.slane %v7078_v12, 3 }
0x1910   :  { %4912 = vmatpush.msra.mxu1 %v4844_v37  ;;  %4853 = vmatpush.msra.mxu2 %v4837_v38  ;;  %v3861_v37 = vadd.f32 %v7120_v29, %v3711_v31  ;;  %v3559_v19 = vadd.f32 %v7107_v58, %v3370_v7  ;;  %v4010_v38 = vadd.f32 %v7126_v15, %v3860_v30  ;;  %v4802_v29 = vld [vmem:[#allocation25 + $0x688] sm:$0xff]  ;;  %v4339_v31 = vlaneseq }
0x1911   :  { %4873 = vmatpush.msrb.mxu3 %v4838_v41  ;;  %4893 = vmatpush.msrb.mxu0 %v4839_v45  ;;  %v4095_v41 = vpop.f32.mrf.mxu2  ;;  %v3708_v42 = vadd.f32 %v7113_v23, %v3558_v32  ;;  %v4798_v23 = vld [vmem:[#allocation25 + $0x668] sm:$0xff]  ;;  %v4998_v32 = vld [vmem:[#allocation25 + $0x9f8] sm:$0xff] }
0x1912   :  { %4913 = vmatpush.msra.mxu1 %v4840_v54  ;;  %4854 = vmatpush.msra.mxu2 %v4833_v48  ;;  %v4011_v45 = vadd.f32 %v7128_v18, %v3861_v37  ;;  %v4803_v54 = vld [vmem:[#allocation25 + $0x690] sm:$0xff]  ;;  %v7153_v48 = vld [vmem:[#allocation26] sm:$0xf]  ;;  %v3709_v58 = vadd.f32 %v7115_v47, %v3559_v19  ;;  %v4992_v19 = vld [vmem:[#allocation25 + $0x9c8] sm:$0xff]  ;;  %vm7173_vm5 = vcmp.lt.s32.totalorder %v4339_v31, 512 }
0x1913   :  { %4874 = vmatpush.msrb.mxu3 %v4834_v11  ;;  %4894 = vmatpush.msrb.mxu0 %v4835_v39  ;;  %v4160_v11 = vadd.f32 %v4135_v8, %v4010_v38  ;;  %v4804_v39 = vld [vmem:[#allocation25 + $0x698] sm:$0xff]  ;;  %v4314_v6 = vperm.slane %v7153_v48, 1  ;;  %v4786_v8 = vld [vmem:[#allocation25 + $0x608] sm:$0xff]  ;;  %v4991_v37 = vld [vmem:[#allocation25 + $0x9c0] sm:$0xff] }
0x1914   :  { %4914 = vmatpush.msra.mxu1 %v4836_v59  ;;  %4855 = vmatpush.msra.mxu2 %v4829_v43  ;;  %v4797_v59 = vld [vmem:[#allocation25 + $0x660] sm:$0xff]  ;;  %v3858_v43 = vadd.f32 %v7122_v50, %v3708_v42  ;;  %v4161_v15 = vadd.f32 %v4155_v44, %v4011_v45  ;;  %v3859_v18 = vadd.f32 %v7124_v33, %v3709_v58  ;;  %v4796_v33 = vld [vmem:[#allocation25 + $0x658] sm:$0xff]  ;;  %v4993_v38 = vld [vmem:[#allocation25 + $0x9d0] sm:$0xff] }
0x1915   :  { %4875 = vmatpush.msrb.mxu3 %v4830_v49  ;;  %4895 = vmatpush.msrb.mxu0 %v4831_v26  ;;  %v4799_v49 = vld [vmem:[#allocation25 + $0x670] sm:$0xff]  ;;  %v4987_v42 = vld [vmem:[#allocation25 + $0x9a0] sm:$0xff]  ;;  %v4990_v58 = vld [vmem:[#allocation25 + $0x9b8] sm:$0xff] }
0x1916   :  { %4915 = vmatpush.msra.mxu1 %v4832_v16  ;;  %4856 = vmatpush.msra.mxu2 %v4825_v24  ;;  %v4800_v16 = vld [vmem:[#allocation25 + $0x678] sm:$0xff]  ;;  %v4793_v24 = vld [vmem:[#allocation25 + $0x640] sm:$0xff]  ;;  %v4008_v50 = vadd.f32 %v7132_v27, %v3858_v43  ;;  %v4009_v57 = vadd.f32 %v7136_v13, %v3859_v18 }
0x1917   :  { %4876 = vmatpush.msrb.mxu3 %v4826_v21  ;;  %4896 = vmatpush.msrb.mxu0 %v4827_v40  ;;  %v4315_v21 = vperm.slane %v7153_v48, 2  ;;  %v4792_v27 = vld [vmem:[#allocation25 + $0x638] sm:$0xff]  ;;  %v4975_v18 = vld [vmem:[#allocation25 + $0x940] sm:$0xff] }
0x1918   :  { %4916 = vmatpush.msra.mxu1 %v4828_v5  ;;  %4857 = vmatpush.msra.mxu2 %v4821_v51  ;;  %v4316_v5 = vperm.slane %v7153_v48, 3  ;;  %v4794_v51 = vld [vmem:[#allocation25 + $0x648] sm:$0xff]  ;;  %v4986_v43 = vld [vmem:[#allocation25 + $0x998] sm:$0xff]  ;;  %v4947_v31 = vld [vmem:[#allocation25 + $0x860] sm:$0xff] }
0x1919   :  { %4877 = vmatpush.msrb.mxu3 %v4822_v53  ;;  %4897 = vmatpush.msrb.mxu0 %v4823_v20  ;;  %v4795_v53 = vld [vmem:[#allocation25 + $0x650] sm:$0xff] }
0x191a   :  { %4917 = vmatpush.msra.mxu1 %v4824_v34  ;;  %4858 = vmatpush.msra.mxu2 %v4817_v56  ;;  %v4789_v34 = vld [vmem:[#allocation25 + $0x620] sm:$0xff]  ;;  %v4158_v56 = vadd.f32 %v4095_v41, %v4008_v50  ;;  %v4972_v50 = vld [vmem:[#allocation25 + $0x928] sm:$0xff] }
0x191b   :  { %4878 = vmatpush.msrb.mxu3 %v4818_v1  ;;  %4898 = vmatpush.msrb.mxu0 %v4819_v35  ;;  %v4791_v1 = vld [vmem:[#allocation25 + $0x630] sm:$0xff]  ;;  %v4159_v35 = vadd.f32 %v4115_v55, %v4009_v57  ;;  %v4988_v55 = vld [vmem:[#allocation25 + $0x9a8] sm:$0xff] }
0x191c   :  { %4918 = vmatpush.msra.mxu1 %v4820_v0  ;;  %4859 = vmatpush.msra.mxu2 %v4813_v63  ;;  %v4968_v57 = vld [vmem:[#allocation25 + $0x908] sm:$0xff] }
0x191d   :  { %4879 = vmatpush.msrb.mxu3 %v4814_v9  ;;  %4899 = vmatpush.msrb.mxu0 %v4815_v14  ;;  %v4787_v9 = vld [vmem:[#allocation25 + $0x610] sm:$0xff] }
0x191e   :  { %4919 = vmatpush.msra.mxu1 %v4816_v52  ;;  %4860 = vmatpush.msra.mxu2 %v4809_v3  ;;  %v4313_v52 = vperm.slane %v7153_v48, 0 }
0x191f   :  { %4880 = vmatpush.msrb.mxu3 %v4810_v25  ;;  %4900 = vmatpush.msrb.mxu0 %v4811_v22  ;;  %v4995_v25 = vld [vmem:[#allocation25 + $0x9e0] sm:$0xff] }
0x1920   :  { %4920 = vmatpush.msra.mxu1 %v4812_v62  ;;  %4861 = vmatpush.msra.mxu2 %v4805_v17  ;;  %v4996_v62 = vld [vmem:[#allocation25 + $0x9e8] sm:$0xff]  ;;  %v4997_v17 = vld [vmem:[#allocation25 + $0x9f0] sm:$0xff] }
0x1921   :  { %4881 = vmatpush.msrb.mxu3 %v4806_v61  ;;  %4901 = vmatpush.msrb.mxu0 %v4807_v46 }
0x1922   :  { %4921 = vmatpush.msra.mxu1 %v4808_v2  ;;  %4862 = vmatpush.msra.mxu2 %v4801_v28  ;;  %v4285_v26 = vpop.f32.mrf.mxu0  ;;  %v4994_v28 = vld [vmem:[#allocation25 + $0x9d8] sm:$0xff] }
0x1923   :  { %4882 = vmatpush.msrb.mxu3 %v4802_v29  ;;  %4902 = vmatpush.msrb.mxu0 %v4803_v54  ;;  %v4310_v47 = vadd.f32 %v4285_v26, %v4160_v11  ;;  %v4305_v40 = vpop.f32.mrf.mxu1  ;;  %v4989_v29 = vld [vmem:[#allocation25 + $0x9b0] sm:$0xff]  ;;  %v4983_v11 = vld [vmem:[#allocation25 + $0x980] sm:$0xff]  ;;  %v4982_v26 = vld [vmem:[#allocation25 + $0x978] sm:$0xff] }
0x1924   :  { %4922 = vmatpush.msra.mxu1 %v4804_v39  ;;  %4863 = vmatpush.msra.mxu2 %v4797_v59  ;;  %v4311_v20 = vadd.f32 %v4305_v40, %v4161_v15  ;;  %v4984_v39 = vld [vmem:[#allocation25 + $0x988] sm:$0xff]  ;;  %v4985_v59 = vld [vmem:[#allocation25 + $0x990] sm:$0xff]  ;;  %v4979_v15 = vld [vmem:[#allocation25 + $0x960] sm:$0xff] }
0x1925   :  { %4883 = vmatpush.msrb.mxu3 %v4798_v23  ;;  %4903 = vmatpush.msrb.mxu0 %v4799_v49  ;;  %v4323_v0 = vadd.f32 %v4315_v21, %v4310_v47  ;;  %v4980_v23 = vld [vmem:[#allocation25 + $0x968] sm:$0xff]  ;;  %v4981_v49 = vld [vmem:[#allocation25 + $0x970] sm:$0xff]  ;;  %v4978_v47 = vld [vmem:[#allocation25 + $0x958] sm:$0xff] }
0x1926   :  { %4923 = vmatpush.msra.mxu1 %v4800_v16  ;;  %4864 = vmatpush.msra.mxu2 %v4793_v24  ;;  %v4324_v13 = vadd.f32 %v4316_v5, %v4311_v20  ;;  %v4976_v16 = vld [vmem:[#allocation25 + $0x948] sm:$0xff]  ;;  %v4977_v24 = vld [vmem:[#allocation25 + $0x950] sm:$0xff]  ;;  %v4971_v40 = vld [vmem:[#allocation25 + $0x920] sm:$0xff] }
0x1927   :  { %4884 = vmatpush.msrb.mxu3 %v4794_v51  ;;  %4904 = vmatpush.msrb.mxu0 %v4795_v53  ;;  %v4245_v63 = vpop.f32.mrf.mxu2  ;;  %v4330_v22 = vrot.slane %v4323_v0, 6  ;;  %v4973_v51 = vld [vmem:[#allocation25 + $0x930] sm:$0xff]  ;;  %v4974_v53 = vld [vmem:[#allocation25 + $0x938] sm:$0xff]  ;;  %v4967_v20 = vld [vmem:[#allocation25 + $0x900] sm:$0xff] }
0x1928   :  { %4924 = vmatpush.msra.mxu1 %v4796_v33  ;;  %4865 = vmatpush.msra.mxu2 %v4789_v34  ;;  %v4265_v14 = vpop.f32.mrf.mxu3  ;;  %v4308_v44 = vadd.f32 %v4245_v63, %v4158_v56  ;;  %v4331_v7 = vrot.slane %v4324_v13, 5  ;;  %v4969_v33 = vld [vmem:[#allocation25 + $0x910] sm:$0xff]  ;;  %v4970_v34 = vld [vmem:[#allocation25 + $0x918] sm:$0xff]  ;;  %v4963_v56 = vld [vmem:[#allocation25 + $0x8e0] sm:$0xff] }
0x1929   :  { %4885 = vmatpush.msrb.mxu3 %v4790_v4  ;;  %4905 = vmatpush.msrb.mxu0 %v4791_v1  ;;  %v4309_v3 = vadd.f32 %v4265_v14, %v4159_v35  ;;  %v4964_v4 = vld [vmem:[#allocation25 + $0x8e8] sm:$0xff]  ;;  %v4965_v1 = vld [vmem:[#allocation25 + $0x8f0] sm:$0xff]  ;;  %v4966_v35 = vld [vmem:[#allocation25 + $0x8f8] sm:$0xff] }
0x192a   :  { %4925 = vmatpush.msra.mxu1 %v4792_v27  ;;  %4866 = vmatpush.msra.mxu2 %v4785_v60  ;;  %v4321_v61 = vadd.f32 %v4313_v52, %v4308_v44  ;;  %v4335_v2 = vsel %vm4334_vm1, %v4330_v22, %v4331_v7  ;;  %v4959_v27 = vld [vmem:[#allocation25 + $0x8c0] sm:$0xff]  ;;  %v4960_v60 = vld [vmem:[#allocation25 + $0x8c8] sm:$0xff]  ;;  %v4961_v0 = vld [vmem:[#allocation25 + $0x8d0] sm:$0xff] }
0x192b   :  { %4886 = vmatpush.msrb.mxu3 %v4786_v8  ;;  %4906 = vmatpush.msrb.mxu0 %v4787_v9  ;;  %v4322_v30 = vadd.f32 %v4314_v6, %v4309_v3  ;;  %v4962_v13 = vld [vmem:[#allocation25 + $0x8d8] sm:$0xff]  ;;  %v4955_v63 = vld [vmem:[#allocation25 + $0x8a0] sm:$0xff]  ;;  %v4956_v8 = vld [vmem:[#allocation25 + $0x8a8] sm:$0xff] }
0x192c   :  { %4926 = vmatpush.msra.mxu1 %v4788_v10  ;;  %4867 = vmatmul.f32.vlgmr.msra.gmra.mxu2 %v4849_v36  ;;  %v4957_v9 = vld [vmem:[#allocation25 + $0x8b0] sm:$0xff]  ;;  %v4958_v14 = vld [vmem:[#allocation25 + $0x8b8] sm:$0xff]  ;;  %v4951_v10 = vld [vmem:[#allocation25 + $0x880] sm:$0xff] }
0x192d   :  { %4887 = vmatmul.f32.vlgmr.msrb.gmra.mxu3 %v4849_v36  ;;  %4907 = vmatmul.f32.vlgmr.msrb.gmra.mxu0 %v4849_v36  ;;  %v4329_v46 = vrot.slane %v4322_v30, 7  ;;  %v4952_v44 = vld [vmem:[#allocation25 + $0x888] sm:$0xff]  ;;  %v4953_v3 = vld [vmem:[#allocation25 + $0x890] sm:$0xff]  ;;  %v4950_v7 = vld [vmem:[#allocation25 + $0x878] sm:$0xff] }
0x192e   :  { %4927 = vmatmul.f32.vlgmr.msra.gmra.mxu1 %v4849_v36  ;;  %5001 = vmatpush.msrb.mxu2 %v4995_v25  ;;  %v4954_v36 = vld [vmem:[#allocation25 + $0x898] sm:$0xff]  ;;  %v4948_v25 = vld [vmem:[#allocation25 + $0x868] sm:$0xff]  ;;  %v4949_v22 = vld [vmem:[#allocation25 + $0x870] sm:$0xff] }
0x192f   :  { %5021 = vmatpush.msra.mxu3 %v4996_v62  ;;  %5041 = vmatpush.msra.mxu0 %v4997_v17  ;;  %v4333_v45 = vsel %vm4332_vm2, %v4321_v61, %v4329_v46  ;;  %v4943_v30 = vld [vmem:[#allocation25 + $0x840] sm:$0xff]  ;;  %v4944_v62 = vld [vmem:[#allocation25 + $0x848] sm:$0xff]  ;;  %v4945_v17 = vld [vmem:[#allocation25 + $0x850] sm:$0xff] }
0x1930   :  { %5061 = vmatpush.msrb.mxu1 %v4998_v32  ;;  %5002 = vmatpush.msrb.mxu2 %v4991_v37  ;;  %v4337_v54 = vsel %vm4336_vm3, %v4333_v45, %v4335_v2  ;;  %v4946_v32 = vld [vmem:[#allocation25 + $0x858] sm:$0xff]  ;;  %v4939_v37 = vld [vmem:[#allocation25 + $0x820] sm:$0xff]  ;;  %v4940_v61 = vld [vmem:[#allocation25 + $0x828] sm:$0xff]  ;;  %v4999_v45 = vrot.slane %v7078_v12, 4 }
0x1931   :  { %5022 = vmatpush.msra.mxu3 %v4992_v19  ;;  %5042 = vmatpush.msra.mxu0 %v4993_v38  ;;  %4343 = vst.msk [vmem:[#allocation28] ss:$2 sm:$0xf] %vm7173_vm5, %v4337_v54  ;;  %v4941_v46 = vld [vmem:[#allocation25 + $0x830] sm:$0xff]  ;;  %v4942_v19 = vld [vmem:[#allocation25 + $0x838] sm:$0xff]  ;;  %v4935_v38 = vld [vmem:[#allocation25 + $0x800] sm:$0xff] }
0x1932   :  { %5062 = vmatpush.msrb.mxu1 %v4994_v28  ;;  %5003 = vmatpush.msrb.mxu2 %v4987_v42  ;;  %v4936_v2 = vld [vmem:[#allocation25 + $0x808] sm:$0xff]  ;;  %v4937_v28 = vld [vmem:[#allocation25 + $0x810] sm:$0xff]  ;;  %v4938_v42 = vld [vmem:[#allocation25 + $0x818] sm:$0xff] }
0x1933   :  { %5023 = vmatpush.msra.mxu3 %v4988_v55  ;;  %5043 = vmatpush.msra.mxu0 %v4989_v29  ;;  %v5145_v55 = vld [vmem:[#allocation25 + $0xbe0] sm:$0xff]  ;;  %v5146_v29 = vld [vmem:[#allocation25 + $0xbe8] sm:$0xff]  ;;  %v5147_v54 = vld [vmem:[#allocation25 + $0xbf0] sm:$0xff] }
0x1934   :  { %5063 = vmatpush.msrb.mxu1 %v4990_v58  ;;  %5004 = vmatpush.msrb.mxu2 %v4983_v11  ;;  %v5148_v58 = vld [vmem:[#allocation25 + $0xbf8] sm:$0xff]  ;;  %v5141_v11 = vld [vmem:[#allocation25 + $0xbc0] sm:$0xff] }
0x1935   :  { %5024 = vmatpush.msra.mxu3 %v4984_v39  ;;  %5044 = vmatpush.msra.mxu0 %v4985_v59  ;;  %v5142_v39 = vld [vmem:[#allocation25 + $0xbc8] sm:$0xff]  ;;  %v5143_v59 = vld [vmem:[#allocation25 + $0xbd0] sm:$0xff] }
0x1936   :  { %5064 = vmatpush.msrb.mxu1 %v4986_v43  ;;  %5005 = vmatpush.msrb.mxu2 %v4979_v15  ;;  %v5144_v43 = vld [vmem:[#allocation25 + $0xbd8] sm:$0xff]  ;;  %v5137_v15 = vld [vmem:[#allocation25 + $0xba0] sm:$0xff] }
0x1937   :  { %5025 = vmatpush.msra.mxu3 %v4980_v23  ;;  %5045 = vmatpush.msra.mxu0 %v4981_v49  ;;  %v5138_v23 = vld [vmem:[#allocation25 + $0xba8] sm:$0xff]  ;;  %v5139_v49 = vld [vmem:[#allocation25 + $0xbb0] sm:$0xff] }
0x1938   :  { %5065 = vmatpush.msrb.mxu1 %v4982_v26  ;;  %5006 = vmatpush.msrb.mxu2 %v4975_v18  ;;  %v5140_v26 = vld [vmem:[#allocation25 + $0xbb8] sm:$0xff]  ;;  %v5133_v18 = vld [vmem:[#allocation25 + $0xb80] sm:$0xff] }
0x1939   :  { %5026 = vmatpush.msra.mxu3 %v4976_v16  ;;  %5046 = vmatpush.msra.mxu0 %v4977_v24  ;;  %v5134_v16 = vld [vmem:[#allocation25 + $0xb88] sm:$0xff]  ;;  %v5135_v24 = vld [vmem:[#allocation25 + $0xb90] sm:$0xff] }
0x193a   :  { %5066 = vmatpush.msrb.mxu1 %v4978_v47  ;;  %5007 = vmatpush.msrb.mxu2 %v4971_v40  ;;  %v5136_v47 = vld [vmem:[#allocation25 + $0xb98] sm:$0xff]  ;;  %v5129_v40 = vld [vmem:[#allocation25 + $0xb60] sm:$0xff] }
0x193b   :  { %5027 = vmatpush.msra.mxu3 %v4972_v50  ;;  %5047 = vmatpush.msra.mxu0 %v4973_v51  ;;  %v5130_v50 = vld [vmem:[#allocation25 + $0xb68] sm:$0xff]  ;;  %v5131_v51 = vld [vmem:[#allocation25 + $0xb70] sm:$0xff] }
0x193c   :  { %5067 = vmatpush.msrb.mxu1 %v4974_v53  ;;  %5008 = vmatpush.msrb.mxu2 %v4967_v20  ;;  %v5132_v53 = vld [vmem:[#allocation25 + $0xb78] sm:$0xff]  ;;  %v5125_v20 = vld [vmem:[#allocation25 + $0xb40] sm:$0xff] }
0x193d   :  { %5028 = vmatpush.msra.mxu3 %v4968_v57  ;;  %5048 = vmatpush.msra.mxu0 %v4969_v33  ;;  %v5126_v57 = vld [vmem:[#allocation25 + $0xb48] sm:$0xff]  ;;  %v5127_v33 = vld [vmem:[#allocation25 + $0xb50] sm:$0xff] }
0x193e   :  { %5068 = vmatpush.msrb.mxu1 %v4970_v34  ;;  %5009 = vmatpush.msrb.mxu2 %v4963_v56  ;;  %v5128_v34 = vld [vmem:[#allocation25 + $0xb58] sm:$0xff]  ;;  %v5121_v56 = vld [vmem:[#allocation25 + $0xb20] sm:$0xff] }
0x193f   :  { %5029 = vmatpush.msra.mxu3 %v4964_v4  ;;  %5049 = vmatpush.msra.mxu0 %v4965_v1  ;;  %v5122_v4 = vld [vmem:[#allocation25 + $0xb28] sm:$0xff]  ;;  %v5123_v1 = vld [vmem:[#allocation25 + $0xb30] sm:$0xff] }
0x1940   :  { %5069 = vmatpush.msrb.mxu1 %v4966_v35  ;;  %5010 = vmatpush.msrb.mxu2 %v4959_v27  ;;  %v5124_v35 = vld [vmem:[#allocation25 + $0xb38] sm:$0xff]  ;;  %v5117_v27 = vld [vmem:[#allocation25 + $0xb00] sm:$0xff] }
0x1941   :  { %5030 = vmatpush.msra.mxu3 %v4960_v60  ;;  %5050 = vmatpush.msra.mxu0 %v4961_v0  ;;  %v5118_v60 = vld [vmem:[#allocation25 + $0xb08] sm:$0xff]  ;;  %v5119_v0 = vld [vmem:[#allocation25 + $0xb10] sm:$0xff] }
0x1942   :  { %5070 = vmatpush.msrb.mxu1 %v4962_v13  ;;  %5011 = vmatpush.msrb.mxu2 %v4955_v63  ;;  %v5120_v13 = vld [vmem:[#allocation25 + $0xb18] sm:$0xff]  ;;  %v5113_v63 = vld [vmem:[#allocation25 + $0xae0] sm:$0xff] }
0x1943   :  { %5031 = vmatpush.msra.mxu3 %v4956_v8  ;;  %5051 = vmatpush.msra.mxu0 %v4957_v9  ;;  %v5114_v8 = vld [vmem:[#allocation25 + $0xae8] sm:$0xff]  ;;  %v5115_v9 = vld [vmem:[#allocation25 + $0xaf0] sm:$0xff] }
0x1944   :  { %5071 = vmatpush.msrb.mxu1 %v4958_v14  ;;  %5012 = vmatpush.msrb.mxu2 %v4951_v10  ;;  %v5116_v14 = vld [vmem:[#allocation25 + $0xaf8] sm:$0xff]  ;;  %v5109_v10 = vld [vmem:[#allocation25 + $0xac0] sm:$0xff] }
0x1945   :  { %5032 = vmatpush.msra.mxu3 %v4952_v44  ;;  %5052 = vmatpush.msra.mxu0 %v4953_v3  ;;  %v5110_v44 = vld [vmem:[#allocation25 + $0xac8] sm:$0xff]  ;;  %v5111_v3 = vld [vmem:[#allocation25 + $0xad0] sm:$0xff] }
0x1946   :  { %5072 = vmatpush.msrb.mxu1 %v4954_v36  ;;  %5013 = vmatpush.msrb.mxu2 %v4947_v31  ;;  %v5112_v36 = vld [vmem:[#allocation25 + $0xad8] sm:$0xff]  ;;  %v5105_v31 = vld [vmem:[#allocation25 + $0xaa0] sm:$0xff] }
0x1947   :  { %5033 = vmatpush.msra.mxu3 %v4948_v25  ;;  %5053 = vmatpush.msra.mxu0 %v4949_v22  ;;  %v5106_v25 = vld [vmem:[#allocation25 + $0xaa8] sm:$0xff]  ;;  %v5107_v22 = vld [vmem:[#allocation25 + $0xab0] sm:$0xff] }
0x1948   :  { %5073 = vmatpush.msrb.mxu1 %v4950_v7  ;;  %5014 = vmatpush.msrb.mxu2 %v4943_v30  ;;  %v5108_v7 = vld [vmem:[#allocation25 + $0xab8] sm:$0xff]  ;;  %v5101_v30 = vld [vmem:[#allocation25 + $0xa80] sm:$0xff] }
0x1949   :  { %5034 = vmatpush.msra.mxu3 %v4944_v62  ;;  %5054 = vmatpush.msra.mxu0 %v4945_v17  ;;  %v5102_v62 = vld [vmem:[#allocation25 + $0xa88] sm:$0xff]  ;;  %v5103_v17 = vld [vmem:[#allocation25 + $0xa90] sm:$0xff] }
0x194a   :  { %5074 = vmatpush.msrb.mxu1 %v4946_v32  ;;  %5015 = vmatpush.msrb.mxu2 %v4939_v37  ;;  %v5104_v32 = vld [vmem:[#allocation25 + $0xa98] sm:$0xff]  ;;  %v5097_v37 = vld [vmem:[#allocation25 + $0xa60] sm:$0xff] }
0x194b   :  { %5035 = vmatpush.msra.mxu3 %v4940_v61  ;;  %5055 = vmatpush.msra.mxu0 %v4941_v46  ;;  %v5098_v61 = vld [vmem:[#allocation25 + $0xa68] sm:$0xff]  ;;  %v5099_v46 = vld [vmem:[#allocation25 + $0xa70] sm:$0xff] }
0x194c   :  { %5075 = vmatpush.msrb.mxu1 %v4942_v19  ;;  %5016 = vmatpush.msrb.mxu2 %v4935_v38  ;;  %v5100_v19 = vld [vmem:[#allocation25 + $0xa78] sm:$0xff]  ;;  %v5093_v38 = vld [vmem:[#allocation25 + $0xa40] sm:$0xff] }
0x194d   :  { %5036 = vmatpush.msra.mxu3 %v4936_v2  ;;  %5056 = vmatpush.msra.mxu0 %v4937_v28  ;;  %v5094_v2 = vld [vmem:[#allocation25 + $0xa48] sm:$0xff]  ;;  %v5095_v28 = vld [vmem:[#allocation25 + $0xa50] sm:$0xff] }
0x194e   :  { %5076 = vmatpush.msrb.mxu1 %v4938_v42  ;;  %5017 = vmatmul.f32.vlgmr.msrb.gmra.mxu2 %v4999_v45  ;;  %v5096_v42 = vld [vmem:[#allocation25 + $0xa58] sm:$0xff] }
0x194f   :  { %5037 = vmatmul.f32.vlgmr.msra.gmra.mxu3 %v4999_v45  ;;  %5057 = vmatmul.f32.vlgmr.msra.gmra.mxu0 %v4999_v45 }
0x1950   :  { %5077 = vmatmul.f32.vlgmr.msrb.gmra.mxu1 %v4999_v45  ;;  %5151 = vmatpush.msra.mxu2 %v5145_v55  ;;  %v5089_v45 = vld [vmem:[#allocation25 + $0xa20] sm:$0xff]  ;;  %v5090_v55 = vld [vmem:[#allocation25 + $0xa28] sm:$0xff] }
0x1951   :  { %5171 = vmatpush.msrb.mxu3 %v5146_v29  ;;  %5191 = vmatpush.msrb.mxu0 %v5147_v54  ;;  %v5091_v29 = vld [vmem:[#allocation25 + $0xa30] sm:$0xff]  ;;  %v5092_v54 = vld [vmem:[#allocation25 + $0xa38] sm:$0xff] }
0x1952   :  { %5211 = vmatpush.msra.mxu1 %v5148_v58  ;;  %5152 = vmatpush.msra.mxu2 %v5141_v11  ;;  %v5085_v58 = vld [vmem:[#allocation25 + $0xa00] sm:$0xff]  ;;  %v5086_v11 = vld [vmem:[#allocation25 + $0xa08] sm:$0xff] }
0x1953   :  { %5172 = vmatpush.msrb.mxu3 %v5142_v39  ;;  %5192 = vmatpush.msrb.mxu0 %v5143_v59  ;;  %v5087_v39 = vld [vmem:[#allocation25 + $0xa10] sm:$0xff]  ;;  %v5088_v59 = vld [vmem:[#allocation25 + $0xa18] sm:$0xff] }
0x1954   :  { %5212 = vmatpush.msra.mxu1 %v5144_v43  ;;  %5153 = vmatpush.msra.mxu2 %v5137_v15  ;;  %v5149_v43 = vrot.slane %v7078_v12, 5  ;;  %v5295_v15 = vld [vmem:[#allocation25 + $0xde0] sm:$0xff] }
0x1955   :  { %5173 = vmatpush.msrb.mxu3 %v5138_v23  ;;  %5193 = vmatpush.msrb.mxu0 %v5139_v49  ;;  %v5296_v23 = vld [vmem:[#allocation25 + $0xde8] sm:$0xff]  ;;  %v5297_v49 = vld [vmem:[#allocation25 + $0xdf0] sm:$0xff] }
0x1956   :  { %5213 = vmatpush.msra.mxu1 %v5140_v26  ;;  %5154 = vmatpush.msra.mxu2 %v5133_v18  ;;  %v5298_v26 = vld [vmem:[#allocation25 + $0xdf8] sm:$0xff]  ;;  %v5291_v18 = vld [vmem:[#allocation25 + $0xdc0] sm:$0xff] }
0x1957   :  { %5174 = vmatpush.msrb.mxu3 %v5134_v16  ;;  %5194 = vmatpush.msrb.mxu0 %v5135_v24  ;;  %v5292_v16 = vld [vmem:[#allocation25 + $0xdc8] sm:$0xff]  ;;  %v5293_v24 = vld [vmem:[#allocation25 + $0xdd0] sm:$0xff] }
0x1958   :  { %5214 = vmatpush.msra.mxu1 %v5136_v47  ;;  %5155 = vmatpush.msra.mxu2 %v5129_v40  ;;  %v5294_v47 = vld [vmem:[#allocation25 + $0xdd8] sm:$0xff]  ;;  %v5287_v40 = vld [vmem:[#allocation25 + $0xda0] sm:$0xff] }
0x1959   :  { %5175 = vmatpush.msrb.mxu3 %v5130_v50  ;;  %5195 = vmatpush.msrb.mxu0 %v5131_v51  ;;  %v5288_v50 = vld [vmem:[#allocation25 + $0xda8] sm:$0xff]  ;;  %v5289_v51 = vld [vmem:[#allocation25 + $0xdb0] sm:$0xff] }
0x195a   :  { %5215 = vmatpush.msra.mxu1 %v5132_v53  ;;  %5156 = vmatpush.msra.mxu2 %v5125_v20  ;;  %v5290_v53 = vld [vmem:[#allocation25 + $0xdb8] sm:$0xff]  ;;  %v5283_v20 = vld [vmem:[#allocation25 + $0xd80] sm:$0xff] }
0x195b   :  { %5176 = vmatpush.msrb.mxu3 %v5126_v57  ;;  %5196 = vmatpush.msrb.mxu0 %v5127_v33  ;;  %v5284_v57 = vld [vmem:[#allocation25 + $0xd88] sm:$0xff]  ;;  %v5285_v33 = vld [vmem:[#allocation25 + $0xd90] sm:$0xff] }
0x195c   :  { %5216 = vmatpush.msra.mxu1 %v5128_v34  ;;  %5157 = vmatpush.msra.mxu2 %v5121_v56  ;;  %v5286_v34 = vld [vmem:[#allocation25 + $0xd98] sm:$0xff]  ;;  %v5279_v56 = vld [vmem:[#allocation25 + $0xd60] sm:$0xff] }
0x195d   :  { %5177 = vmatpush.msrb.mxu3 %v5122_v4  ;;  %5197 = vmatpush.msrb.mxu0 %v5123_v1  ;;  %v5280_v4 = vld [vmem:[#allocation25 + $0xd68] sm:$0xff]  ;;  %v5281_v1 = vld [vmem:[#allocation25 + $0xd70] sm:$0xff] }
0x195e   :  { %5217 = vmatpush.msra.mxu1 %v5124_v35  ;;  %5158 = vmatpush.msra.mxu2 %v5117_v27  ;;  %v5282_v35 = vld [vmem:[#allocation25 + $0xd78] sm:$0xff]  ;;  %v5275_v27 = vld [vmem:[#allocation25 + $0xd40] sm:$0xff] }
0x195f   :  { %5178 = vmatpush.msrb.mxu3 %v5118_v60  ;;  %5198 = vmatpush.msrb.mxu0 %v5119_v0  ;;  %v5276_v60 = vld [vmem:[#allocation25 + $0xd48] sm:$0xff]  ;;  %v5277_v0 = vld [vmem:[#allocation25 + $0xd50] sm:$0xff] }
0x1960   :  { %5218 = vmatpush.msra.mxu1 %v5120_v13  ;;  %5159 = vmatpush.msra.mxu2 %v5113_v63  ;;  %v5278_v13 = vld [vmem:[#allocation25 + $0xd58] sm:$0xff]  ;;  %v5271_v63 = vld [vmem:[#allocation25 + $0xd20] sm:$0xff] }
0x1961   :  { %5179 = vmatpush.msrb.mxu3 %v5114_v8  ;;  %5199 = vmatpush.msrb.mxu0 %v5115_v9  ;;  %v5272_v8 = vld [vmem:[#allocation25 + $0xd28] sm:$0xff]  ;;  %v5273_v9 = vld [vmem:[#allocation25 + $0xd30] sm:$0xff] }
0x1962   :  { %5219 = vmatpush.msra.mxu1 %v5116_v14  ;;  %5160 = vmatpush.msra.mxu2 %v5109_v10  ;;  %v5274_v14 = vld [vmem:[#allocation25 + $0xd38] sm:$0xff]  ;;  %v5267_v10 = vld [vmem:[#allocation25 + $0xd00] sm:$0xff] }
0x1963   :  { %5180 = vmatpush.msrb.mxu3 %v5110_v44  ;;  %5200 = vmatpush.msrb.mxu0 %v5111_v3  ;;  %v5268_v44 = vld [vmem:[#allocation25 + $0xd08] sm:$0xff]  ;;  %v5269_v3 = vld [vmem:[#allocation25 + $0xd10] sm:$0xff] }
0x1964   :  { %5220 = vmatpush.msra.mxu1 %v5112_v36  ;;  %5161 = vmatpush.msra.mxu2 %v5105_v31  ;;  %v5270_v36 = vld [vmem:[#allocation25 + $0xd18] sm:$0xff]  ;;  %v5263_v31 = vld [vmem:[#allocation25 + $0xce0] sm:$0xff] }
0x1965   :  { %5181 = vmatpush.msrb.mxu3 %v5106_v25  ;;  %5201 = vmatpush.msrb.mxu0 %v5107_v22  ;;  %v5264_v25 = vld [vmem:[#allocation25 + $0xce8] sm:$0xff]  ;;  %v5265_v22 = vld [vmem:[#allocation25 + $0xcf0] sm:$0xff] }
0x1966   :  { %5221 = vmatpush.msra.mxu1 %v5108_v7  ;;  %5162 = vmatpush.msra.mxu2 %v5101_v30  ;;  %v5266_v7 = vld [vmem:[#allocation25 + $0xcf8] sm:$0xff]  ;;  %v5259_v30 = vld [vmem:[#allocation25 + $0xcc0] sm:$0xff] }
0x1967   :  { %5182 = vmatpush.msrb.mxu3 %v5102_v62  ;;  %5202 = vmatpush.msrb.mxu0 %v5103_v17  ;;  %v5260_v62 = vld [vmem:[#allocation25 + $0xcc8] sm:$0xff]  ;;  %v5261_v17 = vld [vmem:[#allocation25 + $0xcd0] sm:$0xff] }
0x1968   :  { %5222 = vmatpush.msra.mxu1 %v5104_v32  ;;  %5163 = vmatpush.msra.mxu2 %v5097_v37  ;;  %v5262_v32 = vld [vmem:[#allocation25 + $0xcd8] sm:$0xff]  ;;  %v5255_v37 = vld [vmem:[#allocation25 + $0xca0] sm:$0xff] }
0x1969   :  { %5183 = vmatpush.msrb.mxu3 %v5098_v61  ;;  %5203 = vmatpush.msrb.mxu0 %v5099_v46  ;;  %v5256_v61 = vld [vmem:[#allocation25 + $0xca8] sm:$0xff]  ;;  %v5257_v46 = vld [vmem:[#allocation25 + $0xcb0] sm:$0xff] }
0x196a   :  { %5223 = vmatpush.msra.mxu1 %v5100_v19  ;;  %5164 = vmatpush.msra.mxu2 %v5093_v38  ;;  %v5258_v19 = vld [vmem:[#allocation25 + $0xcb8] sm:$0xff]  ;;  %v5251_v38 = vld [vmem:[#allocation25 + $0xc80] sm:$0xff] }
0x196b   :  { %5184 = vmatpush.msrb.mxu3 %v5094_v2  ;;  %5204 = vmatpush.msrb.mxu0 %v5095_v28  ;;  %v5252_v2 = vld [vmem:[#allocation25 + $0xc88] sm:$0xff]  ;;  %v5253_v28 = vld [vmem:[#allocation25 + $0xc90] sm:$0xff] }
0x196c   :  { %5224 = vmatpush.msra.mxu1 %v5096_v42  ;;  %5165 = vmatpush.msra.mxu2 %v5089_v45  ;;  %v5254_v42 = vld [vmem:[#allocation25 + $0xc98] sm:$0xff]  ;;  %v5247_v45 = vld [vmem:[#allocation25 + $0xc60] sm:$0xff] }
0x196d   :  { %5185 = vmatpush.msrb.mxu3 %v5090_v55  ;;  %5205 = vmatpush.msrb.mxu0 %v5091_v29  ;;  %v5248_v55 = vld [vmem:[#allocation25 + $0xc68] sm:$0xff]  ;;  %v5249_v29 = vld [vmem:[#allocation25 + $0xc70] sm:$0xff] }
0x196e   :  { %5225 = vmatpush.msra.mxu1 %v5092_v54  ;;  %5166 = vmatpush.msra.mxu2 %v5085_v58  ;;  %v5250_v54 = vld [vmem:[#allocation25 + $0xc78] sm:$0xff]  ;;  %v5243_v58 = vld [vmem:[#allocation25 + $0xc40] sm:$0xff] }
0x196f   :  { %5186 = vmatpush.msrb.mxu3 %v5086_v11  ;;  %5206 = vmatpush.msrb.mxu0 %v5087_v39  ;;  %v5244_v11 = vld [vmem:[#allocation25 + $0xc48] sm:$0xff]  ;;  %v5245_v39 = vld [vmem:[#allocation25 + $0xc50] sm:$0xff] }
0x1970   :  { %5226 = vmatpush.msra.mxu1 %v5088_v59  ;;  %5167 = vmatmul.f32.vlgmr.msra.gmra.mxu2 %v5149_v43  ;;  %v5246_v59 = vld [vmem:[#allocation25 + $0xc58] sm:$0xff] }
0x1971   :  { %5187 = vmatmul.f32.vlgmr.msrb.gmra.mxu3 %v5149_v43  ;;  %5207 = vmatmul.f32.vlgmr.msrb.gmra.mxu0 %v5149_v43 }
0x1972   :  { %5227 = vmatmul.f32.vlgmr.msra.gmra.mxu1 %v5149_v43  ;;  %5301 = vmatpush.msrb.mxu2 %v5295_v15  ;;  %v5239_v43 = vld [vmem:[#allocation25 + $0xc20] sm:$0xff]  ;;  %v5240_v15 = vld [vmem:[#allocation25 + $0xc28] sm:$0xff] }
0x1973   :  { %5321 = vmatpush.msra.mxu3 %v5296_v23  ;;  %5341 = vmatpush.msra.mxu0 %v5297_v49  ;;  %v5241_v23 = vld [vmem:[#allocation25 + $0xc30] sm:$0xff]  ;;  %v5242_v49 = vld [vmem:[#allocation25 + $0xc38] sm:$0xff] }
0x1974   :  { %5361 = vmatpush.msrb.mxu1 %v5298_v26  ;;  %5302 = vmatpush.msrb.mxu2 %v5291_v18  ;;  %v5235_v26 = vld [vmem:[#allocation25 + $0xc00] sm:$0xff]  ;;  %v5236_v18 = vld [vmem:[#allocation25 + $0xc08] sm:$0xff] }
0x1975   :  { %5322 = vmatpush.msra.mxu3 %v5292_v16  ;;  %5342 = vmatpush.msra.mxu0 %v5293_v24  ;;  %v5237_v16 = vld [vmem:[#allocation25 + $0xc10] sm:$0xff]  ;;  %v5238_v24 = vld [vmem:[#allocation25 + $0xc18] sm:$0xff] }
0x1976   :  { %5362 = vmatpush.msrb.mxu1 %v5294_v47  ;;  %5303 = vmatpush.msrb.mxu2 %v5287_v40  ;;  %v5299_v47 = vrot.slane %v7078_v12, 6  ;;  %v5445_v40 = vld [vmem:[#allocation25 + $0xfe0] sm:$0xff] }
0x1977   :  { %5323 = vmatpush.msra.mxu3 %v5288_v50  ;;  %5343 = vmatpush.msra.mxu0 %v5289_v51  ;;  %v5446_v50 = vld [vmem:[#allocation25 + $0xfe8] sm:$0xff]  ;;  %v5447_v51 = vld [vmem:[#allocation25 + $0xff0] sm:$0xff] }
0x1978   :  { %5363 = vmatpush.msrb.mxu1 %v5290_v53  ;;  %5304 = vmatpush.msrb.mxu2 %v5283_v20  ;;  %v5448_v53 = vld [vmem:[#allocation25 + $0xff8] sm:$0xff]  ;;  %v5441_v20 = vld [vmem:[#allocation25 + $0xfc0] sm:$0xff] }
0x1979   :  { %5324 = vmatpush.msra.mxu3 %v5284_v57  ;;  %5344 = vmatpush.msra.mxu0 %v5285_v33  ;;  %v5442_v57 = vld [vmem:[#allocation25 + $0xfc8] sm:$0xff]  ;;  %v5443_v33 = vld [vmem:[#allocation25 + $0xfd0] sm:$0xff] }
0x197a   :  { %5364 = vmatpush.msrb.mxu1 %v5286_v34  ;;  %5305 = vmatpush.msrb.mxu2 %v5279_v56  ;;  %v5444_v34 = vld [vmem:[#allocation25 + $0xfd8] sm:$0xff]  ;;  %v5437_v56 = vld [vmem:[#allocation25 + $0xfa0] sm:$0xff] }
0x197b   :  { %5325 = vmatpush.msra.mxu3 %v5280_v4  ;;  %5345 = vmatpush.msra.mxu0 %v5281_v1  ;;  %v5438_v4 = vld [vmem:[#allocation25 + $0xfa8] sm:$0xff]  ;;  %v5439_v1 = vld [vmem:[#allocation25 + $0xfb0] sm:$0xff] }
0x197c   :  { %5365 = vmatpush.msrb.mxu1 %v5282_v35  ;;  %5306 = vmatpush.msrb.mxu2 %v5275_v27  ;;  %v5440_v35 = vld [vmem:[#allocation25 + $0xfb8] sm:$0xff]  ;;  %v5433_v27 = vld [vmem:[#allocation25 + $0xf80] sm:$0xff] }
0x197d   :  { %5326 = vmatpush.msra.mxu3 %v5276_v60  ;;  %5346 = vmatpush.msra.mxu0 %v5277_v0  ;;  %v5434_v60 = vld [vmem:[#allocation25 + $0xf88] sm:$0xff]  ;;  %v5435_v0 = vld [vmem:[#allocation25 + $0xf90] sm:$0xff] }
0x197e   :  { %5366 = vmatpush.msrb.mxu1 %v5278_v13  ;;  %5307 = vmatpush.msrb.mxu2 %v5271_v63  ;;  %v5436_v13 = vld [vmem:[#allocation25 + $0xf98] sm:$0xff]  ;;  %v5429_v63 = vld [vmem:[#allocation25 + $0xf60] sm:$0xff] }
0x197f   :  { %5327 = vmatpush.msra.mxu3 %v5272_v8  ;;  %5347 = vmatpush.msra.mxu0 %v5273_v9  ;;  %v5430_v8 = vld [vmem:[#allocation25 + $0xf68] sm:$0xff]  ;;  %v5431_v9 = vld [vmem:[#allocation25 + $0xf70] sm:$0xff] }
0x1980   :  { %5367 = vmatpush.msrb.mxu1 %v5274_v14  ;;  %5308 = vmatpush.msrb.mxu2 %v5267_v10  ;;  %v5432_v14 = vld [vmem:[#allocation25 + $0xf78] sm:$0xff]  ;;  %v5425_v10 = vld [vmem:[#allocation25 + $0xf40] sm:$0xff] }
0x1981   :  { %5328 = vmatpush.msra.mxu3 %v5268_v44  ;;  %5348 = vmatpush.msra.mxu0 %v5269_v3  ;;  %v5426_v44 = vld [vmem:[#allocation25 + $0xf48] sm:$0xff]  ;;  %v5427_v3 = vld [vmem:[#allocation25 + $0xf50] sm:$0xff] }
0x1982   :  { %5368 = vmatpush.msrb.mxu1 %v5270_v36  ;;  %5309 = vmatpush.msrb.mxu2 %v5263_v31  ;;  %v5428_v36 = vld [vmem:[#allocation25 + $0xf58] sm:$0xff]  ;;  %v5421_v31 = vld [vmem:[#allocation25 + $0xf20] sm:$0xff] }
0x1983   :  { %5329 = vmatpush.msra.mxu3 %v5264_v25  ;;  %5349 = vmatpush.msra.mxu0 %v5265_v22  ;;  %v5422_v25 = vld [vmem:[#allocation25 + $0xf28] sm:$0xff]  ;;  %v5423_v22 = vld [vmem:[#allocation25 + $0xf30] sm:$0xff] }
0x1984   :  { %5369 = vmatpush.msrb.mxu1 %v5266_v7  ;;  %5310 = vmatpush.msrb.mxu2 %v5259_v30  ;;  %v5424_v7 = vld [vmem:[#allocation25 + $0xf38] sm:$0xff]  ;;  %v5417_v30 = vld [vmem:[#allocation25 + $0xf00] sm:$0xff] }
0x1985   :  { %5330 = vmatpush.msra.mxu3 %v5260_v62  ;;  %5350 = vmatpush.msra.mxu0 %v5261_v17  ;;  %v5418_v62 = vld [vmem:[#allocation25 + $0xf08] sm:$0xff]  ;;  %v5419_v17 = vld [vmem:[#allocation25 + $0xf10] sm:$0xff] }
0x1986   :  { %5370 = vmatpush.msrb.mxu1 %v5262_v32  ;;  %5311 = vmatpush.msrb.mxu2 %v5255_v37  ;;  %v5420_v32 = vld [vmem:[#allocation25 + $0xf18] sm:$0xff]  ;;  %v5413_v37 = vld [vmem:[#allocation25 + $0xee0] sm:$0xff] }
0x1987   :  { %5331 = vmatpush.msra.mxu3 %v5256_v61  ;;  %5351 = vmatpush.msra.mxu0 %v5257_v46  ;;  %v5414_v61 = vld [vmem:[#allocation25 + $0xee8] sm:$0xff]  ;;  %v5415_v46 = vld [vmem:[#allocation25 + $0xef0] sm:$0xff] }
0x1988   :  { %5371 = vmatpush.msrb.mxu1 %v5258_v19  ;;  %5312 = vmatpush.msrb.mxu2 %v5251_v38  ;;  %v5416_v19 = vld [vmem:[#allocation25 + $0xef8] sm:$0xff]  ;;  %v5409_v38 = vld [vmem:[#allocation25 + $0xec0] sm:$0xff] }
0x1989   :  { %5332 = vmatpush.msra.mxu3 %v5252_v2  ;;  %5352 = vmatpush.msra.mxu0 %v5253_v28  ;;  %v5410_v2 = vld [vmem:[#allocation25 + $0xec8] sm:$0xff]  ;;  %v5411_v28 = vld [vmem:[#allocation25 + $0xed0] sm:$0xff] }
0x198a   :  { %5372 = vmatpush.msrb.mxu1 %v5254_v42  ;;  %5313 = vmatpush.msrb.mxu2 %v5247_v45  ;;  %v5412_v42 = vld [vmem:[#allocation25 + $0xed8] sm:$0xff]  ;;  %v5405_v45 = vld [vmem:[#allocation25 + $0xea0] sm:$0xff] }
0x198b   :  { %5333 = vmatpush.msra.mxu3 %v5248_v55  ;;  %5353 = vmatpush.msra.mxu0 %v5249_v29  ;;  %v5406_v55 = vld [vmem:[#allocation25 + $0xea8] sm:$0xff]  ;;  %v5407_v29 = vld [vmem:[#allocation25 + $0xeb0] sm:$0xff] }
0x198c   :  { %5373 = vmatpush.msrb.mxu1 %v5250_v54  ;;  %5314 = vmatpush.msrb.mxu2 %v5243_v58  ;;  %v5408_v54 = vld [vmem:[#allocation25 + $0xeb8] sm:$0xff]  ;;  %v5401_v58 = vld [vmem:[#allocation25 + $0xe80] sm:$0xff] }
0x198d   :  { %5334 = vmatpush.msra.mxu3 %v5244_v11  ;;  %5354 = vmatpush.msra.mxu0 %v5245_v39  ;;  %v5402_v11 = vld [vmem:[#allocation25 + $0xe88] sm:$0xff]  ;;  %v5403_v39 = vld [vmem:[#allocation25 + $0xe90] sm:$0xff] }
0x198e   :  { %5374 = vmatpush.msrb.mxu1 %v5246_v59  ;;  %5315 = vmatpush.msrb.mxu2 %v5239_v43  ;;  %v5404_v59 = vld [vmem:[#allocation25 + $0xe98] sm:$0xff]  ;;  %v5397_v43 = vld [vmem:[#allocation25 + $0xe60] sm:$0xff] }
0x198f   :  { %5335 = vmatpush.msra.mxu3 %v5240_v15  ;;  %5355 = vmatpush.msra.mxu0 %v5241_v23  ;;  %v5398_v15 = vld [vmem:[#allocation25 + $0xe68] sm:$0xff]  ;;  %v5399_v23 = vld [vmem:[#allocation25 + $0xe70] sm:$0xff] }
0x1990   :  { %5375 = vmatpush.msrb.mxu1 %v5242_v49  ;;  %5316 = vmatpush.msrb.mxu2 %v5235_v26  ;;  %v5400_v49 = vld [vmem:[#allocation25 + $0xe78] sm:$0xff]  ;;  %v5393_v26 = vld [vmem:[#allocation25 + $0xe40] sm:$0xff] }
0x1991   :  { %5336 = vmatpush.msra.mxu3 %v5236_v18  ;;  %5356 = vmatpush.msra.mxu0 %v5237_v16  ;;  %v5394_v18 = vld [vmem:[#allocation25 + $0xe48] sm:$0xff]  ;;  %v5395_v16 = vld [vmem:[#allocation25 + $0xe50] sm:$0xff] }
0x1992   :  { %5376 = vmatpush.msrb.mxu1 %v5238_v24  ;;  %5317 = vmatmul.f32.vlgmr.msrb.gmra.mxu2 %v5299_v47  ;;  %v5396_v24 = vld [vmem:[#allocation25 + $0xe58] sm:$0xff] }
0x1993   :  { %5337 = vmatmul.f32.vlgmr.msra.gmra.mxu3 %v5299_v47  ;;  %5357 = vmatmul.f32.vlgmr.msra.gmra.mxu0 %v5299_v47 }
0x1994   :  { %5377 = vmatmul.f32.vlgmr.msrb.gmra.mxu1 %v5299_v47  ;;  %5451 = vmatpush.msra.mxu2 %v5445_v40  ;;  %v5389_v47 = vld [vmem:[#allocation25 + $0xe20] sm:$0xff]  ;;  %v5390_v40 = vld [vmem:[#allocation25 + $0xe28] sm:$0xff] }
0x1995   :  { %5471 = vmatpush.msrb.mxu3 %v5446_v50  ;;  %5491 = vmatpush.msrb.mxu0 %v5447_v51  ;;  %v5391_v50 = vld [vmem:[#allocation25 + $0xe30] sm:$0xff]  ;;  %v5392_v51 = vld [vmem:[#allocation25 + $0xe38] sm:$0xff] }
0x1996   :  { %5511 = vmatpush.msra.mxu1 %v5448_v53  ;;  %5452 = vmatpush.msra.mxu2 %v5441_v20  ;;  %v5385_v53 = vld [vmem:[#allocation25 + $0xe00] sm:$0xff]  ;;  %v5386_v20 = vld [vmem:[#allocation25 + $0xe08] sm:$0xff] }
0x1997   :  { %5472 = vmatpush.msrb.mxu3 %v5442_v57  ;;  %5492 = vmatpush.msrb.mxu0 %v5443_v33  ;;  %v5387_v57 = vld [vmem:[#allocation25 + $0xe10] sm:$0xff]  ;;  %v5388_v33 = vld [vmem:[#allocation25 + $0xe18] sm:$0xff] }
0x1998   :  { %5512 = vmatpush.msra.mxu1 %v5444_v34  ;;  %5453 = vmatpush.msra.mxu2 %v5437_v56  ;;  %v5449_v34 = vrot.slane %v7078_v12, 7  ;;  %v4532_v56 = vpop.f32.mrf.mxu0 }
0x1999   :  { %5473 = vmatpush.msrb.mxu3 %v5438_v4  ;;  %5493 = vmatpush.msrb.mxu0 %v5439_v1  ;;  %v4552_v4 = vpop.f32.mrf.mxu1  ;;  %v4492_v1 = vpop.f32.mrf.mxu2 }
0x199a   :  { %5513 = vmatpush.msra.mxu1 %v5440_v35  ;;  %5454 = vmatpush.msra.mxu2 %v5433_v27  ;;  %v4512_v35 = vpop.f32.mrf.mxu3 }
0x199b   :  { %5474 = vmatpush.msrb.mxu3 %v5434_v60  ;;  %5494 = vmatpush.msrb.mxu0 %v5435_v0 }
0x199c   :  { %5514 = vmatpush.msra.mxu1 %v5436_v13  ;;  %5455 = vmatpush.msra.mxu2 %v5429_v63 }
0x199d   :  { %5475 = vmatpush.msrb.mxu3 %v5430_v8  ;;  %5495 = vmatpush.msrb.mxu0 %v5431_v9 }
0x199e   :  { %5515 = vmatpush.msra.mxu1 %v5432_v14  ;;  %5456 = vmatpush.msra.mxu2 %v5425_v10 }
0x199f   :  { %5476 = vmatpush.msrb.mxu3 %v5426_v44  ;;  %5496 = vmatpush.msrb.mxu0 %v5427_v3 }
0x19a0   :  { %5516 = vmatpush.msra.mxu1 %v5428_v36  ;;  %5457 = vmatpush.msra.mxu2 %v5421_v31  ;;  %v4612_v27 = vpop.f32.mrf.mxu0 }
0x19a1   :  { %5477 = vmatpush.msrb.mxu3 %v5422_v25  ;;  %5497 = vmatpush.msrb.mxu0 %v5423_v22  ;;  %v4632_v60 = vpop.f32.mrf.mxu1  ;;  %v4572_v0 = vpop.f32.mrf.mxu2 }
0x19a2   :  { %5517 = vmatpush.msra.mxu1 %v5424_v7  ;;  %5458 = vmatpush.msra.mxu2 %v5417_v30  ;;  %v4592_v13 = vpop.f32.mrf.mxu3 }
0x19a3   :  { %5478 = vmatpush.msrb.mxu3 %v5418_v62  ;;  %5498 = vmatpush.msrb.mxu0 %v5419_v17  ;;  %v4613_v62 = vadd.f32 %v4612_v27, %v4532_v56 }
0x19a4   :  { %5518 = vmatpush.msra.mxu1 %v5420_v32  ;;  %5459 = vmatpush.msra.mxu2 %v5413_v37  ;;  %v4633_v32 = vadd.f32 %v4632_v60, %v4552_v4 }
0x19a5   :  { %5479 = vmatpush.msrb.mxu3 %v5414_v61  ;;  %5499 = vmatpush.msrb.mxu0 %v5415_v46 }
0x19a6   :  { %5519 = vmatpush.msra.mxu1 %v5416_v19  ;;  %5460 = vmatpush.msra.mxu2 %v5409_v38 }
0x19a7   :  { %5480 = vmatpush.msrb.mxu3 %v5410_v2  ;;  %5500 = vmatpush.msrb.mxu0 %v5411_v28 }
0x19a8   :  { %5520 = vmatpush.msra.mxu1 %v5412_v42  ;;  %5461 = vmatpush.msra.mxu2 %v5405_v45  ;;  %v4758_v63 = vpop.f32.mrf.mxu0  ;;  %v4573_v42 = vadd.f32 %v4572_v0, %v4492_v1  ;;  %v4593_v45 = vadd.f32 %v4592_v13, %v4512_v35 }
0x19a9   :  { %5481 = vmatpush.msrb.mxu3 %v5406_v55  ;;  %5501 = vmatpush.msrb.mxu0 %v5407_v29  ;;  %v4778_v8 = vpop.f32.mrf.mxu1  ;;  %v4718_v9 = vpop.f32.mrf.mxu2  ;;  %v4783_v61 = vadd.f32 %v4758_v63, %v4613_v62 }
0x19aa   :  { %5521 = vmatpush.msra.mxu1 %v5408_v54  ;;  %5462 = vmatpush.msra.mxu2 %v5401_v58  ;;  %v4738_v14 = vpop.f32.mrf.mxu3  ;;  %v4784_v46 = vadd.f32 %v4778_v8, %v4633_v32  ;;  %v4781_v54 = vadd.f32 %v4718_v9, %v4573_v42 }
0x19ab   :  { %5482 = vmatpush.msrb.mxu3 %v5402_v11  ;;  %5502 = vmatpush.msrb.mxu0 %v5403_v39  ;;  %v4782_v58 = vadd.f32 %v4738_v14, %v4593_v45 }
0x19ac   :  { %5522 = vmatpush.msra.mxu1 %v5404_v59  ;;  %5463 = vmatpush.msra.mxu2 %v5397_v43 }
0x19ad   :  { %5483 = vmatpush.msrb.mxu3 %v5398_v15  ;;  %5503 = vmatpush.msrb.mxu0 %v5399_v23 }
0x19ae   :  { %5523 = vmatpush.msra.mxu1 %v5400_v49  ;;  %5464 = vmatpush.msra.mxu2 %v5393_v26 }
0x19af   :  { %5484 = vmatpush.msrb.mxu3 %v5394_v18  ;;  %5504 = vmatpush.msrb.mxu0 %v5395_v16 }
0x19b0   :  { %5524 = vmatpush.msra.mxu1 %v5396_v24  ;;  %5465 = vmatpush.msra.mxu2 %v5389_v47  ;;  %v4908_v12 = vpop.f32.mrf.mxu0 }
0x19b1   :  { %5485 = vmatpush.msrb.mxu3 %v5390_v40  ;;  %5505 = vmatpush.msrb.mxu0 %v5391_v50  ;;  %v4928_v10 = vpop.f32.mrf.mxu1  ;;  %v4868_v44 = vpop.f32.mrf.mxu2  ;;  %v4933_v38 = vadd.f32 %v4908_v12, %v4783_v61 }
0x19b2   :  { %5525 = vmatpush.msra.mxu1 %v5392_v51  ;;  %5466 = vmatpush.msra.mxu2 %v5385_v53  ;;  %v4888_v3 = vpop.f32.mrf.mxu3  ;;  %v4934_v28 = vadd.f32 %v4928_v10, %v4784_v46  ;;  %v4931_v15 = vadd.f32 %v4868_v44, %v4781_v54 }
0x19b3   :  { %5486 = vmatpush.msrb.mxu3 %v5386_v20  ;;  %5506 = vmatpush.msrb.mxu0 %v5387_v57  ;;  %v4932_v23 = vadd.f32 %v4888_v3, %v4782_v58 }
0x19b4   :  { %5526 = vmatpush.msra.mxu1 %v5388_v33  ;;  %5467 = vmatmul.f32.vlgmr.msra.gmra.mxu2 %v5449_v34 }
0x19b5   :  { %5487 = vmatmul.f32.vlgmr.msrb.gmra.mxu3 %v5449_v34  ;;  %5507 = vmatmul.f32.vlgmr.msrb.gmra.mxu0 %v5449_v34 }
0x19b6   :  { %5527 = vmatmul.f32.vlgmr.msra.gmra.mxu1 %v5449_v34 }
0x19cc   :  { %v5058_v36 = vpop.f32.mrf.mxu0 }
0x19cd   :  { %v5078_v31 = vpop.f32.mrf.mxu1  ;;  %v5083_v55 = vadd.f32 %v5058_v36, %v4933_v38 }
0x19ce   :  { %v5084_v29 = vadd.f32 %v5078_v31, %v4934_v28 }
0x19d1   :  { %v5018_v25 = vpop.f32.mrf.mxu2 }
0x19d2   :  { %v5038_v22 = vpop.f32.mrf.mxu3  ;;  %v5081_v16 = vadd.f32 %v5018_v25, %v4931_v15 }
0x19d3   :  { %v5082_v24 = vadd.f32 %v5038_v22, %v4932_v23 }
0x19ee   :  { %v5208_v7 = vpop.f32.mrf.mxu0 }
0x19ef   :  { %v5228_v30 = vpop.f32.mrf.mxu1  ;;  %v5233_v11 = vadd.f32 %v5208_v7, %v5083_v55 }
0x19f0   :  { %v5234_v59 = vadd.f32 %v5228_v30, %v5084_v29 }
0x19f3   :  { %v5168_v17 = vpop.f32.mrf.mxu2 }
0x19f4   :  { %v5188_v37 = vpop.f32.mrf.mxu3  ;;  %v5231_v51 = vadd.f32 %v5168_v17, %v5081_v16 }
0x19f5   :  { %v5232_v53 = vadd.f32 %v5188_v37, %v5082_v24 }
0x1a10   :  { %v5358_v19 = vpop.f32.mrf.mxu0 }
0x1a11   :  { %v5378_v2 = vpop.f32.mrf.mxu1  ;;  %v5383_v49 = vadd.f32 %v5358_v19, %v5233_v11 }
0x1a12   :  { %v5384_v26 = vadd.f32 %v5378_v2, %v5234_v59 }
0x1a15   :  { %v5318_v39 = vpop.f32.mrf.mxu2 }
0x1a16   :  { %v5338_v43 = vpop.f32.mrf.mxu3  ;;  %v5381_v20 = vadd.f32 %v5318_v39, %v5231_v51 }
0x1a17   :  { %v5382_v57 = vadd.f32 %v5338_v43, %v5232_v53 }
0x1a32   :  { %v5508_v18 = vpop.f32.mrf.mxu0 }
0x1a33   :  { %v5533_v47 = vadd.f32 %v5508_v18, %v5383_v49  ;;  %v5528_v40 = vpop.f32.mrf.mxu1 }
0x1a34   :  { %v5534_v50 = vadd.f32 %v5528_v40, %v5384_v26 }
0x1a35   :  { %v5537_v33 = vadd.f32 %v5533_v47, %v4315_v21 }
0x1a36   :  { %v5538_v34 = vadd.f32 %v5534_v50, %v4316_v5 }
0x1a37   :  { %v5468_v56 = vpop.f32.mrf.mxu2  ;;  %v5544_v27 = vrot.slane %v5537_v33, 6 }
0x1a38   :  { %v5488_v4 = vpop.f32.mrf.mxu3  ;;  %v5531_v1 = vadd.f32 %v5468_v56, %v5381_v20  ;;  %v5545_v60 = vrot.slane %v5538_v34, 5 }
0x1a39   :  { %v5532_v35 = vadd.f32 %v5488_v4, %v5382_v57 }
0x1a3a   :  { %v5535_v21 = vadd.f32 %v5531_v1, %v4313_v52  ;;  %v5547_v5 = vsel %vm4334_vm1, %v5544_v27, %v5545_v60 }
0x1a3b   :  { %v5536_v0 = vadd.f32 %v5532_v35, %v4314_v6 }
0x1a3d   :  { %v5543_v13 = vrot.slane %v5536_v0, 7 }
0x1a3f   :  { %v5546_v63 = vsel %vm4332_vm2, %v5535_v21, %v5543_v13 }
0x1a40   :  { %v5548_v8 = vsel %vm4336_vm3, %v5546_v63, %v5547_v5 }
0x1a41   :  { %5551 = vst.msk [vmem:[#allocation28 + $0x1] ss:$2 sm:$0xf] %vm7173_vm5, %v5548_v8 }
0x1a42   :  { %5562 = dma.vmem_to_hbm [thread:$0]  %s5558_s24, 128, %s5560_s4, [#allocation4]  }
0x1a43   :  { %6236 = dma.done.wait [#allocation4], 128  }
0x1a44   :  { %6237 = vsyncadd [#allocation4], 4294967168 }
0x1a45   :  { %5567 = vsyncpa [#allocation3], 1 }
0x1a46   :  { %5568 = vsyncpa [#allocation6], 1 }
0x1a47   :  { %5569 = vsyncpa [#allocation9], 1 }
0x1a48   :  { %5570 = vsyncpa [#allocation12], 1 }
0x1a49   :  { %5571 = vsyncpa [#allocation15], 1 }
0x1a4a   :  { %5572 = vsyncpa [#allocation18], 1 }
0x1a4b   :  { %5573 = vsyncpa [#allocation21], 1 }
0x1a4c   :  { %5574 = vsyncpa [#allocation24], 1 }
0x1a4d   :  { %5575 = vsyncpa [#allocation27], 1 }
0x1a4e   :  { %5576 = vsyncpa [#allocation4], 1 }

</bundles_post_ra>
